<compile_context>
chip_gen: v5e
topology: v5e:2x2
jax: 0.10.0
libtpu: 0.0.40
codegen_flags: <defaults>
</compile_context>

<pallas_src>
from functools import partial

import jax
import jax.numpy as jnp
from jax.experimental import pallas as pl
from jax.experimental.pallas import tpu as pltpu


# ----------------------------------------------------------------------------
# Pallas kernel
# ----------------------------------------------------------------------------
def _make_decoder_kernel(T: int, B: int, L: int, HP: int):
    """Kernel for fixed seq-len T, batch B, num_layers L, padded hidden HP."""

    def lstm_cell(gates, c_prev):
        # gate blocks at vreg-aligned 128-lane boundaries: [ i | f | g | o ]
        i_g = jax.nn.sigmoid(gates[:, 0 * HP:1 * HP])
        f_g = jax.nn.sigmoid(gates[:, 1 * HP:2 * HP])
        g_g = jnp.tanh(gates[:, 2 * HP:3 * HP])
        o_g = jax.nn.sigmoid(gates[:, 3 * HP:4 * HP])
        c_new = f_g * c_prev + i_g * g_g
        h_new = o_g * jnp.tanh(c_new)
        return h_new, c_new

    def kernel(emb_ref,       # (T*B, E)   time-major embeddings
               feat_ref,      # (B, F)
               wih0_ref,      # (E, 4*HP)  layer-0 input weights (gate-padded)
               whh0_ref,      # (HP, 4*HP) layer-0 recurrent weights
               wih_r_ref,     # (max(L-1,1), HP, 4*HP) input weights layers>0
               whh_r_ref,     # (max(L-1,1), HP, 4*HP) recurrent weights layers>0
               bg_ref,        # (L, 1, 4*HP) combined gate biases (un-broadcast)
               winit_ref,     # (F, 2*L*HP) fused [init_h | init_c] weights
               binit_ref,     # (1, 2*L*HP) fused init biases
               wfc_ref,       # (HP, Vp)   vocab-padded FC weights
               bfc_ref,       # (1, Vp)
               out_ref,       # (T*B, Vp)
               tops_ref):     # (T*B, HP)  VMEM scratch for top-layer h's
        # ---- init hidden / cell of all layers: one fused matmul.
        # Padded lanes of winit/binit are zero -> hc padding is exactly 0.
        hc = (jnp.dot(feat_ref[...], winit_ref[...],
                      preferred_element_type=jnp.float32) + binit_ref[...])
        h = [hc[:, l * HP:(l + 1) * HP] for l in range(L)]
        c = [hc[:, (L + l) * HP:(L + l + 1) * HP] for l in range(L)]

        # ---- batched layer-0 input projection over all timesteps at once.
        x_proj = jnp.dot(emb_ref[...], wih0_ref[...],
                         preferred_element_type=jnp.float32)      # (T*B, 4*HP)

        # ---- hoist all weight loads / bias broadcasts out of the time loop.
        whh0 = whh0_ref[...]
        wih_r_all = wih_r_ref[...]
        whh_r_all = whh_r_ref[...]
        bg_all = bg_ref[...]
        wih_r = [wih_r_all[l] for l in range(L - 1)]
        whh_r = [whh_r_all[l] for l in range(L - 1)]
        bg = [jnp.broadcast_to(bg_all[l], (B, 4 * HP)) for l in range(L)]

        for t in range(T):                                        # unrolled
            # layer 0: precomputed input projection + recurrent matmul
            gates = (x_proj[t * B:(t + 1) * B, :]
                     + jnp.dot(h[0], whh0, preferred_element_type=jnp.float32)
                     + bg[0])
            h[0], c[0] = lstm_cell(gates, c[0])
            x = h[0]
            # layers 1..L-1: two dots, no lane-axis concat
            for l in range(1, L):
                gates = (jnp.dot(x, wih_r[l - 1],
                                 preferred_element_type=jnp.float32)
                         + jnp.dot(h[l], whh_r[l - 1],
                                   preferred_element_type=jnp.float32)
                         + bg[l])
                h[l], c[l] = lstm_cell(gates, c[l])
                x = h[l]
            # sublane-aligned store (B == 8) of this step's top-layer hidden
            tops_ref[t * B:(t + 1) * B, :] = x

        # ---- batched FC head: one (T*B, HP) x (HP, Vp) matmul.
        # h padding lanes are exactly 0 and wfc rows H..HP are 0 -> exact.
        out_ref[...] = (jnp.dot(tops_ref[...], wfc_ref[...],
                                preferred_element_type=jnp.float32)
                        + bfc_ref[...])

    return kernel


# ----------------------------------------------------------------------------
# One-time parameter prepacking (NOT in the per-call path)
# ----------------------------------------------------------------------------
def prepack_decoder_params(params, lane_block: int = 128):
    (emb_table, w_init_h, b_init_h, w_init_c, b_init_c,
     w_ih_list, w_hh_list, b_ih_list, b_hh_list, w_fc, b_fc) = params
    f32 = jnp.float32

    L = len(w_ih_list)
    H = w_hh_list[0].shape[1]
    F = w_init_h.shape[1]
    V = w_fc.shape[0]
    HP = ((H + lane_block - 1) // lane_block) * lane_block
    Vp = ((V + lane_block - 1) // lane_block) * lane_block

    def pad_gate_cols(wt):                     # (rows, 4H) -> (rows, 4*HP)
        rows = wt.shape[0]
        out = jnp.zeros((rows, 4 * HP), f32)
        for g in range(4):                     # torch gate order [i, f, g, o]
            out = out.at[:, g * HP:g * HP + H].set(wt[:, g * H:(g + 1) * H])
        return out

    def pad_rows(w, rows_p):                   # zero-pad leading dim to rows_p
        return jnp.zeros((rows_p, w.shape[1]), f32).at[:w.shape[0], :].set(w)

    # layer 0 weights (x enters unpadded with E features)
    wih0_p = pad_gate_cols(w_ih_list[0].T.astype(f32))                # (E, 4HP)
    whh0_p = pad_rows(pad_gate_cols(w_hh_list[0].T.astype(f32)), HP)  # (HP, 4HP)

    # layers > 0 (their inputs are padded (B, HP) hidden states)
    if L > 1:
        wih_rest = jnp.stack(
            [pad_rows(pad_gate_cols(w_ih_list[l].T.astype(f32)), HP)
             for l in range(1, L)])                                   # (L-1, HP, 4HP)
        whh_rest = jnp.stack(
            [pad_rows(pad_gate_cols(w_hh_list[l].T.astype(f32)), HP)
             for l in range(1, L)])
    else:
        wih_rest = jnp.zeros((1, HP, 4 * HP), f32)                    # unused
        whh_rest = jnp.zeros((1, HP, 4 * HP), f32)

    # combined (b_ih + b_hh) gate biases, gate-block padded, un-broadcast
    bg = jnp.stack(
        [pad_gate_cols((b_ih_list[l] + b_hh_list[l]).astype(f32)[None, :])
         for l in range(L)])                                          # (L, 1, 4HP)

    # init_hidden: torch does reshape(B,H,L).permute(2,0,1) -> layer l's hidden
    # unit j comes from linear-output column j*L + l.  Permute rows so layer-l
    # is contiguous, fuse h|c, and pad each layer block to HP lanes.
    perm = (jnp.arange(L * H) % H) * L + (jnp.arange(L * H) // H)
    wh = w_init_h[perm, :].T.astype(f32)                              # (F, L*H)
    wc = w_init_c[perm, :].T.astype(f32)
    bh = b_init_h[perm].astype(f32)
    bc = b_init_c[perm].astype(f32)
    winit_p = jnp.zeros((F, 2 * L * HP), f32)
    binit_p = jnp.zeros((1, 2 * L * HP), f32)
    for l in range(L):
        winit_p = winit_p.at[:, l * HP:l * HP + H].set(wh[:, l * H:(l + 1) * H])
        winit_p = winit_p.at[:, (L + l) * HP:(L + l) * HP + H].set(
            wc[:, l * H:(l + 1) * H])
        binit_p = binit_p.at[0, l * HP:l * HP + H].set(bh[l * H:(l + 1) * H])
        binit_p = binit_p.at[0, (L + l) * HP:(L + l) * HP + H].set(
            bc[l * H:(l + 1) * H])

    # vocab-padded FC head (lane-dense output), rows padded H -> HP
    wfc_p = jnp.zeros((HP, Vp), f32).at[:H, :V].set(w_fc.T.astype(f32))
    bfc_p = jnp.zeros((1, Vp), f32).at[0, :V].set(b_fc.astype(f32))

    packed = (emb_table.astype(f32), wih0_p, whh0_p, wih_rest, whh_rest,
              bg, winit_p, binit_p, wfc_p, bfc_p)
    return packed, V


# ----------------------------------------------------------------------------
# Per-call forward (jitted): gather -> single pallas_call -> reshape/slice
# ----------------------------------------------------------------------------
@partial(jax.jit, static_argnums=(3,))
def decoder_forward_pallas(packed, features, captions, V):
    (emb_table, wih0_p, whh0_p, wih_rest, whh_rest,
     bg, winit_p, binit_p, wfc_p, bfc_p) = packed

    B, T = captions.shape
    E = emb_table.shape[1]
    L = bg.shape[0]
    HP, Vp = wfc_p.shape
    f32 = jnp.float32

    # Embedding lookup (glue), time-major, flattened to (T*B, E).
    emb = jnp.take(emb_table, captions, axis=0)                   # (B, T, E)
    emb = jnp.transpose(emb, (1, 0, 2)).reshape(T * B, E)

    kernel = _make_decoder_kernel(T, B, L, HP)

    args = (emb, features.astype(f32), wih0_p, whh0_p, wih_rest, whh_rest,
            bg, winit_p, binit_p, wfc_p, bfc_p)

    vmem_spec = pl.BlockSpec(memory_space=pltpu.MemorySpace.VMEM)
    out = pl.pallas_call(
        kernel,
        out_shape=jax.ShapeDtypeStruct((T * B, Vp), f32),
        in_specs=[vmem_spec] * len(args),
        out_specs=vmem_spec,
        scratch_shapes=[pltpu.VMEM((T * B, HP), f32)],
        compiler_params=pltpu.CompilerParams(
            vmem_limit_bytes=32 * 1024 * 1024),
    )(*args)

    # (T*B, Vp) -> (T, B, V): strip vocab padding.
    return out.reshape(T, B, Vp)[:, :, :V]


# ----------------------------------------------------------------------------
# Pure-JAX reference (mirrors the PyTorch forward exactly)
# ----------------------------------------------------------------------------
def decoder_forward_ref(params, features, captions):
    (emb_table, w_init_h, b_init_h, w_init_c, b_init_c,
     w_ih_list, w_hh_list, b_ih_list, b_hh_list, w_fc, b_fc) = params
    B, T = captions.shape
    L = len(w_ih_list)
    H = w_hh_list[0].shape[1]

    h = (features @ w_init_h.T + b_init_h).reshape(B, H, L).transpose(2, 0, 1)
    c = (features @ w_init_c.T + b_init_c).reshape(B, H, L).transpose(2, 0, 1)
    emb = emb_table[captions]                                     # (B, T, E)

    outs = []
    for t in range(T):
        x = emb[:, t, :]
        new_h, new_c = [], []
        for l in range(L):
            gates = (x @ w_ih_list[l].T + b_ih_list[l]
                     + h[l] @ w_hh_list[l].T + b_hh_list[l])
            i = jax.nn.sigmoid(gates[:, 0 * H:1 * H])
            f = jax.nn.sigmoid(gates[:, 1 * H:2 * H])
            g = jnp.tanh(gates[:, 2 * H:3 * H])
            o = jax.nn.sigmoid(gates[:, 3 * H:4 * H])
            cl = f * c[l] + i * g
            hl = o * jnp.tanh(cl)
            new_h.append(hl); new_c.append(cl)
            x = hl
        h = jnp.stack(new_h); c = jnp.stack(new_c)
        outs.append(x @ w_fc.T + b_fc)
    return jnp.stack(outs, axis=0)                                # (T, B, V)


# ----------------------------------------------------------------------------
# Main
# ----------------------------------------------------------------------------
if __name__ == "__main__":
    # Small config consistent with the module.
    B, T = 8, 8            # batch, caption length
    E = 32                 # embed_dim
    H = 32                 # hidden_size
    L = 2                  # num_layers
    F = 64                 # feature_dim
    V = 40                 # vocab_size = len(tokenizer.word_index)
    PAD = 0                # tokenizer.word_index['<PAD>']

    key = jax.random.PRNGKey(0)
    ks = jax.random.split(key, 16)
    s = 0.1

    emb_table = s * jax.random.normal(ks[0], (V, E), jnp.float32)
    emb_table = emb_table.at[PAD].set(0.0)   # padding_idx row zeroed

    w_init_h = s * jax.random.normal(ks[1], (H * L, F), jnp.float32)
    b_init_h = s * jax.random.normal(ks[2], (H * L,), jnp.float32)
    w_init_c = s * jax.random.normal(ks[3], (H * L, F), jnp.float32)
    b_init_c = s * jax.random.normal(ks[4], (H * L,), jnp.float32)

    w_ih_list, w_hh_list, b_ih_list, b_hh_list = [], [], [], []
    kidx = 5
    for l in range(L):
        in_dim = E if l == 0 else H
        w_ih_list.append(s * jax.random.normal(ks[kidx], (4 * H, in_dim), jnp.float32)); kidx += 1
        w_hh_list.append(s * jax.random.normal(ks[kidx], (4 * H, H), jnp.float32)); kidx += 1
        b_ih_list.append(s * jax.random.normal(ks[kidx], (4 * H,), jnp.float32)); kidx += 1
        b_hh_list.append(s * jax.random.normal(ks[kidx], (4 * H,), jnp.float32)); kidx += 1

    w_fc = s * jax.random.normal(ks[kidx], (V, H), jnp.float32); kidx += 1
    b_fc = s * jax.random.normal(ks[kidx], (V,), jnp.float32)

    params = (emb_table, w_init_h, b_init_h, w_init_c, b_init_c,
              w_ih_list, w_hh_list, b_ih_list, b_hh_list, w_fc, b_fc)

    features = jax.random.normal(jax.random.PRNGKey(1), (B, F), jnp.float32)
    captions = jax.random.randint(jax.random.PRNGKey(2), (B, T), 0, V, jnp.int32)

    # One-time prepacking at "param load" time; per-call path is just the
    # jitted gather + single pallas_call.
    packed, vocab = prepack_decoder_params(params)
    packed = jax.block_until_ready(packed)

    out = decoder_forward_pallas(packed, features, captions, vocab)
    out = jax.block_until_ready(out)

    ref = decoder_forward_ref(params, features, captions)
    assert out.shape == (T, B, V), out.shape
    assert jnp.allclose(out, ref, atol=1e-4, rtol=1e-4), float(jnp.max(jnp.abs(out - ref)))

    print("KERNEL_OK")
</pallas_src>

<mosaic_0001>
module attributes {stable_mosaic.version = 11 : i64} {
  func.func @kernel(%arg0: memref<64x32xf32, #tpu.memory_space<vmem>>, %arg1: memref<8x64xf32, #tpu.memory_space<vmem>>, %arg2: memref<32x512xf32, #tpu.memory_space<vmem>>, %arg3: memref<128x512xf32, #tpu.memory_space<vmem>>, %arg4: memref<1x128x512xf32, #tpu.memory_space<vmem>>, %arg5: memref<1x128x512xf32, #tpu.memory_space<vmem>>, %arg6: memref<2x1x512xf32, #tpu.memory_space<vmem>>, %arg7: memref<64x512xf32, #tpu.memory_space<vmem>>, %arg8: memref<1x512xf32, #tpu.memory_space<vmem>>, %arg9: memref<128x128xf32, #tpu.memory_space<vmem>>, %arg10: memref<1x128xf32, #tpu.memory_space<vmem>>, %arg11: memref<64x128xf32, #tpu.memory_space<vmem>>, %arg12: memref<64x128xf32, #tpu.memory_space<vmem>>) attributes {dimension_semantics = [], scalar_prefetch = 0 : i64, scratch_operands = 1 : i64, tpu.core_type = #tpu.core_type<tc>} {
    %c0 = arith.constant 0 : index
    %c0_0 = arith.constant 0 : index
    %0 = vector.load %arg1[%c0, %c0_0] : memref<8x64xf32, #tpu.memory_space<vmem>>, vector<8x64xf32>
    %c0_1 = arith.constant 0 : index
    %c0_2 = arith.constant 0 : index
    %1 = vector.load %arg7[%c0_1, %c0_2] : memref<64x512xf32, #tpu.memory_space<vmem>>, vector<64x512xf32>
    %cst = arith.constant dense<0.000000e+00> : vector<8x512xf32>
    %2 = tpu.matmul %0, %1, %cst {dimension_numbers = #tpu.dot_dimension_numbers<[1], [0], [0], [1], [0, 0, 1, 1], [], []>} : vector<8x64xf32>, vector<64x512xf32>, vector<8x512xf32> -> vector<8x512xf32>
    %c0_3 = arith.constant 0 : index
    %c0_4 = arith.constant 0 : index
    %3 = vector.load %arg8[%c0_3, %c0_4] : memref<1x512xf32, #tpu.memory_space<vmem>>, vector<1x512xf32>
    %4 = vector.broadcast %3 : vector<1x512xf32> to vector<8x512xf32>
    %5 = arith.addf %2, %4 : vector<8x512xf32>
    %6 = vector.extract_strided_slice %5 {offsets = [0, 0], sizes = [8, 128], strides = [1, 1]} : vector<8x512xf32> to vector<8x128xf32>
    %7 = vector.extract_strided_slice %5 {offsets = [0, 128], sizes = [8, 128], strides = [1, 1]} : vector<8x512xf32> to vector<8x128xf32>
    %8 = vector.extract_strided_slice %5 {offsets = [0, 256], sizes = [8, 128], strides = [1, 1]} : vector<8x512xf32> to vector<8x128xf32>
    %9 = vector.extract_strided_slice %5 {offsets = [0, 384], sizes = [8, 128], strides = [1, 1]} : vector<8x512xf32> to vector<8x128xf32>
    %c0_5 = arith.constant 0 : index
    %c0_6 = arith.constant 0 : index
    %10 = vector.load %arg0[%c0_5, %c0_6] : memref<64x32xf32, #tpu.memory_space<vmem>>, vector<64x32xf32>
    %c0_7 = arith.constant 0 : index
    %c0_8 = arith.constant 0 : index
    %11 = vector.load %arg2[%c0_7, %c0_8] : memref<32x512xf32, #tpu.memory_space<vmem>>, vector<32x512xf32>
    %cst_9 = arith.constant dense<0.000000e+00> : vector<64x512xf32>
    %12 = tpu.matmul %10, %11, %cst_9 {dimension_numbers = #tpu.dot_dimension_numbers<[1], [0], [0], [1], [0, 0, 1, 1], [], []>} : vector<64x32xf32>, vector<32x512xf32>, vector<64x512xf32> -> vector<64x512xf32>
    %c0_10 = arith.constant 0 : index
    %c0_11 = arith.constant 0 : index
    %13 = vector.load %arg3[%c0_10, %c0_11] : memref<128x512xf32, #tpu.memory_space<vmem>>, vector<128x512xf32>
    %c0_12 = arith.constant 0 : index
    %c0_13 = arith.constant 0 : index
    %c0_14 = arith.constant 0 : index
    %14 = vector.load %arg4[%c0_12, %c0_13, %c0_14] : memref<1x128x512xf32, #tpu.memory_space<vmem>>, vector<1x128x512xf32>
    %c0_15 = arith.constant 0 : index
    %c0_16 = arith.constant 0 : index
    %c0_17 = arith.constant 0 : index
    %15 = vector.load %arg5[%c0_15, %c0_16, %c0_17] : memref<1x128x512xf32, #tpu.memory_space<vmem>>, vector<1x128x512xf32>
    %c0_18 = arith.constant 0 : index
    %c0_19 = arith.constant 0 : index
    %c0_20 = arith.constant 0 : index
    %16 = vector.load %arg6[%c0_18, %c0_19, %c0_20] : memref<2x1x512xf32, #tpu.memory_space<vmem>>, vector<2x1x512xf32>
    %17 = vector.shape_cast %14 : vector<1x128x512xf32> to vector<128x512xf32>
    %18 = vector.shape_cast %15 : vector<1x128x512xf32> to vector<128x512xf32>
    %19 = vector.extract_strided_slice %16 {offsets = [0, 0, 0], sizes = [1, 1, 512], strides = [1, 1, 1]} : vector<2x1x512xf32> to vector<1x1x512xf32>
    %20 = vector.shape_cast %19 : vector<1x1x512xf32> to vector<1x512xf32>
    %21 = vector.shape_cast %20 : vector<1x512xf32> to vector<1x512xf32>
    %22 = vector.broadcast %21 : vector<1x512xf32> to vector<8x512xf32>
    %23 = vector.extract_strided_slice %16 {offsets = [1, 0, 0], sizes = [1, 1, 512], strides = [1, 1, 1]} : vector<2x1x512xf32> to vector<1x1x512xf32>
    %24 = vector.shape_cast %23 : vector<1x1x512xf32> to vector<1x512xf32>
    %25 = vector.shape_cast %24 : vector<1x512xf32> to vector<1x512xf32>
    %26 = vector.broadcast %25 : vector<1x512xf32> to vector<8x512xf32>
    %27 = vector.extract_strided_slice %12 {offsets = [0, 0], sizes = [8, 512], strides = [1, 1]} : vector<64x512xf32> to vector<8x512xf32>
    %cst_21 = arith.constant dense<0.000000e+00> : vector<8x512xf32>
    %28 = tpu.matmul %6, %13, %cst_21 {dimension_numbers = #tpu.dot_dimension_numbers<[1], [0], [0], [1], [0, 0, 1, 1], [], []>} : vector<8x128xf32>, vector<128x512xf32>, vector<8x512xf32> -> vector<8x512xf32>
    %29 = arith.addf %27, %28 : vector<8x512xf32>
    %30 = arith.addf %29, %22 : vector<8x512xf32>
    %31 = vector.extract_strided_slice %30 {offsets = [0, 0], sizes = [8, 128], strides = [1, 1]} : vector<8x512xf32> to vector<8x128xf32>
    %32 = arith.negf %31 : vector<8x128xf32>
    %33 = math.exp %32 : vector<8x128xf32>
    %cst_22 = arith.constant 1.000000e+00 : f32
    %34 = vector.broadcast %cst_22 : f32 to vector<8x128xf32>
    %35 = arith.addf %34, %33 : vector<8x128xf32>
    %36 = arith.divf %34, %35 : vector<8x128xf32>
    %37 = vector.extract_strided_slice %30 {offsets = [0, 128], sizes = [8, 128], strides = [1, 1]} : vector<8x512xf32> to vector<8x128xf32>
    %38 = arith.negf %37 : vector<8x128xf32>
    %39 = math.exp %38 : vector<8x128xf32>
    %cst_23 = arith.constant 1.000000e+00 : f32
    %40 = vector.broadcast %cst_23 : f32 to vector<8x128xf32>
    %41 = arith.addf %40, %39 : vector<8x128xf32>
    %42 = arith.divf %40, %41 : vector<8x128xf32>
    %43 = vector.extract_strided_slice %30 {offsets = [0, 256], sizes = [8, 128], strides = [1, 1]} : vector<8x512xf32> to vector<8x128xf32>
    %44 = math.tanh %43 : vector<8x128xf32>
    %45 = vector.extract_strided_slice %30 {offsets = [0, 384], sizes = [8, 128], strides = [1, 1]} : vector<8x512xf32> to vector<8x128xf32>
    %46 = arith.negf %45 : vector<8x128xf32>
    %47 = math.exp %46 : vector<8x128xf32>
    %cst_24 = arith.constant 1.000000e+00 : f32
    %48 = vector.broadcast %cst_24 : f32 to vector<8x128xf32>
    %49 = arith.addf %48, %47 : vector<8x128xf32>
    %50 = arith.divf %48, %49 : vector<8x128xf32>
    %51 = arith.mulf %42, %8 : vector<8x128xf32>
    %52 = arith.mulf %36, %44 : vector<8x128xf32>
    %53 = arith.addf %51, %52 : vector<8x128xf32>
    %54 = math.tanh %53 : vector<8x128xf32>
    %55 = arith.mulf %50, %54 : vector<8x128xf32>
    %cst_25 = arith.constant dense<0.000000e+00> : vector<8x512xf32>
    %56 = tpu.matmul %55, %17, %cst_25 {dimension_numbers = #tpu.dot_dimension_numbers<[1], [0], [0], [1], [0, 0, 1, 1], [], []>} : vector<8x128xf32>, vector<128x512xf32>, vector<8x512xf32> -> vector<8x512xf32>
    %cst_26 = arith.constant dense<0.000000e+00> : vector<8x512xf32>
    %57 = tpu.matmul %7, %18, %cst_26 {dimension_numbers = #tpu.dot_dimension_numbers<[1], [0], [0], [1], [0, 0, 1, 1], [], []>} : vector<8x128xf32>, vector<128x512xf32>, vector<8x512xf32> -> vector<8x512xf32>
    %58 = arith.addf %56, %57 : vector<8x512xf32>
    %59 = arith.addf %58, %26 : vector<8x512xf32>
    %60 = vector.extract_strided_slice %59 {offsets = [0, 0], sizes = [8, 128], strides = [1, 1]} : vector<8x512xf32> to vector<8x128xf32>
    %61 = arith.negf %60 : vector<8x128xf32>
    %62 = math.exp %61 : vector<8x128xf32>
    %cst_27 = arith.constant 1.000000e+00 : f32
    %63 = vector.broadcast %cst_27 : f32 to vector<8x128xf32>
    %64 = arith.addf %63, %62 : vector<8x128xf32>
    %65 = arith.divf %63, %64 : vector<8x128xf32>
    %66 = vector.extract_strided_slice %59 {offsets = [0, 128], sizes = [8, 128], strides = [1, 1]} : vector<8x512xf32> to vector<8x128xf32>
    %67 = arith.negf %66 : vector<8x128xf32>
    %68 = math.exp %67 : vector<8x128xf32>
    %cst_28 = arith.constant 1.000000e+00 : f32
    %69 = vector.broadcast %cst_28 : f32 to vector<8x128xf32>
    %70 = arith.addf %69, %68 : vector<8x128xf32>
    %71 = arith.divf %69, %70 : vector<8x128xf32>
    %72 = vector.extract_strided_slice %59 {offsets = [0, 256], sizes = [8, 128], strides = [1, 1]} : vector<8x512xf32> to vector<8x128xf32>
    %73 = math.tanh %72 : vector<8x128xf32>
    %74 = vector.extract_strided_slice %59 {offsets = [0, 384], sizes = [8, 128], strides = [1, 1]} : vector<8x512xf32> to vector<8x128xf32>
    %75 = arith.negf %74 : vector<8x128xf32>
    %76 = math.exp %75 : vector<8x128xf32>
    %cst_29 = arith.constant 1.000000e+00 : f32
    %77 = vector.broadcast %cst_29 : f32 to vector<8x128xf32>
    %78 = arith.addf %77, %76 : vector<8x128xf32>
    %79 = arith.divf %77, %78 : vector<8x128xf32>
    %80 = arith.mulf %71, %9 : vector<8x128xf32>
    %81 = arith.mulf %65, %73 : vector<8x128xf32>
    %82 = arith.addf %80, %81 : vector<8x128xf32>
    %83 = math.tanh %82 : vector<8x128xf32>
    %84 = arith.mulf %79, %83 : vector<8x128xf32>
    %c0_30 = arith.constant 0 : index
    %c0_31 = arith.constant 0 : index
    %85 = vector.load %arg12[%c0_30, %c0_31] : memref<64x128xf32, #tpu.memory_space<vmem>>, vector<8x128xf32>
    tpu.vector_store %arg12[%c0_30, %c0_31], %84 {strides = array<i32>} : memref<64x128xf32, #tpu.memory_space<vmem>>, vector<8x128xf32>,
    %86 = vector.extract_strided_slice %12 {offsets = [8, 0], sizes = [8, 512], strides = [1, 1]} : vector<64x512xf32> to vector<8x512xf32>
    %cst_32 = arith.constant dense<0.000000e+00> : vector<8x512xf32>
    %87 = tpu.matmul %55, %13, %cst_32 {dimension_numbers = #tpu.dot_dimension_numbers<[1], [0], [0], [1], [0, 0, 1, 1], [], []>} : vector<8x128xf32>, vector<128x512xf32>, vector<8x512xf32> -> vector<8x512xf32>
    %88 = arith.addf %86, %87 : vector<8x512xf32>
    %89 = arith.addf %88, %22 : vector<8x512xf32>
    %90 = vector.extract_strided_slice %89 {offsets = [0, 0], sizes = [8, 128], strides = [1, 1]} : vector<8x512xf32> to vector<8x128xf32>
    %91 = arith.negf %90 : vector<8x128xf32>
    %92 = math.exp %91 : vector<8x128xf32>
    %cst_33 = arith.constant 1.000000e+00 : f32
    %93 = vector.broadcast %cst_33 : f32 to vector<8x128xf32>
    %94 = arith.addf %93, %92 : vector<8x128xf32>
    %95 = arith.divf %93, %94 : vector<8x128xf32>
    %96 = vector.extract_strided_slice %89 {offsets = [0, 128], sizes = [8, 128], strides = [1, 1]} : vector<8x512xf32> to vector<8x128xf32>
    %97 = arith.negf %96 : vector<8x128xf32>
    %98 = math.exp %97 : vector<8x128xf32>
    %cst_34 = arith.constant 1.000000e+00 : f32
    %99 = vector.broadcast %cst_34 : f32 to vector<8x128xf32>
    %100 = arith.addf %99, %98 : vector<8x128xf32>
    %101 = arith.divf %99, %100 : vector<8x128xf32>
    %102 = vector.extract_strided_slice %89 {offsets = [0, 256], sizes = [8, 128], strides = [1, 1]} : vector<8x512xf32> to vector<8x128xf32>
    %103 = math.tanh %102 : vector<8x128xf32>
    %104 = vector.extract_strided_slice %89 {offsets = [0, 384], sizes = [8, 128], strides = [1, 1]} : vector<8x512xf32> to vector<8x128xf32>
    %105 = arith.negf %104 : vector<8x128xf32>
    %106 = math.exp %105 : vector<8x128xf32>
    %cst_35 = arith.constant 1.000000e+00 : f32
    %107 = vector.broadcast %cst_35 : f32 to vector<8x128xf32>
    %108 = arith.addf %107, %106 : vector<8x128xf32>
    %109 = arith.divf %107, %108 : vector<8x128xf32>
    %110 = arith.mulf %101, %53 : vector<8x128xf32>
    %111 = arith.mulf %95, %103 : vector<8x128xf32>
    %112 = arith.addf %110, %111 : vector<8x128xf32>
    %113 = math.tanh %112 : vector<8x128xf32>
    %114 = arith.mulf %109, %113 : vector<8x128xf32>
    %cst_36 = arith.constant dense<0.000000e+00> : vector<8x512xf32>
    %115 = tpu.matmul %114, %17, %cst_36 {dimension_numbers = #tpu.dot_dimension_numbers<[1], [0], [0], [1], [0, 0, 1, 1], [], []>} : vector<8x128xf32>, vector<128x512xf32>, vector<8x512xf32> -> vector<8x512xf32>
    %cst_37 = arith.constant dense<0.000000e+00> : vector<8x512xf32>
    %116 = tpu.matmul %84, %18, %cst_37 {dimension_numbers = #tpu.dot_dimension_numbers<[1], [0], [0], [1], [0, 0, 1, 1], [], []>} : vector<8x128xf32>, vector<128x512xf32>, vector<8x512xf32> -> vector<8x512xf32>
    %117 = arith.addf %115, %116 : vector<8x512xf32>
    %118 = arith.addf %117, %26 : vector<8x512xf32>
    %119 = vector.extract_strided_slice %118 {offsets = [0, 0], sizes = [8, 128], strides = [1, 1]} : vector<8x512xf32> to vector<8x128xf32>
    %120 = arith.negf %119 : vector<8x128xf32>
    %121 = math.exp %120 : vector<8x128xf32>
    %cst_38 = arith.constant 1.000000e+00 : f32
    %122 = vector.broadcast %cst_38 : f32 to vector<8x128xf32>
    %123 = arith.addf %122, %121 : vector<8x128xf32>
    %124 = arith.divf %122, %123 : vector<8x128xf32>
    %125 = vector.extract_strided_slice %118 {offsets = [0, 128], sizes = [8, 128], strides = [1, 1]} : vector<8x512xf32> to vector<8x128xf32>
    %126 = arith.negf %125 : vector<8x128xf32>
    %127 = math.exp %126 : vector<8x128xf32>
    %cst_39 = arith.constant 1.000000e+00 : f32
    %128 = vector.broadcast %cst_39 : f32 to vector<8x128xf32>
    %129 = arith.addf %128, %127 : vector<8x128xf32>
    %130 = arith.divf %128, %129 : vector<8x128xf32>
    %131 = vector.extract_strided_slice %118 {offsets = [0, 256], sizes = [8, 128], strides = [1, 1]} : vector<8x512xf32> to vector<8x128xf32>
    %132 = math.tanh %131 : vector<8x128xf32>
    %133 = vector.extract_strided_slice %118 {offsets = [0, 384], sizes = [8, 128], strides = [1, 1]} : vector<8x512xf32> to vector<8x128xf32>
    %134 = arith.negf %133 : vector<8x128xf32>
    %135 = math.exp %134 : vector<8x128xf32>
    %cst_40 = arith.constant 1.000000e+00 : f32
    %136 = vector.broadcast %cst_40 : f32 to vector<8x128xf32>
    %137 = arith.addf %136, %135 : vector<8x128xf32>
    %138 = arith.divf %136, %137 : vector<8x128xf32>
    %139 = arith.mulf %130, %82 : vector<8x128xf32>
    %140 = arith.mulf %124, %132 : vector<8x128xf32>
    %141 = arith.addf %139, %140 : vector<8x128xf32>
    %142 = math.tanh %141 : vector<8x128xf32>
    %143 = arith.mulf %138, %142 : vector<8x128xf32>
    %c8 = arith.constant 8 : index
    %c0_41 = arith.constant 0 : index
    %144 = vector.load %arg12[%c8, %c0_41] : memref<64x128xf32, #tpu.memory_space<vmem>>, vector<8x128xf32>
    tpu.vector_store %arg12[%c8, %c0_41], %143 {strides = array<i32>} : memref<64x128xf32, #tpu.memory_space<vmem>>, vector<8x128xf32>,
    %145 = vector.extract_strided_slice %12 {offsets = [16, 0], sizes = [8, 512], strides = [1, 1]} : vector<64x512xf32> to vector<8x512xf32>
    %cst_42 = arith.constant dense<0.000000e+00> : vector<8x512xf32>
    %146 = tpu.matmul %114, %13, %cst_42 {dimension_numbers = #tpu.dot_dimension_numbers<[1], [0], [0], [1], [0, 0, 1, 1], [], []>} : vector<8x128xf32>, vector<128x512xf32>, vector<8x512xf32> -> vector<8x512xf32>
    %147 = arith.addf %145, %146 : vector<8x512xf32>
    %148 = arith.addf %147, %22 : vector<8x512xf32>
    %149 = vector.extract_strided_slice %148 {offsets = [0, 0], sizes = [8, 128], strides = [1, 1]} : vector<8x512xf32> to vector<8x128xf32>
    %150 = arith.negf %149 : vector<8x128xf32>
    %151 = math.exp %150 : vector<8x128xf32>
    %cst_43 = arith.constant 1.000000e+00 : f32
    %152 = vector.broadcast %cst_43 : f32 to vector<8x128xf32>
    %153 = arith.addf %152, %151 : vector<8x128xf32>
    %154 = arith.divf %152, %153 : vector<8x128xf32>
    %155 = vector.extract_strided_slice %148 {offsets = [0, 128], sizes = [8, 128], strides = [1, 1]} : vector<8x512xf32> to vector<8x128xf32>
    %156 = arith.negf %155 : vector<8x128xf32>
    %157 = math.exp %156 : vector<8x128xf32>
    %cst_44 = arith.constant 1.000000e+00 : f32
    %158 = vector.broadcast %cst_44 : f32 to vector<8x128xf32>
    %159 = arith.addf %158, %157 : vector<8x128xf32>
    %160 = arith.divf %158, %159 : vector<8x128xf32>
    %161 = vector.extract_strided_slice %148 {offsets = [0, 256], sizes = [8, 128], strides = [1, 1]} : vector<8x512xf32> to vector<8x128xf32>
    %162 = math.tanh %161 : vector<8x128xf32>
    %163 = vector.extract_strided_slice %148 {offsets = [0, 384], sizes = [8, 128], strides = [1, 1]} : vector<8x512xf32> to vector<8x128xf32>
    %164 = arith.negf %163 : vector<8x128xf32>
    %165 = math.exp %164 : vector<8x128xf32>
    %cst_45 = arith.constant 1.000000e+00 : f32
    %166 = vector.broadcast %cst_45 : f32 to vector<8x128xf32>
    %167 = arith.addf %166, %165 : vector<8x128xf32>
    %168 = arith.divf %166, %167 : vector<8x128xf32>
    %169 = arith.mulf %160, %112 : vector<8x128xf32>
    %170 = arith.mulf %154, %162 : vector<8x128xf32>
    %171 = arith.addf %169, %170 : vector<8x128xf32>
    %172 = math.tanh %171 : vector<8x128xf32>
    %173 = arith.mulf %168, %172 : vector<8x128xf32>
    %cst_46 = arith.constant dense<0.000000e+00> : vector<8x512xf32>
    %174 = tpu.matmul %173, %17, %cst_46 {dimension_numbers = #tpu.dot_dimension_numbers<[1], [0], [0], [1], [0, 0, 1, 1], [], []>} : vector<8x128xf32>, vector<128x512xf32>, vector<8x512xf32> -> vector<8x512xf32>
    %cst_47 = arith.constant dense<0.000000e+00> : vector<8x512xf32>
    %175 = tpu.matmul %143, %18, %cst_47 {dimension_numbers = #tpu.dot_dimension_numbers<[1], [0], [0], [1], [0, 0, 1, 1], [], []>} : vector<8x128xf32>, vector<128x512xf32>, vector<8x512xf32> -> vector<8x512xf32>
    %176 = arith.addf %174, %175 : vector<8x512xf32>
    %177 = arith.addf %176, %26 : vector<8x512xf32>
    %178 = vector.extract_strided_slice %177 {offsets = [0, 0], sizes = [8, 128], strides = [1, 1]} : vector<8x512xf32> to vector<8x128xf32>
    %179 = arith.negf %178 : vector<8x128xf32>
    %180 = math.exp %179 : vector<8x128xf32>
    %cst_48 = arith.constant 1.000000e+00 : f32
    %181 = vector.broadcast %cst_48 : f32 to vector<8x128xf32>
    %182 = arith.addf %181, %180 : vector<8x128xf32>
    %183 = arith.divf %181, %182 : vector<8x128xf32>
    %184 = vector.extract_strided_slice %177 {offsets = [0, 128], sizes = [8, 128], strides = [1, 1]} : vector<8x512xf32> to vector<8x128xf32>
    %185 = arith.negf %184 : vector<8x128xf32>
    %186 = math.exp %185 : vector<8x128xf32>
    %cst_49 = arith.constant 1.000000e+00 : f32
    %187 = vector.broadcast %cst_49 : f32 to vector<8x128xf32>
    %188 = arith.addf %187, %186 : vector<8x128xf32>
    %189 = arith.divf %187, %188 : vector<8x128xf32>
    %190 = vector.extract_strided_slice %177 {offsets = [0, 256], sizes = [8, 128], strides = [1, 1]} : vector<8x512xf32> to vector<8x128xf32>
    %191 = math.tanh %190 : vector<8x128xf32>
    %192 = vector.extract_strided_slice %177 {offsets = [0, 384], sizes = [8, 128], strides = [1, 1]} : vector<8x512xf32> to vector<8x128xf32>
    %193 = arith.negf %192 : vector<8x128xf32>
    %194 = math.exp %193 : vector<8x128xf32>
    %cst_50 = arith.constant 1.000000e+00 : f32
    %195 = vector.broadcast %cst_50 : f32 to vector<8x128xf32>
    %196 = arith.addf %195, %194 : vector<8x128xf32>
    %197 = arith.divf %195, %196 : vector<8x128xf32>
    %198 = arith.mulf %189, %141 : vector<8x128xf32>
    %199 = arith.mulf %183, %191 : vector<8x128xf32>
    %200 = arith.addf %198, %199 : vector<8x128xf32>
    %201 = math.tanh %200 : vector<8x128xf32>
    %202 = arith.mulf %197, %201 : vector<8x128xf32>
    %c16 = arith.constant 16 : index
    %c0_51 = arith.constant 0 : index
    %203 = vector.load %arg12[%c16, %c0_51] : memref<64x128xf32, #tpu.memory_space<vmem>>, vector<8x128xf32>
    tpu.vector_store %arg12[%c16, %c0_51], %202 {strides = array<i32>} : memref<64x128xf32, #tpu.memory_space<vmem>>, vector<8x128xf32>,
    %204 = vector.extract_strided_slice %12 {offsets = [24, 0], sizes = [8, 512], strides = [1, 1]} : vector<64x512xf32> to vector<8x512xf32>
    %cst_52 = arith.constant dense<0.000000e+00> : vector<8x512xf32>
    %205 = tpu.matmul %173, %13, %cst_52 {dimension_numbers = #tpu.dot_dimension_numbers<[1], [0], [0], [1], [0, 0, 1, 1], [], []>} : vector<8x128xf32>, vector<128x512xf32>, vector<8x512xf32> -> vector<8x512xf32>
    %206 = arith.addf %204, %205 : vector<8x512xf32>
    %207 = arith.addf %206, %22 : vector<8x512xf32>
    %208 = vector.extract_strided_slice %207 {offsets = [0, 0], sizes = [8, 128], strides = [1, 1]} : vector<8x512xf32> to vector<8x128xf32>
    %209 = arith.negf %208 : vector<8x128xf32>
    %210 = math.exp %209 : vector<8x128xf32>
    %cst_53 = arith.constant 1.000000e+00 : f32
    %211 = vector.broadcast %cst_53 : f32 to vector<8x128xf32>
    %212 = arith.addf %211, %210 : vector<8x128xf32>
    %213 = arith.divf %211, %212 : vector<8x128xf32>
    %214 = vector.extract_strided_slice %207 {offsets = [0, 128], sizes = [8, 128], strides = [1, 1]} : vector<8x512xf32> to vector<8x128xf32>
    %215 = arith.negf %214 : vector<8x128xf32>
    %216 = math.exp %215 : vector<8x128xf32>
    %cst_54 = arith.constant 1.000000e+00 : f32
    %217 = vector.broadcast %cst_54 : f32 to vector<8x128xf32>
    %218 = arith.addf %217, %216 : vector<8x128xf32>
    %219 = arith.divf %217, %218 : vector<8x128xf32>
    %220 = vector.extract_strided_slice %207 {offsets = [0, 256], sizes = [8, 128], strides = [1, 1]} : vector<8x512xf32> to vector<8x128xf32>
    %221 = math.tanh %220 : vector<8x128xf32>
    %222 = vector.extract_strided_slice %207 {offsets = [0, 384], sizes = [8, 128], strides = [1, 1]} : vector<8x512xf32> to vector<8x128xf32>
    %223 = arith.negf %222 : vector<8x128xf32>
    %224 = math.exp %223 : vector<8x128xf32>
    %cst_55 = arith.constant 1.000000e+00 : f32
    %225 = vector.broadcast %cst_55 : f32 to vector<8x128xf32>
    %226 = arith.addf %225, %224 : vector<8x128xf32>
    %227 = arith.divf %225, %226 : vector<8x128xf32>
    %228 = arith.mulf %219, %171 : vector<8x128xf32>
    %229 = arith.mulf %213, %221 : vector<8x128xf32>
    %230 = arith.addf %228, %229 : vector<8x128xf32>
    %231 = math.tanh %230 : vector<8x128xf32>
    %232 = arith.mulf %227, %231 : vector<8x128xf32>
    %cst_56 = arith.constant dense<0.000000e+00> : vector<8x512xf32>
    %233 = tpu.matmul %232, %17, %cst_56 {dimension_numbers = #tpu.dot_dimension_numbers<[1], [0], [0], [1], [0, 0, 1, 1], [], []>} : vector<8x128xf32>, vector<128x512xf32>, vector<8x512xf32> -> vector<8x512xf32>
    %cst_57 = arith.constant dense<0.000000e+00> : vector<8x512xf32>
    %234 = tpu.matmul %202, %18, %cst_57 {dimension_numbers = #tpu.dot_dimension_numbers<[1], [0], [0], [1], [0, 0, 1, 1], [], []>} : vector<8x128xf32>, vector<128x512xf32>, vector<8x512xf32> -> vector<8x512xf32>
    %235 = arith.addf %233, %234 : vector<8x512xf32>
    %236 = arith.addf %235, %26 : vector<8x512xf32>
    %237 = vector.extract_strided_slice %236 {offsets = [0, 0], sizes = [8, 128], strides = [1, 1]} : vector<8x512xf32> to vector<8x128xf32>
    %238 = arith.negf %237 : vector<8x128xf32>
    %239 = math.exp %238 : vector<8x128xf32>
    %cst_58 = arith.constant 1.000000e+00 : f32
    %240 = vector.broadcast %cst_58 : f32 to vector<8x128xf32>
    %241 = arith.addf %240, %239 : vector<8x128xf32>
    %242 = arith.divf %240, %241 : vector<8x128xf32>
    %243 = vector.extract_strided_slice %236 {offsets = [0, 128], sizes = [8, 128], strides = [1, 1]} : vector<8x512xf32> to vector<8x128xf32>
    %244 = arith.negf %243 : vector<8x128xf32>
    %245 = math.exp %244 : vector<8x128xf32>
    %cst_59 = arith.constant 1.000000e+00 : f32
    %246 = vector.broadcast %cst_59 : f32 to vector<8x128xf32>
    %247 = arith.addf %246, %245 : vector<8x128xf32>
    %248 = arith.divf %246, %247 : vector<8x128xf32>
    %249 = vector.extract_strided_slice %236 {offsets = [0, 256], sizes = [8, 128], strides = [1, 1]} : vector<8x512xf32> to vector<8x128xf32>
    %250 = math.tanh %249 : vector<8x128xf32>
    %251 = vector.extract_strided_slice %236 {offsets = [0, 384], sizes = [8, 128], strides = [1, 1]} : vector<8x512xf32> to vector<8x128xf32>
    %252 = arith.negf %251 : vector<8x128xf32>
    %253 = math.exp %252 : vector<8x128xf32>
    %cst_60 = arith.constant 1.000000e+00 : f32
    %254 = vector.broadcast %cst_60 : f32 to vector<8x128xf32>
    %255 = arith.addf %254, %253 : vector<8x128xf32>
    %256 = arith.divf %254, %255 : vector<8x128xf32>
    %257 = arith.mulf %248, %200 : vector<8x128xf32>
    %258 = arith.mulf %242, %250 : vector<8x128xf32>
    %259 = arith.addf %257, %258 : vector<8x128xf32>
    %260 = math.tanh %259 : vector<8x128xf32>
    %261 = arith.mulf %256, %260 : vector<8x128xf32>
    %c24 = arith.constant 24 : index
    %c0_61 = arith.constant 0 : index
    %262 = vector.load %arg12[%c24, %c0_61] : memref<64x128xf32, #tpu.memory_space<vmem>>, vector<8x128xf32>
    tpu.vector_store %arg12[%c24, %c0_61], %261 {strides = array<i32>} : memref<64x128xf32, #tpu.memory_space<vmem>>, vector<8x128xf32>,
    %263 = vector.extract_strided_slice %12 {offsets = [32, 0], sizes = [8, 512], strides = [1, 1]} : vector<64x512xf32> to vector<8x512xf32>
    %cst_62 = arith.constant dense<0.000000e+00> : vector<8x512xf32>
    %264 = tpu.matmul %232, %13, %cst_62 {dimension_numbers = #tpu.dot_dimension_numbers<[1], [0], [0], [1], [0, 0, 1, 1], [], []>} : vector<8x128xf32>, vector<128x512xf32>, vector<8x512xf32> -> vector<8x512xf32>
    %265 = arith.addf %263, %264 : vector<8x512xf32>
    %266 = arith.addf %265, %22 : vector<8x512xf32>
    %267 = vector.extract_strided_slice %266 {offsets = [0, 0], sizes = [8, 128], strides = [1, 1]} : vector<8x512xf32> to vector<8x128xf32>
    %268 = arith.negf %267 : vector<8x128xf32>
    %269 = math.exp %268 : vector<8x128xf32>
    %cst_63 = arith.constant 1.000000e+00 : f32
    %270 = vector.broadcast %cst_63 : f32 to vector<8x128xf32>
    %271 = arith.addf %270, %269 : vector<8x128xf32>
    %272 = arith.divf %270, %271 : vector<8x128xf32>
    %273 = vector.extract_strided_slice %266 {offsets = [0, 128], sizes = [8, 128], strides = [1, 1]} : vector<8x512xf32> to vector<8x128xf32>
    %274 = arith.negf %273 : vector<8x128xf32>
    %275 = math.exp %274 : vector<8x128xf32>
    %cst_64 = arith.constant 1.000000e+00 : f32
    %276 = vector.broadcast %cst_64 : f32 to vector<8x128xf32>
    %277 = arith.addf %276, %275 : vector<8x128xf32>
    %278 = arith.divf %276, %277 : vector<8x128xf32>
    %279 = vector.extract_strided_slice %266 {offsets = [0, 256], sizes = [8, 128], strides = [1, 1]} : vector<8x512xf32> to vector<8x128xf32>
    %280 = math.tanh %279 : vector<8x128xf32>
    %281 = vector.extract_strided_slice %266 {offsets = [0, 384], sizes = [8, 128], strides = [1, 1]} : vector<8x512xf32> to vector<8x128xf32>
    %282 = arith.negf %281 : vector<8x128xf32>
    %283 = math.exp %282 : vector<8x128xf32>
    %cst_65 = arith.constant 1.000000e+00 : f32
    %284 = vector.broadcast %cst_65 : f32 to vector<8x128xf32>
    %285 = arith.addf %284, %283 : vector<8x128xf32>
    %286 = arith.divf %284, %285 : vector<8x128xf32>
    %287 = arith.mulf %278, %230 : vector<8x128xf32>
    %288 = arith.mulf %272, %280 : vector<8x128xf32>
    %289 = arith.addf %287, %288 : vector<8x128xf32>
    %290 = math.tanh %289 : vector<8x128xf32>
    %291 = arith.mulf %286, %290 : vector<8x128xf32>
    %cst_66 = arith.constant dense<0.000000e+00> : vector<8x512xf32>
    %292 = tpu.matmul %291, %17, %cst_66 {dimension_numbers = #tpu.dot_dimension_numbers<[1], [0], [0], [1], [0, 0, 1, 1], [], []>} : vector<8x128xf32>, vector<128x512xf32>, vector<8x512xf32> -> vector<8x512xf32>
    %cst_67 = arith.constant dense<0.000000e+00> : vector<8x512xf32>
    %293 = tpu.matmul %261, %18, %cst_67 {dimension_numbers = #tpu.dot_dimension_numbers<[1], [0], [0], [1], [0, 0, 1, 1], [], []>} : vector<8x128xf32>, vector<128x512xf32>, vector<8x512xf32> -> vector<8x512xf32>
    %294 = arith.addf %292, %293 : vector<8x512xf32>
    %295 = arith.addf %294, %26 : vector<8x512xf32>
    %296 = vector.extract_strided_slice %295 {offsets = [0, 0], sizes = [8, 128], strides = [1, 1]} : vector<8x512xf32> to vector<8x128xf32>
    %297 = arith.negf %296 : vector<8x128xf32>
    %298 = math.exp %297 : vector<8x128xf32>
    %cst_68 = arith.constant 1.000000e+00 : f32
    %299 = vector.broadcast %cst_68 : f32 to vector<8x128xf32>
    %300 = arith.addf %299, %298 : vector<8x128xf32>
    %301 = arith.divf %299, %300 : vector<8x128xf32>
    %302 = vector.extract_strided_slice %295 {offsets = [0, 128], sizes = [8, 128], strides = [1, 1]} : vector<8x512xf32> to vector<8x128xf32>
    %303 = arith.negf %302 : vector<8x128xf32>
    %304 = math.exp %303 : vector<8x128xf32>
    %cst_69 = arith.constant 1.000000e+00 : f32
    %305 = vector.broadcast %cst_69 : f32 to vector<8x128xf32>
    %306 = arith.addf %305, %304 : vector<8x128xf32>
    %307 = arith.divf %305, %306 : vector<8x128xf32>
    %308 = vector.extract_strided_slice %295 {offsets = [0, 256], sizes = [8, 128], strides = [1, 1]} : vector<8x512xf32> to vector<8x128xf32>
    %309 = math.tanh %308 : vector<8x128xf32>
    %310 = vector.extract_strided_slice %295 {offsets = [0, 384], sizes = [8, 128], strides = [1, 1]} : vector<8x512xf32> to vector<8x128xf32>
    %311 = arith.negf %310 : vector<8x128xf32>
    %312 = math.exp %311 : vector<8x128xf32>
    %cst_70 = arith.constant 1.000000e+00 : f32
    %313 = vector.broadcast %cst_70 : f32 to vector<8x128xf32>
    %314 = arith.addf %313, %312 : vector<8x128xf32>
    %315 = arith.divf %313, %314 : vector<8x128xf32>
    %316 = arith.mulf %307, %259 : vector<8x128xf32>
    %317 = arith.mulf %301, %309 : vector<8x128xf32>
    %318 = arith.addf %316, %317 : vector<8x128xf32>
    %319 = math.tanh %318 : vector<8x128xf32>
    %320 = arith.mulf %315, %319 : vector<8x128xf32>
    %c32 = arith.constant 32 : index
    %c0_71 = arith.constant 0 : index
    %321 = vector.load %arg12[%c32, %c0_71] : memref<64x128xf32, #tpu.memory_space<vmem>>, vector<8x128xf32>
    tpu.vector_store %arg12[%c32, %c0_71], %320 {strides = array<i32>} : memref<64x128xf32, #tpu.memory_space<vmem>>, vector<8x128xf32>,
    %322 = vector.extract_strided_slice %12 {offsets = [40, 0], sizes = [8, 512], strides = [1, 1]} : vector<64x512xf32> to vector<8x512xf32>
    %cst_72 = arith.constant dense<0.000000e+00> : vector<8x512xf32>
    %323 = tpu.matmul %291, %13, %cst_72 {dimension_numbers = #tpu.dot_dimension_numbers<[1], [0], [0], [1], [0, 0, 1, 1], [], []>} : vector<8x128xf32>, vector<128x512xf32>, vector<8x512xf32> -> vector<8x512xf32>
    %324 = arith.addf %322, %323 : vector<8x512xf32>
    %325 = arith.addf %324, %22 : vector<8x512xf32>
    %326 = vector.extract_strided_slice %325 {offsets = [0, 0], sizes = [8, 128], strides = [1, 1]} : vector<8x512xf32> to vector<8x128xf32>
    %327 = arith.negf %326 : vector<8x128xf32>
    %328 = math.exp %327 : vector<8x128xf32>
    %cst_73 = arith.constant 1.000000e+00 : f32
    %329 = vector.broadcast %cst_73 : f32 to vector<8x128xf32>
    %330 = arith.addf %329, %328 : vector<8x128xf32>
    %331 = arith.divf %329, %330 : vector<8x128xf32>
    %332 = vector.extract_strided_slice %325 {offsets = [0, 128], sizes = [8, 128], strides = [1, 1]} : vector<8x512xf32> to vector<8x128xf32>
    %333 = arith.negf %332 : vector<8x128xf32>
    %334 = math.exp %333 : vector<8x128xf32>
    %cst_74 = arith.constant 1.000000e+00 : f32
    %335 = vector.broadcast %cst_74 : f32 to vector<8x128xf32>
    %336 = arith.addf %335, %334 : vector<8x128xf32>
    %337 = arith.divf %335, %336 : vector<8x128xf32>
    %338 = vector.extract_strided_slice %325 {offsets = [0, 256], sizes = [8, 128], strides = [1, 1]} : vector<8x512xf32> to vector<8x128xf32>
    %339 = math.tanh %338 : vector<8x128xf32>
    %340 = vector.extract_strided_slice %325 {offsets = [0, 384], sizes = [8, 128], strides = [1, 1]} : vector<8x512xf32> to vector<8x128xf32>
    %341 = arith.negf %340 : vector<8x128xf32>
    %342 = math.exp %341 : vector<8x128xf32>
    %cst_75 = arith.constant 1.000000e+00 : f32
    %343 = vector.broadcast %cst_75 : f32 to vector<8x128xf32>
    %344 = arith.addf %343, %342 : vector<8x128xf32>
    %345 = arith.divf %343, %344 : vector<8x128xf32>
    %346 = arith.mulf %337, %289 : vector<8x128xf32>
    %347 = arith.mulf %331, %339 : vector<8x128xf32>
    %348 = arith.addf %346, %347 : vector<8x128xf32>
    %349 = math.tanh %348 : vector<8x128xf32>
    %350 = arith.mulf %345, %349 : vector<8x128xf32>
    %cst_76 = arith.constant dense<0.000000e+00> : vector<8x512xf32>
    %351 = tpu.matmul %350, %17, %cst_76 {dimension_numbers = #tpu.dot_dimension_numbers<[1], [0], [0], [1], [0, 0, 1, 1], [], []>} : vector<8x128xf32>, vector<128x512xf32>, vector<8x512xf32> -> vector<8x512xf32>
    %cst_77 = arith.constant dense<0.000000e+00> : vector<8x512xf32>
    %352 = tpu.matmul %320, %18, %cst_77 {dimension_numbers = #tpu.dot_dimension_numbers<[1], [0], [0], [1], [0, 0, 1, 1], [], []>} : vector<8x128xf32>, vector<128x512xf32>, vector<8x512xf32> -> vector<8x512xf32>
    %353 = arith.addf %351, %352 : vector<8x512xf32>
    %354 = arith.addf %353, %26 : vector<8x512xf32>
    %355 = vector.extract_strided_slice %354 {offsets = [0, 0], sizes = [8, 128], strides = [1, 1]} : vector<8x512xf32> to vector<8x128xf32>
    %356 = arith.negf %355 : vector<8x128xf32>
    %357 = math.exp %356 : vector<8x128xf32>
    %cst_78 = arith.constant 1.000000e+00 : f32
    %358 = vector.broadcast %cst_78 : f32 to vector<8x128xf32>
    %359 = arith.addf %358, %357 : vector<8x128xf32>
    %360 = arith.divf %358, %359 : vector<8x128xf32>
    %361 = vector.extract_strided_slice %354 {offsets = [0, 128], sizes = [8, 128], strides = [1, 1]} : vector<8x512xf32> to vector<8x128xf32>
    %362 = arith.negf %361 : vector<8x128xf32>
    %363 = math.exp %362 : vector<8x128xf32>
    %cst_79 = arith.constant 1.000000e+00 : f32
    %364 = vector.broadcast %cst_79 : f32 to vector<8x128xf32>
    %365 = arith.addf %364, %363 : vector<8x128xf32>
    %366 = arith.divf %364, %365 : vector<8x128xf32>
    %367 = vector.extract_strided_slice %354 {offsets = [0, 256], sizes = [8, 128], strides = [1, 1]} : vector<8x512xf32> to vector<8x128xf32>
    %368 = math.tanh %367 : vector<8x128xf32>
    %369 = vector.extract_strided_slice %354 {offsets = [0, 384], sizes = [8, 128], strides = [1, 1]} : vector<8x512xf32> to vector<8x128xf32>
    %370 = arith.negf %369 : vector<8x128xf32>
    %371 = math.exp %370 : vector<8x128xf32>
    %cst_80 = arith.constant 1.000000e+00 : f32
    %372 = vector.broadcast %cst_80 : f32 to vector<8x128xf32>
    %373 = arith.addf %372, %371 : vector<8x128xf32>
    %374 = arith.divf %372, %373 : vector<8x128xf32>
    %375 = arith.mulf %366, %318 : vector<8x128xf32>
    %376 = arith.mulf %360, %368 : vector<8x128xf32>
    %377 = arith.addf %375, %376 : vector<8x128xf32>
    %378 = math.tanh %377 : vector<8x128xf32>
    %379 = arith.mulf %374, %378 : vector<8x128xf32>
    %c40 = arith.constant 40 : index
    %c0_81 = arith.constant 0 : index
    %380 = vector.load %arg12[%c40, %c0_81] : memref<64x128xf32, #tpu.memory_space<vmem>>, vector<8x128xf32>
    tpu.vector_store %arg12[%c40, %c0_81], %379 {strides = array<i32>} : memref<64x128xf32, #tpu.memory_space<vmem>>, vector<8x128xf32>,
    %381 = vector.extract_strided_slice %12 {offsets = [48, 0], sizes = [8, 512], strides = [1, 1]} : vector<64x512xf32> to vector<8x512xf32>
    %cst_82 = arith.constant dense<0.000000e+00> : vector<8x512xf32>
    %382 = tpu.matmul %350, %13, %cst_82 {dimension_numbers = #tpu.dot_dimension_numbers<[1], [0], [0], [1], [0, 0, 1, 1], [], []>} : vector<8x128xf32>, vector<128x512xf32>, vector<8x512xf32> -> vector<8x512xf32>
    %383 = arith.addf %381, %382 : vector<8x512xf32>
    %384 = arith.addf %383, %22 : vector<8x512xf32>
    %385 = vector.extract_strided_slice %384 {offsets = [0, 0], sizes = [8, 128], strides = [1, 1]} : vector<8x512xf32> to vector<8x128xf32>
    %386 = arith.negf %385 : vector<8x128xf32>
    %387 = math.exp %386 : vector<8x128xf32>
    %cst_83 = arith.constant 1.000000e+00 : f32
    %388 = vector.broadcast %cst_83 : f32 to vector<8x128xf32>
    %389 = arith.addf %388, %387 : vector<8x128xf32>
    %390 = arith.divf %388, %389 : vector<8x128xf32>
    %391 = vector.extract_strided_slice %384 {offsets = [0, 128], sizes = [8, 128], strides = [1, 1]} : vector<8x512xf32> to vector<8x128xf32>
    %392 = arith.negf %391 : vector<8x128xf32>
    %393 = math.exp %392 : vector<8x128xf32>
    %cst_84 = arith.constant 1.000000e+00 : f32
    %394 = vector.broadcast %cst_84 : f32 to vector<8x128xf32>
    %395 = arith.addf %394, %393 : vector<8x128xf32>
    %396 = arith.divf %394, %395 : vector<8x128xf32>
    %397 = vector.extract_strided_slice %384 {offsets = [0, 256], sizes = [8, 128], strides = [1, 1]} : vector<8x512xf32> to vector<8x128xf32>
    %398 = math.tanh %397 : vector<8x128xf32>
    %399 = vector.extract_strided_slice %384 {offsets = [0, 384], sizes = [8, 128], strides = [1, 1]} : vector<8x512xf32> to vector<8x128xf32>
    %400 = arith.negf %399 : vector<8x128xf32>
    %401 = math.exp %400 : vector<8x128xf32>
    %cst_85 = arith.constant 1.000000e+00 : f32
    %402 = vector.broadcast %cst_85 : f32 to vector<8x128xf32>
    %403 = arith.addf %402, %401 : vector<8x128xf32>
    %404 = arith.divf %402, %403 : vector<8x128xf32>
    %405 = arith.mulf %396, %348 : vector<8x128xf32>
    %406 = arith.mulf %390, %398 : vector<8x128xf32>
    %407 = arith.addf %405, %406 : vector<8x128xf32>
    %408 = math.tanh %407 : vector<8x128xf32>
    %409 = arith.mulf %404, %408 : vector<8x128xf32>
    %cst_86 = arith.constant dense<0.000000e+00> : vector<8x512xf32>
    %410 = tpu.matmul %409, %17, %cst_86 {dimension_numbers = #tpu.dot_dimension_numbers<[1], [0], [0], [1], [0, 0, 1, 1], [], []>} : vector<8x128xf32>, vector<128x512xf32>, vector<8x512xf32> -> vector<8x512xf32>
    %cst_87 = arith.constant dense<0.000000e+00> : vector<8x512xf32>
    %411 = tpu.matmul %379, %18, %cst_87 {dimension_numbers = #tpu.dot_dimension_numbers<[1], [0], [0], [1], [0, 0, 1, 1], [], []>} : vector<8x128xf32>, vector<128x512xf32>, vector<8x512xf32> -> vector<8x512xf32>
    %412 = arith.addf %410, %411 : vector<8x512xf32>
    %413 = arith.addf %412, %26 : vector<8x512xf32>
    %414 = vector.extract_strided_slice %413 {offsets = [0, 0], sizes = [8, 128], strides = [1, 1]} : vector<8x512xf32> to vector<8x128xf32>
    %415 = arith.negf %414 : vector<8x128xf32>
    %416 = math.exp %415 : vector<8x128xf32>
    %cst_88 = arith.constant 1.000000e+00 : f32
    %417 = vector.broadcast %cst_88 : f32 to vector<8x128xf32>
    %418 = arith.addf %417, %416 : vector<8x128xf32>
    %419 = arith.divf %417, %418 : vector<8x128xf32>
    %420 = vector.extract_strided_slice %413 {offsets = [0, 128], sizes = [8, 128], strides = [1, 1]} : vector<8x512xf32> to vector<8x128xf32>
    %421 = arith.negf %420 : vector<8x128xf32>
    %422 = math.exp %421 : vector<8x128xf32>
    %cst_89 = arith.constant 1.000000e+00 : f32
    %423 = vector.broadcast %cst_89 : f32 to vector<8x128xf32>
    %424 = arith.addf %423, %422 : vector<8x128xf32>
    %425 = arith.divf %423, %424 : vector<8x128xf32>
    %426 = vector.extract_strided_slice %413 {offsets = [0, 256], sizes = [8, 128], strides = [1, 1]} : vector<8x512xf32> to vector<8x128xf32>
    %427 = math.tanh %426 : vector<8x128xf32>
    %428 = vector.extract_strided_slice %413 {offsets = [0, 384], sizes = [8, 128], strides = [1, 1]} : vector<8x512xf32> to vector<8x128xf32>
    %429 = arith.negf %428 : vector<8x128xf32>
    %430 = math.exp %429 : vector<8x128xf32>
    %cst_90 = arith.constant 1.000000e+00 : f32
    %431 = vector.broadcast %cst_90 : f32 to vector<8x128xf32>
    %432 = arith.addf %431, %430 : vector<8x128xf32>
    %433 = arith.divf %431, %432 : vector<8x128xf32>
    %434 = arith.mulf %425, %377 : vector<8x128xf32>
    %435 = arith.mulf %419, %427 : vector<8x128xf32>
    %436 = arith.addf %434, %435 : vector<8x128xf32>
    %437 = math.tanh %436 : vector<8x128xf32>
    %438 = arith.mulf %433, %437 : vector<8x128xf32>
    %c48 = arith.constant 48 : index
    %c0_91 = arith.constant 0 : index
    %439 = vector.load %arg12[%c48, %c0_91] : memref<64x128xf32, #tpu.memory_space<vmem>>, vector<8x128xf32>
    tpu.vector_store %arg12[%c48, %c0_91], %438 {strides = array<i32>} : memref<64x128xf32, #tpu.memory_space<vmem>>, vector<8x128xf32>,
    %440 = vector.extract_strided_slice %12 {offsets = [56, 0], sizes = [8, 512], strides = [1, 1]} : vector<64x512xf32> to vector<8x512xf32>
    %cst_92 = arith.constant dense<0.000000e+00> : vector<8x512xf32>
    %441 = tpu.matmul %409, %13, %cst_92 {dimension_numbers = #tpu.dot_dimension_numbers<[1], [0], [0], [1], [0, 0, 1, 1], [], []>} : vector<8x128xf32>, vector<128x512xf32>, vector<8x512xf32> -> vector<8x512xf32>
    %442 = arith.addf %440, %441 : vector<8x512xf32>
    %443 = arith.addf %442, %22 : vector<8x512xf32>
    %444 = vector.extract_strided_slice %443 {offsets = [0, 0], sizes = [8, 128], strides = [1, 1]} : vector<8x512xf32> to vector<8x128xf32>
    %445 = arith.negf %444 : vector<8x128xf32>
    %446 = math.exp %445 : vector<8x128xf32>
    %cst_93 = arith.constant 1.000000e+00 : f32
    %447 = vector.broadcast %cst_93 : f32 to vector<8x128xf32>
    %448 = arith.addf %447, %446 : vector<8x128xf32>
    %449 = arith.divf %447, %448 : vector<8x128xf32>
    %450 = vector.extract_strided_slice %443 {offsets = [0, 128], sizes = [8, 128], strides = [1, 1]} : vector<8x512xf32> to vector<8x128xf32>
    %451 = arith.negf %450 : vector<8x128xf32>
    %452 = math.exp %451 : vector<8x128xf32>
    %cst_94 = arith.constant 1.000000e+00 : f32
    %453 = vector.broadcast %cst_94 : f32 to vector<8x128xf32>
    %454 = arith.addf %453, %452 : vector<8x128xf32>
    %455 = arith.divf %453, %454 : vector<8x128xf32>
    %456 = vector.extract_strided_slice %443 {offsets = [0, 256], sizes = [8, 128], strides = [1, 1]} : vector<8x512xf32> to vector<8x128xf32>
    %457 = math.tanh %456 : vector<8x128xf32>
    %458 = vector.extract_strided_slice %443 {offsets = [0, 384], sizes = [8, 128], strides = [1, 1]} : vector<8x512xf32> to vector<8x128xf32>
    %459 = arith.negf %458 : vector<8x128xf32>
    %460 = math.exp %459 : vector<8x128xf32>
    %cst_95 = arith.constant 1.000000e+00 : f32
    %461 = vector.broadcast %cst_95 : f32 to vector<8x128xf32>
    %462 = arith.addf %461, %460 : vector<8x128xf32>
    %463 = arith.divf %461, %462 : vector<8x128xf32>
    %464 = arith.mulf %455, %407 : vector<8x128xf32>
    %465 = arith.mulf %449, %457 : vector<8x128xf32>
    %466 = arith.addf %464, %465 : vector<8x128xf32>
    %467 = math.tanh %466 : vector<8x128xf32>
    %468 = arith.mulf %463, %467 : vector<8x128xf32>
    %cst_96 = arith.constant dense<0.000000e+00> : vector<8x512xf32>
    %469 = tpu.matmul %468, %17, %cst_96 {dimension_numbers = #tpu.dot_dimension_numbers<[1], [0], [0], [1], [0, 0, 1, 1], [], []>} : vector<8x128xf32>, vector<128x512xf32>, vector<8x512xf32> -> vector<8x512xf32>
    %cst_97 = arith.constant dense<0.000000e+00> : vector<8x512xf32>
    %470 = tpu.matmul %438, %18, %cst_97 {dimension_numbers = #tpu.dot_dimension_numbers<[1], [0], [0], [1], [0, 0, 1, 1], [], []>} : vector<8x128xf32>, vector<128x512xf32>, vector<8x512xf32> -> vector<8x512xf32>
    %471 = arith.addf %469, %470 : vector<8x512xf32>
    %472 = arith.addf %471, %26 : vector<8x512xf32>
    %473 = vector.extract_strided_slice %472 {offsets = [0, 0], sizes = [8, 128], strides = [1, 1]} : vector<8x512xf32> to vector<8x128xf32>
    %474 = arith.negf %473 : vector<8x128xf32>
    %475 = math.exp %474 : vector<8x128xf32>
    %cst_98 = arith.constant 1.000000e+00 : f32
    %476 = vector.broadcast %cst_98 : f32 to vector<8x128xf32>
    %477 = arith.addf %476, %475 : vector<8x128xf32>
    %478 = arith.divf %476, %477 : vector<8x128xf32>
    %479 = vector.extract_strided_slice %472 {offsets = [0, 128], sizes = [8, 128], strides = [1, 1]} : vector<8x512xf32> to vector<8x128xf32>
    %480 = arith.negf %479 : vector<8x128xf32>
    %481 = math.exp %480 : vector<8x128xf32>
    %cst_99 = arith.constant 1.000000e+00 : f32
    %482 = vector.broadcast %cst_99 : f32 to vector<8x128xf32>
    %483 = arith.addf %482, %481 : vector<8x128xf32>
    %484 = arith.divf %482, %483 : vector<8x128xf32>
    %485 = vector.extract_strided_slice %472 {offsets = [0, 256], sizes = [8, 128], strides = [1, 1]} : vector<8x512xf32> to vector<8x128xf32>
    %486 = math.tanh %485 : vector<8x128xf32>
    %487 = vector.extract_strided_slice %472 {offsets = [0, 384], sizes = [8, 128], strides = [1, 1]} : vector<8x512xf32> to vector<8x128xf32>
    %488 = arith.negf %487 : vector<8x128xf32>
    %489 = math.exp %488 : vector<8x128xf32>
    %cst_100 = arith.constant 1.000000e+00 : f32
    %490 = vector.broadcast %cst_100 : f32 to vector<8x128xf32>
    %491 = arith.addf %490, %489 : vector<8x128xf32>
    %492 = arith.divf %490, %491 : vector<8x128xf32>
    %493 = arith.mulf %484, %436 : vector<8x128xf32>
    %494 = arith.mulf %478, %486 : vector<8x128xf32>
    %495 = arith.addf %493, %494 : vector<8x128xf32>
    %496 = math.tanh %495 : vector<8x128xf32>
    %497 = arith.mulf %492, %496 : vector<8x128xf32>
    %c56 = arith.constant 56 : index
    %c0_101 = arith.constant 0 : index
    %498 = vector.load %arg12[%c56, %c0_101] : memref<64x128xf32, #tpu.memory_space<vmem>>, vector<8x128xf32>
    tpu.vector_store %arg12[%c56, %c0_101], %497 {strides = array<i32>} : memref<64x128xf32, #tpu.memory_space<vmem>>, vector<8x128xf32>,
    %c0_102 = arith.constant 0 : index
    %c0_103 = arith.constant 0 : index
    %499 = vector.load %arg12[%c0_102, %c0_103] : memref<64x128xf32, #tpu.memory_space<vmem>>, vector<64x128xf32>
    %c0_104 = arith.constant 0 : index
    %c0_105 = arith.constant 0 : index
    %500 = vector.load %arg9[%c0_104, %c0_105] : memref<128x128xf32, #tpu.memory_space<vmem>>, vector<128x128xf32>
    %cst_106 = arith.constant dense<0.000000e+00> : vector<64x128xf32>
    %501 = tpu.matmul %499, %500, %cst_106 {dimension_numbers = #tpu.dot_dimension_numbers<[1], [0], [0], [1], [0, 0, 1, 1], [], []>} : vector<64x128xf32>, vector<128x128xf32>, vector<64x128xf32> -> vector<64x128xf32>
    %c0_107 = arith.constant 0 : index
    %c0_108 = arith.constant 0 : index
    %502 = vector.load %arg10[%c0_107, %c0_108] : memref<1x128xf32, #tpu.memory_space<vmem>>, vector<1x128xf32>
    %503 = vector.broadcast %502 : vector<1x128xf32> to vector<64x128xf32>
    %504 = arith.addf %501, %503 : vector<64x128xf32>
    %c0_109 = arith.constant 0 : index
    %c0_110 = arith.constant 0 : index
    %505 = vector.load %arg11[%c0_109, %c0_110] : memref<64x128xf32, #tpu.memory_space<vmem>>, vector<64x128xf32>
    tpu.vector_store %arg11[%c0_109, %c0_110], %504 {strides = array<i32>} : memref<64x128xf32, #tpu.memory_space<vmem>>, vector<64x128xf32>,
    return
  }
}

</mosaic_0001>

<bundles_post_ra>
// kernel: decoder_forward_pallas.1
= control target key start
LH: loop header
LB: loop body
LE: loop exit
PB: predicated region body
PF: predicated region fallthrough
CT: control target
= control target key end

     0   :  { %16 = vsyncpa [#allocation4], 0  ;;  %s9622_s0 = inlined_call_operand.vmem [shape: f32[64,32], index: 0, kind: input, shape index: {}]   ;;  %s9623_s1 = inlined_call_operand.vmem [shape: f32[8,64], index: 1, kind: input, shape index: {}]   ;;  %s9624_s2 = inlined_call_operand.hbm [shape: f32[32,512], index: 2, kind: input, shape index: {}]   ;;  %s9625_s3 = inlined_call_operand.vmem [shape: f32[128,512], index: 3, kind: input, shape index: {}]   ;;  %s9626_s4 = inlined_call_operand.hbm [shape: f32[1,128,512], index: 4, kind: input, shape index: {}]   ;;  %s9627_s5 = inlined_call_operand.hbm [shape: f32[1,128,512], index: 5, kind: input, shape index: {}]   ;;  %s9628_s6 = inlined_call_operand.vmem [shape: f32[2,1,512], index: 6, kind: input, shape index: {}]   ;;  %s9629_s7 = inlined_call_operand.vmem [shape: f32[64,512], index: 7, kind: input, shape index: {}]   ;;  %s9630_s8 = inlined_call_operand.vmem [shape: f32[1,512], index: 8, kind: input, shape index: {}]   ;;  %s9631_s9 = inlined_call_operand.hbm [shape: f32[128,128], index: 9, kind: input, shape index: {}]   ;;  %s9632_s10 = inlined_call_operand.vmem [shape: f32[1,128], index: 10, kind: input, shape index: {}]   ;;  %s9633_s11 = inlined_call_operand.hbm [shape: f32[64,128], index: 11, kind: output, shape index: {}]  }
   0x1   :  { %17 = vsyncpa [#allocation7], 0 }
   0x2   :  { %18 = vsyncpa [#allocation10], 0 }
   0x3   :  { %19 = vsyncpa [#allocation5], 0  ;;  %s43_s19 = sshll.u32 %s9626_s4, 4  ;;  %s4844_s20 = smov [#allocation6]   ;;  %s44_s19 = int_to_ptr.hbm [resolvable:$true] %s43_s19 }
   0x4   :  { %s45_s21 = sshll.u32 %s4844_s20, 4  ;;  %s28_s24 = sshll.u32 %s9624_s2, 4  ;;  %s46_s21 = int_to_ptr.vmem [resolvable:$true] %s45_s21  ;;  %s29_s24 = int_to_ptr.hbm [resolvable:$true] %s28_s24 }
   0x5   :  { %s4845_s25 = smov 512   ;;  %s4846_s26 = smov 32  }
   0x6   :  { %51 = dma.hbm_to_vmem [thread:$0]  %s44_s19, 8192, %s46_s21, [#allocation7], %s4845_s25, %s4845_s25, %s4846_s26  }
   0x7   :  { %s4847_s27 = smov [#allocation3]   ;;  %s56_s12 = sshll.u32 %s9627_s5, 4  ;;  %s57_s12 = int_to_ptr.hbm [resolvable:$true] %s56_s12 }
   0x8   :  { %s30_s28 = sshll.u32 %s4847_s27, 4  ;;  %s75_s14 = sshll.u32 %s9631_s9, 4  ;;  %s31_s28 = int_to_ptr.vmem [resolvable:$true] %s30_s28  ;;  %s76_s14 = int_to_ptr.hbm [resolvable:$true] %s75_s14 }
   0x9   :  { %36 = dma.hbm_to_vmem [thread:$0]  %s29_s24, 2048, %s31_s28, [#allocation4], %s4845_s25, %s4845_s25, %s4846_s26  }
   0xa   :  { %s4848_s15 = smov [#allocation8]   ;;  %s4849_s2 = smov [#allocation9]  }
   0xb   :  { %s58_s16 = sshll.u32 %s4848_s15, 4  ;;  %s77_s17 = sshll.u32 %s4849_s2, 4  ;;  %s59_s16 = int_to_ptr.vmem [resolvable:$true] %s58_s16  ;;  %s78_s17 = int_to_ptr.vmem [resolvable:$true] %s77_s17 }
   0xc   :  { %64 = dma.hbm_to_vmem [thread:$0]  %s57_s12, 8192, %s59_s16, [#allocation7], %s4845_s25, %s4845_s25, %s4846_s26  }
   0xd   :  { %s4850_s18 = smov 128   ;;  %s4851_s19 = smov 8  }
   0xe   :  { %83 = dma.hbm_to_vmem [thread:$0]  %s76_s14, 2048, %s78_s17, [#allocation10], %s4850_s18, %s4850_s18, %s4851_s19  }
   0xf   :  { %4836 = dma.done.wait [#allocation4], 2048  }
  0x10   :  { %4837 = vsyncadd [#allocation4], 4294965248 }
  0x11   :  { %4838 = dma.done.wait [#allocation7], 16384  }
  0x12   :  { %4839 = vsyncadd [#allocation7], 4294950912 }
  0x13   :  { %4840 = dma.done.wait [#allocation10], 2048  }
  0x14   :  { %4841 = vsyncadd [#allocation10], 4294965248  ;;  %v131_v0 = vld [vmem:[%s9629_s7 + $0xe0] sm:$0xff]  ;;  %v132_v4 = vld [vmem:[%s9629_s7 + $0xe8] sm:$0xff]  ;;  %vm253_vm0 = vcmask 261120   ;;  %vm145_vm1 = vcmask 523264  }
  0x15   :  { %v127_v1 = vld [vmem:[%s9629_s7 + $0xc0] sm:$0xff]  ;;  %157 = vmatpush.msra.mxu0 %v131_v0  ;;  %177 = vmatpush.msra.mxu3 %v132_v4  ;;  %v128_v7 = vld [vmem:[%s9629_s7 + $0xc8] sm:$0xff]  ;;  %v133_v15 = vld [vmem:[%s9629_s7 + $0xf0] sm:$0xff] }
  0x16   :  { %v123_v2 = vld [vmem:[%s9629_s7 + $0xa0] sm:$0xff]  ;;  %v124_v9 = vld [vmem:[%s9629_s7 + $0xa8] sm:$0xff]  ;;  %197 = vmatpush.msra.mxu2 %v133_v15  ;;  %v129_v19 = vld [vmem:[%s9629_s7 + $0xd0] sm:$0xff] }
  0x17   :  { %158 = vmatpush.msra.mxu0 %v127_v1  ;;  %v249_v3 = vld [vmem:[#allocation3 + $0x60] sm:$0xff]  ;;  %178 = vmatpush.msra.mxu3 %v128_v7  ;;  %v120_v12 = vld [vmem:[%s9629_s7 + $0x88] sm:$0xff]  ;;  %v125_v23 = vld [vmem:[%s9629_s7 + $0xb0] sm:$0xff] }
  0x18   :  { %v4940_v5 = vld [vmem:[#allocation3 + $0x40] sm:$0xff]  ;;  %3868 = vmatpush.msra.mxu1 %v249_v3  ;;  %v116_v16 = vld [vmem:[%s9629_s7 + $0x68] sm:$0xff]  ;;  %198 = vmatpush.msra.mxu2 %v129_v19  ;;  %v121_v26 = vld [vmem:[%s9629_s7 + $0x90] sm:$0xff] }
  0x19   :  { %v119_v6 = vld [vmem:[%s9629_s7 + $0x80] sm:$0xff]  ;;  %159 = vmatpush.msra.mxu0 %v123_v2  ;;  %179 = vmatpush.msra.mxu3 %v124_v9  ;;  %v250_v17 = vld [vmem:[#allocation3 + $0x68] sm:$0xff]  ;;  %v134_v30 = vld [vmem:[%s9629_s7 + $0xf8] sm:$0xff] }
  0x1a   :  { %v4948_v8 = vld [vmem:[#allocation3 + $0x20] sm:$0xff]  ;;  %3869 = vmatpush.msra.mxu1 %v4940_v5  ;;  %v112_v20 = vld [vmem:[%s9629_s7 + $0x48] sm:$0xff]  ;;  %199 = vmatpush.msra.mxu2 %v125_v23  ;;  %v117_v31 = vld [vmem:[%s9629_s7 + $0x70] sm:$0xff] }
  0x1b   :  { %v115_v10 = vld [vmem:[%s9629_s7 + $0x60] sm:$0xff]  ;;  %160 = vmatpush.msra.mxu0 %v119_v6  ;;  %180 = vmatpush.msra.mxu3 %v120_v12  ;;  %v246_v21 = vld [vmem:[#allocation3 + $0x48] sm:$0xff]  ;;  %v130_v32 = vld [vmem:[%s9629_s7 + $0xd8] sm:$0xff] }
  0x1c   :  { %v4957_v11 = vld [vmem:[#allocation3] sm:$0xff]  ;;  %3870 = vmatpush.msra.mxu1 %v4948_v8  ;;  %v108_v25 = vld [vmem:[%s9629_s7 + $0x28] sm:$0xff]  ;;  %200 = vmatpush.msra.mxu2 %v121_v26  ;;  %v113_v34 = vld [vmem:[%s9629_s7 + $0x50] sm:$0xff] }
  0x1d   :  { %v111_v13 = vld [vmem:[%s9629_s7 + $0x40] sm:$0xff]  ;;  %161 = vmatpush.msra.mxu0 %v115_v10  ;;  %181 = vmatpush.msra.mxu3 %v116_v16  ;;  %v242_v27 = vld [vmem:[#allocation3 + $0x28] sm:$0xff]  ;;  %v126_v36 = vld [vmem:[%s9629_s7 + $0xb8] sm:$0xff] }
  0x1e   :  { %v4969_v14 = vld [vmem:[%s9622_s0 + $0x20] sm:$0xff]  ;;  %3871 = vmatpush.msra.mxu1 %v4957_v11  ;;  %v104_v28 = vld [vmem:[%s9629_s7 + $0x8] sm:$0xff]  ;;  %201 = vmatpush.msra.mxu2 %v117_v31  ;;  %v109_v37 = vld [vmem:[%s9629_s7 + $0x30] sm:$0xff] }
  0x1f   :  { %v107_v18 = vld [vmem:[%s9629_s7 + $0x20] sm:$0xff]  ;;  %162 = vmatpush.msra.mxu0 %v111_v13  ;;  %3792 = vmatmul.msk.f32.vlgmr.msra.gmra.mxu1 %vm253_vm0, %v4969_v14  ;;  %v5014_v29 = vld [vmem:[%s9622_s0 + $0x28] sm:$0xff]  ;;  %v122_v39 = vld [vmem:[%s9629_s7 + $0x98] sm:$0xff] }
  0x20   :  { %v103_v22 = vld [vmem:[%s9629_s7] sm:$0xff]  ;;  %331 = vmatpush.msrb.mxu1 %v250_v17  ;;  %182 = vmatpush.msra.mxu3 %v112_v20  ;;  %v238_v33 = vld [vmem:[#allocation3 + $0x8] sm:$0xff]  ;;  %v105_v40 = vld [vmem:[%s9629_s7 + $0x10] sm:$0xff] }
  0x21   :  { %163 = vmatpush.msra.mxu0 %v107_v18  ;;  %v4998_v24 = vld [vmem:[%s9623_s1] sm:$0xff]  ;;  %v503_v35 = vld [vmem:[%s9625_s3 + $0x1e8] sm:$0xff]  ;;  %202 = vmatpush.msra.mxu2 %v113_v34  ;;  %v5061_v42 = vld [vmem:[%s9622_s0 + $0x30] sm:$0xff] }
  0x22   :  { %332 = vmatpush.msrb.mxu1 %v246_v21  ;;  %183 = vmatpush.msra.mxu3 %v108_v25  ;;  %v5044_v38 = vld [vmem:[%s9625_s3 + $0x1c8] sm:$0xff]  ;;  %v118_v43 = vld [vmem:[%s9629_s7 + $0x78] sm:$0xff]  ;;  %v251_v45 = vld [vmem:[#allocation3 + $0x70] sm:$0xff] }
  0x23   :  { %164 = vmatpush.msra.mxu0 %v103_v22  ;;  %v5055_v41 = vld [vmem:[%s9625_s3 + $0x1a8] sm:$0xff]  ;;  %203 = vmatpush.msra.mxu2 %v109_v37  ;;  %v114_v44 = vld [vmem:[%s9629_s7 + $0x58] sm:$0xff]  ;;  %v247_v48 = vld [vmem:[#allocation3 + $0x50] sm:$0xff] }
  0x24   :  { %3784 = vmatmul.msk.f32.vlgmr.msra.gmra.mxu0 %vm145_vm1, %v4998_v24  ;;  %333 = vmatpush.msrb.mxu1 %v242_v27  ;;  %v5077_v46 = vld [vmem:[%s9625_s3 + $0x188] sm:$0xff]  ;;  %v110_v47 = vld [vmem:[%s9629_s7 + $0x38] sm:$0xff]  ;;  %v243_v51 = vld [vmem:[#allocation3 + $0x30] sm:$0xff] }
  0x25   :  { %184 = vmatpush.msra.mxu3 %v104_v28  ;;  %290 = vmatpush.msrb.mxu0 %v249_v3  ;;  %v5088_v49 = vld [vmem:[%s9625_s3 + $0x168] sm:$0xff]  ;;  %v106_v50 = vld [vmem:[%s9629_s7 + $0x18] sm:$0xff]  ;;  %v229_v52 = vld [vmem:[%s9622_s0] sm:$0xff] }
  0x26   :  { %3785 = vmatmul.msk.f32.vlgmr.msra.gmra.mxu3 %vm145_vm1, %v4998_v24  ;;  %334 = vmatpush.msrb.mxu1 %v238_v33  ;;  %v5101_v53 = vld [vmem:[%s9622_s0 + $0x38] sm:$0xff]  ;;  %v239_v55 = vld [vmem:[#allocation3 + $0x10] sm:$0xff]  ;;  %v5111_v57 = vld [vmem:[%s9625_s3 + $0x1e0] sm:$0xff] }
  0x27   :  { %3793 = vmatmul.msk.f32.gmra.mxu1 %vm253_vm0, %v5014_v29  ;;  %217 = vmatpush.msrb.mxu3 %v134_v30  ;;  %v252_v54 = vld [vmem:[#allocation3 + $0x78] sm:$0xff]  ;;  %v5116_v58 = vld [vmem:[%s9625_s3 + $0x148] sm:$0xff]  ;;  %v5123_v60 = vld [vmem:[%s9625_s3 + $0x1c0] sm:$0xff] }
  0x28   :  { %674 = vmatpush.msra.mxu1 %v503_v35  ;;  %291 = vmatpush.msrb.mxu0 %v4940_v5  ;;  %v248_v56 = vld [vmem:[#allocation3 + $0x58] sm:$0xff]  ;;  %v5128_v61 = vld [vmem:[%s9625_s3 + $0x128] sm:$0xff]  ;;  %v5138_v0 = vld [vmem:[%s9625_s3 + $0x1a0] sm:$0xff] }
  0x29   :  { %218 = vmatpush.msrb.mxu3 %v130_v32  ;;  %204 = vmatpush.msra.mxu2 %v105_v40  ;;  %v244_v59 = vld [vmem:[#allocation3 + $0x38] sm:$0xff]  ;;  %v230_v63 = vld [vmem:[%s9622_s0 + $0x8] sm:$0xff]  ;;  %v5150_v2 = vld [vmem:[%s9625_s3 + $0x180] sm:$0xff] }
  0x2a   :  { %675 = vmatpush.msra.mxu1 %v5044_v38  ;;  %292 = vmatpush.msrb.mxu0 %v4948_v8  ;;  %v240_v62 = vld [vmem:[#allocation3 + $0x18] sm:$0xff]  ;;  %v5164_v4 = vld [vmem:[%s9625_s3 + $0x160] sm:$0xff]  ;;  %v5169_v5 = vld [vmem:[%s9625_s3 + $0x108] sm:$0xff] }
  0x2b   :  { %219 = vmatpush.msrb.mxu3 %v126_v36  ;;  %3786 = vmatmul.msk.f32.vlgmr.msra.gmra.mxu2 %vm145_vm1, %v4998_v24  ;;  %v5144_v1 = vld [vmem:[%s9625_s3 + $0x1f8] sm:$0xff]  ;;  %v5183_v7 = vld [vmem:[%s9625_s3 + $0x140] sm:$0xff]  ;;  %v5188_v8 = vld [vmem:[%s9625_s3 + $0xe8] sm:$0xff] }
  0x2c   :  { %676 = vmatpush.msra.mxu1 %v5055_v41  ;;  %372 = vmatpush.msrb.mxu2 %v251_v45  ;;  %v5157_v3 = vld [vmem:[%s9625_s3 + $0x1d8] sm:$0xff]  ;;  %v231_v10 = vld [vmem:[%s9622_s0 + $0x10] sm:$0xff]  ;;  %v5217_v13 = vld [vmem:[%s9625_s3 + $0x100] sm:$0xff] }
  0x2d   :  { %220 = vmatpush.msrb.mxu3 %v122_v39  ;;  %293 = vmatpush.msrb.mxu0 %v4957_v11  ;;  %v5175_v6 = vld [vmem:[%s9625_s3 + $0x1b8] sm:$0xff]  ;;  %v5204_v11 = vld [vmem:[%s9625_s3 + $0x120] sm:$0xff]  ;;  %v5236_v17 = vld [vmem:[%s9625_s3 + $0xc8] sm:$0xff] }
  0x2e   :  { %677 = vmatpush.msra.mxu1 %v5077_v46  ;;  %373 = vmatpush.msrb.mxu2 %v247_v48  ;;  %v5194_v9 = vld [vmem:[%s9625_s3 + $0x198] sm:$0xff]  ;;  %v5230_v16 = vld [vmem:[%s9625_s3 + $0xe0] sm:$0xff]  ;;  %v5255_v20 = vld [vmem:[%s9625_s3 + $0xa8] sm:$0xff] }
  0x2f   :  { %3794 = vmatmul.msk.f32.gmra.mxu1 %vm253_vm0, %v5061_v42  ;;  %221 = vmatpush.msrb.mxu3 %v118_v43  ;;  %v5210_v12 = vld [vmem:[%s9625_s3 + $0x178] sm:$0xff]  ;;  %v5249_v19 = vld [vmem:[%s9625_s3 + $0xc0] sm:$0xff]  ;;  %v5303_v28 = vld [vmem:[%s9625_s3 + $0x88] sm:$0xff] }
  0x30   :  { %678 = vmatpush.msra.mxu1 %v5088_v49  ;;  %3788 = vmatmul.msk.f32.vlgmr.msrb.gmra.mxu0 %vm253_vm0, %v229_v52  ;;  %v5224_v15 = vld [vmem:[%s9625_s3 + $0x158] sm:$0xff]  ;;  %v5270_v23 = vld [vmem:[%s9625_s3 + $0xa0] sm:$0xff]  ;;  %v5315_v31 = vld [vmem:[%s9625_s3 + $0x68] sm:$0xff] }
  0x31   :  { %222 = vmatpush.msrb.mxu3 %v114_v44  ;;  %374 = vmatpush.msrb.mxu2 %v243_v51  ;;  %v5242_v18 = vld [vmem:[%s9625_s3 + $0x138] sm:$0xff]  ;;  %v5283_v25 = vld [vmem:[%s9625_s3 + $0x80] sm:$0xff]  ;;  %v5350_v36 = vld [vmem:[%s9625_s3 + $0x1f0] sm:$0xff] }
  0x32   :  { %679 = vmatpush.msra.mxu1 %v5116_v58  ;;  %v5261_v21 = vld [vmem:[%s9625_s3 + $0x118] sm:$0xff]  ;;  %v5297_v27 = vld [vmem:[%s9625_s3 + $0x60] sm:$0xff]  ;;  %v5360_v39 = vld [vmem:[%s9625_s3 + $0x48] sm:$0xff] }
  0x33   :  { %223 = vmatpush.msrb.mxu3 %v110_v47  ;;  %375 = vmatpush.msrb.mxu2 %v239_v55  ;;  %v232_v22 = vld [vmem:[%s9622_s0 + $0x18] sm:$0xff]  ;;  %v5321_v32 = vld [vmem:[%s9625_s3 + $0x40] sm:$0xff]  ;;  %10278 = vst [vmem:[#allocation20_spill] sm:$0xff] %v5360_v39  ;;  %v5374_v43 = vld [vmem:[%s9625_s3 + $0x1d0] sm:$0xff] }
  0x34   :  { %3804 = vmatmul.msk.f32.vlgmr.msrb.gmra.mxu2 %vm253_vm0, %v229_v52  ;;  %680 = vmatpush.msra.mxu1 %v5128_v61  ;;  %v5291_v26 = vld [vmem:[%s9625_s3 + $0xd8] sm:$0xff]  ;;  %10274 = vst [vmem:[#allocation16_spill] sm:$0xff] %v5321_v32  ;;  %v5334_v34 = vld [vmem:[%s9625_s3 + $0x20] sm:$0xff]  ;;  %v5382_v44 = vld [vmem:[%s9625_s3 + $0x1b0] sm:$0xff] }
  0x35   :  { %224 = vmatpush.msrb.mxu3 %v106_v50  ;;  %654 = vmatpush.msra.mxu2 %v5111_v57  ;;  %v5310_v30 = vld [vmem:[%s9625_s3 + $0xb8] sm:$0xff]  ;;  %10275 = vst [vmem:[#allocation17_spill] sm:$0xff] %v5334_v34  ;;  %v5341_v35 = vld [vmem:[%s9625_s3] sm:$0xff]  ;;  %v5388_v45 = vld [vmem:[%s9625_s3 + $0x190] sm:$0xff] }
  0x36   :  { %3787 = vmatmul.msk.f32.vlgmr.msrb.gmra.mxu3 %vm145_vm1, %v4998_v24  ;;  %681 = vmatpush.msra.mxu1 %v5169_v5  ;;  %v5277_v24 = vld [vmem:[%s9625_s3 + $0xf8] sm:$0xff]  ;;  %10276 = vst [vmem:[#allocation18_spill] sm:$0xff] %v5341_v35  ;;  %v5398_v47 = vld [vmem:[%s9625_s3 + $0x170] sm:$0xff] }
  0x37   :  { %3795 = vmatmul.msk.f32.gmra.mxu1 %vm253_vm0, %v5101_v53  ;;  %413 = vmatpush.msra.mxu3 %v252_v54  ;;  %v5329_v33 = vld [vmem:[%s9625_s3 + $0x98] sm:$0xff]  ;;  %v5406_v48 = vld [vmem:[%s9625_s3 + $0x150] sm:$0xff] }
  0x38   :  { %655 = vmatpush.msra.mxu2 %v5123_v60  ;;  %3789 = vmatmul.msk.f32.gmra.mxu0 %vm253_vm0, %v230_v63  ;;  %v5355_v37 = vld [vmem:[%s9625_s3 + $0x78] sm:$0xff]  ;;  %v5418_v50 = vld [vmem:[%s9625_s3 + $0x110] sm:$0xff] }
  0x39   :  { %414 = vmatpush.msra.mxu3 %v248_v56  ;;  %682 = vmatpush.msra.mxu1 %v5188_v8  ;;  %10277 = vst [vmem:[#allocation19_spill] sm:$0xff] %v5355_v37  ;;  %v5367_v40 = vld [vmem:[%s9625_s3 + $0x58] sm:$0xff]  ;;  %v5428_v51 = vld [vmem:[%s9625_s3 + $0xf0] sm:$0xff] }
  0x3a   :  { %656 = vmatpush.msra.mxu2 %v5138_v0  ;;  %10279 = vst [vmem:[#allocation21_spill] sm:$0xff] %v5367_v40  ;;  %v5458_v54 = vld [vmem:[%s9625_s3 + $0xb0] sm:$0xff]  ;;  %v5481_v56 = vld [vmem:[%s9625_s3 + $0x18] sm:$0xff] }
  0x3b   :  { %415 = vmatpush.msra.mxu3 %v244_v59  ;;  %683 = vmatpush.msra.mxu1 %v5236_v17  ;;  %v5476_v55 = vld [vmem:[%s9625_s3 + $0x90] sm:$0xff]  ;;  %10283 = vst [vmem:[#allocation25_spill] sm:$0xff] %v5481_v56 }
  0x3c   :  { %657 = vmatpush.msra.mxu2 %v5150_v2  ;;  %v5489_v59 = vld [vmem:[%s9625_s3 + $0x70] sm:$0xff] }
  0x3d   :  { %416 = vmatpush.msra.mxu3 %v240_v62  ;;  %3805 = vmatmul.msk.f32.gmra.mxu2 %vm253_vm0, %v230_v63  ;;  %v5494_v62 = vld [vmem:[%s9625_s3 + $0x50] sm:$0xff] }
  0x3e   :  { %3812 = vmatmul.msk.f32.vlgmr.msra.gmra.mxu3 %vm253_vm0, %v229_v52  ;;  %658 = vmatpush.msra.mxu2 %v5164_v4  ;;  %10284 = vst [vmem:[#allocation26_spill] sm:$0xff] %v5494_v62 }
  0x3f   :  { %3796 = vmatmul.msk.f32.vlgmr.msrb.gmra.mxu1 %vm253_vm0, %v229_v52  ;;  %714 = vmatpush.msrb.mxu3 %v5144_v1  ;;  %v5436_v52 = vld [vmem:[%s9625_s3 + $0xd0] sm:$0xff] }
  0x40   :  { %659 = vmatpush.msra.mxu2 %v5183_v7  ;;  %3790 = vmatmul.msk.f32.gmra.mxu0 %vm253_vm0, %v231_v10 }
  0x41   :  { %715 = vmatpush.msrb.mxu3 %v5157_v3  ;;  %684 = vmatpush.msra.mxu1 %v5255_v20 }
  0x42   :  { %660 = vmatpush.msra.mxu2 %v5204_v11 }
  0x43   :  { %716 = vmatpush.msrb.mxu3 %v5175_v6  ;;  %685 = vmatpush.msra.mxu1 %v5303_v28 }
  0x44   :  { %661 = vmatpush.msra.mxu2 %v5217_v13 }
  0x45   :  { %717 = vmatpush.msrb.mxu3 %v5194_v9  ;;  %3806 = vmatmul.msk.f32.gmra.mxu2 %vm253_vm0, %v231_v10 }
  0x46   :  { %3813 = vmatmul.msk.f32.gmra.mxu3 %vm253_vm0, %v230_v63  ;;  %662 = vmatpush.msra.mxu2 %v5230_v16 }
  0x47   :  { %3797 = vmatmul.msk.f32.gmra.mxu1 %vm253_vm0, %v230_v63  ;;  %718 = vmatpush.msrb.mxu3 %v5210_v12  ;;  %v5500_v63 = vld [vmem:[%s9625_s3 + $0x30] sm:$0xff] }
  0x48   :  { %663 = vmatpush.msra.mxu2 %v5249_v19  ;;  %3791 = vmatmul.msk.f32.gmra.mxu0 %vm253_vm0, %v232_v22  ;;  %10285 = vst [vmem:[#allocation27_spill] sm:$0xff] %v5500_v63 }
  0x49   :  { %719 = vmatpush.msrb.mxu3 %v5224_v15  ;;  %686 = vmatpush.msra.mxu1 %v5315_v31 }
  0x4a   :  { %664 = vmatpush.msra.mxu2 %v5270_v23 }
  0x4b   :  { %720 = vmatpush.msrb.mxu3 %v5242_v18  ;;  %687 = vmatpush.msra.mxu1 %v5360_v39 }
  0x4c   :  { %665 = vmatpush.msra.mxu2 %v5283_v25 }
  0x4d   :  { %721 = vmatpush.msrb.mxu3 %v5261_v21  ;;  %3807 = vmatmul.msk.f32.gmra.mxu2 %vm253_vm0, %v232_v22 }
  0x4e   :  { %3814 = vmatmul.msk.f32.gmra.mxu3 %vm253_vm0, %v231_v10  ;;  %666 = vmatpush.msra.mxu2 %v5297_v27 }
  0x4f   :  { %3798 = vmatmul.msk.f32.gmra.mxu1 %vm253_vm0, %v231_v10  ;;  %722 = vmatpush.msrb.mxu3 %v5277_v24  ;;  %v5506_v10 = vld [vmem:[%s9625_s3 + $0x10] sm:$0xff] }
  0x50   :  { %667 = vmatpush.msra.mxu2 %v5321_v32  ;;  %10286 = vst [vmem:[#allocation28_spill] sm:$0xff] %v5506_v10  ;;  %v5618_v32 = vld [vmem:[#allocation8 + $0x1f0] sm:$0xff] }
  0x51   :  { %723 = vmatpush.msrb.mxu3 %v5291_v26  ;;  %10323 = vst [vmem:[#allocation65_spill] sm:$0xff] %v5618_v32 }
  0x52   :  { %668 = vmatpush.msra.mxu2 %v5334_v34  ;;  %v5536_v34 = vld [vmem:[#allocation8 + $0x188] sm:$0xff] }
  0x53   :  { %724 = vmatpush.msrb.mxu3 %v5310_v30  ;;  %10297 = vst [vmem:[#allocation39_spill] sm:$0xff] %v5536_v34 }
  0x54   :  { %669 = vmatpush.msra.mxu2 %v5341_v35  ;;  %v5518_v35 = vld [vmem:[#allocation8 + $0x1c0] sm:$0xff] }
  0x55   :  { %725 = vmatpush.msrb.mxu3 %v5329_v33  ;;  %3808 = vmatmul.msk.f32.gmra.mxu2 %vm253_vm0, %v4969_v14  ;;  %10290 = vst [vmem:[#allocation32_spill] sm:$0xff] %v5518_v35 }
  0x56   :  { %3815 = vmatmul.msk.f32.gmra.mxu3 %vm253_vm0, %v232_v22  ;;  %694 = vmatpush.msrb.mxu2 %v5350_v36 }
  0x57   :  { %3799 = vmatmul.msk.f32.gmra.mxu1 %vm253_vm0, %v232_v22  ;;  %726 = vmatpush.msrb.mxu3 %v5355_v37  ;;  %v5510_v22 = vld [vmem:[#allocation8 + $0x1e0] sm:$0xff] }
  0x58   :  { %695 = vmatpush.msrb.mxu2 %v5374_v43  ;;  %10287 = vst [vmem:[#allocation29_spill] sm:$0xff] %v5510_v22  ;;  %805 = vmatpush.msra.mxu0 %v5510_v22  ;;  %v5531_v22 = vld [vmem:[#allocation8 + $0x1b8] sm:$0xff] }
  0x59   :  { %727 = vmatpush.msrb.mxu3 %v5367_v40  ;;  %10295 = vst [vmem:[#allocation37_spill] sm:$0xff] %v5531_v22  ;;  %v5552_v40 = vld [vmem:[#allocation8 + $0x140] sm:$0xff] }
  0x5a   :  { %696 = vmatpush.msrb.mxu2 %v5382_v44  ;;  %806 = vmatpush.msra.mxu0 %v5518_v35  ;;  %v5543_v35 = vld [vmem:[#allocation8 + $0x160] sm:$0xff]  ;;  %10302 = vst [vmem:[#allocation44_spill] sm:$0xff] %v5552_v40 }
  0x5b   :  { %10299 = vst [vmem:[#allocation41_spill] sm:$0xff] %v5543_v35 }
  0x5c   :  { %697 = vmatpush.msrb.mxu2 %v5388_v45 }
  0x5d   :  { %3809 = vmatmul.msk.f32.gmra.mxu2 %vm253_vm0, %v5014_v29 }
  0x5e   :  { %3816 = vmatmul.msk.f32.gmra.mxu3 %vm253_vm0, %v4969_v14  ;;  %698 = vmatpush.msrb.mxu2 %v5398_v47 }
  0x5f   :  { %3800 = vmatmul.msk.f32.gmra.mxu1 %vm253_vm0, %v4969_v14  ;;  %v5412_v14 = vld [vmem:[%s9625_s3 + $0x130] sm:$0xff] }
  0x60   :  { %699 = vmatpush.msrb.mxu2 %v5406_v48 }
  0x62   :  { %700 = vmatpush.msrb.mxu2 %v5412_v14 }
  0x64   :  { %701 = vmatpush.msrb.mxu2 %v5418_v50 }
  0x65   :  { %3810 = vmatmul.msk.f32.gmra.mxu2 %vm253_vm0, %v5061_v42 }
  0x66   :  { %3817 = vmatmul.msk.f32.gmra.mxu3 %vm253_vm0, %v5014_v29  ;;  %702 = vmatpush.msrb.mxu2 %v5428_v51 }
  0x67   :  { %3801 = vmatmul.msk.f32.gmra.mxu1 %vm253_vm0, %v5014_v29  ;;  %v5453_v29 = vld [vmem:[%s9625_s3 + $0x28] sm:$0xff] }
  0x68   :  { %703 = vmatpush.msrb.mxu2 %v5436_v52  ;;  %10280 = vst [vmem:[#allocation22_spill] sm:$0xff] %v5453_v29  ;;  %688 = vmatpush.msra.mxu1 %v5453_v29  ;;  %v5523_v29 = vld [vmem:[#allocation8 + $0x1d8] sm:$0xff] }
  0x69   :  { %10292 = vst [vmem:[#allocation34_spill] sm:$0xff] %v5523_v29 }
  0x6a   :  { %704 = vmatpush.msrb.mxu2 %v5458_v54 }
  0x6c   :  { %705 = vmatpush.msrb.mxu2 %v5476_v55 }
  0x6d   :  { %3811 = vmatmul.msk.f32.gmra.mxu2 %vm253_vm0, %v5101_v53 }
  0x6e   :  { %3818 = vmatmul.msk.f32.gmra.mxu3 %vm253_vm0, %v5061_v42  ;;  %706 = vmatpush.msrb.mxu2 %v5489_v59 }
  0x6f   :  { %3802 = vmatmul.msk.f32.gmra.mxu1 %vm253_vm0, %v5061_v42  ;;  %v5463_v42 = vld [vmem:[%s9625_s3 + $0x38] sm:$0xff] }
  0x70   :  { %10281 = vst [vmem:[#allocation23_spill] sm:$0xff] %v5463_v42  ;;  %728 = vmatpush.msrb.mxu3 %v5463_v42  ;;  %707 = vmatpush.msrb.mxu2 %v5494_v62  ;;  %v5520_v42 = vld [vmem:[#allocation8 + $0x1c8] sm:$0xff] }
  0x71   :  { %10291 = vst [vmem:[#allocation33_spill] sm:$0xff] %v5520_v42 }
  0x72   :  { %729 = vmatpush.msrb.mxu3 %v5481_v56  ;;  %708 = vmatpush.msrb.mxu2 %v5500_v63  ;;  %v5512_v56 = vld [vmem:[#allocation8 + $0x1e8] sm:$0xff]  ;;  %v5525_v63 = vld [vmem:[#allocation8 + $0x1a0] sm:$0xff] }
  0x73   :  { %10288 = vst [vmem:[#allocation30_spill] sm:$0xff] %v5512_v56  ;;  %807 = vmatpush.msra.mxu0 %v5525_v63 }
  0x74   :  { %709 = vmatpush.msrb.mxu2 %v5506_v10  ;;  %10293 = vst [vmem:[#allocation35_spill] sm:$0xff] %v5525_v63  ;;  %v5529_v10 = vld [vmem:[#allocation8 + $0x1a8] sm:$0xff] }
  0x75   :  { %10294 = vst [vmem:[#allocation36_spill] sm:$0xff] %v5529_v10  ;;  %v5554_v63 = vld [vmem:[#allocation8 + $0x148] sm:$0xff] }
  0x76   :  { %3819 = vmatmul.msk.f32.gmra.mxu3 %vm253_vm0, %v5101_v53  ;;  %10303 = vst [vmem:[#allocation45_spill] sm:$0xff] %v5554_v63 }
  0x77   :  { %3803 = vmatmul.msk.f32.gmra.mxu1 %vm253_vm0, %v5101_v53  ;;  %v5471_v53 = vld [vmem:[%s9625_s3 + $0x8] sm:$0xff] }
  0x78   :  { %10282 = vst [vmem:[#allocation24_spill] sm:$0xff] %v5471_v53  ;;  %689 = vmatpush.msra.mxu1 %v5471_v53  ;;  %v5516_v53 = vld [vmem:[#allocation8 + $0x1f8] sm:$0xff] }
  0x79   :  { %10289 = vst [vmem:[#allocation31_spill] sm:$0xff] %v5516_v53  ;;  %865 = vmatpush.msra.mxu3 %v5516_v53  ;;  %v5540_v53 = vld [vmem:[#allocation8 + $0x198] sm:$0xff] }
  0x7a   :  { %825 = vmatpush.msrb.mxu1 %v5512_v56  ;;  %v5534_v56 = vld [vmem:[#allocation8 + $0x180] sm:$0xff]  ;;  %10298 = vst [vmem:[#allocation40_spill] sm:$0xff] %v5540_v53 }
  0x7b   :  { %866 = vmatpush.msra.mxu3 %v5523_v29  ;;  %10296 = vst [vmem:[#allocation38_spill] sm:$0xff] %v5534_v56  ;;  %808 = vmatpush.msra.mxu0 %v5534_v56  ;;  %v5549_v29 = vld [vmem:[#allocation8 + $0x178] sm:$0xff]  ;;  %v5563_v56 = vld [vmem:[#allocation8 + $0x128] sm:$0xff] }
  0x7c   :  { %826 = vmatpush.msrb.mxu1 %v5520_v42  ;;  %v5545_v42 = vld [vmem:[#allocation8 + $0x168] sm:$0xff]  ;;  %10301 = vst [vmem:[#allocation43_spill] sm:$0xff] %v5549_v29 }
  0x7d   :  { %867 = vmatpush.msra.mxu3 %v5531_v22  ;;  %10300 = vst [vmem:[#allocation42_spill] sm:$0xff] %v5545_v42  ;;  %809 = vmatpush.msra.mxu0 %v5543_v35  ;;  %v5558_v22 = vld [vmem:[#allocation8 + $0x158] sm:$0xff]  ;;  %v5572_v35 = vld [vmem:[#allocation8 + $0x108] sm:$0xff] }
  0x7e   :  { %827 = vmatpush.msrb.mxu1 %v5529_v10  ;;  %10304 = vst [vmem:[#allocation46_spill] sm:$0xff] %v5558_v22  ;;  %v5561_v10 = vld [vmem:[#allocation8 + $0x120] sm:$0xff] }
  0x7f   :  { %868 = vmatpush.msra.mxu3 %v5540_v53  ;;  %10305 = vst [vmem:[#allocation47_spill] sm:$0xff] %v5561_v10  ;;  %810 = vmatpush.msra.mxu0 %v5552_v40  ;;  %v5567_v53 = vld [vmem:[#allocation8 + $0x138] sm:$0xff]  ;;  %v5581_v40 = vld [vmem:[#allocation8 + $0xe8] sm:$0xff] }
  0x80   :  { %828 = vmatpush.msrb.mxu1 %v5536_v34  ;;  %10306 = vst [vmem:[#allocation48_spill] sm:$0xff] %v5563_v56  ;;  %v5570_v34 = vld [vmem:[#allocation8 + $0x100] sm:$0xff] }
  0x81   :  { %869 = vmatpush.msra.mxu3 %v5549_v29  ;;  %10307 = vst [vmem:[#allocation49_spill] sm:$0xff] %v5567_v53  ;;  %811 = vmatpush.msra.mxu0 %v5561_v10  ;;  %v5576_v29 = vld [vmem:[#allocation8 + $0x118] sm:$0xff] }
  0x82   :  { %829 = vmatpush.msrb.mxu1 %v5545_v42  ;;  %10308 = vst [vmem:[#allocation50_spill] sm:$0xff] %v5570_v34  ;;  %v5579_v42 = vld [vmem:[#allocation8 + $0xe0] sm:$0xff]  ;;  %v5590_v10 = vld [vmem:[#allocation8 + $0xf8] sm:$0xff] }
  0x83   :  { %870 = vmatpush.msra.mxu3 %v5558_v22  ;;  %10309 = vst [vmem:[#allocation51_spill] sm:$0xff] %v5572_v35  ;;  %v5586_v22 = vld [vmem:[%s9630_s8] sm:$0xf]  ;;  %812 = vmatpush.msra.mxu0 %v5570_v34 }
  0x84   :  { %830 = vmatpush.msrb.mxu1 %v5554_v63  ;;  %10310 = vst [vmem:[#allocation52_spill] sm:$0xff] %v5576_v29  ;;  %v5599_v63 = vld [vmem:[#allocation8 + $0xd8] sm:$0xff]  ;;  %v137_v62 = vperm.slane %v5586_v22, 0  ;;  %v5603_v34 = vld [vmem:[#allocation8 + $0xa0] sm:$0xff]  ;;  %v138_v37 = vperm.slane %v5586_v22, 1 }
  0x85   :  { %871 = vmatpush.msra.mxu3 %v5567_v53  ;;  %10311 = vst [vmem:[#allocation53_spill] sm:$0xff] %v5579_v42  ;;  %v5595_v53 = vld [vmem:[#allocation8 + $0xc8] sm:$0xff]  ;;  %813 = vmatpush.msra.mxu0 %v5579_v42  ;;  %v5612_v42 = vld [vmem:[#allocation8 + $0x80] sm:$0xff] }
  0x86   :  { %831 = vmatpush.msrb.mxu1 %v5563_v56  ;;  %10312 = vst [vmem:[#allocation54_spill] sm:$0xff] %v5581_v40  ;;  %v5593_v56 = vld [vmem:[#allocation8 + $0xc0] sm:$0xff] }
  0x87   :  { %10313 = vst [vmem:[#allocation55_spill] sm:$0xff] %v5586_v22  ;;  %872 = vmatpush.msra.mxu3 %v5576_v29  ;;  %814 = vmatpush.msra.mxu0 %v5593_v56  ;;  %v5609_v29 = vld [vmem:[#allocation8 + $0xb8] sm:$0xff]  ;;  %v5665_v22 = vld [vmem:[#allocation8] sm:$0xff] }
  0x88   :  { %832 = vmatpush.msrb.mxu1 %v5572_v35  ;;  %10314 = vst [vmem:[#allocation56_spill] sm:$0xff] %v5590_v10  ;;  %v5605_v35 = vld [vmem:[#allocation8 + $0xa8] sm:$0xff] }
  0x89   :  { %10315 = vst [vmem:[#allocation57_spill] sm:$0xff] %v5593_v56  ;;  %873 = vmatpush.msra.mxu3 %v5590_v10  ;;  %815 = vmatpush.msra.mxu0 %v5603_v34  ;;  %v5627_v56 = vld [vmem:[#allocation8 + $0x1d0] sm:$0xff] }
  0x8a   :  { %10316 = vst [vmem:[#allocation58_spill] sm:$0xff] %v5595_v53  ;;  %833 = vmatpush.msrb.mxu1 %v5581_v40  ;;  %v5614_v40 = vld [vmem:[#allocation8 + $0x88] sm:$0xff] }
  0x8b   :  { %10317 = vst [vmem:[#allocation59_spill] sm:$0xff] %v5599_v63  ;;  %874 = vmatpush.msra.mxu3 %v5599_v63  ;;  %816 = vmatpush.msra.mxu0 %v5612_v42  ;;  %v5625_v63 = vld [vmem:[#allocation8 + $0x60] sm:$0xff] }
  0x8c   :  { %10318 = vst [vmem:[#allocation60_spill] sm:$0xff] %v5603_v34  ;;  %834 = vmatpush.msrb.mxu1 %v5595_v53  ;;  %v5623_v53 = vld [vmem:[#allocation8 + $0x98] sm:$0xff]  ;;  %v5629_v34 = vld [vmem:[#allocation8 + $0x68] sm:$0xff] }
  0x8d   :  { %10319 = vst [vmem:[#allocation61_spill] sm:$0xff] %v5605_v35  ;;  %875 = vmatpush.msra.mxu3 %v5609_v29  ;;  %817 = vmatpush.msra.mxu0 %v5625_v63 }
  0x8e   :  { %10320 = vst [vmem:[#allocation62_spill] sm:$0xff] %v5609_v29  ;;  %835 = vmatpush.msrb.mxu1 %v5605_v35  ;;  %v5644_v29 = vld [vmem:[#allocation8 + $0x58] sm:$0xff]  ;;  %v5646_v35 = vld [vmem:[#allocation8 + $0x20] sm:$0xff] }
  0x8f   :  { %10321 = vst [vmem:[#allocation63_spill] sm:$0xff] %v5612_v42  ;;  %v5636_v42 = vld [vmem:[#allocation8 + $0x1b0] sm:$0xff]  ;;  %876 = vmatpush.msra.mxu3 %v5623_v53 }
  0x90   :  { %10322 = vst [vmem:[#allocation64_spill] sm:$0xff] %v5614_v40  ;;  %836 = vmatpush.msrb.mxu1 %v5614_v40  ;;  %v5640_v40 = vld [vmem:[#allocation8 + $0x48] sm:$0xff] }
  0x91   :  { %10324 = vst [vmem:[#allocation66_spill] sm:$0xff] %v5623_v53  ;;  %v5653_v53 = vld [vmem:[#allocation8 + $0x28] sm:$0xff] }
  0x92   :  { %10325 = vst [vmem:[#allocation67_spill] sm:$0xff] %v5625_v63  ;;  %837 = vmatpush.msrb.mxu1 %v5629_v34 }
  0x93   :  { %10326 = vst [vmem:[#allocation68_spill] sm:$0xff] %v5627_v56 }
  0x94   :  { %10327 = vst [vmem:[#allocation69_spill] sm:$0xff] %v5629_v34  ;;  %838 = vmatpush.msrb.mxu1 %v5640_v40  ;;  %v5659_v34 = vld [vmem:[#allocation8 + $0x38] sm:$0xff] }
  0x95   :  { %10330 = vst [vmem:[#allocation72_spill] sm:$0xff] %v5636_v42 }
  0x96   :  { %10331 = vst [vmem:[#allocation73_spill] sm:$0xff] %v5640_v40  ;;  %839 = vmatpush.msrb.mxu1 %v5653_v53  ;;  %v5673_v40 = vld [vmem:[#allocation8 + $0x150] sm:$0xff] }
  0x97   :  { %10332 = vst [vmem:[#allocation74_spill] sm:$0xff] %v5644_v29 }
  0x98   :  { %10333 = vst [vmem:[#allocation75_spill] sm:$0xff] %v5646_v35 }
  0x99   :  { %10335 = vst [vmem:[#allocation77_spill] sm:$0xff] %v5653_v53  ;;  %v5683_v53 = vld [vmem:[#allocation8 + $0x110] sm:$0xff] }
  0x9a   :  { %10337 = vst [vmem:[#allocation79_spill] sm:$0xff] %v5659_v34 }
  0x9b   :  { %10339 = vst [vmem:[#allocation81_spill] sm:$0xff] %v5665_v22 }
  0x9c   :  { %v5655_v63 = vpop.f32.mrf.mxu1  ;;  %10342 = vst [vmem:[#allocation84_spill] sm:$0xff] %v5673_v40 }
  0x9d   :  { %10336 = vst [vmem:[#allocation78_spill] sm:$0xff] %v5655_v63  ;;  %v5669_v63 = vld [vmem:[#allocation8 + $0x8] sm:$0xff] }
  0x9e   :  { %10340 = vst [vmem:[#allocation82_spill] sm:$0xff] %v5669_v63  ;;  %840 = vmatpush.msrb.mxu1 %v5669_v63  ;;  %v5697_v63 = vld [vmem:[#allocation8 + $0x90] sm:$0xff] }
  0x9f   :  { %10344 = vst [vmem:[#allocation86_spill] sm:$0xff] %v5683_v53 }
  0xa0   :  { %10349 = vst [vmem:[#allocation91_spill] sm:$0xff] %v5697_v63 }
  0xa1   :  { %v166_v39 = vpop.f32.mrf.mxu0 }
  0xa2   :  { %v167_v10 = vadd.f32 %v166_v39, %v137_v62  ;;  %v5632_v39 = vld [vmem:[#allocation8 + $0x78] sm:$0xff]  ;;  %v5634_v62 = vld [vmem:[#allocation8 + $0x40] sm:$0xff] }
  0xa3   :  { %10328 = vst [vmem:[#allocation70_spill] sm:$0xff] %v5632_v39  ;;  %877 = vmatpush.msra.mxu3 %v5632_v39  ;;  %818 = vmatpush.msra.mxu0 %v5634_v62  ;;  %v5671_v39 = vld [vmem:[#allocation8 + $0x18] sm:$0xff] }
  0xa4   :  { %670 = vmatmul.f32.vlgmr.msra.gmra.mxu2 %v167_v10  ;;  %690 = vmatmul.f32.vlgmr.msra.gmra.mxu1 %v167_v10  ;;  %10329 = vst [vmem:[#allocation71_spill] sm:$0xff] %v5634_v62 }
  0xa5   :  { %730 = vmatmul.f32.vlgmr.msrb.gmra.mxu3 %v167_v10  ;;  %845 = vmatpush.msra.mxu2 %v5618_v32  ;;  %v5648_v32 = vld [vmem:[#allocation8 + $0x190] sm:$0xff]  ;;  %10341 = vst [vmem:[#allocation83_spill] sm:$0xff] %v5671_v39 }
  0xa6   :  { %10334 = vst [vmem:[#allocation76_spill] sm:$0xff] %v5648_v32  ;;  %878 = vmatpush.msra.mxu3 %v5644_v29  ;;  %819 = vmatpush.msra.mxu0 %v5646_v35  ;;  %v5678_v35 = vld [vmem:[#allocation8 + $0x130] sm:$0xff] }
  0xa7   :  { %846 = vmatpush.msra.mxu2 %v5627_v56  ;;  %v5661_v56 = vld [vmem:[#allocation8 + $0x170] sm:$0xff]  ;;  %10343 = vst [vmem:[#allocation85_spill] sm:$0xff] %v5678_v35 }
  0xa8   :  { %10338 = vst [vmem:[#allocation80_spill] sm:$0xff] %v5661_v56  ;;  %879 = vmatpush.msra.mxu3 %v5659_v34  ;;  %820 = vmatpush.msra.mxu0 %v5665_v22  ;;  %v5700_v22 = vld [vmem:[#allocation8 + $0x70] sm:$0xff] }
  0xa9   :  { %847 = vmatpush.msra.mxu2 %v5636_v42  ;;  %v186_v62 = vpop.f32.mrf.mxu3  ;;  %10350 = vst [vmem:[#allocation92_spill] sm:$0xff] %v5700_v22  ;;  %v5703_v34 = vld [vmem:[#allocation8 + $0x50] sm:$0xff] }
  0xaa   :  { %v187_v42 = vadd.f32 %v186_v62, %v138_v37  ;;  %880 = vmatpush.msra.mxu3 %v5671_v39  ;;  %v5686_v37 = vld [vmem:[#allocation8 + $0xf0] sm:$0xff]  ;;  %10351 = vst [vmem:[#allocation93_spill] sm:$0xff] %v5703_v34 }
  0xab   :  { %848 = vmatpush.msra.mxu2 %v5648_v32  ;;  %10345 = vst [vmem:[#allocation87_spill] sm:$0xff] %v5686_v37  ;;  %v5691_v62 = vld [vmem:[#allocation8 + $0xd0] sm:$0xff] }
  0xac   :  { %710 = vmatmul.f32.vlgmr.msrb.gmra.mxu2 %v167_v10  ;;  %821 = vmatmul.f32.vlgmr.msra.gmra.mxu0 %v187_v42  ;;  %v5688_v10 = vpop.f32.mrf.mxu1  ;;  %10347 = vst [vmem:[#allocation89_spill] sm:$0xff] %v5691_v62  ;;  %v5694_v39 = vld [vmem:[#allocation8 + $0xb0] sm:$0xff] }
  0xad   :  { %849 = vmatpush.msra.mxu2 %v5661_v56  ;;  %841 = vmatmul.f32.vlgmr.msrb.gmra.mxu1 %v187_v42  ;;  %10346 = vst [vmem:[#allocation88_spill] sm:$0xff] %v5688_v10  ;;  %v5708_v29 = vld [vmem:[#allocation8 + $0x30] sm:$0xff] }
  0xae   :  { %881 = vmatmul.f32.vlgmr.msra.gmra.mxu3 %v187_v42  ;;  %10348 = vst [vmem:[#allocation90_spill] sm:$0xff] %v5694_v39 }
  0xaf   :  { %850 = vmatpush.msra.mxu2 %v5673_v40  ;;  %10353 = vst [vmem:[#allocation95_spill] sm:$0xff] %v5708_v29 }
  0xb1   :  { %851 = vmatpush.msra.mxu2 %v5678_v35  ;;  %v5729_v35 = vld [vmem:[#allocation6 + $0x1e8] sm:$0xff] }
  0xb2   :  { %10359 = vst [vmem:[#allocation101_spill] sm:$0xff] %v5729_v35  ;;  %905 = vmatpush.msra.mxu1 %v5729_v35 }
  0xb3   :  { %852 = vmatpush.msra.mxu2 %v5683_v53 }
  0xb4   :  { %v5705_v10 = vpop.f32.mrf.mxu1 }
  0xb5   :  { %853 = vmatpush.msra.mxu2 %v5686_v37  ;;  %10352 = vst [vmem:[#allocation94_spill] sm:$0xff] %v5705_v10  ;;  %v5711_v37 = vld [vmem:[#allocation8 + $0x10] sm:$0xff] }
  0xb6   :  { %10354 = vst [vmem:[#allocation96_spill] sm:$0xff] %v5711_v37 }
  0xb7   :  { %854 = vmatpush.msra.mxu2 %v5691_v62 }
  0xb9   :  { %855 = vmatpush.msra.mxu2 %v5694_v39  ;;  %v5719_v62 = vpop.f32.mrf.mxu3 }
  0xba   :  { %10357 = vst [vmem:[#allocation99_spill] sm:$0xff] %v5719_v62 }
  0xbb   :  { %856 = vmatpush.msra.mxu2 %v5697_v63  ;;  %v5717_v63 = vpop.f32.mrf.mxu2 }
  0xbc   :  { %v5715_v39 = vpop.f32.mrf.mxu1  ;;  %10356 = vst [vmem:[#allocation98_spill] sm:$0xff] %v5717_v63 }
  0xbd   :  { %857 = vmatpush.msra.mxu2 %v5700_v22  ;;  %10355 = vst [vmem:[#allocation97_spill] sm:$0xff] %v5715_v39 }
  0xbf   :  { %858 = vmatpush.msra.mxu2 %v5703_v34  ;;  %v5727_v34 = vld [vmem:[#allocation6 + $0x1e0] sm:$0xff] }
  0xc0   :  { %10358 = vst [vmem:[#allocation100_spill] sm:$0xff] %v5727_v34  ;;  %885 = vmatpush.msrb.mxu0 %v5727_v34 }
  0xc1   :  { %859 = vmatpush.msra.mxu2 %v5708_v29  ;;  %v5725_v53 = vpop.f32.mrf.mxu3  ;;  %v5731_v29 = vld [vmem:[#allocation6 + $0x1f0] sm:$0xff] }
  0xc2   :  { %10360 = vst [vmem:[#allocation102_spill] sm:$0xff] %v5731_v29 }
  0xc3   :  { %860 = vmatpush.msra.mxu2 %v5711_v37  ;;  %v5723_v22 = vpop.f32.mrf.mxu2 }
  0xc4   :  { %861 = vmatmul.f32.vlgmr.msra.gmra.mxu2 %v187_v42  ;;  %v5721_v10 = vpop.f32.mrf.mxu1  ;;  %v5735_v42 = vld [vmem:[#allocation6 + $0x1f8] sm:$0xff] }
  0xc5   :  { %10361 = vst [vmem:[#allocation103_spill] sm:$0xff] %v5735_v42  ;;  %925 = vmatpush.msrb.mxu2 %v5731_v29  ;;  %945 = vmatpush.msrb.mxu3 %v5735_v42 }
  0xc9   :  { %v5743_v37 = vpop.f32.mrf.mxu3 }
  0xca   :  { %10364 = vst [vmem:[#allocation106_spill] sm:$0xff] %v5743_v37  ;;  %v5765_v37 = vld [vmem:[#allocation6 + $0x1c8] sm:$0xff] }
  0xcb   :  { %v5741_v62 = vpop.f32.mrf.mxu2  ;;  %906 = vmatpush.msra.mxu1 %v5765_v37 }
  0xcc   :  { %v5737_v39 = vpop.f32.mrf.mxu1  ;;  %10363 = vst [vmem:[#allocation105_spill] sm:$0xff] %v5741_v62  ;;  %v5763_v62 = vld [vmem:[#allocation6 + $0x1c0] sm:$0xff] }
  0xcd   :  { %10362 = vst [vmem:[#allocation104_spill] sm:$0xff] %v5737_v39  ;;  %886 = vmatpush.msrb.mxu0 %v5763_v62 }
  0xd1   :  { %v5749_v32 = vpop.f32.mrf.mxu3 }
  0xd2   :  { %10367 = vst [vmem:[#allocation109_spill] sm:$0xff] %v5749_v32  ;;  %v5793_v32 = vld [vmem:[#allocation6 + $0x190] sm:$0xff] }
  0xd3   :  { %v5747_v56 = vpop.f32.mrf.mxu2  ;;  %10383 = vst [vmem:[#allocation125_spill] sm:$0xff] %v5793_v32 }
  0xd4   :  { %v5745_v40 = vpop.f32.mrf.mxu1  ;;  %10366 = vst [vmem:[#allocation108_spill] sm:$0xff] %v5747_v56  ;;  %v5791_v56 = vld [vmem:[#allocation6 + $0x188] sm:$0xff] }
  0xd5   :  { %10365 = vst [vmem:[#allocation107_spill] sm:$0xff] %v5745_v40  ;;  %v5767_v40 = vld [vmem:[#allocation6 + $0x1d0] sm:$0xff] }
  0xd6   :  { %10374 = vst [vmem:[#allocation116_spill] sm:$0xff] %v5767_v40  ;;  %926 = vmatpush.msrb.mxu2 %v5767_v40  ;;  %v5821_v40 = vld [vmem:[#allocation6 + $0x150] sm:$0xff] }
  0xd7   :  { %10382 = vst [vmem:[#allocation124_spill] sm:$0xff] %v5791_v56 }
  0xd8   :  { %10393 = vst [vmem:[#allocation135_spill] sm:$0xff] %v5821_v40 }
  0xd9   :  { %v5755_v63 = vpop.f32.mrf.mxu3 }
  0xda   :  { %10370 = vst [vmem:[#allocation112_spill] sm:$0xff] %v5755_v63  ;;  %v5785_v63 = vld [vmem:[#allocation6 + $0x1b8] sm:$0xff] }
  0xdb   :  { %v5753_v35 = vpop.f32.mrf.mxu2  ;;  %10380 = vst [vmem:[#allocation122_spill] sm:$0xff] %v5785_v63 }
  0xdc   :  { %v5751_v34 = vpop.f32.mrf.mxu1  ;;  %10369 = vst [vmem:[#allocation111_spill] sm:$0xff] %v5753_v35 }
  0xdd   :  { %10368 = vst [vmem:[#allocation110_spill] sm:$0xff] %v5751_v34  ;;  %v5771_v34 = vld [vmem:[#allocation6 + $0x1d8] sm:$0xff] }
  0xde   :  { %10375 = vst [vmem:[#allocation117_spill] sm:$0xff] %v5771_v34  ;;  %946 = vmatpush.msrb.mxu3 %v5771_v34  ;;  %v5797_v34 = vld [vmem:[#allocation6 + $0x198] sm:$0xff] }
  0xdf   :  { %10384 = vst [vmem:[#allocation126_spill] sm:$0xff] %v5797_v34 }
  0xe0   :  { %947 = vmatpush.msrb.mxu3 %v5785_v63  ;;  %v5805_v63 = vld [vmem:[#allocation6 + $0x170] sm:$0xff] }
  0xe1   :  { %v5761_v42 = vpop.f32.mrf.mxu3  ;;  %10387 = vst [vmem:[#allocation129_spill] sm:$0xff] %v5805_v63 }
  0xe2   :  { %10373 = vst [vmem:[#allocation115_spill] sm:$0xff] %v5761_v42  ;;  %v5779_v42 = vld [vmem:[#allocation6 + $0x1a8] sm:$0xff]  ;;  %948 = vmatpush.msrb.mxu3 %v5797_v34  ;;  %v5817_v34 = vld [vmem:[#allocation6 + $0x140] sm:$0xff] }
  0xe3   :  { %v5759_v29 = vpop.f32.mrf.mxu2  ;;  %10378 = vst [vmem:[#allocation120_spill] sm:$0xff] %v5779_v42  ;;  %907 = vmatpush.msra.mxu1 %v5779_v42  ;;  %v5801_v42 = vld [vmem:[#allocation6 + $0x160] sm:$0xff] }
  0xe4   :  { %v5757_v39 = vpop.f32.mrf.mxu1  ;;  %10372 = vst [vmem:[#allocation114_spill] sm:$0xff] %v5759_v29  ;;  %v5777_v29 = vld [vmem:[#allocation6 + $0x1a0] sm:$0xff] }
  0xe5   :  { %10371 = vst [vmem:[#allocation113_spill] sm:$0xff] %v5757_v39  ;;  %v5781_v39 = vld [vmem:[#allocation6 + $0x1b0] sm:$0xff]  ;;  %887 = vmatpush.msrb.mxu0 %v5777_v29  ;;  %908 = vmatpush.msra.mxu1 %v5791_v56 }
  0xe6   :  { %10377 = vst [vmem:[#allocation119_spill] sm:$0xff] %v5777_v29  ;;  %927 = vmatpush.msrb.mxu2 %v5781_v39 }
  0xe7   :  { %10379 = vst [vmem:[#allocation121_spill] sm:$0xff] %v5781_v39  ;;  %v5803_v39 = vld [vmem:[#allocation6 + $0x168] sm:$0xff] }
  0xe8   :  { %928 = vmatpush.msrb.mxu2 %v5793_v32  ;;  %10385 = vst [vmem:[#allocation127_spill] sm:$0xff] %v5801_v42  ;;  %909 = vmatpush.msra.mxu1 %v5803_v39  ;;  %v5819_v32 = vld [vmem:[#allocation6 + $0x148] sm:$0xff] }
  0xe9   :  { %10386 = vst [vmem:[#allocation128_spill] sm:$0xff] %v5803_v39  ;;  %v5813_v56 = vpop.f32.mrf.mxu3 }
  0xea   :  { %10390 = vst [vmem:[#allocation132_spill] sm:$0xff] %v5813_v56  ;;  %929 = vmatpush.msrb.mxu2 %v5805_v63  ;;  %910 = vmatpush.msra.mxu1 %v5819_v32  ;;  %v5829_v56 = vld [vmem:[#allocation6 + $0x120] sm:$0xff]  ;;  %v5831_v63 = vld [vmem:[#allocation6 + $0x128] sm:$0xff] }
  0xeb   :  { %v5807_v29 = vpop.f32.mrf.mxu2  ;;  %10391 = vst [vmem:[#allocation133_spill] sm:$0xff] %v5817_v34 }
  0xec   :  { %v5773_v35 = vpop.f32.mrf.mxu1  ;;  %10388 = vst [vmem:[#allocation130_spill] sm:$0xff] %v5807_v29  ;;  %v5825_v29 = vld [vmem:[#allocation6 + $0x158] sm:$0xff]  ;;  %930 = vmatpush.msrb.mxu2 %v5821_v40  ;;  %911 = vmatpush.msra.mxu1 %v5831_v63  ;;  %v5843_v40 = vld [vmem:[#allocation6 + $0x100] sm:$0xff] }
  0xed   :  { %10376 = vst [vmem:[#allocation118_spill] sm:$0xff] %v5773_v35  ;;  %v5789_v35 = vld [vmem:[#allocation6 + $0x180] sm:$0xff] }
  0xee   :  { %10381 = vst [vmem:[#allocation123_spill] sm:$0xff] %v5789_v35  ;;  %888 = vmatpush.msrb.mxu0 %v5789_v35  ;;  %v5811_v35 = vld [vmem:[#allocation6 + $0x178] sm:$0xff] }
  0xef   :  { %10389 = vst [vmem:[#allocation131_spill] sm:$0xff] %v5811_v35  ;;  %949 = vmatpush.msrb.mxu3 %v5811_v35  ;;  %v5833_v35 = vld [vmem:[#allocation6 + $0x130] sm:$0xff] }
  0xf0   :  { %889 = vmatpush.msrb.mxu0 %v5801_v42  ;;  %10392 = vst [vmem:[#allocation134_spill] sm:$0xff] %v5819_v32  ;;  %931 = vmatpush.msrb.mxu2 %v5833_v35  ;;  %v5847_v32 = vld [vmem:[#allocation6 + $0x110] sm:$0xff] }
  0xf1   :  { %10394 = vst [vmem:[#allocation136_spill] sm:$0xff] %v5825_v29  ;;  %950 = vmatpush.msrb.mxu3 %v5825_v29  ;;  %v5845_v29 = vld [vmem:[#allocation6 + $0x108] sm:$0xff]  ;;  %v5887_v42 = vld [vmem:[#allocation6 + $0xb0] sm:$0xff] }
  0xf2   :  { %890 = vmatpush.msrb.mxu0 %v5817_v34  ;;  %10395 = vst [vmem:[#allocation137_spill] sm:$0xff] %v5829_v56  ;;  %v5839_v34 = vld [vmem:[#allocation6 + $0x138] sm:$0xff]  ;;  %912 = vmatpush.msra.mxu1 %v5845_v29 }
  0xf3   :  { %10396 = vst [vmem:[#allocation138_spill] sm:$0xff] %v5831_v63  ;;  %951 = vmatpush.msrb.mxu3 %v5839_v34  ;;  %932 = vmatpush.msrb.mxu2 %v5847_v32  ;;  %v5855_v63 = vld [vmem:[#allocation6 + $0xe0] sm:$0xff] }
  0xf4   :  { %10397 = vst [vmem:[#allocation139_spill] sm:$0xff] %v5833_v35  ;;  %v5835_v39 = vpop.f32.mrf.mxu1  ;;  %891 = vmatpush.msrb.mxu0 %v5829_v56  ;;  %v5857_v35 = vld [vmem:[#allocation6 + $0xe8] sm:$0xff]  ;;  %v5863_v56 = vld [vmem:[#allocation6 + $0xf8] sm:$0xff] }
  0xf5   :  { %10398 = vst [vmem:[#allocation140_spill] sm:$0xff] %v5835_v39  ;;  %v5851_v39 = vld [vmem:[#allocation6 + $0x118] sm:$0xff]  ;;  %913 = vmatpush.msra.mxu1 %v5857_v35 }
  0xf6   :  { %10399 = vst [vmem:[#allocation141_spill] sm:$0xff] %v5839_v34  ;;  %892 = vmatpush.msrb.mxu0 %v5843_v40  ;;  %952 = vmatpush.msrb.mxu3 %v5851_v39  ;;  %v5859_v34 = vld [vmem:[#allocation6 + $0xf0] sm:$0xff] }
  0xf7   :  { %10400 = vst [vmem:[#allocation142_spill] sm:$0xff] %v5843_v40  ;;  %933 = vmatpush.msrb.mxu2 %v5859_v34  ;;  %v5873_v40 = vpop.f32.mrf.mxu2 }
  0xf8   :  { %10401 = vst [vmem:[#allocation143_spill] sm:$0xff] %v5845_v29  ;;  %893 = vmatpush.msrb.mxu0 %v5855_v63  ;;  %953 = vmatpush.msrb.mxu3 %v5863_v56  ;;  %v5867_v29 = vld [vmem:[#allocation6 + $0xc0] sm:$0xff] }
  0xf9   :  { %10402 = vst [vmem:[#allocation144_spill] sm:$0xff] %v5847_v32  ;;  %v5869_v32 = vld [vmem:[#allocation6 + $0xc8] sm:$0xff] }
  0xfa   :  { %10403 = vst [vmem:[#allocation145_spill] sm:$0xff] %v5851_v39  ;;  %v5871_v39 = vld [vmem:[#allocation6 + $0xd0] sm:$0xff]  ;;  %894 = vmatpush.msrb.mxu0 %v5867_v29  ;;  %914 = vmatpush.msra.mxu1 %v5869_v32 }
  0xfb   :  { %10404 = vst [vmem:[#allocation146_spill] sm:$0xff] %v5855_v63  ;;  %v5877_v63 = vld [vmem:[#allocation6 + $0xd8] sm:$0xff]  ;;  %934 = vmatpush.msrb.mxu2 %v5871_v39 }
  0xfc   :  { %10405 = vst [vmem:[#allocation147_spill] sm:$0xff] %v5857_v35  ;;  %v5879_v35 = vpop.f32.mrf.mxu3  ;;  %954 = vmatpush.msrb.mxu3 %v5877_v63 }
  0xfd   :  { %10406 = vst [vmem:[#allocation148_spill] sm:$0xff] %v5859_v34  ;;  %v5885_v34 = vld [vmem:[#allocation6 + $0xa8] sm:$0xff]  ;;  %935 = vmatpush.msrb.mxu2 %v5887_v42 }
  0xfe   :  { %10407 = vst [vmem:[#allocation149_spill] sm:$0xff] %v5863_v56  ;;  %v5883_v56 = vld [vmem:[#allocation6 + $0xa0] sm:$0xff]  ;;  %915 = vmatpush.msra.mxu1 %v5885_v34 }
  0xff   :  { %10408 = vst [vmem:[#allocation150_spill] sm:$0xff] %v5867_v29  ;;  %895 = vmatpush.msrb.mxu0 %v5883_v56  ;;  %v5958_v29 = vld [vmem:[#allocation6 + $0x10] sm:$0xff] }
 0x100   :  { %10409 = vst [vmem:[#allocation151_spill] sm:$0xff] %v5869_v32  ;;  %v5901_v32 = vpop.f32.mrf.mxu1 }
 0x101   :  { %10410 = vst [vmem:[#allocation152_spill] sm:$0xff] %v5871_v39  ;;  %v5897_v39 = vld [vmem:[#allocation6 + $0x88] sm:$0xff] }
 0x102   :  { %10411 = vst [vmem:[#allocation153_spill] sm:$0xff] %v5873_v40  ;;  %v5891_v40 = vld [vmem:[#allocation6 + $0xb8] sm:$0xff]  ;;  %916 = vmatpush.msra.mxu1 %v5897_v39 }
 0x103   :  { %10412 = vst [vmem:[#allocation154_spill] sm:$0xff] %v5877_v63  ;;  %955 = vmatpush.msrb.mxu3 %v5891_v40  ;;  %v5899_v63 = vld [vmem:[#allocation6 + $0x90] sm:$0xff] }
 0x104   :  { %10413 = vst [vmem:[#allocation155_spill] sm:$0xff] %v5879_v35  ;;  %v5895_v35 = vld [vmem:[#allocation6 + $0x80] sm:$0xff]  ;;  %936 = vmatpush.msrb.mxu2 %v5899_v63 }
 0x105   :  { %10414 = vst [vmem:[#allocation156_spill] sm:$0xff] %v5883_v56  ;;  %896 = vmatpush.msrb.mxu0 %v5895_v35  ;;  %v5905_v56 = vld [vmem:[#allocation6 + $0x98] sm:$0xff] }
 0x106   :  { %10415 = vst [vmem:[#allocation157_spill] sm:$0xff] %v5885_v34  ;;  %956 = vmatpush.msrb.mxu3 %v5905_v56  ;;  %v5913_v34 = vld [vmem:[#allocation6 + $0x70] sm:$0xff] }
 0x107   :  { %10416 = vst [vmem:[#allocation158_spill] sm:$0xff] %v5887_v42  ;;  %v5909_v42 = vld [vmem:[#allocation6 + $0x60] sm:$0xff]  ;;  %937 = vmatpush.msrb.mxu2 %v5913_v34 }
 0x108   :  { %10417 = vst [vmem:[#allocation159_spill] sm:$0xff] %v5891_v40  ;;  %v5911_v40 = vld [vmem:[#allocation6 + $0x68] sm:$0xff]  ;;  %897 = vmatpush.msrb.mxu0 %v5909_v42 }
 0x109   :  { %10418 = vst [vmem:[#allocation160_spill] sm:$0xff] %v5895_v35  ;;  %917 = vmatpush.msra.mxu1 %v5911_v40  ;;  %v5929_v35 = vld [vmem:[#allocation6 + $0x58] sm:$0xff] }
 0x10a   :  { %10419 = vst [vmem:[#allocation161_spill] sm:$0xff] %v5897_v39  ;;  %v5921_v39 = vld [vmem:[#allocation6 + $0x40] sm:$0xff] }
 0x10b   :  { %10420 = vst [vmem:[#allocation162_spill] sm:$0xff] %v5899_v63  ;;  %v5923_v63 = vld [vmem:[#allocation6 + $0x48] sm:$0xff]  ;;  %898 = vmatpush.msrb.mxu0 %v5921_v39 }
 0x10c   :  { %10421 = vst [vmem:[#allocation163_spill] sm:$0xff] %v5901_v32  ;;  %v5917_v32 = vld [vmem:[#allocation6 + $0x78] sm:$0xff]  ;;  %918 = vmatpush.msra.mxu1 %v5923_v63 }
 0x10d   :  { %10422 = vst [vmem:[#allocation164_spill] sm:$0xff] %v5905_v56  ;;  %957 = vmatpush.msrb.mxu3 %v5917_v32  ;;  %v5925_v56 = vld [vmem:[#allocation6 + $0x50] sm:$0xff] }
 0x10e   :  { %10423 = vst [vmem:[#allocation165_spill] sm:$0xff] %v5909_v42  ;;  %938 = vmatpush.msrb.mxu2 %v5925_v56  ;;  %v5939_v42 = vpop.f32.mrf.mxu2 }
 0x10f   :  { %10424 = vst [vmem:[#allocation166_spill] sm:$0xff] %v5911_v40  ;;  %958 = vmatpush.msrb.mxu3 %v5929_v35  ;;  %v5933_v40 = vld [vmem:[#allocation6 + $0x20] sm:$0xff] }
 0x110   :  { %10425 = vst [vmem:[#allocation167_spill] sm:$0xff] %v5913_v34  ;;  %v5935_v34 = vld [vmem:[#allocation6 + $0x28] sm:$0xff]  ;;  %899 = vmatpush.msrb.mxu0 %v5933_v40 }
 0x111   :  { %10426 = vst [vmem:[#allocation168_spill] sm:$0xff] %v5917_v32  ;;  %v5937_v32 = vld [vmem:[#allocation6 + $0x30] sm:$0xff]  ;;  %919 = vmatpush.msra.mxu1 %v5935_v34 }
 0x112   :  { %10427 = vst [vmem:[#allocation169_spill] sm:$0xff] %v5921_v39  ;;  %v5944_v39 = vld [vmem:[%s9628_s6] sm:$0xf]  ;;  %939 = vmatpush.msrb.mxu2 %v5937_v32 }
 0x113   :  { %10428 = vst [vmem:[#allocation170_spill] sm:$0xff] %v5923_v63  ;;  %v5954_v63 = vld [vmem:[#allocation6] sm:$0xff] }
 0x114   :  { %10429 = vst [vmem:[#allocation171_spill] sm:$0xff] %v5925_v56  ;;  %v5948_v56 = vld [vmem:[#allocation6 + $0x38] sm:$0xff]  ;;  %900 = vmatpush.msrb.mxu0 %v5954_v63  ;;  %940 = vmatpush.msrb.mxu2 %v5958_v29 }
 0x115   :  { %10430 = vst [vmem:[#allocation172_spill] sm:$0xff] %v5929_v35  ;;  %v5950_v35 = vpop.f32.mrf.mxu3  ;;  %959 = vmatpush.msrb.mxu3 %v5948_v56 }
 0x116   :  { %10431 = vst [vmem:[#allocation173_spill] sm:$0xff] %v5933_v40  ;;  %v5962_v40 = vld [vmem:[#allocation6 + $0x18] sm:$0xff]  ;;  %1033 = vmatpush.msra.mxu0 %v5111_v57  ;;  %1073 = vmatpush.msra.mxu2 %v5350_v36  ;;  %v295_v57 = vpop.f32.mrf.mxu0  ;;  %v5987_v36 = vperm.slane %v5944_v39, 0 }
 0x117   :  { %10432 = vst [vmem:[#allocation174_spill] sm:$0xff] %v5935_v34  ;;  %v5965_v34 = vperm.slane %v5944_v39, 1  ;;  %960 = vmatpush.msrb.mxu3 %v5962_v40 }
 0x118   :  { %10433 = vst [vmem:[#allocation175_spill] sm:$0xff] %v5939_v42  ;;  %v5956_v42 = vld [vmem:[#allocation6 + $0x8] sm:$0xff]  ;;  %1034 = vmatpush.msra.mxu0 %v5123_v60  ;;  %1074 = vmatpush.msra.mxu2 %v5374_v43  ;;  %v5992_v60 = vperm.slane %v5944_v39, 3 }
 0x119   :  { %10434 = vst [vmem:[#allocation176_spill] sm:$0xff] %v5948_v56  ;;  %920 = vmatpush.msra.mxu1 %v5956_v42  ;;  %v5973_v56 = vld [vmem:[%s9625_s3 + $0x1e8] sm:$0xff]  ;;  %1093 = vmatpush.msra.mxu3 %v5144_v1 }
 0x11a   :  { %10435 = vst [vmem:[#allocation177_spill] sm:$0xff] %v5950_v35  ;;  %1035 = vmatpush.msra.mxu0 %v5138_v0  ;;  %1075 = vmatpush.msra.mxu2 %v5382_v44  ;;  %v10449_v44 = vld [vmem:[#allocation18_spill] sm:$0xff] }
 0x11b   :  { %10436 = vst [vmem:[#allocation178_spill] sm:$0xff] %v5956_v42  ;;  %1053 = vmatpush.msrb.mxu1 %v5973_v56  ;;  %1094 = vmatpush.msra.mxu3 %v5157_v3 }
 0x11c   :  { %10437 = vst [vmem:[#allocation179_spill] sm:$0xff] %v5962_v40  ;;  %1036 = vmatpush.msra.mxu0 %v5150_v2  ;;  %1076 = vmatpush.msra.mxu2 %v5388_v45  ;;  %v10450_v45 = vld [vmem:[#allocation24_spill] sm:$0xff] }
 0x11d   :  { %10438 = vst [vmem:[#allocation180_spill] sm:$0xff] %v5965_v34  ;;  %1054 = vmatpush.msrb.mxu1 %v5044_v38  ;;  %1095 = vmatpush.msra.mxu3 %v5175_v6 }
 0x11e   :  { %10439 = vst [vmem:[#allocation181_spill] sm:$0xff] %v5987_v36  ;;  %1037 = vmatpush.msra.mxu0 %v5164_v4  ;;  %1077 = vmatpush.msra.mxu2 %v5398_v47 }
 0x11f   :  { %1055 = vmatpush.msrb.mxu1 %v5055_v41  ;;  %1096 = vmatpush.msra.mxu3 %v5194_v9 }
 0x120   :  { %1038 = vmatpush.msra.mxu0 %v5183_v7  ;;  %1078 = vmatpush.msra.mxu2 %v5406_v48 }
 0x121   :  { %v691_v35 = vpop.f32.mrf.mxu1  ;;  %1056 = vmatpush.msrb.mxu1 %v5077_v46  ;;  %1097 = vmatpush.msra.mxu3 %v5210_v12  ;;  %v6044_v12 = vperm.slane %v5944_v39, 2 }
 0x122   :  { %v735_v42 = vadd.f32 %v691_v35, %v5721_v10  ;;  %1039 = vmatpush.msra.mxu0 %v5204_v11  ;;  %1079 = vmatpush.msra.mxu2 %v5412_v14  ;;  %v10451_v14 = vld [vmem:[#allocation28_spill] sm:$0xff] }
 0x123   :  { %1057 = vmatpush.msrb.mxu1 %v5088_v49  ;;  %1098 = vmatpush.msra.mxu3 %v5224_v15 }
 0x124   :  { %v739_v40 = vadd.f32 %v735_v42, %v5965_v34  ;;  %1040 = vmatpush.msra.mxu0 %v5217_v13  ;;  %1080 = vmatpush.msra.mxu2 %v5418_v50  ;;  %v10452_v50 = vld [vmem:[#allocation25_spill] sm:$0xff] }
 0x125   :  { %1058 = vmatpush.msrb.mxu1 %v5116_v58  ;;  %1099 = vmatpush.msra.mxu3 %v5242_v18  ;;  %v10442_v18 = vld [vmem:[#allocation20_spill] sm:$0xff] }
 0x126   :  { %v3821_v35 = vmul.f32 -1.442695, %v739_v40  ;;  %1041 = vmatpush.msra.mxu0 %v5230_v16  ;;  %1081 = vmatpush.msra.mxu2 %v5428_v51  ;;  %v10440_v16 = vld [vmem:[#allocation19_spill] sm:$0xff] }
 0x127   :  { %v671_v38 = vpop.f32.mrf.mxu2  ;;  %1059 = vmatpush.msrb.mxu1 %v5128_v61  ;;  %1100 = vmatpush.msra.mxu3 %v5261_v21  ;;  %v10444_v21 = vld [vmem:[#allocation21_spill] sm:$0xff]  ;;  %v10453_v51 = vld [vmem:[#allocation55_spill] sm:$0xff] }
 0x128   :  { %3882 = vpow2.f32 %v3821_v35  ;;  %v734_v0 = vadd.f32 %v671_v38, %v295_v57  ;;  %v731_v1 = vpop.f32.mrf.mxu3  ;;  %1042 = vmatpush.msra.mxu0 %v5249_v19  ;;  %1082 = vmatpush.msra.mxu2 %v5436_v52  ;;  %v139_v52 = vperm.slane %v10453_v51, 2  ;;  %v10454_v35 = vld [vmem:[#allocation98_spill] sm:$0xff]  ;;  %v10481_v51 = vld [vmem:[#allocation85_spill] sm:$0xff] }
 0x129   :  { %v737_v41 = vadd.f32 %v731_v1, %v5725_v53  ;;  %1060 = vmatpush.msrb.mxu1 %v5169_v5  ;;  %1101 = vmatpush.msra.mxu3 %v5277_v24 }
 0x12a   :  { %v738_v3 = vadd.f32 %v734_v0, %v5987_v36  ;;  %1043 = vmatpush.msra.mxu0 %v5270_v23  ;;  %1083 = vmatpush.msra.mxu2 %v5458_v54  ;;  %v207_v38 = vadd.f32 %v10454_v35, %v139_v52  ;;  %v10482_v52 = vld [vmem:[#allocation49_spill] sm:$0xff]  ;;  %v10492_v35 = vld [vmem:[#allocation58_spill] sm:$0xff] }
 0x12b   :  { %v741_v46 = vadd.f32 %v737_v41, %v5992_v60  ;;  %1061 = vmatpush.msrb.mxu1 %v5188_v8  ;;  %1102 = vmatpush.msra.mxu3 %v5291_v26  ;;  %v10446_v26 = vld [vmem:[#allocation22_spill] sm:$0xff] }
 0x12c   :  { %v3820_v2 = vmul.f32 -1.442695, %v738_v3  ;;  %1044 = vmatpush.msra.mxu0 %v5283_v25  ;;  %1084 = vmatpush.msra.mxu2 %v5476_v55  ;;  %v10445_v25 = vld [vmem:[#allocation17_spill] sm:$0xff] }
 0x12d   :  { %v3822_v4 = vmul.f32 -1.442695, %v741_v46  ;;  %1062 = vmatpush.msrb.mxu1 %v5236_v17  ;;  %1103 = vmatpush.msra.mxu3 %v5310_v30  ;;  %v10441_v17 = vld [vmem:[#allocation16_spill] sm:$0xff] }
 0x12e   :  { %v3883_v49 = vpop.eup %3882  ;;  %3884 = vpow2.f32 %v3820_v2  ;;  %1045 = vmatpush.msra.mxu0 %v5297_v27  ;;  %1085 = vmatpush.msra.mxu2 %v5489_v59 }
 0x12f   :  { %v6013_v6 = vadd.f32 1.0, %v3883_v49  ;;  %3886 = vpow2.f32 %v3822_v4  ;;  %1063 = vmatpush.msrb.mxu1 %v5255_v20  ;;  %v711_v8 = vpop.f32.mrf.mxu2  ;;  %1104 = vmatpush.msra.mxu3 %v5329_v33  ;;  %v10443_v20 = vld [vmem:[#allocation26_spill] sm:$0xff]  ;;  %v10448_v33 = vld [vmem:[#allocation23_spill] sm:$0xff] }
 0x130   :  { %v736_v13 = vadd.f32 %v711_v8, %v5723_v22  ;;  %1046 = vmatpush.msra.mxu0 %v10441_v17  ;;  %1086 = vmatpush.msra.mxu2 %v10443_v20  ;;  %v10458_v17 = vld [vmem:[#allocation31_spill] sm:$0xff]  ;;  %v10462_v20 = vld [vmem:[#allocation34_spill] sm:$0xff] }
 0x131   :  { %3888 = vrcp.f32 %v6013_v6  ;;  %1064 = vmatpush.msrb.mxu1 %v5303_v28  ;;  %1105 = vmatpush.msra.mxu3 %v10440_v16  ;;  %v776_v40 = vand.u32 2147483648, %v6013_v6  ;;  %vm770_vm3 = vweird.f32 %v6013_v6  ;;  %v774_v48 = vand.u32 2147483647, %v6013_v6  ;;  %v10457_v16 = vld [vmem:[#allocation65_spill] sm:$0xff] }
 0x132   :  { %v740_v24 = vadd.f32 %v736_v13, %v6044_v12  ;;  %1047 = vmatpush.msra.mxu0 %v10445_v25  ;;  %v10455_v13 = vld [vmem:[#allocation29_spill] sm:$0xff] }
 0x133   :  { %1065 = vmatpush.msrb.mxu1 %v5315_v31  ;;  %1106 = vmatpush.msra.mxu3 %v10444_v21  ;;  %v10447_v31 = vld [vmem:[#allocation27_spill] sm:$0xff]  ;;  %v777_v22 = vor.u32 1.1754944e-38, %v776_v40  ;;  %vm775_vm7 = vcmp.eq.f32.partialorder %v774_v48, 8.507059e+37  ;;  %v10466_v25 = vld [vmem:[#allocation37_spill] sm:$0xff]  ;;  %v10473_v40 = vld [vmem:[#allocation80_spill] sm:$0xff] }
 0x134   :  { %v3885_v58 = vpop.eup %3884  ;;  %1087 = vmatpush.msra.mxu2 %v10447_v31  ;;  %1048 = vmatpush.msra.mxu0 %v10449_v44  ;;  %v10463_v21 = vld [vmem:[#allocation35_spill] sm:$0xff]  ;;  %v10471_v31 = vld [vmem:[#allocation41_spill] sm:$0xff]  ;;  %v10475_v44 = vld [vmem:[#allocation44_spill] sm:$0xff] }
 0x135   :  { %v3887_v61 = vpop.eup %3886  ;;  %v6028_v5 = vadd.f32 1.0, %v3885_v58  ;;  %1066 = vmatpush.msrb.mxu1 %v10442_v18  ;;  %1107 = vmatpush.msra.mxu3 %v10448_v33  ;;  %v10460_v18 = vld [vmem:[#allocation33_spill] sm:$0xff]  ;;  %v10472_v33 = vld [vmem:[#allocation42_spill] sm:$0xff] }
 0x136   :  { %v6032_v7 = vadd.f32 1.0, %v3887_v61  ;;  %1088 = vmatpush.msra.mxu2 %v10451_v14  ;;  %v10478_v48 = vld [vmem:[#allocation46_spill] sm:$0xff]  ;;  %v10479_v14 = vld [vmem:[#allocation47_spill] sm:$0xff] }
 0x137   :  { %v3889_v9 = vpop.eup %3888  ;;  %3890 = vrcp.f32 %v6028_v5  ;;  %1067 = vmatpush.msrb.mxu1 %v10446_v26  ;;  %1108 = vmatpush.msra.mxu3 %v10452_v50  ;;  %v757_v54 = vand.u32 2147483648, %v6028_v5  ;;  %v755_v55 = vand.u32 2147483647, %v6028_v5  ;;  %vm751_vm6 = vweird.f32 %v6028_v5  ;;  %v10467_v26 = vld [vmem:[#allocation38_spill] sm:$0xff]  ;;  %v10480_v50 = vld [vmem:[#allocation48_spill] sm:$0xff] }
 0x138   :  { %v766_v11 = vmul.f32 %v3889_v9, %v6013_v6  ;;  %3892 = vrcp.f32 %v6032_v7  ;;  %vm771_vm2 = vweird.f32 %v3889_v9  ;;  %v796_v6 = vand.u32 2147483648, %v6032_v7 }
 0x139   :  { %1068 = vmatpush.msrb.mxu1 %v10450_v45  ;;  %vm772_vm4 = vmor %vm770_vm3, %vm771_vm2  ;;  %3894 = vtanh.f32 %v740_v24  ;;  %v758_v42 = vor.u32 1.1754944e-38, %v757_v54  ;;  %vm756_vm9 = vcmp.eq.f32.partialorder %v755_v55, 8.507059e+37  ;;  %vm790_vm11 = vweird.f32 %v6032_v7  ;;  %v10465_v24 = vld [vmem:[#allocation72_spill] sm:$0xff]  ;;  %v10476_v45 = vld [vmem:[#allocation45_spill] sm:$0xff] }
 0x13a   :  { %v767_v15 = vsub.f32 1.0, %v766_v11  ;;  %v794_v58 = vand.u32 2147483647, %v6032_v7  ;;  %v10483_v54 = vld [vmem:[#allocation50_spill] sm:$0xff] }
 0x13b   :  { %v10485_v55 = vld [vmem:[#allocation86_spill] sm:$0xff] }
 0x13c   :  { %v768_v19 = vmul.f32 %v3889_v9, %v767_v15  ;;  %vm795_vm13 = vcmp.eq.f32.partialorder %v794_v58, 8.507059e+37  ;;  %v10456_v15 = vld [vmem:[#allocation30_spill] sm:$0xff] }
 0x13d   :  { %v3891_v23 = vpop.eup %3890  ;;  %v10502_v58 = vld [vmem:[#allocation66_spill] sm:$0xff] }
 0x13e   :  { %v3893_v27 = vpop.eup %3892  ;;  %v747_v28 = vmul.f32 %v3891_v23, %v6028_v5  ;;  %v769_v30 = vadd.f32 %v3889_v9, %v768_v19  ;;  %vm752_vm5 = vweird.f32 %v3891_v23  ;;  %v797_v5 = vor.u32 1.1754944e-38, %v796_v6  ;;  %v10461_v19 = vld [vmem:[#allocation68_spill] sm:$0xff]  ;;  %v10501_v6 = vld [vmem:[#allocation91_spill] sm:$0xff] }
 0x13f   :  { %v786_v43 = vmul.f32 %v3893_v27, %v6032_v7  ;;  %vm753_vm8 = vmor %vm751_vm6, %vm752_vm5  ;;  %v3895_v1 = vpop.eup %3894  ;;  %vm791_vm10 = vweird.f32 %v3893_v27  ;;  %v10459_v7 = vld [vmem:[#allocation32_spill] sm:$0xff] }
 0x140   :  { %v748_v47 = vsub.f32 1.0, %v747_v28  ;;  %v773_v59 = vsel %vm772_vm4, %v3889_v9, %v769_v30  ;;  %vm792_vm12 = vmor %vm790_vm11, %vm791_vm10  ;;  %v10469_v28 = vld [vmem:[#allocation76_spill] sm:$0xff] }
 0x141   :  { %v787_v39 = vsub.f32 1.0, %v786_v43  ;;  %v778_v57 = vsel %vm775_vm7, %v777_v22, %v773_v59  ;;  %v10470_v30 = vld [vmem:[#allocation40_spill] sm:$0xff]  ;;  %v10474_v43 = vld [vmem:[#allocation43_spill] sm:$0xff]  ;;  %v10487_v22 = vld [vmem:[#allocation53_spill] sm:$0xff] }
 0x142   :  { %v749_v53 = vmul.f32 %v3891_v23, %v748_v47  ;;  %v800_v46 = vmul.f32 %v778_v57, %v207_v38  ;;  %v10477_v47 = vld [vmem:[#allocation84_spill] sm:$0xff]  ;;  %v10491_v57 = vld [vmem:[#allocation57_spill] sm:$0xff] }
 0x143   :  { %v788_v41 = vmul.f32 %v3893_v27, %v787_v39  ;;  %v10486_v59 = vld [vmem:[#allocation52_spill] sm:$0xff]  ;;  %v10488_v39 = vld [vmem:[#allocation54_spill] sm:$0xff]  ;;  %v10493_v38 = vld [vmem:[#allocation89_spill] sm:$0xff] }
 0x144   :  { %v750_v10 = vadd.f32 %v3891_v23, %v749_v53  ;;  %v10484_v53 = vld [vmem:[#allocation51_spill] sm:$0xff] }
 0x145   :  { %v789_v49 = vadd.f32 %v3893_v27, %v788_v41  ;;  %v10496_v41 = vld [vmem:[#allocation61_spill] sm:$0xff] }
 0x146   :  { %v754_v0 = vsel %vm753_vm8, %v3891_v23, %v750_v10  ;;  %v10464_v23 = vld [vmem:[#allocation36_spill] sm:$0xff]  ;;  %v10489_v10 = vld [vmem:[#allocation87_spill] sm:$0xff] }
 0x147   :  { %v759_v3 = vsel %vm756_vm9, %v758_v42, %v754_v0  ;;  %v793_v61 = vsel %vm792_vm12, %v3893_v27, %v789_v49  ;;  %v10468_v27 = vld [vmem:[#allocation39_spill] sm:$0xff]  ;;  %v10490_v42 = vld [vmem:[#allocation56_spill] sm:$0xff] }
 0x148   :  { %v801_v2 = vmul.f32 %v3895_v1, %v759_v3  ;;  %v798_v9 = vsel %vm795_vm13, %v797_v5, %v793_v61  ;;  %v10494_v0 = vld [vmem:[#allocation59_spill] sm:$0xff]  ;;  %v10495_v1 = vld [vmem:[#allocation60_spill] sm:$0xff]  ;;  %v10497_v3 = vld [vmem:[#allocation90_spill] sm:$0xff] }
 0x149   :  { %v10500_v49 = vld [vmem:[#allocation64_spill] sm:$0xff]  ;;  %v10503_v61 = vld [vmem:[#allocation67_spill] sm:$0xff]  ;;  %v10504_v5 = vld [vmem:[#allocation69_spill] sm:$0xff] }
 0x14a   :  { %v6075_v4 = vadd.f32 %v801_v2, %v800_v46  ;;  %v10498_v46 = vld [vmem:[#allocation62_spill] sm:$0xff]  ;;  %v10499_v2 = vld [vmem:[#allocation63_spill] sm:$0xff] }
 0x14c   :  { %3896 = vtanh.f32 %v6075_v4 }
 0x152   :  { %v3897_v8 = vpop.eup %3896 }
 0x153   :  { %v804_v11 = vmul.f32 %v3897_v8, %v798_v9  ;;  %v10505_v8 = vld [vmem:[#allocation92_spill] sm:$0xff]  ;;  %v10506_v9 = vld [vmem:[#allocation70_spill] sm:$0xff] }
 0x155   :  { %901 = vmatmul.f32.vlgmr.msrb.gmra.mxu0 %v804_v11  ;;  %921 = vmatmul.f32.vlgmr.msra.gmra.mxu1 %v804_v11 }
 0x156   :  { %941 = vmatmul.f32.vlgmr.msrb.gmra.mxu2 %v804_v11  ;;  %961 = vmatmul.f32.vlgmr.msrb.gmra.mxu3 %v804_v11 }
 0x157   :  { %1184 = vmatpush.msrb.mxu0 %v10455_v13  ;;  %1204 = vmatpush.msra.mxu1 %v10456_v15  ;;  %v10508_v13 = vld [vmem:[#allocation73_spill] sm:$0xff] }
 0x158   :  { %1224 = vmatpush.msrb.mxu2 %v10457_v16  ;;  %1244 = vmatpush.msrb.mxu3 %v10458_v17  ;;  %v10509_v15 = vld [vmem:[#allocation93_spill] sm:$0xff]  ;;  %v10510_v16 = vld [vmem:[#allocation74_spill] sm:$0xff]  ;;  %v10511_v17 = vld [vmem:[#allocation75_spill] sm:$0xff] }
 0x159   :  { %1185 = vmatpush.msrb.mxu0 %v10459_v7  ;;  %1205 = vmatpush.msra.mxu1 %v10460_v18  ;;  %v10512_v7 = vld [vmem:[#allocation77_spill] sm:$0xff]  ;;  %v10513_v18 = vld [vmem:[#allocation95_spill] sm:$0xff] }
 0x15a   :  { %1225 = vmatpush.msrb.mxu2 %v10461_v19  ;;  %1245 = vmatpush.msrb.mxu3 %v10462_v20  ;;  %v10514_v19 = vld [vmem:[#allocation79_spill] sm:$0xff]  ;;  %v10515_v20 = vld [vmem:[#allocation81_spill] sm:$0xff] }
 0x15b   :  { %1186 = vmatpush.msrb.mxu0 %v10463_v21  ;;  %1206 = vmatpush.msra.mxu1 %v10464_v23  ;;  %v10516_v21 = vld [vmem:[#allocation82_spill] sm:$0xff]  ;;  %v10517_v23 = vld [vmem:[#allocation96_spill] sm:$0xff] }
 0x15c   :  { %1226 = vmatpush.msrb.mxu2 %v10465_v24  ;;  %1246 = vmatpush.msrb.mxu3 %v10466_v25  ;;  %v10518_v24 = vld [vmem:[#allocation83_spill] sm:$0xff]  ;;  %v10519_v25 = vld [vmem:[#allocation100_spill] sm:$0xff] }
 0x15d   :  { %1049 = vmatmul.f32.vlgmr.msra.gmra.mxu0 %v804_v11  ;;  %1069 = vmatmul.f32.vlgmr.msrb.gmra.mxu1 %v804_v11 }
 0x15e   :  { %1089 = vmatmul.f32.vlgmr.msra.gmra.mxu2 %v804_v11  ;;  %1109 = vmatmul.f32.vlgmr.msra.gmra.mxu3 %v804_v11  ;;  %v10507_v11 = vld [vmem:[#allocation71_spill] sm:$0xff] }
 0x15f   :  { %1187 = vmatpush.msrb.mxu0 %v10467_v26  ;;  %1207 = vmatpush.msra.mxu1 %v10468_v27  ;;  %v10520_v26 = vld [vmem:[#allocation101_spill] sm:$0xff]  ;;  %v10521_v27 = vld [vmem:[#allocation102_spill] sm:$0xff] }
 0x160   :  { %1227 = vmatpush.msrb.mxu2 %v10469_v28  ;;  %1247 = vmatpush.msrb.mxu3 %v10470_v30  ;;  %v10522_v28 = vld [vmem:[#allocation103_spill] sm:$0xff]  ;;  %v10523_v30 = vld [vmem:[#allocation116_spill] sm:$0xff] }
 0x161   :  { %1188 = vmatpush.msrb.mxu0 %v10471_v31  ;;  %1208 = vmatpush.msra.mxu1 %v10472_v33  ;;  %v10524_v31 = vld [vmem:[#allocation117_spill] sm:$0xff]  ;;  %v10525_v33 = vld [vmem:[#allocation119_spill] sm:$0xff] }
 0x162   :  { %1228 = vmatpush.msrb.mxu2 %v10473_v40  ;;  %1248 = vmatpush.msrb.mxu3 %v10474_v43  ;;  %v10526_v40 = vld [vmem:[#allocation120_spill] sm:$0xff]  ;;  %v10527_v43 = vld [vmem:[#allocation121_spill] sm:$0xff] }
 0x163   :  { %1189 = vmatpush.msrb.mxu0 %v10475_v44  ;;  %1209 = vmatpush.msra.mxu1 %v10476_v45  ;;  %v10528_v44 = vld [vmem:[#allocation122_spill] sm:$0xff]  ;;  %v10529_v45 = vld [vmem:[#allocation123_spill] sm:$0xff] }
 0x164   :  { %1229 = vmatpush.msrb.mxu2 %v10477_v47  ;;  %1249 = vmatpush.msrb.mxu3 %v10478_v48  ;;  %v10530_v47 = vld [vmem:[#allocation124_spill] sm:$0xff]  ;;  %v10531_v48 = vld [vmem:[#allocation125_spill] sm:$0xff] }
 0x165   :  { %1190 = vmatpush.msrb.mxu0 %v10479_v14  ;;  %1210 = vmatpush.msra.mxu1 %v10480_v50  ;;  %v10534_v14 = vld [vmem:[#allocation128_spill] sm:$0xff]  ;;  %v10535_v50 = vld [vmem:[#allocation129_spill] sm:$0xff] }
 0x166   :  { %1230 = vmatpush.msrb.mxu2 %v10481_v51  ;;  %1250 = vmatpush.msrb.mxu3 %v10482_v52  ;;  %v10536_v51 = vld [vmem:[#allocation131_spill] sm:$0xff]  ;;  %v10537_v52 = vld [vmem:[#allocation133_spill] sm:$0xff] }
 0x167   :  { %1191 = vmatpush.msrb.mxu0 %v10483_v54  ;;  %1211 = vmatpush.msra.mxu1 %v10484_v53  ;;  %v10538_v54 = vld [vmem:[#allocation134_spill] sm:$0xff]  ;;  %v10539_v53 = vld [vmem:[#allocation135_spill] sm:$0xff] }
 0x168   :  { %1231 = vmatpush.msrb.mxu2 %v10485_v55  ;;  %1251 = vmatpush.msrb.mxu3 %v10486_v59  ;;  %v10540_v55 = vld [vmem:[#allocation136_spill] sm:$0xff]  ;;  %v10541_v59 = vld [vmem:[#allocation137_spill] sm:$0xff] }
 0x169   :  { %1192 = vmatpush.msrb.mxu0 %v10487_v22  ;;  %1212 = vmatpush.msra.mxu1 %v10488_v39  ;;  %v10542_v22 = vld [vmem:[#allocation138_spill] sm:$0xff]  ;;  %v10543_v39 = vld [vmem:[#allocation139_spill] sm:$0xff] }
 0x16a   :  { %1232 = vmatpush.msrb.mxu2 %v10489_v10  ;;  %1252 = vmatpush.msrb.mxu3 %v10490_v42  ;;  %v10544_v10 = vld [vmem:[#allocation141_spill] sm:$0xff]  ;;  %v10545_v42 = vld [vmem:[#allocation142_spill] sm:$0xff] }
 0x16b   :  { %1193 = vmatpush.msrb.mxu0 %v10491_v57  ;;  %1213 = vmatpush.msra.mxu1 %v10492_v35  ;;  %v10546_v57 = vld [vmem:[#allocation143_spill] sm:$0xff]  ;;  %v10547_v35 = vld [vmem:[#allocation144_spill] sm:$0xff] }
 0x16c   :  { %1233 = vmatpush.msrb.mxu2 %v10493_v38  ;;  %1253 = vmatpush.msrb.mxu3 %v10494_v0  ;;  %v10548_v38 = vld [vmem:[#allocation145_spill] sm:$0xff]  ;;  %v10549_v0 = vld [vmem:[#allocation146_spill] sm:$0xff] }
 0x16d   :  { %1194 = vmatpush.msrb.mxu0 %v10495_v1  ;;  %1214 = vmatpush.msra.mxu1 %v10496_v41  ;;  %v10550_v1 = vld [vmem:[#allocation147_spill] sm:$0xff]  ;;  %v10551_v41 = vld [vmem:[#allocation148_spill] sm:$0xff] }
 0x16e   :  { %1234 = vmatpush.msrb.mxu2 %v10497_v3  ;;  %1254 = vmatpush.msrb.mxu3 %v10498_v46  ;;  %v10552_v3 = vld [vmem:[#allocation149_spill] sm:$0xff]  ;;  %v10553_v46 = vld [vmem:[#allocation150_spill] sm:$0xff] }
 0x16f   :  { %1195 = vmatpush.msrb.mxu0 %v10499_v2  ;;  %1215 = vmatpush.msra.mxu1 %v10500_v49  ;;  %v10554_v2 = vld [vmem:[#allocation151_spill] sm:$0xff]  ;;  %v10555_v49 = vld [vmem:[#allocation152_spill] sm:$0xff] }
 0x170   :  { %1235 = vmatpush.msrb.mxu2 %v10501_v6  ;;  %1255 = vmatpush.msrb.mxu3 %v10502_v58  ;;  %v10556_v6 = vld [vmem:[#allocation154_spill] sm:$0xff]  ;;  %v10557_v58 = vld [vmem:[#allocation156_spill] sm:$0xff] }
 0x171   :  { %1196 = vmatpush.msrb.mxu0 %v10503_v61  ;;  %1216 = vmatpush.msra.mxu1 %v10504_v5  ;;  %v10558_v61 = vld [vmem:[#allocation157_spill] sm:$0xff]  ;;  %v10559_v5 = vld [vmem:[#allocation158_spill] sm:$0xff] }
 0x172   :  { %1236 = vmatpush.msrb.mxu2 %v10505_v8  ;;  %1256 = vmatpush.msrb.mxu3 %v10506_v9  ;;  %v10560_v8 = vld [vmem:[#allocation159_spill] sm:$0xff]  ;;  %v10561_v9 = vld [vmem:[#allocation160_spill] sm:$0xff] }
 0x173   :  { %1197 = vmatpush.msrb.mxu0 %v10507_v11  ;;  %1217 = vmatpush.msra.mxu1 %v10508_v13  ;;  %v10562_v11 = vld [vmem:[#allocation161_spill] sm:$0xff]  ;;  %v10563_v13 = vld [vmem:[#allocation162_spill] sm:$0xff] }
 0x174   :  { %1237 = vmatpush.msrb.mxu2 %v10509_v15  ;;  %1257 = vmatpush.msrb.mxu3 %v10510_v16  ;;  %v10564_v15 = vld [vmem:[#allocation164_spill] sm:$0xff]  ;;  %v10565_v16 = vld [vmem:[#allocation165_spill] sm:$0xff] }
 0x175   :  { %1198 = vmatpush.msrb.mxu0 %v10511_v17  ;;  %1218 = vmatpush.msra.mxu1 %v10512_v7  ;;  %v10566_v17 = vld [vmem:[#allocation166_spill] sm:$0xff]  ;;  %v10567_v7 = vld [vmem:[#allocation167_spill] sm:$0xff] }
 0x176   :  { %1238 = vmatpush.msrb.mxu2 %v10513_v18  ;;  %1258 = vmatpush.msrb.mxu3 %v10514_v19  ;;  %v10568_v18 = vld [vmem:[#allocation168_spill] sm:$0xff]  ;;  %v10569_v19 = vld [vmem:[#allocation169_spill] sm:$0xff] }
 0x177   :  { %1199 = vmatpush.msrb.mxu0 %v10515_v20  ;;  %1219 = vmatpush.msra.mxu1 %v10516_v21  ;;  %v10570_v20 = vld [vmem:[#allocation170_spill] sm:$0xff]  ;;  %v10571_v21 = vld [vmem:[#allocation171_spill] sm:$0xff] }
 0x178   :  { %1239 = vmatpush.msrb.mxu2 %v10517_v23  ;;  %1259 = vmatpush.msrb.mxu3 %v10518_v24  ;;  %v10572_v23 = vld [vmem:[#allocation172_spill] sm:$0xff]  ;;  %v10573_v24 = vld [vmem:[#allocation173_spill] sm:$0xff] }
 0x179   :  { %1264 = vmatpush.msra.mxu0 %v10519_v25  ;;  %1284 = vmatpush.msrb.mxu1 %v10520_v26  ;;  %v10574_v25 = vld [vmem:[#allocation174_spill] sm:$0xff]  ;;  %v10575_v26 = vld [vmem:[#allocation176_spill] sm:$0xff] }
 0x17a   :  { %1304 = vmatpush.msra.mxu2 %v10521_v27  ;;  %1324 = vmatpush.msra.mxu3 %v10522_v28  ;;  %v10576_v27 = vld [vmem:[#allocation178_spill] sm:$0xff]  ;;  %v10577_v28 = vld [vmem:[#allocation179_spill] sm:$0xff] }
 0x17b   :  { %1265 = vmatpush.msra.mxu0 %v5763_v62  ;;  %1285 = vmatpush.msrb.mxu1 %v5765_v37  ;;  %v10532_v62 = vld [vmem:[#allocation126_spill] sm:$0xff]  ;;  %v10533_v37 = vld [vmem:[#allocation127_spill] sm:$0xff] }
 0x17c   :  { %1305 = vmatpush.msra.mxu2 %v10523_v30  ;;  %1325 = vmatpush.msra.mxu3 %v10524_v31  ;;  %v298_v30 = vpop.f32.mrf.mxu0 }
 0x17d   :  { %1266 = vmatpush.msra.mxu0 %v10525_v33  ;;  %1286 = vmatpush.msrb.mxu1 %v10526_v40 }
 0x17e   :  { %1306 = vmatpush.msra.mxu2 %v10527_v43  ;;  %1326 = vmatpush.msra.mxu3 %v10528_v44  ;;  %v842_v43 = vpop.f32.mrf.mxu1  ;;  %v882_v44 = vpop.f32.mrf.mxu3 }
 0x17f   :  { %1267 = vmatpush.msra.mxu0 %v10529_v45  ;;  %1287 = vmatpush.msrb.mxu1 %v10530_v47 }
 0x180   :  { %1307 = vmatpush.msra.mxu2 %v10531_v48  ;;  %1327 = vmatpush.msra.mxu3 %v10532_v62 }
 0x181   :  { %1268 = vmatpush.msra.mxu0 %v10533_v37  ;;  %1288 = vmatpush.msrb.mxu1 %v10534_v14  ;;  %v862_v37 = vpop.f32.mrf.mxu2 }
 0x182   :  { %1308 = vmatpush.msra.mxu2 %v10535_v50  ;;  %1328 = vmatpush.msra.mxu3 %v10536_v51 }
 0x183   :  { %1269 = vmatpush.msra.mxu0 %v10537_v52  ;;  %1289 = vmatpush.msrb.mxu1 %v10538_v54 }
 0x184   :  { %1309 = vmatpush.msra.mxu2 %v10539_v53  ;;  %1329 = vmatpush.msra.mxu3 %v10540_v55  ;;  %v6209_v31 = vpop.f32.mrf.mxu0 }
 0x185   :  { %1270 = vmatpush.msra.mxu0 %v10541_v59  ;;  %1290 = vmatpush.msrb.mxu1 %v10542_v22 }
 0x186   :  { %1310 = vmatpush.msra.mxu2 %v10543_v39  ;;  %1330 = vmatpush.msra.mxu3 %v10544_v10  ;;  %v10582_v10 = vld [vmem:[#allocation104_spill] sm:$0xff] }
 0x187   :  { %1271 = vmatpush.msra.mxu0 %v10545_v42  ;;  %1291 = vmatpush.msrb.mxu1 %v10546_v57 }
 0x188   :  { %1311 = vmatpush.msra.mxu2 %v10547_v35  ;;  %1331 = vmatpush.msra.mxu3 %v10548_v38 }
 0x189   :  { %1272 = vmatpush.msra.mxu0 %v10549_v0  ;;  %1292 = vmatpush.msrb.mxu1 %v10550_v1 }
 0x18a   :  { %1312 = vmatpush.msra.mxu2 %v10551_v41  ;;  %1332 = vmatpush.msra.mxu3 %v10552_v3 }
 0x18b   :  { %1273 = vmatpush.msra.mxu0 %v10553_v46  ;;  %1293 = vmatpush.msrb.mxu1 %v10554_v2 }
 0x18c   :  { %1313 = vmatpush.msra.mxu2 %v10555_v49  ;;  %1333 = vmatpush.msra.mxu3 %v10556_v6  ;;  %v6211_v33 = vpop.f32.mrf.mxu0 }
 0x18d   :  { %1274 = vmatpush.msra.mxu0 %v10557_v58  ;;  %1294 = vmatpush.msrb.mxu1 %v10558_v61  ;;  %10578 = vst [vmem:[#allocation19_spill] sm:$0xff] %v6211_v33  ;;  %v6609_v33 = vld [vmem:[%s9625_s3 + $0x40] sm:$0xff] }
 0x18e   :  { %1314 = vmatpush.msra.mxu2 %v10559_v5  ;;  %1334 = vmatpush.msra.mxu3 %v10560_v8  ;;  %10606 = vst [vmem:[#allocation36_spill] sm:$0xff] %v6609_v33 }
 0x18f   :  { %1275 = vmatpush.msra.mxu0 %v10561_v9  ;;  %1295 = vmatpush.msrb.mxu1 %v10562_v11  ;;  %v10584_v9 = vld [vmem:[#allocation106_spill] sm:$0xff] }
 0x190   :  { %1315 = vmatpush.msra.mxu2 %v10563_v13  ;;  %1335 = vmatpush.msra.mxu3 %v10564_v15 }
 0x191   :  { %1276 = vmatpush.msra.mxu0 %v10565_v16  ;;  %1296 = vmatpush.msrb.mxu1 %v10566_v17 }
 0x192   :  { %1316 = vmatpush.msra.mxu2 %v10567_v7  ;;  %1336 = vmatpush.msra.mxu3 %v10568_v18 }
 0x193   :  { %1277 = vmatpush.msra.mxu0 %v10569_v19  ;;  %1297 = vmatpush.msrb.mxu1 %v10570_v20 }
 0x194   :  { %1317 = vmatpush.msra.mxu2 %v10571_v21  ;;  %1337 = vmatpush.msra.mxu3 %v10572_v23  ;;  %v822_v40 = vpop.f32.mrf.mxu0  ;;  %v10585_v23 = vld [vmem:[#allocation105_spill] sm:$0xff] }
 0x195   :  { %1278 = vmatpush.msra.mxu0 %v10573_v24  ;;  %1298 = vmatpush.msrb.mxu1 %v10574_v25 }
 0x196   :  { %1318 = vmatpush.msra.mxu2 %v5937_v32  ;;  %1338 = vmatpush.msra.mxu3 %v10575_v26  ;;  %v635_v32 = vld [vmem:[%s9628_s6 + $0x4] sm:$0xf]  ;;  %v4139_v26 = vld [vmem:[%s9630_s8] sm:$0xf]  ;;  %s3769_s6 = sshll.u32 %s9633_s11, 4  ;;  %s3770_s6 = int_to_ptr.hbm [resolvable:$true] %s3769_s6 }
 0x197   :  { %1279 = vmatpush.msra.mxu0 %v5954_v63  ;;  %1299 = vmatpush.msrb.mxu1 %v10576_v27  ;;  %v6216_v45 = vperm.slane %v635_v32, 0  ;;  %v6218_v63 = vperm.slane %v635_v32, 1  ;;  %v6222_v54 = vperm.slane %v635_v32, 3  ;;  %v6228_v3 = vperm.slane %v635_v32, 2 }
 0x198   :  { %1319 = vmatpush.msra.mxu2 %v5958_v29  ;;  %1339 = vmatpush.msra.mxu3 %v10577_v28  ;;  %v140_v27 = vperm.slane %v4139_v26, 3 }
 0x199   :  { %10579 = vst [vmem:[#allocation16_spill] sm:$0xff] %v6216_v45 }
 0x19a   :  { %10580 = vst [vmem:[#allocation20_spill] sm:$0xff] %v6218_v63 }
 0x19b   :  { %10581 = vst [vmem:[#allocation26_spill] sm:$0xff] %v6222_v54 }
 0x19c   :  { %10583 = vst [vmem:[#allocation21_spill] sm:$0xff] %v6228_v3 }
 0x1d2   :  { %v902_v47 = vpop.f32.mrf.mxu0  ;;  %v922_v29 = vpop.f32.mrf.mxu1 }
 0x1d3   :  { %v903_v48 = vadd.f32 %v902_v47, %v822_v40  ;;  %v923_v62 = vadd.f32 %v922_v29, %v842_v43 }
 0x1d5   :  { %v965_v14 = vadd.f32 %v903_v48, %v6216_v45  ;;  %v966_v50 = vadd.f32 %v923_v62, %v6218_v63 }
 0x1d7   :  { %v3823_v51 = vmul.f32 -1.442695, %v965_v14  ;;  %v3824_v52 = vmul.f32 -1.442695, %v966_v50  ;;  %v10586_v50 = vld [vmem:[#allocation99_spill] sm:$0xff] }
 0x1d9   :  { %3898 = vpow2.f32 %v3823_v51  ;;  %v962_v53 = vpop.f32.mrf.mxu3  ;;  %v942_v57 = vpop.f32.mrf.mxu2  ;;  %v227_v51 = vadd.f32 %v10586_v50, %v140_v27 }
 0x1da   :  { %3900 = vpow2.f32 %v3824_v52  ;;  %v963_v55 = vadd.f32 %v962_v53, %v882_v44  ;;  %v1050_v59 = vpop.f32.mrf.mxu0  ;;  %v1070_v22 = vpop.f32.mrf.mxu1  ;;  %v943_v6 = vadd.f32 %v942_v57, %v862_v37 }
 0x1db   :  { %v1113_v39 = vadd.f32 %v1050_v59, %v298_v30  ;;  %v1114_v42 = vadd.f32 %v1070_v22, %v10582_v10 }
 0x1dc   :  { %v968_v35 = vadd.f32 %v963_v55, %v6222_v54  ;;  %v967_v8 = vadd.f32 %v943_v6, %v6228_v3 }
 0x1dd   :  { %v1117_v38 = vadd.f32 %v1113_v39, %v5987_v36  ;;  %v1118_v0 = vadd.f32 %v1114_v42, %v5965_v34 }
 0x1de   :  { %v3825_v1 = vmul.f32 -1.442695, %v968_v35 }
 0x1df   :  { %v3899_v41 = vpop.eup %3898  ;;  %v3826_v46 = vmul.f32 -1.442695, %v1117_v38  ;;  %v3827_v58 = vmul.f32 -1.442695, %v1118_v0 }
 0x1e0   :  { %v3901_v2 = vpop.eup %3900  ;;  %v972_v49 = vadd.f32 1.0, %v3899_v41  ;;  %3902 = vpow2.f32 %v3825_v1 }
 0x1e1   :  { %v991_v61 = vadd.f32 1.0, %v3901_v2  ;;  %3904 = vpow2.f32 %v3826_v46  ;;  %v1110_v5 = vpop.f32.mrf.mxu3  ;;  %v1090_v15 = vpop.f32.mrf.mxu2 }
 0x1e2   :  { %3906 = vrcp.f32 %v972_v49  ;;  %v1116_v11 = vadd.f32 %v1110_v5, %v10584_v9  ;;  %v1115_v24 = vadd.f32 %v1090_v15, %v10585_v23  ;;  %v982_v40 = vand.u32 2147483647, %v972_v49 }
 0x1e3   :  { %3908 = vrcp.f32 %v991_v61  ;;  %v984_v43 = vand.u32 2147483648, %v972_v49  ;;  %v1003_v47 = vand.u32 2147483648, %v991_v61  ;;  %v1001_v29 = vand.u32 2147483647, %v991_v61 }
 0x1e4   :  { %3910 = vpow2.f32 %v3827_v58  ;;  %v1120_v19 = vadd.f32 %v1116_v11, %v5992_v60  ;;  %v1119_v37 = vadd.f32 %v1115_v24, %v6044_v12  ;;  %vm978_vm0 = vweird.f32 %v972_v49 }
 0x1e5   :  { %3912 = vtanh.f32 %v967_v8  ;;  %vm997_vm1 = vweird.f32 %v991_v61  ;;  %vm983_vm2 = vcmp.eq.f32.partialorder %v982_v40, 8.507059e+37  ;;  %v1004_v22 = vor.u32 1.1754944e-38, %v1003_v47 }
 0x1e6   :  { %v3903_v13 = vpop.eup %3902  ;;  %v3828_v48 = vmul.f32 -1.442695, %v1120_v19  ;;  %v985_v39 = vor.u32 1.1754944e-38, %v984_v43  ;;  %vm1002_vm5 = vcmp.eq.f32.partialorder %v1001_v29, 8.507059e+37 }
 0x1e7   :  { %v3905_v16 = vpop.eup %3904  ;;  %v6232_v17 = vadd.f32 1.0, %v3903_v13 }
 0x1e8   :  { %v3907_v7 = vpop.eup %3906  ;;  %v6234_v18 = vadd.f32 1.0, %v3905_v16 }
 0x1e9   :  { %v3909_v20 = vpop.eup %3908  ;;  %v974_v21 = vmul.f32 %v3907_v7, %v972_v49  ;;  %3914 = vrcp.f32 %v6232_v17  ;;  %vm979_vm14 = vweird.f32 %v3907_v7  ;;  %vm1017_vm6 = vweird.f32 %v6232_v17 }
 0x1ea   :  { %v3911_v25 = vpop.eup %3910  ;;  %v993_v28 = vmul.f32 %v3909_v20, %v991_v61  ;;  %3916 = vrcp.f32 %v6234_v18  ;;  %vm998_vm15 = vweird.f32 %v3909_v20  ;;  %vm980_vm3 = vmor %vm978_vm0, %vm979_vm14  ;;  %v1136_v6 = vand.u32 2147483648, %v6234_v18 }
 0x1eb   :  { %v975_v30 = vsub.f32 1.0, %v974_v21  ;;  %v6243_v32 = vadd.f32 1.0, %v3911_v25  ;;  %v3913_v14 = vpop.eup %3912  ;;  %vm999_vm4 = vmor %vm997_vm1, %vm998_vm15  ;;  %v1023_v5 = vand.u32 2147483648, %v6232_v17  ;;  %vm1130_vm7 = vweird.f32 %v6234_v18 }
 0x1ec   :  { %v994_v44 = vsub.f32 1.0, %v993_v28  ;;  %v1134_v13 = vand.u32 2147483647, %v6234_v18  ;;  %v1137_v23 = vor.u32 1.1754944e-38, %v1136_v6  ;;  %v1021_v28 = vand.u32 2147483647, %v6232_v17 }
 0x1ed   :  { %v976_v62 = vmul.f32 %v3907_v7, %v975_v30  ;;  %3918 = vrcp.f32 %v6243_v32  ;;  %v1153_v26 = vand.u32 2147483647, %v6243_v32  ;;  %vm1149_vm13 = vweird.f32 %v6243_v32 }
 0x1ee   :  { %v995_v52 = vmul.f32 %v3909_v20, %v994_v44  ;;  %3920 = vpow2.f32 %v3828_v48  ;;  %vm1135_vm12 = vcmp.eq.f32.partialorder %v1134_v13, 8.507059e+37  ;;  %v1024_v29 = vor.u32 1.1754944e-38, %v1023_v5  ;;  %v6395_v13 = vld [vmem:[%s9625_s3 + $0x168] sm:$0xff] }
 0x1ef   :  { %v6248_v53 = vpop.eup %3914  ;;  %v977_v55 = vadd.f32 %v3907_v7, %v976_v62  ;;  %3922 = vtanh.f32 %v1119_v37  ;;  %vm1154_vm0 = vcmp.eq.f32.partialorder %v1153_v26, 8.507059e+37  ;;  %vm1022_vm1 = vcmp.eq.f32.partialorder %v1021_v28, 8.507059e+37  ;;  %v6453_v26 = vld [vmem:[%s9625_s3 + $0x130] sm:$0xff]  ;;  %v6465_v28 = vld [vmem:[%s9625_s3 + $0x100] sm:$0xff] }
 0x1f0   :  { %v3917_v59 = vpop.eup %3916  ;;  %v996_v10 = vadd.f32 %v3909_v20, %v995_v52  ;;  %v1013_v42 = vmul.f32 %v6248_v53, %v6232_v17  ;;  %vm1018_vm9 = vweird.f32 %v6248_v53 }
 0x1f1   :  { %v981_v57 = vsel %vm980_vm3, %v3907_v7, %v977_v55  ;;  %v1126_v35 = vmul.f32 %v3917_v59, %v6234_v18  ;;  %vm1131_vm8 = vweird.f32 %v3917_v59  ;;  %v1155_v7 = vand.u32 2147483648, %v6243_v32  ;;  %vm1019_vm14 = vmor %vm1017_vm6, %vm1018_vm9 }
 0x1f2   :  { %v986_v38 = vsel %vm983_vm2, %v985_v39, %v981_v57  ;;  %v1000_v0 = vsel %vm999_vm4, %v3909_v20, %v996_v10  ;;  %v1014_v1 = vsub.f32 1.0, %v1013_v42  ;;  %vm1132_vm11 = vmor %vm1130_vm7, %vm1131_vm8  ;;  %v6307_v39 = vld [vmem:[%s9625_s3 + $0x1f8] sm:$0xff]  ;;  %v6319_v10 = vld [vmem:[%s9625_s3 + $0x1c8] sm:$0xff] }
 0x1f3   :  { %v3919_v41 = vpop.eup %3918  ;;  %v1005_v46 = vsel %vm1002_vm5, %v1004_v22, %v1000_v0  ;;  %v1028_v2 = vmul.f32 %v3913_v14, %v986_v38  ;;  %v1127_v49 = vsub.f32 1.0, %v1126_v35  ;;  %v1156_v43 = vor.u32 1.1754944e-38, %v1155_v7  ;;  %v6301_v22 = vld [vmem:[%s9625_s3 + $0x1f0] sm:$0xff]  ;;  %v6332_v35 = vld [vmem:[%s9625_s3 + $0x1d8] sm:$0xff]  ;;  %v6339_v0 = vld [vmem:[%s9625_s3 + $0x1a0] sm:$0xff] }
 0x1f4   :  { %v1027_v58 = vmul.f32 %v1005_v46, %v227_v51  ;;  %v1015_v61 = vmul.f32 %v6248_v53, %v1014_v1  ;;  %v1145_v8 = vmul.f32 %v3919_v41, %v6243_v32  ;;  %v3921_v9 = vpop.eup %3920  ;;  %vm1150_vm10 = vweird.f32 %v3919_v41  ;;  %v6326_v57 = vld [vmem:[%s9625_s3 + $0x1d0] sm:$0xff]  ;;  %v6345_v1 = vld [vmem:[%s9625_s3 + $0x1a8] sm:$0xff]  ;;  %v6411_v7 = vld [vmem:[%s9625_s3 + $0x178] sm:$0xff] }
 0x1f5   :  { %v1128_v11 = vmul.f32 %v3917_v59, %v1127_v49  ;;  %v6264_v19 = vadd.f32 1.0, %v3921_v9  ;;  %v3923_v20 = vpop.eup %3922  ;;  %vm1151_vm15 = vmor %vm1149_vm13, %vm1150_vm10  ;;  %v6357_v49 = vld [vmem:[%s9625_s3 + $0x1b8] sm:$0xff] }
 0x1f6   :  { %v6261_v15 = vadd.f32 %v1028_v2, %v1027_v58  ;;  %v1146_v16 = vsub.f32 1.0, %v1145_v8  ;;  %v1016_v24 = vadd.f32 %v6248_v53, %v1015_v61  ;;  %v6351_v2 = vld [vmem:[%s9625_s3 + $0x1b0] sm:$0xff]  ;;  %v6363_v58 = vld [vmem:[%s9625_s3 + $0x180] sm:$0xff]  ;;  %v6369_v61 = vld [vmem:[%s9625_s3 + $0x188] sm:$0xff] }
 0x1f7   :  { %v1129_v21 = vadd.f32 %v3917_v59, %v1128_v11  ;;  %vm1169_vm3 = vweird.f32 %v6264_v19  ;;  %v6377_v8 = vld [vmem:[%s9625_s3 + $0x190] sm:$0xff]  ;;  %v6383_v9 = vld [vmem:[%s9625_s3 + $0x198] sm:$0xff]  ;;  %v6389_v11 = vld [vmem:[%s9625_s3 + $0x160] sm:$0xff] }
 0x1f8   :  { %3924 = vtanh.f32 %v6261_v15  ;;  %v1147_v25 = vmul.f32 %v3919_v41, %v1146_v16  ;;  %v1020_v18 = vsel %vm1019_vm14, %v6248_v53, %v1016_v24  ;;  %v6293_v53 = vld [vmem:[%s9625_s3 + $0x1e0] sm:$0xff]  ;;  %v6405_v16 = vld [vmem:[%s9625_s3 + $0x170] sm:$0xff] }
 0x1f9   :  { %v1133_v27 = vsel %vm1132_vm11, %v3917_v59, %v1129_v21  ;;  %3926 = vrcp.f32 %v6264_v19  ;;  %v1025_v14 = vsel %vm1022_vm1, %v1024_v29, %v1020_v18  ;;  %v1173_v59 = vand.u32 2147483647, %v6264_v19  ;;  %v6429_v21 = vld [vmem:[%s9625_s3 + $0x150] sm:$0xff]  ;;  %v6441_v24 = vld [vmem:[%s9625_s3 + $0x120] sm:$0xff]  ;;  %v6507_v29 = vld [vmem:[%s9625_s3 + $0xf8] sm:$0xff] }
 0x1fa   :  { %v1138_v30 = vsel %vm1135_vm12, %v1137_v23, %v1133_v27  ;;  %v1148_v40 = vadd.f32 %v3919_v41, %v1147_v25  ;;  %v6435_v23 = vld [vmem:[%s9625_s3 + $0x158] sm:$0xff]  ;;  %v6447_v25 = vld [vmem:[%s9625_s3 + $0x128] sm:$0xff]  ;;  %v6489_v18 = vld [vmem:[%s9625_s3 + $0xe0] sm:$0xff]  ;;  %10589 = vst [vmem:[#allocation27_spill] sm:$0xff] %v6507_v29 }
 0x1fb   :  { %v1180_v47 = vmul.f32 %v3923_v20, %v1138_v30  ;;  %vm1174_vm5 = vcmp.eq.f32.partialorder %v1173_v59, 8.507059e+37  ;;  %v6423_v20 = vld [vmem:[%s9625_s3 + $0x148] sm:$0xff]  ;;  %v6459_v27 = vld [vmem:[%s9625_s3 + $0x138] sm:$0xff] }
 0x1fc   :  { %v1152_v44 = vsel %vm1151_vm15, %v3919_v41, %v1148_v40  ;;  %v6471_v30 = vld [vmem:[%s9625_s3 + $0x108] sm:$0xff]  ;;  %v6477_v40 = vld [vmem:[%s9625_s3 + $0x110] sm:$0xff] }
 0x1fd   :  { %v1157_v48 = vsel %vm1154_vm0, %v1156_v43, %v1152_v44  ;;  %v6483_v43 = vld [vmem:[%s9625_s3 + $0x118] sm:$0xff]  ;;  %v6495_v44 = vld [vmem:[%s9625_s3 + $0xe8] sm:$0xff] }
 0x1fe   :  { %v3925_v62 = vpop.eup %3924  ;;  %v1179_v37 = vmul.f32 %v1157_v48, %v6075_v4  ;;  %v1175_v4 = vand.u32 2147483648, %v6264_v19  ;;  %v6513_v48 = vld [vmem:[%s9625_s3 + $0xc0] sm:$0xff]  ;;  %v6567_v59 = vld [vmem:[%s9625_s3 + $0x88] sm:$0xff] }
 0x1ff   :  { %v3927_v32 = vpop.eup %3926  ;;  %v6279_v50 = vmul.f32 %v3925_v62, %v1025_v14  ;;  %10590 = vst [vmem:[#allocation23_spill] sm:$0xff] %v6513_v48  ;;  %v6519_v62 = vld [vmem:[%s9625_s3 + $0xc8] sm:$0xff]  ;;  %v6531_v14 = vld [vmem:[%s9625_s3 + $0xd8] sm:$0xff] }
 0x200   :  { %v6281_v51 = vadd.f32 %v1180_v47, %v1179_v37  ;;  %v1165_v17 = vmul.f32 %v3927_v32, %v6264_v19  ;;  %vm1170_vm2 = vweird.f32 %v3927_v32  ;;  %v1176_v38 = vor.u32 1.1754944e-38, %v1175_v4  ;;  %v6417_v19 = vld [vmem:[%s9625_s3 + $0x140] sm:$0xff]  ;;  %v6501_v47 = vld [vmem:[%s9625_s3 + $0xf0] sm:$0xff]  ;;  %10591 = vst [vmem:[#allocation18_spill] sm:$0xff] %v6519_v62  ;;  %v6555_v4 = vld [vmem:[%s9625_s3 + $0xb8] sm:$0xff] }
 0x201   :  { %10587 = vst [vmem:[#allocation17_spill] sm:$0xff] %v6279_v50  ;;  %1200 = vmatmul.f32.vlgmr.msrb.gmra.mxu0 %v6279_v50  ;;  %1220 = vmatmul.f32.vlgmr.msra.gmra.mxu1 %v6279_v50  ;;  %vm1171_vm4 = vmor %vm1169_vm3, %vm1170_vm2  ;;  %v6525_v37 = vld [vmem:[%s9625_s3 + $0xd0] sm:$0xff] }
 0x202   :  { %3928 = vtanh.f32 %v6281_v51  ;;  %v1166_v52 = vsub.f32 1.0, %v1165_v17  ;;  %1240 = vmatmul.f32.vlgmr.msrb.gmra.mxu2 %v6279_v50  ;;  %1260 = vmatmul.f32.vlgmr.msrb.gmra.mxu3 %v6279_v50  ;;  %10588 = vst [vmem:[#allocation22_spill] sm:$0xff] %v6501_v47  ;;  %v6543_v17 = vld [vmem:[%s9625_s3 + $0xa8] sm:$0xff]  ;;  %v6603_v50 = vld [vmem:[%s9625_s3 + $0x78] sm:$0xff] }
 0x203   :  { %1412 = vmatpush.msrb.mxu0 %v6293_v53  ;;  %1432 = vmatpush.msra.mxu1 %v5973_v56  ;;  %v6313_v56 = vld [vmem:[%s9625_s3 + $0x1c0] sm:$0xff]  ;;  %10592 = vst [vmem:[#allocation24_spill] sm:$0xff] %v6525_v37 }
 0x204   :  { %v1167_v55 = vmul.f32 %v3927_v32, %v1166_v52  ;;  %1452 = vmatpush.msrb.mxu2 %v6301_v22  ;;  %1472 = vmatpush.msrb.mxu3 %v6307_v39  ;;  %10593 = vst [vmem:[#allocation28_spill] sm:$0xff] %v6531_v14  ;;  %v6549_v52 = vld [vmem:[%s9625_s3 + $0xb0] sm:$0xff] }
 0x205   :  { %1413 = vmatpush.msrb.mxu0 %v6313_v56  ;;  %1433 = vmatpush.msra.mxu1 %v6319_v10  ;;  %10595 = vst [vmem:[#allocation55_spill] sm:$0xff] %v6543_v17 }
 0x206   :  { %v1168_v42 = vadd.f32 %v3927_v32, %v1167_v55  ;;  %1453 = vmatpush.msrb.mxu2 %v6326_v57  ;;  %1473 = vmatpush.msrb.mxu3 %v6332_v35  ;;  %10596 = vst [vmem:[#allocation98_spill] sm:$0xff] %v6549_v52  ;;  %v6561_v55 = vld [vmem:[%s9625_s3 + $0x80] sm:$0xff] }
 0x207   :  { %1414 = vmatpush.msrb.mxu0 %v6339_v0  ;;  %1434 = vmatpush.msra.mxu1 %v6345_v1  ;;  %10597 = vst [vmem:[#allocation29_spill] sm:$0xff] %v6555_v4 }
 0x208   :  { %v3929_v41 = vpop.eup %3928  ;;  %v1172_v46 = vsel %vm1171_vm4, %v3927_v32, %v1168_v42  ;;  %1454 = vmatpush.msrb.mxu2 %v6351_v2  ;;  %1474 = vmatpush.msrb.mxu3 %v6357_v49  ;;  %v6537_v32 = vld [vmem:[%s9625_s3 + $0xa0] sm:$0xff]  ;;  %10598 = vst [vmem:[#allocation30_spill] sm:$0xff] %v6561_v55  ;;  %v6573_v42 = vld [vmem:[%s9625_s3 + $0x90] sm:$0xff] }
 0x209   :  { %v1177_v6 = vsel %vm1174_vm5, %v1176_v38, %v1172_v46  ;;  %1415 = vmatpush.msrb.mxu0 %v6363_v58  ;;  %1435 = vmatpush.msra.mxu1 %v6369_v61  ;;  %10594 = vst [vmem:[#allocation25_spill] sm:$0xff] %v6537_v32  ;;  %v6579_v38 = vld [vmem:[%s9625_s3 + $0x98] sm:$0xff]  ;;  %v6591_v46 = vld [vmem:[%s9625_s3 + $0x68] sm:$0xff] }
 0x20a   :  { %v6372_v5 = vmul.f32 %v3929_v41, %v1177_v6  ;;  %1455 = vmatpush.msrb.mxu2 %v6377_v8  ;;  %1475 = vmatpush.msrb.mxu3 %v6383_v9  ;;  %10599 = vst [vmem:[#allocation65_spill] sm:$0xff] %v6567_v59  ;;  %v6585_v41 = vld [vmem:[%s9625_s3 + $0x60] sm:$0xff]  ;;  %v6597_v6 = vld [vmem:[%s9625_s3 + $0x70] sm:$0xff] }
 0x20b   :  { %1416 = vmatpush.msrb.mxu0 %v6389_v11  ;;  %1436 = vmatpush.msra.mxu1 %v6395_v13  ;;  %10600 = vst [vmem:[#allocation31_spill] sm:$0xff] %v6573_v42 }
 0x20c   :  { %1280 = vmatmul.f32.vlgmr.msra.gmra.mxu0 %v6372_v5  ;;  %1300 = vmatmul.f32.vlgmr.msrb.gmra.mxu1 %v6372_v5  ;;  %10601 = vst [vmem:[#allocation32_spill] sm:$0xff] %v6579_v38 }
 0x20d   :  { %1320 = vmatmul.f32.vlgmr.msra.gmra.mxu2 %v6372_v5  ;;  %1340 = vmatmul.f32.vlgmr.msra.gmra.mxu3 %v6372_v5  ;;  %10602 = vst [vmem:[#allocation33_spill] sm:$0xff] %v6585_v41 }
 0x20e   :  { %1456 = vmatpush.msrb.mxu2 %v6405_v16  ;;  %1476 = vmatpush.msrb.mxu3 %v6411_v7  ;;  %10603 = vst [vmem:[#allocation68_spill] sm:$0xff] %v6591_v46 }
 0x20f   :  { %1417 = vmatpush.msrb.mxu0 %v6417_v19  ;;  %1437 = vmatpush.msra.mxu1 %v6423_v20  ;;  %10604 = vst [vmem:[#allocation34_spill] sm:$0xff] %v6597_v6 }
 0x210   :  { %1457 = vmatpush.msrb.mxu2 %v6429_v21  ;;  %1477 = vmatpush.msrb.mxu3 %v6435_v23  ;;  %10605 = vst [vmem:[#allocation35_spill] sm:$0xff] %v6603_v50 }
 0x211   :  { %1418 = vmatpush.msrb.mxu0 %v6441_v24  ;;  %1438 = vmatpush.msra.mxu1 %v6447_v25 }
 0x212   :  { %1458 = vmatpush.msrb.mxu2 %v6453_v26  ;;  %1478 = vmatpush.msrb.mxu3 %v6459_v27 }
 0x213   :  { %1419 = vmatpush.msrb.mxu0 %v6465_v28  ;;  %1439 = vmatpush.msra.mxu1 %v6471_v30 }
 0x214   :  { %1459 = vmatpush.msrb.mxu2 %v6477_v40  ;;  %1479 = vmatpush.msrb.mxu3 %v6483_v43 }
 0x215   :  { %1420 = vmatpush.msrb.mxu0 %v6489_v18  ;;  %1440 = vmatpush.msra.mxu1 %v6495_v44 }
 0x216   :  { %1460 = vmatpush.msrb.mxu2 %v6501_v47  ;;  %1480 = vmatpush.msrb.mxu3 %v6507_v29 }
 0x217   :  { %1421 = vmatpush.msrb.mxu0 %v6513_v48  ;;  %1441 = vmatpush.msra.mxu1 %v6519_v62 }
 0x218   :  { %1461 = vmatpush.msrb.mxu2 %v6525_v37  ;;  %1481 = vmatpush.msrb.mxu3 %v6531_v14 }
 0x219   :  { %1422 = vmatpush.msrb.mxu0 %v6537_v32  ;;  %1442 = vmatpush.msra.mxu1 %v6543_v17 }
 0x21a   :  { %1462 = vmatpush.msrb.mxu2 %v6549_v52  ;;  %1482 = vmatpush.msrb.mxu3 %v6555_v4 }
 0x21b   :  { %1423 = vmatpush.msrb.mxu0 %v6561_v55  ;;  %1443 = vmatpush.msra.mxu1 %v6567_v59 }
 0x21c   :  { %1463 = vmatpush.msrb.mxu2 %v6573_v42  ;;  %1483 = vmatpush.msrb.mxu3 %v6579_v38 }
 0x21d   :  { %1424 = vmatpush.msrb.mxu0 %v6585_v41  ;;  %1444 = vmatpush.msra.mxu1 %v6591_v46  ;;  %v6615_v46 = vld [vmem:[%s9625_s3 + $0x48] sm:$0xff]  ;;  %v6694_v41 = vld [vmem:[#allocation8 + $0x1c0] sm:$0xff] }
 0x21e   :  { %1464 = vmatpush.msrb.mxu2 %v6597_v6  ;;  %1484 = vmatpush.msrb.mxu3 %v6603_v50  ;;  %10607 = vst [vmem:[#allocation72_spill] sm:$0xff] %v6615_v46  ;;  %v6621_v6 = vld [vmem:[%s9625_s3 + $0x50] sm:$0xff]  ;;  %v6627_v50 = vld [vmem:[%s9625_s3 + $0x58] sm:$0xff] }
 0x21f   :  { %1425 = vmatpush.msrb.mxu0 %v6609_v33  ;;  %1445 = vmatpush.msra.mxu1 %v6615_v46  ;;  %10608 = vst [vmem:[#allocation37_spill] sm:$0xff] %v6621_v6  ;;  %v6633_v33 = vld [vmem:[%s9625_s3 + $0x20] sm:$0xff]  ;;  %v6639_v46 = vld [vmem:[%s9625_s3 + $0x28] sm:$0xff] }
 0x220   :  { %1465 = vmatpush.msrb.mxu2 %v6621_v6  ;;  %10609 = vst [vmem:[#allocation38_spill] sm:$0xff] %v6627_v50  ;;  %1485 = vmatpush.msrb.mxu3 %v6627_v50  ;;  %v6645_v6 = vld [vmem:[%s9625_s3 + $0x30] sm:$0xff]  ;;  %v6651_v50 = vld [vmem:[%s9625_s3 + $0x38] sm:$0xff] }
 0x221   :  { %10610 = vst [vmem:[#allocation39_spill] sm:$0xff] %v6633_v33  ;;  %1426 = vmatpush.msrb.mxu0 %v6633_v33  ;;  %1446 = vmatpush.msra.mxu1 %v6639_v46  ;;  %v6657_v33 = vld [vmem:[%s9625_s3] sm:$0xff] }
 0x222   :  { %10611 = vst [vmem:[#allocation76_spill] sm:$0xff] %v6639_v46  ;;  %1466 = vmatpush.msrb.mxu2 %v6645_v6  ;;  %1486 = vmatpush.msrb.mxu3 %v6651_v50  ;;  %v6663_v46 = vld [vmem:[%s9625_s3 + $0x8] sm:$0xff] }
 0x223   :  { %10612 = vst [vmem:[#allocation40_spill] sm:$0xff] %v6645_v6  ;;  %1427 = vmatpush.msrb.mxu0 %v6657_v33  ;;  %1447 = vmatpush.msra.mxu1 %v6663_v46  ;;  %v6669_v6 = vld [vmem:[%s9625_s3 + $0x10] sm:$0xff] }
 0x224   :  { %10613 = vst [vmem:[#allocation41_spill] sm:$0xff] %v6651_v50  ;;  %1467 = vmatpush.msrb.mxu2 %v6669_v6  ;;  %v6675_v50 = vld [vmem:[%s9625_s3 + $0x18] sm:$0xff]  ;;  %1428 = vmatmul.f32.vlgmr.msrb.gmra.mxu0 %v6372_v5 }
 0x225   :  { %10614 = vst [vmem:[#allocation42_spill] sm:$0xff] %v6657_v33  ;;  %1487 = vmatpush.msrb.mxu3 %v6675_v50  ;;  %1448 = vmatmul.f32.vlgmr.msra.gmra.mxu1 %v6372_v5  ;;  %v6688_v33 = vld [vmem:[#allocation8 + $0x1f0] sm:$0xff] }
 0x226   :  { %10615 = vst [vmem:[#allocation80_spill] sm:$0xff] %v6663_v46  ;;  %1468 = vmatmul.f32.vlgmr.msrb.gmra.mxu2 %v6372_v5  ;;  %1488 = vmatmul.f32.vlgmr.msrb.gmra.mxu3 %v6372_v5  ;;  %v6682_v46 = vld [vmem:[#allocation8 + $0x1e0] sm:$0xff]  ;;  %v6697_v5 = vld [vmem:[#allocation8 + $0x1c8] sm:$0xff] }
 0x227   :  { %10616 = vst [vmem:[#allocation43_spill] sm:$0xff] %v6669_v6  ;;  %1563 = vmatpush.msra.mxu0 %v6682_v46  ;;  %v6685_v6 = vld [vmem:[#allocation8 + $0x1e8] sm:$0xff]  ;;  %1603 = vmatpush.msra.mxu2 %v6688_v33 }
 0x228   :  { %10617 = vst [vmem:[#allocation44_spill] sm:$0xff] %v6675_v50  ;;  %1583 = vmatpush.msrb.mxu1 %v6685_v6  ;;  %v6691_v50 = vld [vmem:[#allocation8 + $0x1f8] sm:$0xff] }
 0x229   :  { %10618 = vst [vmem:[#allocation45_spill] sm:$0xff] %v6682_v46  ;;  %1623 = vmatpush.msra.mxu3 %v6691_v50  ;;  %1564 = vmatpush.msra.mxu0 %v6694_v41  ;;  %v6700_v46 = vld [vmem:[#allocation8 + $0x1d0] sm:$0xff] }
 0x22a   :  { %10619 = vst [vmem:[#allocation84_spill] sm:$0xff] %v6685_v6  ;;  %1584 = vmatpush.msrb.mxu1 %v6697_v5  ;;  %1604 = vmatpush.msra.mxu2 %v6700_v46  ;;  %v6703_v6 = vld [vmem:[#allocation8 + $0x1d8] sm:$0xff] }
 0x22b   :  { %10620 = vst [vmem:[#allocation46_spill] sm:$0xff] %v6688_v33  ;;  %1624 = vmatpush.msra.mxu3 %v6703_v6  ;;  %v6706_v33 = vld [vmem:[#allocation8 + $0x1a0] sm:$0xff] }
 0x22c   :  { %10621 = vst [vmem:[#allocation47_spill] sm:$0xff] %v6691_v50  ;;  %1565 = vmatpush.msra.mxu0 %v6706_v33  ;;  %v6709_v50 = vld [vmem:[#allocation8 + $0x1a8] sm:$0xff] }
 0x22d   :  { %10622 = vst [vmem:[#allocation48_spill] sm:$0xff] %v6694_v41  ;;  %1585 = vmatpush.msrb.mxu1 %v6709_v50  ;;  %v6712_v41 = vld [vmem:[#allocation8 + $0x1b0] sm:$0xff] }
 0x22e   :  { %10623 = vst [vmem:[#allocation85_spill] sm:$0xff] %v6697_v5  ;;  %1605 = vmatpush.msra.mxu2 %v6712_v41  ;;  %v6715_v5 = vld [vmem:[#allocation8 + $0x1b8] sm:$0xff] }
 0x22f   :  { %10624 = vst [vmem:[#allocation49_spill] sm:$0xff] %v6700_v46  ;;  %1625 = vmatpush.msra.mxu3 %v6715_v5  ;;  %v6718_v46 = vld [vmem:[#allocation8 + $0x180] sm:$0xff] }
 0x230   :  { %10625 = vst [vmem:[#allocation50_spill] sm:$0xff] %v6703_v6  ;;  %1566 = vmatpush.msra.mxu0 %v6718_v46  ;;  %v6721_v6 = vld [vmem:[#allocation8 + $0x188] sm:$0xff] }
 0x231   :  { %10626 = vst [vmem:[#allocation51_spill] sm:$0xff] %v6706_v33  ;;  %1586 = vmatpush.msrb.mxu1 %v6721_v6  ;;  %v6724_v33 = vld [vmem:[#allocation8 + $0x190] sm:$0xff] }
 0x232   :  { %10627 = vst [vmem:[#allocation86_spill] sm:$0xff] %v6709_v50  ;;  %1606 = vmatpush.msra.mxu2 %v6724_v33  ;;  %v6727_v50 = vld [vmem:[#allocation8 + $0x198] sm:$0xff] }
 0x233   :  { %10628 = vst [vmem:[#allocation52_spill] sm:$0xff] %v6712_v41  ;;  %1626 = vmatpush.msra.mxu3 %v6727_v50  ;;  %v6730_v41 = vld [vmem:[#allocation8 + $0x160] sm:$0xff] }
 0x234   :  { %10629 = vst [vmem:[#allocation53_spill] sm:$0xff] %v6715_v5  ;;  %1567 = vmatpush.msra.mxu0 %v6730_v41  ;;  %v6733_v5 = vld [vmem:[#allocation8 + $0x168] sm:$0xff] }
 0x235   :  { %10630 = vst [vmem:[#allocation54_spill] sm:$0xff] %v6718_v46  ;;  %1587 = vmatpush.msrb.mxu1 %v6733_v5  ;;  %v6736_v46 = vld [vmem:[#allocation8 + $0x170] sm:$0xff] }
 0x236   :  { %10631 = vst [vmem:[#allocation87_spill] sm:$0xff] %v6721_v6  ;;  %1607 = vmatpush.msra.mxu2 %v6736_v46  ;;  %v6739_v6 = vld [vmem:[#allocation8 + $0x178] sm:$0xff] }
 0x237   :  { %10632 = vst [vmem:[#allocation56_spill] sm:$0xff] %v6724_v33  ;;  %1627 = vmatpush.msra.mxu3 %v6739_v6  ;;  %v6742_v33 = vld [vmem:[#allocation8 + $0x140] sm:$0xff] }
 0x238   :  { %10633 = vst [vmem:[#allocation57_spill] sm:$0xff] %v6727_v50  ;;  %1568 = vmatpush.msra.mxu0 %v6742_v33  ;;  %v6745_v50 = vld [vmem:[#allocation8 + $0x148] sm:$0xff] }
 0x239   :  { %10634 = vst [vmem:[#allocation58_spill] sm:$0xff] %v6730_v41  ;;  %1588 = vmatpush.msrb.mxu1 %v6745_v50  ;;  %v6748_v41 = vld [vmem:[#allocation8 + $0x150] sm:$0xff] }
 0x23a   :  { %10635 = vst [vmem:[#allocation89_spill] sm:$0xff] %v6733_v5  ;;  %1608 = vmatpush.msra.mxu2 %v6748_v41  ;;  %v6751_v5 = vld [vmem:[#allocation8 + $0x158] sm:$0xff] }
 0x23b   :  { %10636 = vst [vmem:[#allocation59_spill] sm:$0xff] %v6736_v46  ;;  %1628 = vmatpush.msra.mxu3 %v6751_v5  ;;  %v6754_v46 = vld [vmem:[#allocation8 + $0x120] sm:$0xff] }
 0x23c   :  { %10637 = vst [vmem:[#allocation60_spill] sm:$0xff] %v6739_v6  ;;  %1569 = vmatpush.msra.mxu0 %v6754_v46  ;;  %v6757_v6 = vld [vmem:[#allocation8 + $0x128] sm:$0xff] }
 0x23d   :  { %10638 = vst [vmem:[#allocation61_spill] sm:$0xff] %v6742_v33  ;;  %1589 = vmatpush.msrb.mxu1 %v6757_v6  ;;  %v6760_v33 = vld [vmem:[#allocation8 + $0x130] sm:$0xff] }
 0x23e   :  { %10639 = vst [vmem:[#allocation90_spill] sm:$0xff] %v6745_v50  ;;  %1609 = vmatpush.msra.mxu2 %v6760_v33  ;;  %v6763_v50 = vld [vmem:[#allocation8 + $0x138] sm:$0xff] }
 0x23f   :  { %10640 = vst [vmem:[#allocation62_spill] sm:$0xff] %v6748_v41  ;;  %1629 = vmatpush.msra.mxu3 %v6763_v50  ;;  %v6766_v41 = vld [vmem:[#allocation8 + $0x100] sm:$0xff] }
 0x240   :  { %10641 = vst [vmem:[#allocation63_spill] sm:$0xff] %v6751_v5  ;;  %1570 = vmatpush.msra.mxu0 %v6766_v41  ;;  %v6769_v5 = vld [vmem:[#allocation8 + $0x108] sm:$0xff] }
 0x241   :  { %10642 = vst [vmem:[#allocation64_spill] sm:$0xff] %v6754_v46  ;;  %1590 = vmatpush.msrb.mxu1 %v6769_v5  ;;  %v6772_v46 = vld [vmem:[#allocation8 + $0x110] sm:$0xff] }
 0x242   :  { %10643 = vst [vmem:[#allocation91_spill] sm:$0xff] %v6757_v6  ;;  %1610 = vmatpush.msra.mxu2 %v6772_v46  ;;  %v6775_v6 = vld [vmem:[#allocation8 + $0x118] sm:$0xff] }
 0x243   :  { %10644 = vst [vmem:[#allocation66_spill] sm:$0xff] %v6760_v33  ;;  %1630 = vmatpush.msra.mxu3 %v6775_v6  ;;  %v6778_v33 = vld [vmem:[#allocation8 + $0xe0] sm:$0xff] }
 0x244   :  { %10645 = vst [vmem:[#allocation67_spill] sm:$0xff] %v6763_v50  ;;  %1571 = vmatpush.msra.mxu0 %v6778_v33  ;;  %v6781_v50 = vld [vmem:[#allocation8 + $0xe8] sm:$0xff] }
 0x245   :  { %10646 = vst [vmem:[#allocation69_spill] sm:$0xff] %v6766_v41  ;;  %1591 = vmatpush.msrb.mxu1 %v6781_v50  ;;  %v6784_v41 = vld [vmem:[#allocation8 + $0xf0] sm:$0xff] }
 0x246   :  { %10647 = vst [vmem:[#allocation92_spill] sm:$0xff] %v6769_v5  ;;  %1611 = vmatpush.msra.mxu2 %v6784_v41  ;;  %v6787_v5 = vld [vmem:[#allocation8 + $0xf8] sm:$0xff] }
 0x247   :  { %10648 = vst [vmem:[#allocation70_spill] sm:$0xff] %v6772_v46  ;;  %1631 = vmatpush.msra.mxu3 %v6787_v5  ;;  %v6790_v46 = vld [vmem:[#allocation8 + $0xc0] sm:$0xff] }
 0x248   :  { %10649 = vst [vmem:[#allocation71_spill] sm:$0xff] %v6775_v6  ;;  %1572 = vmatpush.msra.mxu0 %v6790_v46  ;;  %v6793_v6 = vld [vmem:[#allocation8 + $0xc8] sm:$0xff] }
 0x249   :  { %10650 = vst [vmem:[#allocation73_spill] sm:$0xff] %v6778_v33  ;;  %1592 = vmatpush.msrb.mxu1 %v6793_v6  ;;  %v6796_v33 = vld [vmem:[#allocation8 + $0xd0] sm:$0xff] }
 0x24a   :  { %10651 = vst [vmem:[#allocation93_spill] sm:$0xff] %v6781_v50  ;;  %1612 = vmatpush.msra.mxu2 %v6796_v33  ;;  %v6799_v50 = vld [vmem:[#allocation8 + $0xd8] sm:$0xff] }
 0x24b   :  { %10652 = vst [vmem:[#allocation74_spill] sm:$0xff] %v6784_v41  ;;  %1632 = vmatpush.msra.mxu3 %v6799_v50  ;;  %v6802_v41 = vld [vmem:[#allocation8 + $0xa0] sm:$0xff] }
 0x24c   :  { %10653 = vst [vmem:[#allocation75_spill] sm:$0xff] %v6787_v5  ;;  %1573 = vmatpush.msra.mxu0 %v6802_v41  ;;  %v6805_v5 = vld [vmem:[#allocation8 + $0xa8] sm:$0xff] }
 0x24d   :  { %10654 = vst [vmem:[#allocation77_spill] sm:$0xff] %v6790_v46  ;;  %1593 = vmatpush.msrb.mxu1 %v6805_v5  ;;  %v6808_v46 = vld [vmem:[#allocation8 + $0xb0] sm:$0xff] }
 0x24e   :  { %10655 = vst [vmem:[#allocation95_spill] sm:$0xff] %v6793_v6  ;;  %1613 = vmatpush.msra.mxu2 %v6808_v46  ;;  %v6811_v6 = vld [vmem:[#allocation8 + $0xb8] sm:$0xff] }
 0x24f   :  { %10656 = vst [vmem:[#allocation79_spill] sm:$0xff] %v6796_v33  ;;  %1633 = vmatpush.msra.mxu3 %v6811_v6  ;;  %v6814_v33 = vld [vmem:[#allocation8 + $0x80] sm:$0xff] }
 0x250   :  { %10657 = vst [vmem:[#allocation81_spill] sm:$0xff] %v6799_v50  ;;  %1574 = vmatpush.msra.mxu0 %v6814_v33  ;;  %v6817_v50 = vld [vmem:[#allocation8 + $0x88] sm:$0xff] }
 0x251   :  { %10658 = vst [vmem:[#allocation82_spill] sm:$0xff] %v6802_v41  ;;  %1594 = vmatpush.msrb.mxu1 %v6817_v50  ;;  %v6820_v41 = vld [vmem:[#allocation8 + $0x90] sm:$0xff] }
 0x252   :  { %10659 = vst [vmem:[#allocation96_spill] sm:$0xff] %v6805_v5  ;;  %1614 = vmatpush.msra.mxu2 %v6820_v41  ;;  %v6823_v5 = vld [vmem:[#allocation8 + $0x98] sm:$0xff] }
 0x253   :  { %10660 = vst [vmem:[#allocation83_spill] sm:$0xff] %v6808_v46  ;;  %1634 = vmatpush.msra.mxu3 %v6823_v5  ;;  %v6826_v46 = vld [vmem:[#allocation8 + $0x60] sm:$0xff] }
 0x254   :  { %10661 = vst [vmem:[#allocation100_spill] sm:$0xff] %v6811_v6  ;;  %1575 = vmatpush.msra.mxu0 %v6826_v46  ;;  %v6829_v6 = vld [vmem:[#allocation8 + $0x68] sm:$0xff] }
 0x255   :  { %10662 = vst [vmem:[#allocation101_spill] sm:$0xff] %v6814_v33  ;;  %1595 = vmatpush.msrb.mxu1 %v6829_v6  ;;  %v6832_v33 = vld [vmem:[#allocation8 + $0x70] sm:$0xff] }
 0x256   :  { %10663 = vst [vmem:[#allocation102_spill] sm:$0xff] %v6817_v50  ;;  %1615 = vmatpush.msra.mxu2 %v6832_v33  ;;  %v6835_v50 = vld [vmem:[#allocation8 + $0x78] sm:$0xff] }
 0x257   :  { %10664 = vst [vmem:[#allocation103_spill] sm:$0xff] %v6820_v41  ;;  %1635 = vmatpush.msra.mxu3 %v6835_v50  ;;  %v6838_v41 = vld [vmem:[#allocation8 + $0x40] sm:$0xff] }
 0x258   :  { %10665 = vst [vmem:[#allocation116_spill] sm:$0xff] %v6823_v5  ;;  %1576 = vmatpush.msra.mxu0 %v6838_v41  ;;  %v6841_v5 = vld [vmem:[#allocation8 + $0x48] sm:$0xff] }
 0x259   :  { %10666 = vst [vmem:[#allocation117_spill] sm:$0xff] %v6826_v46  ;;  %1596 = vmatpush.msrb.mxu1 %v6841_v5  ;;  %v6844_v46 = vld [vmem:[#allocation8 + $0x50] sm:$0xff] }
 0x25a   :  { %10667 = vst [vmem:[#allocation119_spill] sm:$0xff] %v6829_v6  ;;  %1616 = vmatpush.msra.mxu2 %v6844_v46  ;;  %v6847_v6 = vld [vmem:[#allocation8 + $0x58] sm:$0xff] }
 0x25b   :  { %10668 = vst [vmem:[#allocation120_spill] sm:$0xff] %v6832_v33  ;;  %1636 = vmatpush.msra.mxu3 %v6847_v6  ;;  %v6850_v33 = vld [vmem:[#allocation8 + $0x20] sm:$0xff] }
 0x25c   :  { %10669 = vst [vmem:[#allocation121_spill] sm:$0xff] %v6835_v50  ;;  %1577 = vmatpush.msra.mxu0 %v6850_v33  ;;  %v6853_v50 = vld [vmem:[#allocation8 + $0x28] sm:$0xff] }
 0x25d   :  { %10670 = vst [vmem:[#allocation122_spill] sm:$0xff] %v6838_v41  ;;  %1597 = vmatpush.msrb.mxu1 %v6853_v50  ;;  %v6856_v41 = vld [vmem:[#allocation8 + $0x30] sm:$0xff] }
 0x25e   :  { %10671 = vst [vmem:[#allocation123_spill] sm:$0xff] %v6841_v5  ;;  %1617 = vmatpush.msra.mxu2 %v6856_v41  ;;  %v6859_v5 = vld [vmem:[#allocation8 + $0x38] sm:$0xff] }
 0x25f   :  { %10672 = vst [vmem:[#allocation124_spill] sm:$0xff] %v6844_v46  ;;  %1637 = vmatpush.msra.mxu3 %v6859_v5  ;;  %v6862_v46 = vld [vmem:[#allocation8] sm:$0xff] }
 0x260   :  { %10673 = vst [vmem:[#allocation125_spill] sm:$0xff] %v6847_v6  ;;  %1578 = vmatpush.msra.mxu0 %v6862_v46  ;;  %v6865_v6 = vld [vmem:[#allocation8 + $0x8] sm:$0xff] }
 0x261   :  { %10674 = vst [vmem:[#allocation126_spill] sm:$0xff] %v6850_v33  ;;  %1598 = vmatpush.msrb.mxu1 %v6865_v6  ;;  %v6868_v33 = vld [vmem:[#allocation8 + $0x10] sm:$0xff] }
 0x262   :  { %10675 = vst [vmem:[#allocation127_spill] sm:$0xff] %v6853_v50  ;;  %1618 = vmatpush.msra.mxu2 %v6868_v33  ;;  %v6871_v50 = vld [vmem:[#allocation8 + $0x18] sm:$0xff] }
 0x263   :  { %10676 = vst [vmem:[#allocation128_spill] sm:$0xff] %v6856_v41  ;;  %1638 = vmatpush.msra.mxu3 %v6871_v50  ;;  %v6874_v41 = vld [vmem:[#allocation6 + $0x1e0] sm:$0xff] }
 0x264   :  { %10677 = vst [vmem:[#allocation129_spill] sm:$0xff] %v6859_v5  ;;  %1643 = vmatpush.msrb.mxu0 %v6874_v41  ;;  %v6877_v5 = vld [vmem:[#allocation6 + $0x1e8] sm:$0xff] }
 0x265   :  { %10678 = vst [vmem:[#allocation131_spill] sm:$0xff] %v6862_v46  ;;  %1663 = vmatpush.msra.mxu1 %v6877_v5  ;;  %v6880_v46 = vld [vmem:[#allocation6 + $0x1f0] sm:$0xff] }
 0x266   :  { %10679 = vst [vmem:[#allocation133_spill] sm:$0xff] %v6865_v6  ;;  %1683 = vmatpush.msrb.mxu2 %v6880_v46  ;;  %v6883_v6 = vld [vmem:[#allocation6 + $0x1f8] sm:$0xff] }
 0x267   :  { %10680 = vst [vmem:[#allocation134_spill] sm:$0xff] %v6868_v33  ;;  %1703 = vmatpush.msrb.mxu3 %v6883_v6  ;;  %v6886_v33 = vld [vmem:[#allocation6 + $0x1c0] sm:$0xff] }
 0x268   :  { %10681 = vst [vmem:[#allocation135_spill] sm:$0xff] %v6871_v50  ;;  %1644 = vmatpush.msrb.mxu0 %v6886_v33  ;;  %v6889_v50 = vld [vmem:[#allocation6 + $0x1c8] sm:$0xff] }
 0x269   :  { %10682 = vst [vmem:[#allocation136_spill] sm:$0xff] %v6874_v41  ;;  %1664 = vmatpush.msra.mxu1 %v6889_v50  ;;  %v6892_v41 = vld [vmem:[#allocation6 + $0x1d0] sm:$0xff] }
 0x26a   :  { %10683 = vst [vmem:[#allocation137_spill] sm:$0xff] %v6877_v5  ;;  %1684 = vmatpush.msrb.mxu2 %v6892_v41  ;;  %v6895_v5 = vld [vmem:[#allocation6 + $0x1d8] sm:$0xff] }
 0x26b   :  { %10684 = vst [vmem:[#allocation138_spill] sm:$0xff] %v6880_v46  ;;  %1704 = vmatpush.msrb.mxu3 %v6895_v5  ;;  %v6898_v46 = vld [vmem:[#allocation6 + $0x1a0] sm:$0xff] }
 0x26c   :  { %10685 = vst [vmem:[#allocation139_spill] sm:$0xff] %v6883_v6  ;;  %1645 = vmatpush.msrb.mxu0 %v6898_v46  ;;  %v6901_v6 = vld [vmem:[#allocation6 + $0x1a8] sm:$0xff] }
 0x26d   :  { %10686 = vst [vmem:[#allocation141_spill] sm:$0xff] %v6886_v33  ;;  %1665 = vmatpush.msra.mxu1 %v6901_v6  ;;  %v6904_v33 = vld [vmem:[#allocation6 + $0x1b0] sm:$0xff] }
 0x26e   :  { %10687 = vst [vmem:[#allocation142_spill] sm:$0xff] %v6889_v50  ;;  %1685 = vmatpush.msrb.mxu2 %v6904_v33  ;;  %v6907_v50 = vld [vmem:[#allocation6 + $0x1b8] sm:$0xff] }
 0x26f   :  { %10688 = vst [vmem:[#allocation143_spill] sm:$0xff] %v6892_v41  ;;  %1705 = vmatpush.msrb.mxu3 %v6907_v50  ;;  %v6910_v41 = vld [vmem:[#allocation6 + $0x180] sm:$0xff] }
 0x270   :  { %10689 = vst [vmem:[#allocation144_spill] sm:$0xff] %v6895_v5  ;;  %1646 = vmatpush.msrb.mxu0 %v6910_v41  ;;  %v6913_v5 = vld [vmem:[#allocation6 + $0x188] sm:$0xff] }
 0x271   :  { %10690 = vst [vmem:[#allocation145_spill] sm:$0xff] %v6898_v46  ;;  %1666 = vmatpush.msra.mxu1 %v6913_v5  ;;  %v6916_v46 = vld [vmem:[#allocation6 + $0x190] sm:$0xff] }
 0x272   :  { %10691 = vst [vmem:[#allocation146_spill] sm:$0xff] %v6901_v6  ;;  %1686 = vmatpush.msrb.mxu2 %v6916_v46  ;;  %v6919_v6 = vld [vmem:[#allocation6 + $0x198] sm:$0xff] }
 0x273   :  { %10692 = vst [vmem:[#allocation147_spill] sm:$0xff] %v6904_v33  ;;  %1706 = vmatpush.msrb.mxu3 %v6919_v6  ;;  %v6922_v33 = vld [vmem:[#allocation6 + $0x160] sm:$0xff] }
 0x274   :  { %10693 = vst [vmem:[#allocation148_spill] sm:$0xff] %v6907_v50  ;;  %1647 = vmatpush.msrb.mxu0 %v6922_v33  ;;  %v6925_v50 = vld [vmem:[#allocation6 + $0x168] sm:$0xff] }
 0x275   :  { %10694 = vst [vmem:[#allocation149_spill] sm:$0xff] %v6910_v41  ;;  %1667 = vmatpush.msra.mxu1 %v6925_v50  ;;  %v6928_v41 = vld [vmem:[#allocation6 + $0x170] sm:$0xff] }
 0x276   :  { %10695 = vst [vmem:[#allocation150_spill] sm:$0xff] %v6913_v5  ;;  %1687 = vmatpush.msrb.mxu2 %v6928_v41  ;;  %v6931_v5 = vld [vmem:[#allocation6 + $0x178] sm:$0xff] }
 0x277   :  { %10696 = vst [vmem:[#allocation151_spill] sm:$0xff] %v6916_v46  ;;  %1707 = vmatpush.msrb.mxu3 %v6931_v5  ;;  %v6934_v46 = vld [vmem:[#allocation6 + $0x140] sm:$0xff] }
 0x278   :  { %10697 = vst [vmem:[#allocation152_spill] sm:$0xff] %v6919_v6  ;;  %1648 = vmatpush.msrb.mxu0 %v6934_v46  ;;  %v6937_v6 = vld [vmem:[#allocation6 + $0x148] sm:$0xff] }
 0x279   :  { %10698 = vst [vmem:[#allocation154_spill] sm:$0xff] %v6922_v33  ;;  %1668 = vmatpush.msra.mxu1 %v6937_v6  ;;  %v6940_v33 = vld [vmem:[#allocation6 + $0x150] sm:$0xff] }
 0x27a   :  { %10699 = vst [vmem:[#allocation156_spill] sm:$0xff] %v6925_v50  ;;  %1688 = vmatpush.msrb.mxu2 %v6940_v33  ;;  %v6943_v50 = vld [vmem:[#allocation6 + $0x158] sm:$0xff] }
 0x27b   :  { %10700 = vst [vmem:[#allocation157_spill] sm:$0xff] %v6928_v41  ;;  %1708 = vmatpush.msrb.mxu3 %v6943_v50  ;;  %v6946_v41 = vld [vmem:[#allocation6 + $0x120] sm:$0xff] }
 0x27c   :  { %10701 = vst [vmem:[#allocation158_spill] sm:$0xff] %v6931_v5  ;;  %1649 = vmatpush.msrb.mxu0 %v6946_v41  ;;  %v6949_v5 = vld [vmem:[#allocation6 + $0x128] sm:$0xff] }
 0x27d   :  { %10702 = vst [vmem:[#allocation159_spill] sm:$0xff] %v6934_v46  ;;  %1669 = vmatpush.msra.mxu1 %v6949_v5  ;;  %v6952_v46 = vld [vmem:[#allocation6 + $0x130] sm:$0xff] }
 0x27e   :  { %10703 = vst [vmem:[#allocation160_spill] sm:$0xff] %v6937_v6  ;;  %1689 = vmatpush.msrb.mxu2 %v6952_v46  ;;  %v6955_v6 = vld [vmem:[#allocation6 + $0x138] sm:$0xff]  ;;  %v1221_v38 = vpop.f32.mrf.mxu1 }
 0x27f   :  { %10704 = vst [vmem:[#allocation161_spill] sm:$0xff] %v6940_v33  ;;  %1709 = vmatpush.msrb.mxu3 %v6955_v6  ;;  %v6958_v33 = vld [vmem:[#allocation6 + $0x100] sm:$0xff] }
 0x280   :  { %10705 = vst [vmem:[#allocation162_spill] sm:$0xff] %v6943_v50  ;;  %1650 = vmatpush.msrb.mxu0 %v6958_v33  ;;  %v6961_v50 = vld [vmem:[#allocation6 + $0x108] sm:$0xff] }
 0x281   :  { %10706 = vst [vmem:[#allocation164_spill] sm:$0xff] %v6946_v41  ;;  %1670 = vmatpush.msra.mxu1 %v6961_v50  ;;  %v6964_v41 = vld [vmem:[#allocation6 + $0x110] sm:$0xff] }
 0x282   :  { %10707 = vst [vmem:[#allocation165_spill] sm:$0xff] %v6949_v5  ;;  %1690 = vmatpush.msrb.mxu2 %v6964_v41  ;;  %v6967_v5 = vld [vmem:[#allocation6 + $0x118] sm:$0xff] }
 0x283   :  { %10708 = vst [vmem:[#allocation166_spill] sm:$0xff] %v6952_v46  ;;  %1710 = vmatpush.msrb.mxu3 %v6967_v5  ;;  %v6970_v46 = vld [vmem:[#allocation6 + $0xe0] sm:$0xff] }
 0x284   :  { %10709 = vst [vmem:[#allocation167_spill] sm:$0xff] %v6955_v6  ;;  %1651 = vmatpush.msrb.mxu0 %v6970_v46  ;;  %v6973_v6 = vld [vmem:[#allocation6 + $0xe8] sm:$0xff] }
 0x285   :  { %10710 = vst [vmem:[#allocation168_spill] sm:$0xff] %v6958_v33  ;;  %1671 = vmatpush.msra.mxu1 %v6973_v6  ;;  %v6976_v33 = vld [vmem:[#allocation6 + $0xf0] sm:$0xff]  ;;  %v1261_v42 = vpop.f32.mrf.mxu3 }
 0x286   :  { %10711 = vst [vmem:[#allocation169_spill] sm:$0xff] %v6961_v50  ;;  %1691 = vmatpush.msrb.mxu2 %v6976_v33  ;;  %v6979_v50 = vld [vmem:[#allocation6 + $0xf8] sm:$0xff] }
 0x287   :  { %10712 = vst [vmem:[#allocation170_spill] sm:$0xff] %v6964_v41  ;;  %1711 = vmatpush.msrb.mxu3 %v6979_v50  ;;  %v6982_v41 = vld [vmem:[#allocation6 + $0xc0] sm:$0xff] }
 0x288   :  { %10713 = vst [vmem:[#allocation171_spill] sm:$0xff] %v6967_v5  ;;  %1652 = vmatpush.msrb.mxu0 %v6982_v41  ;;  %v6985_v5 = vld [vmem:[#allocation6 + $0xc8] sm:$0xff] }
 0x289   :  { %10714 = vst [vmem:[#allocation172_spill] sm:$0xff] %v6970_v46  ;;  %1672 = vmatpush.msra.mxu1 %v6985_v5  ;;  %v6988_v46 = vld [vmem:[#allocation6 + $0xd0] sm:$0xff]  ;;  %v1301_v59 = vpop.f32.mrf.mxu1 }
 0x28a   :  { %10715 = vst [vmem:[#allocation173_spill] sm:$0xff] %v6973_v6  ;;  %1692 = vmatpush.msrb.mxu2 %v6988_v46  ;;  %v6991_v6 = vld [vmem:[#allocation6 + $0xd8] sm:$0xff]  ;;  %v1302_v4 = vadd.f32 %v1301_v59, %v1221_v38 }
 0x28b   :  { %10716 = vst [vmem:[#allocation174_spill] sm:$0xff] %v6976_v33  ;;  %1712 = vmatpush.msrb.mxu3 %v6991_v6  ;;  %v6994_v33 = vld [vmem:[#allocation6 + $0xa0] sm:$0xff] }
 0x28c   :  { %10717 = vst [vmem:[#allocation176_spill] sm:$0xff] %v6979_v50  ;;  %1653 = vmatpush.msrb.mxu0 %v6994_v33  ;;  %v6997_v50 = vld [vmem:[#allocation6 + $0xa8] sm:$0xff]  ;;  %v1345_v52 = vadd.f32 %v1302_v4, %v6218_v63 }
 0x28d   :  { %10718 = vst [vmem:[#allocation178_spill] sm:$0xff] %v6982_v41  ;;  %1673 = vmatpush.msra.mxu1 %v6997_v50  ;;  %v7000_v41 = vld [vmem:[#allocation6 + $0xb0] sm:$0xff] }
 0x28e   :  { %10719 = vst [vmem:[#allocation179_spill] sm:$0xff] %v6985_v5  ;;  %1693 = vmatpush.msrb.mxu2 %v7000_v41  ;;  %v7003_v5 = vld [vmem:[#allocation6 + $0xb8] sm:$0xff]  ;;  %v3830_v32 = vmul.f32 -1.442695, %v1345_v52 }
 0x28f   :  { %10720 = vst [vmem:[#allocation104_spill] sm:$0xff] %v6988_v46  ;;  %1713 = vmatpush.msrb.mxu3 %v7003_v5  ;;  %v7006_v46 = vld [vmem:[#allocation6 + $0x80] sm:$0xff] }
 0x290   :  { %10721 = vst [vmem:[#allocation106_spill] sm:$0xff] %v6991_v6  ;;  %1654 = vmatpush.msrb.mxu0 %v7006_v46  ;;  %v7009_v6 = vld [vmem:[#allocation6 + $0x88] sm:$0xff] }
 0x291   :  { %10722 = vst [vmem:[#allocation105_spill] sm:$0xff] %v6994_v33  ;;  %1674 = vmatpush.msra.mxu1 %v7009_v6  ;;  %v7012_v33 = vld [vmem:[#allocation6 + $0x90] sm:$0xff] }
 0x292   :  { %10723 = vst [vmem:[#allocation99_spill] sm:$0xff] %v6997_v50  ;;  %1694 = vmatpush.msrb.mxu2 %v7012_v33  ;;  %v7015_v50 = vld [vmem:[#allocation6 + $0x98] sm:$0xff] }
 0x293   :  { %10724 = vst [vmem:[#allocation182_spill] sm:$0xff] %v7000_v41  ;;  %1714 = vmatpush.msrb.mxu3 %v7015_v50  ;;  %v7018_v41 = vld [vmem:[#allocation6 + $0x60] sm:$0xff] }
 0x294   :  { %10725 = vst [vmem:[#allocation183_spill] sm:$0xff] %v7003_v5  ;;  %1655 = vmatpush.msrb.mxu0 %v7018_v41  ;;  %v7021_v5 = vld [vmem:[#allocation6 + $0x68] sm:$0xff] }
 0x295   :  { %10726 = vst [vmem:[#allocation184_spill] sm:$0xff] %v7006_v46  ;;  %1675 = vmatpush.msra.mxu1 %v7021_v5  ;;  %v7024_v46 = vld [vmem:[#allocation6 + $0x70] sm:$0xff] }
 0x296   :  { %10727 = vst [vmem:[#allocation185_spill] sm:$0xff] %v7009_v6  ;;  %1695 = vmatpush.msrb.mxu2 %v7024_v46  ;;  %v7027_v6 = vld [vmem:[#allocation6 + $0x78] sm:$0xff] }
 0x297   :  { %10728 = vst [vmem:[#allocation186_spill] sm:$0xff] %v7012_v33  ;;  %1715 = vmatpush.msrb.mxu3 %v7027_v6  ;;  %v7030_v33 = vld [vmem:[#allocation6 + $0x40] sm:$0xff] }
 0x298   :  { %10729 = vst [vmem:[#allocation187_spill] sm:$0xff] %v7015_v50  ;;  %1656 = vmatpush.msrb.mxu0 %v7030_v33  ;;  %v7033_v50 = vld [vmem:[#allocation6 + $0x48] sm:$0xff] }
 0x299   :  { %10730 = vst [vmem:[#allocation188_spill] sm:$0xff] %v7018_v41  ;;  %1676 = vmatpush.msra.mxu1 %v7033_v50  ;;  %v7036_v41 = vld [vmem:[#allocation6 + $0x50] sm:$0xff] }
 0x29a   :  { %10731 = vst [vmem:[#allocation189_spill] sm:$0xff] %v7021_v5  ;;  %1696 = vmatpush.msrb.mxu2 %v7036_v41  ;;  %v7039_v5 = vld [vmem:[#allocation6 + $0x58] sm:$0xff] }
 0x29b   :  { %10732 = vst [vmem:[#allocation190_spill] sm:$0xff] %v7024_v46  ;;  %1716 = vmatpush.msrb.mxu3 %v7039_v5  ;;  %v7042_v46 = vld [vmem:[#allocation6 + $0x20] sm:$0xff] }
 0x29c   :  { %10733 = vst [vmem:[#allocation191_spill] sm:$0xff] %v7027_v6  ;;  %1657 = vmatpush.msrb.mxu0 %v7042_v46  ;;  %v7045_v6 = vld [vmem:[#allocation6 + $0x28] sm:$0xff] }
 0x29d   :  { %10734 = vst [vmem:[#allocation192_spill] sm:$0xff] %v7030_v33  ;;  %1677 = vmatpush.msra.mxu1 %v7045_v6  ;;  %v7048_v33 = vld [vmem:[#allocation6 + $0x30] sm:$0xff] }
 0x29e   :  { %10735 = vst [vmem:[#allocation193_spill] sm:$0xff] %v7033_v50  ;;  %1697 = vmatpush.msrb.mxu2 %v7048_v33  ;;  %v7051_v50 = vld [vmem:[#allocation6 + $0x38] sm:$0xff] }
 0x29f   :  { %10736 = vst [vmem:[#allocation194_spill] sm:$0xff] %v7036_v41  ;;  %1717 = vmatpush.msrb.mxu3 %v7051_v50  ;;  %v7054_v41 = vld [vmem:[#allocation6] sm:$0xff] }
 0x2a0   :  { %10737 = vst [vmem:[#allocation195_spill] sm:$0xff] %v7039_v5  ;;  %1658 = vmatpush.msrb.mxu0 %v7054_v41  ;;  %v7057_v5 = vld [vmem:[#allocation6 + $0x8] sm:$0xff] }
 0x2a1   :  { %10738 = vst [vmem:[#allocation196_spill] sm:$0xff] %v7042_v46  ;;  %1678 = vmatpush.msra.mxu1 %v7057_v5  ;;  %v7060_v46 = vld [vmem:[#allocation6 + $0x10] sm:$0xff] }
 0x2a2   :  { %10739 = vst [vmem:[#allocation197_spill] sm:$0xff] %v7045_v6  ;;  %1698 = vmatpush.msrb.mxu2 %v7060_v46  ;;  %v7063_v6 = vld [vmem:[#allocation6 + $0x18] sm:$0xff] }
 0x2a3   :  { %10740 = vst [vmem:[#allocation198_spill] sm:$0xff] %v7048_v33  ;;  %1718 = vmatpush.msrb.mxu3 %v7063_v6  ;;  %v1201_v33 = vpop.f32.mrf.mxu0 }
 0x2a4   :  { %10741 = vst [vmem:[#allocation199_spill] sm:$0xff] %v7051_v50 }
 0x2a5   :  { %10742 = vst [vmem:[#allocation200_spill] sm:$0xff] %v7054_v41 }
 0x2a6   :  { %10743 = vst [vmem:[#allocation201_spill] sm:$0xff] %v7057_v5  ;;  %v1241_v5 = vpop.f32.mrf.mxu2 }
 0x2a7   :  { %10744 = vst [vmem:[#allocation202_spill] sm:$0xff] %v7060_v46  ;;  %v1341_v46 = vpop.f32.mrf.mxu3 }
 0x2a8   :  { %10745 = vst [vmem:[#allocation203_spill] sm:$0xff] %v7063_v6  ;;  %v1342_v14 = vadd.f32 %v1341_v46, %v1261_v42  ;;  %v10746_v46 = vld [vmem:[#allocation107_spill] sm:$0xff] }
 0x2aa   :  { %v1347_v6 = vadd.f32 %v1342_v14, %v6222_v54 }
 0x2ab   :  { %v1281_v50 = vpop.f32.mrf.mxu0 }
 0x2ac   :  { %v1282_v55 = vadd.f32 %v1281_v50, %v1201_v33  ;;  %v3831_v37 = vmul.f32 -1.442695, %v1347_v6 }
 0x2ae   :  { %v1344_v41 = vadd.f32 %v1282_v55, %v6216_v45  ;;  %v1321_v47 = vpop.f32.mrf.mxu2 }
 0x2af   :  { %v1322_v50 = vadd.f32 %v1321_v47, %v1241_v5 }
 0x2b0   :  { %v3829_v17 = vmul.f32 -1.442695, %v1344_v41 }
 0x2b1   :  { %v1346_v55 = vadd.f32 %v1322_v50, %v6228_v3 }
 0x2b2   :  { %3930 = vpow2.f32 %v3829_v17 }
 0x2b3   :  { %3932 = vpow2.f32 %v3830_v32 }
 0x2b4   :  { %3934 = vpow2.f32 %v3831_v37  ;;  %v1449_v37 = vpop.f32.mrf.mxu1 }
 0x2b5   :  { %v1493_v6 = vadd.f32 %v1449_v37, %v10746_v46 }
 0x2b8   :  { %v3931_v62 = vpop.eup %3930 }
 0x2b9   :  { %v3933_v48 = vpop.eup %3932  ;;  %v1351_v29 = vadd.f32 1.0, %v3931_v62  ;;  %v1429_v62 = vpop.f32.mrf.mxu0 }
 0x2ba   :  { %v1370_v33 = vadd.f32 1.0, %v3933_v48  ;;  %v3935_v4 = vpop.eup %3934  ;;  %v1492_v47 = vadd.f32 %v1429_v62, %v6209_v31 }
 0x2bb   :  { %3936 = vrcp.f32 %v1351_v29  ;;  %v7070_v52 = vadd.f32 1.0, %v3935_v4  ;;  %v1363_v38 = vand.u32 2147483648, %v1351_v29  ;;  %v1361_v41 = vand.u32 2147483647, %v1351_v29 }
 0x2bc   :  { %3938 = vrcp.f32 %v1370_v33  ;;  %v1382_v5 = vand.u32 2147483648, %v1370_v33  ;;  %v1380_v4 = vand.u32 2147483647, %v1370_v33  ;;  %v1496_v54 = vadd.f32 %v1492_v47, %v5987_v36 }
 0x2bd   :  { %3940 = vrcp.f32 %v7070_v52  ;;  %vm1376_vm8 = vweird.f32 %v1370_v33  ;;  %vm1357_vm9 = vweird.f32 %v1351_v29  ;;  %vm1362_vm12 = vcmp.eq.f32.partialorder %v1361_v41, 8.507059e+37 }
 0x2be   :  { %3942 = vtanh.f32 %v1346_v55  ;;  %v3832_v62 = vmul.f32 -1.442695, %v1496_v54  ;;  %v1383_v46 = vor.u32 1.1754944e-38, %v1382_v5  ;;  %vm1381_vm13 = vcmp.eq.f32.partialorder %v1380_v4, 8.507059e+37 }
 0x2bf   :  { %vm1396_vm15 = vweird.f32 %v7070_v52 }
 0x2c0   :  { %3944 = vpow2.f32 %v3832_v62  ;;  %v10748_v62 = vld [vmem:[#allocation108_spill] sm:$0xff] }
 0x2c1   :  { %v3937_v17 = vpop.eup %3936 }
 0x2c2   :  { %v3939_v32 = vpop.eup %3938  ;;  %v1353_v59 = vmul.f32 %v3937_v17, %v1351_v29  ;;  %vm1358_vm6 = vweird.f32 %v3937_v17 }
 0x2c3   :  { %v1372_v14 = vmul.f32 %v3939_v32, %v1370_v33  ;;  %vm1377_vm7 = vweird.f32 %v3939_v32  ;;  %v3941_v63 = vpop.eup %3940  ;;  %vm1359_vm10 = vmor %vm1357_vm9, %vm1358_vm6  ;;  %v1489_v33 = vpop.f32.mrf.mxu3 }
 0x2c4   :  { %v1354_v42 = vsub.f32 1.0, %v1353_v59  ;;  %v1497_v59 = vadd.f32 %v1493_v6, %v5965_v34  ;;  %v1392_v31 = vmul.f32 %v3941_v63, %v7070_v52  ;;  %vm1378_vm11 = vmor %vm1376_vm8, %vm1377_vm7  ;;  %v10747_v34 = vld [vmem:[#allocation109_spill] sm:$0xff]  ;;  %vm1397_vm14 = vweird.f32 %v3941_v63 }
 0x2c5   :  { %v1373_v48 = vsub.f32 1.0, %v1372_v14  ;;  %v1364_v14 = vor.u32 1.1754944e-38, %v1363_v38  ;;  %v1495_v54 = vadd.f32 %v1489_v33, %v10747_v34  ;;  %vm1398_vm0 = vmor %vm1396_vm15, %vm1397_vm14 }
 0x2c6   :  { %v1355_v50 = vmul.f32 %v3937_v17, %v1354_v42  ;;  %v3833_v37 = vmul.f32 -1.442695, %v1497_v59  ;;  %v3943_v42 = vpop.eup %3942  ;;  %v1393_v6 = vsub.f32 1.0, %v1392_v31 }
 0x2c7   :  { %v1374_v3 = vmul.f32 %v3939_v32, %v1373_v48  ;;  %v1499_v5 = vadd.f32 %v1495_v54, %v5992_v60  ;;  %v3945_v41 = vpop.eup %3944 }
 0x2c8   :  { %v1356_v55 = vadd.f32 %v3937_v17, %v1355_v50  ;;  %3946 = vpow2.f32 %v3833_v37  ;;  %v1394_v38 = vmul.f32 %v3941_v63, %v1393_v6  ;;  %v7086_v4 = vadd.f32 1.0, %v3945_v41 }
 0x2c9   :  { %v1375_v45 = vadd.f32 %v3939_v32, %v1374_v3 }
 0x2ca   :  { %v1360_v48 = vsel %vm1359_vm10, %v3937_v17, %v1356_v55  ;;  %v1395_v17 = vadd.f32 %v3941_v63, %v1394_v38  ;;  %v1469_v55 = vpop.f32.mrf.mxu2  ;;  %v1513_v41 = vand.u32 2147483647, %v7086_v4  ;;  %vm1509_vm4 = vweird.f32 %v7086_v4 }
 0x2cb   :  { %v1365_v47 = vsel %vm1362_vm12, %v1364_v14, %v1360_v48  ;;  %v1379_v36 = vsel %vm1378_vm11, %v3939_v32, %v1375_v45  ;;  %v1402_v45 = vand.u32 2147483648, %v7070_v52  ;;  %v3834_v32 = vmul.f32 -1.442695, %v1499_v5 }
 0x2cc   :  { %v1384_v50 = vsel %vm1381_vm13, %v1383_v46, %v1379_v36  ;;  %v1407_v29 = vmul.f32 %v3943_v42, %v1365_v47  ;;  %v1399_v14 = vsel %vm1398_vm0, %v3941_v63, %v1395_v17  ;;  %v1494_v37 = vadd.f32 %v1469_v55, %v10748_v62  ;;  %v10763_v55 = vld [vmem:[#allocation32_spill] sm:$0xff]  ;;  %v10766_v62 = vld [vmem:[#allocation34_spill] sm:$0xff] }
 0x2cd   :  { %v1406_v3 = vmul.f32 %v1384_v50, %v6261_v15  ;;  %v1400_v15 = vand.u32 2147483647, %v7070_v52  ;;  %v1403_v31 = vor.u32 1.1754944e-38, %v1402_v45  ;;  %v1515_v5 = vand.u32 2147483648, %v7086_v4 }
 0x2ce   :  { %v3947_v36 = vpop.eup %3946  ;;  %v1498_v6 = vadd.f32 %v1494_v37, %v6044_v12  ;;  %vm1514_vm8 = vcmp.eq.f32.partialorder %v1513_v41, 8.507059e+37  ;;  %v10767_v37 = vld [vmem:[#allocation35_spill] sm:$0xff]  ;;  %v10782_v41 = vld [vmem:[#allocation46_spill] sm:$0xff] }
 0x2cf   :  { %v7080_v59 = vadd.f32 %v1407_v29, %v1406_v3  ;;  %v7089_v34 = vadd.f32 1.0, %v3947_v36  ;;  %vm1401_vm1 = vcmp.eq.f32.partialorder %v1400_v15, 8.507059e+37  ;;  %v7110_v3 = vld [vmem:[%s9625_s3 + $0x1e8] sm:$0xff] }
 0x2d0   :  { %v1404_v46 = vsel %vm1401_vm1, %v1403_v31, %v1399_v14  ;;  %v10761_v15 = vld [vmem:[#allocation65_spill] sm:$0xff]  ;;  %v10765_v31 = vld [vmem:[#allocation68_spill] sm:$0xff] }
 0x2d1   :  { %3948 = vtanh.f32 %v7080_v59  ;;  %vm1528_vm5 = vweird.f32 %v7089_v34  ;;  %v10764_v14 = vld [vmem:[#allocation33_spill] sm:$0xff] }
 0x2d2   :  { %3950 = vpow2.f32 %v3834_v32 }
 0x2d3   :  { %3952 = vrcp.f32 %v7086_v4 }
 0x2d4   :  { %3954 = vrcp.f32 %v7089_v34 }
 0x2d7   :  { %v3949_v42 = vpop.eup %3948 }
 0x2d8   :  { %v7094_v48 = vmul.f32 %v3949_v42, %v1404_v46  ;;  %v3951_v47 = vpop.eup %3950  ;;  %v10768_v42 = vld [vmem:[#allocation36_spill] sm:$0xff] }
 0x2d9   :  { %v3953_v52 = vpop.eup %3952  ;;  %v7097_v33 = vadd.f32 1.0, %v3951_v47  ;;  %v10769_v46 = vld [vmem:[#allocation72_spill] sm:$0xff]  ;;  %v10770_v47 = vld [vmem:[#allocation37_spill] sm:$0xff] }
 0x2da   :  { %10749 = vst [vmem:[#allocation107_spill] sm:$0xff] %v7094_v48  ;;  %1579 = vmatmul.f32.vlgmr.msra.gmra.mxu0 %v7094_v48  ;;  %1599 = vmatmul.f32.vlgmr.msrb.gmra.mxu1 %v7094_v48  ;;  %v3955_v63 = vpop.eup %3954  ;;  %v1505_v50 = vmul.f32 %v3953_v52, %v7086_v4  ;;  %vm1510_vm2 = vweird.f32 %v3953_v52 }
 0x2db   :  { %1619 = vmatmul.f32.vlgmr.msra.gmra.mxu2 %v7094_v48  ;;  %1639 = vmatmul.f32.vlgmr.msra.gmra.mxu3 %v7094_v48  ;;  %v1524_v29 = vmul.f32 %v3955_v63, %v7089_v34  ;;  %3956 = vrcp.f32 %v7097_v33  ;;  %vm1529_vm3 = vweird.f32 %v3955_v63  ;;  %vm1511_vm6 = vmor %vm1509_vm4, %vm1510_vm2  ;;  %vm1548_vm11 = vweird.f32 %v7097_v33  ;;  %v7723_v48 = vld [vmem:[%s9625_s3 + $0x48] sm:$0xff] }
 0x2dc   :  { %1791 = vmatpush.msra.mxu0 %v6293_v53  ;;  %1811 = vmatpush.msrb.mxu1 %v7110_v3  ;;  %v1506_v38 = vsub.f32 1.0, %v1505_v50  ;;  %3958 = vtanh.f32 %v1498_v6  ;;  %v1534_v53 = vand.u32 2147483648, %v7089_v34  ;;  %vm1530_vm7 = vmor %vm1528_vm5, %vm1529_vm3  ;;  %v10772_v6 = vld [vmem:[#allocation39_spill] sm:$0xff]  ;;  %v10775_v50 = vld [vmem:[#allocation41_spill] sm:$0xff]  ;;  %10942 = vst [vmem:[#allocation36_spill] sm:$0xff] %v7723_v48 }
 0x2dd   :  { %1831 = vmatpush.msra.mxu2 %v6301_v22  ;;  %1851 = vmatpush.msra.mxu3 %v6307_v39  ;;  %v1525_v54 = vsub.f32 1.0, %v1524_v29  ;;  %v1532_v39 = vand.u32 2147483647, %v7089_v34  ;;  %v10762_v34 = vld [vmem:[#allocation31_spill] sm:$0xff]  ;;  %v10776_v29 = vld [vmem:[#allocation42_spill] sm:$0xff] }
 0x2de   :  { %1792 = vmatpush.msra.mxu0 %v6313_v56  ;;  %1812 = vmatpush.msrb.mxu1 %v6319_v10  ;;  %v1507_v17 = vmul.f32 %v3953_v52, %v1506_v38  ;;  %v10777_v38 = vld [vmem:[#allocation80_spill] sm:$0xff] }
 0x2df   :  { %1832 = vmatpush.msra.mxu2 %v6326_v57  ;;  %1852 = vmatpush.msra.mxu3 %v6332_v35  ;;  %v1526_v22 = vmul.f32 %v3955_v63, %v1525_v54  ;;  %v1516_v57 = vor.u32 1.1754944e-38, %v1515_v5  ;;  %vm1533_vm9 = vcmp.eq.f32.partialorder %v1532_v39, 8.507059e+37  ;;  %v10778_v54 = vld [vmem:[#allocation43_spill] sm:$0xff]  ;;  %v10779_v5 = vld [vmem:[#allocation44_spill] sm:$0xff] }
 0x2e0   :  { %1793 = vmatpush.msra.mxu0 %v6339_v0  ;;  %1813 = vmatpush.msrb.mxu1 %v6345_v1  ;;  %v1508_v56 = vadd.f32 %v3953_v52, %v1507_v17  ;;  %v1535_v0 = vor.u32 1.1754944e-38, %v1534_v53  ;;  %v10780_v53 = vld [vmem:[#allocation45_spill] sm:$0xff]  ;;  %v10781_v17 = vld [vmem:[#allocation84_spill] sm:$0xff] }
 0x2e1   :  { %1833 = vmatpush.msra.mxu2 %v6351_v2  ;;  %1853 = vmatpush.msra.mxu3 %v6357_v49  ;;  %v3957_v10 = vpop.eup %3956  ;;  %v1527_v35 = vadd.f32 %v3955_v63, %v1526_v22  ;;  %v10783_v22 = vld [vmem:[#allocation47_spill] sm:$0xff]  ;;  %v10784_v39 = vld [vmem:[#allocation48_spill] sm:$0xff] }
 0x2e2   :  { %1794 = vmatpush.msra.mxu0 %v6363_v58  ;;  %1814 = vmatpush.msrb.mxu1 %v6369_v61  ;;  %v1512_v1 = vsel %vm1511_vm6, %v3953_v52, %v1508_v56  ;;  %v1544_v2 = vmul.f32 %v3957_v10, %v7097_v33  ;;  %v3959_v49 = vpop.eup %3958  ;;  %vm1549_vm10 = vweird.f32 %v3957_v10  ;;  %v10771_v52 = vld [vmem:[#allocation38_spill] sm:$0xff]  ;;  %v10785_v56 = vld [vmem:[#allocation85_spill] sm:$0xff] }
 0x2e3   :  { %1834 = vmatpush.msra.mxu2 %v6377_v8  ;;  %1854 = vmatpush.msra.mxu3 %v6383_v9  ;;  %v1517_v45 = vsel %vm1514_vm8, %v1516_v57, %v1512_v1  ;;  %v1531_v32 = vsel %vm1530_vm7, %v3955_v63, %v1527_v35  ;;  %vm1550_vm12 = vmor %vm1548_vm11, %vm1549_vm10  ;;  %v10774_v63 = vld [vmem:[#allocation40_spill] sm:$0xff]  ;;  %v10787_v57 = vld [vmem:[#allocation50_spill] sm:$0xff] }
 0x2e4   :  { %1795 = vmatpush.msra.mxu0 %v6389_v11  ;;  %1815 = vmatpush.msrb.mxu1 %v6395_v13  ;;  %v1536_v58 = vsel %vm1533_vm9, %v1535_v0, %v1531_v32  ;;  %v1559_v61 = vmul.f32 %v3959_v49, %v1517_v45  ;;  %v1545_v36 = vsub.f32 1.0, %v1544_v2  ;;  %v1552_v13 = vand.u32 2147483647, %v7097_v33  ;;  %v10788_v35 = vld [vmem:[#allocation51_spill] sm:$0xff]  ;;  %v10789_v0 = vld [vmem:[#allocation86_spill] sm:$0xff]  ;;  %v10790_v1 = vld [vmem:[#allocation52_spill] sm:$0xff] }
 0x2e5   :  { %1835 = vmatpush.msra.mxu2 %v6405_v16  ;;  %1855 = vmatpush.msra.mxu3 %v6411_v7  ;;  %v1558_v4 = vmul.f32 %v1536_v58, %v6281_v51  ;;  %v1554_v51 = vand.u32 2147483648, %v7097_v33  ;;  %v10750_v7 = vld [vmem:[#allocation22_spill] sm:$0xff]  ;;  %v10773_v33 = vld [vmem:[#allocation76_spill] sm:$0xff]  ;;  %v10791_v2 = vld [vmem:[#allocation53_spill] sm:$0xff] }
 0x2e6   :  { %1796 = vmatpush.msra.mxu0 %v6417_v19  ;;  %1816 = vmatpush.msrb.mxu1 %v6423_v20  ;;  %v1546_v8 = vmul.f32 %v3957_v10, %v1545_v36  ;;  %v10751_v19 = vld [vmem:[#allocation27_spill] sm:$0xff]  ;;  %vm1553_vm13 = vcmp.eq.f32.partialorder %v1552_v13, 8.507059e+37  ;;  %v10792_v49 = vld [vmem:[#allocation54_spill] sm:$0xff]  ;;  %v10794_v32 = vld [vmem:[#allocation56_spill] sm:$0xff] }
 0x2e7   :  { %1836 = vmatpush.msra.mxu2 %v6429_v21  ;;  %1856 = vmatpush.msra.mxu3 %v6435_v23  ;;  %v7145_v9 = vadd.f32 %v1559_v61, %v1558_v4  ;;  %v1555_v20 = vor.u32 1.1754944e-38, %v1554_v51  ;;  %v10752_v21 = vld [vmem:[#allocation23_spill] sm:$0xff]  ;;  %v10753_v23 = vld [vmem:[#allocation18_spill] sm:$0xff]  ;;  %v10795_v58 = vld [vmem:[#allocation57_spill] sm:$0xff] }
 0x2e8   :  { %1797 = vmatpush.msra.mxu0 %v6441_v24  ;;  %1817 = vmatpush.msrb.mxu1 %v6447_v25  ;;  %v1547_v11 = vadd.f32 %v3957_v10, %v1546_v8  ;;  %v10754_v24 = vld [vmem:[#allocation24_spill] sm:$0xff]  ;;  %v10793_v45 = vld [vmem:[#allocation87_spill] sm:$0xff]  ;;  %v10796_v61 = vld [vmem:[#allocation58_spill] sm:$0xff] }
 0x2e9   :  { %1837 = vmatpush.msra.mxu2 %v6453_v26  ;;  %1857 = vmatpush.msra.mxu3 %v6459_v27  ;;  %3960 = vtanh.f32 %v7145_v9  ;;  %v10755_v25 = vld [vmem:[#allocation28_spill] sm:$0xff]  ;;  %v10797_v36 = vld [vmem:[#allocation89_spill] sm:$0xff]  ;;  %v10798_v4 = vld [vmem:[#allocation59_spill] sm:$0xff] }
 0x2ea   :  { %1798 = vmatpush.msra.mxu0 %v6465_v28  ;;  %1818 = vmatpush.msrb.mxu1 %v6471_v30  ;;  %v1551_v16 = vsel %vm1550_vm12, %v3957_v10, %v1547_v11  ;;  %v10756_v28 = vld [vmem:[#allocation25_spill] sm:$0xff]  ;;  %v10757_v30 = vld [vmem:[#allocation55_spill] sm:$0xff]  ;;  %v10799_v8 = vld [vmem:[#allocation60_spill] sm:$0xff] }
 0x2eb   :  { %1838 = vmatpush.msra.mxu2 %v6477_v40  ;;  %1858 = vmatpush.msra.mxu3 %v6483_v43  ;;  %v1556_v27 = vsel %vm1553_vm13, %v1555_v20, %v1551_v16  ;;  %v10758_v43 = vld [vmem:[#allocation98_spill] sm:$0xff]  ;;  %v10786_v10 = vld [vmem:[#allocation49_spill] sm:$0xff]  ;;  %v10803_v16 = vld [vmem:[#allocation63_spill] sm:$0xff] }
 0x2ec   :  { %1799 = vmatpush.msra.mxu0 %v6489_v18  ;;  %1819 = vmatpush.msrb.mxu1 %v6495_v44  ;;  %v10759_v18 = vld [vmem:[#allocation29_spill] sm:$0xff]  ;;  %v10760_v44 = vld [vmem:[#allocation30_spill] sm:$0xff] }
 0x2ed   :  { %1839 = vmatpush.msra.mxu2 %v10750_v7  ;;  %1859 = vmatpush.msra.mxu3 %v10751_v19  ;;  %v10800_v11 = vld [vmem:[#allocation61_spill] sm:$0xff]  ;;  %v10801_v51 = vld [vmem:[#allocation90_spill] sm:$0xff]  ;;  %v10804_v7 = vld [vmem:[#allocation64_spill] sm:$0xff] }
 0x2ee   :  { %1800 = vmatpush.msra.mxu0 %v10752_v21  ;;  %1820 = vmatpush.msrb.mxu1 %v10753_v23  ;;  %v10802_v13 = vld [vmem:[#allocation62_spill] sm:$0xff]  ;;  %v10805_v19 = vld [vmem:[#allocation91_spill] sm:$0xff]  ;;  %v10808_v23 = vld [vmem:[#allocation69_spill] sm:$0xff] }
 0x2ef   :  { %1840 = vmatpush.msra.mxu2 %v10754_v24  ;;  %1860 = vmatpush.msra.mxu3 %v10755_v25  ;;  %v3961_v26 = vpop.eup %3960  ;;  %v10806_v20 = vld [vmem:[#allocation66_spill] sm:$0xff]  ;;  %v10807_v21 = vld [vmem:[#allocation67_spill] sm:$0xff]  ;;  %v10809_v24 = vld [vmem:[#allocation92_spill] sm:$0xff] }
 0x2f0   :  { %1801 = vmatpush.msra.mxu0 %v10756_v28  ;;  %1821 = vmatpush.msrb.mxu1 %v10757_v30  ;;  %v1562_v40 = vmul.f32 %v3961_v26, %v1556_v27  ;;  %v10810_v25 = vld [vmem:[#allocation70_spill] sm:$0xff]  ;;  %v10811_v26 = vld [vmem:[#allocation71_spill] sm:$0xff]  ;;  %v10812_v27 = vld [vmem:[#allocation73_spill] sm:$0xff] }
 0x2f1   :  { %1841 = vmatpush.msra.mxu2 %v10758_v43  ;;  %1861 = vmatpush.msra.mxu3 %v10759_v18  ;;  %v10813_v28 = vld [vmem:[#allocation93_spill] sm:$0xff]  ;;  %v10814_v30 = vld [vmem:[#allocation74_spill] sm:$0xff]  ;;  %v10817_v18 = vld [vmem:[#allocation95_spill] sm:$0xff] }
 0x2f2   :  { %1802 = vmatpush.msra.mxu0 %v10760_v44  ;;  %1822 = vmatpush.msrb.mxu1 %v10761_v15  ;;  %v10816_v43 = vld [vmem:[#allocation77_spill] sm:$0xff]  ;;  %v10818_v44 = vld [vmem:[#allocation79_spill] sm:$0xff] }
 0x2f3   :  { %1842 = vmatpush.msra.mxu2 %v10762_v34  ;;  %1862 = vmatpush.msra.mxu3 %v10763_v55  ;;  %v10819_v15 = vld [vmem:[#allocation81_spill] sm:$0xff]  ;;  %v10820_v34 = vld [vmem:[#allocation82_spill] sm:$0xff]  ;;  %v10821_v55 = vld [vmem:[#allocation96_spill] sm:$0xff] }
 0x2f4   :  { %1659 = vmatmul.f32.vlgmr.msrb.gmra.mxu0 %v1562_v40  ;;  %1679 = vmatmul.f32.vlgmr.msra.gmra.mxu1 %v1562_v40 }
 0x2f5   :  { %1699 = vmatmul.f32.vlgmr.msrb.gmra.mxu2 %v1562_v40  ;;  %1719 = vmatmul.f32.vlgmr.msrb.gmra.mxu3 %v1562_v40 }
 0x2f6   :  { %1803 = vmatpush.msra.mxu0 %v10764_v14  ;;  %1823 = vmatpush.msrb.mxu1 %v10765_v31  ;;  %v10822_v14 = vld [vmem:[#allocation83_spill] sm:$0xff]  ;;  %v10823_v31 = vld [vmem:[#allocation100_spill] sm:$0xff] }
 0x2f7   :  { %1843 = vmatpush.msra.mxu2 %v10766_v62  ;;  %1863 = vmatpush.msra.mxu3 %v10767_v37  ;;  %v10824_v62 = vld [vmem:[#allocation101_spill] sm:$0xff]  ;;  %v10825_v37 = vld [vmem:[#allocation102_spill] sm:$0xff] }
 0x2f8   :  { %1804 = vmatpush.msra.mxu0 %v10768_v42  ;;  %1824 = vmatpush.msrb.mxu1 %v10769_v46  ;;  %v10826_v42 = vld [vmem:[#allocation103_spill] sm:$0xff]  ;;  %v10827_v46 = vld [vmem:[#allocation116_spill] sm:$0xff] }
 0x2f9   :  { %1844 = vmatpush.msra.mxu2 %v10770_v47  ;;  %1864 = vmatpush.msra.mxu3 %v10771_v52  ;;  %v10828_v47 = vld [vmem:[#allocation117_spill] sm:$0xff]  ;;  %v10829_v52 = vld [vmem:[#allocation119_spill] sm:$0xff] }
 0x2fa   :  { %1805 = vmatpush.msra.mxu0 %v10772_v6  ;;  %1825 = vmatpush.msrb.mxu1 %v10773_v33  ;;  %v10830_v6 = vld [vmem:[#allocation120_spill] sm:$0xff]  ;;  %v10831_v33 = vld [vmem:[#allocation121_spill] sm:$0xff] }
 0x2fb   :  { %1845 = vmatpush.msra.mxu2 %v10774_v63  ;;  %1865 = vmatpush.msra.mxu3 %v10775_v50  ;;  %v10832_v63 = vld [vmem:[#allocation122_spill] sm:$0xff]  ;;  %v10833_v50 = vld [vmem:[#allocation123_spill] sm:$0xff] }
 0x2fc   :  { %1806 = vmatpush.msra.mxu0 %v10776_v29  ;;  %1826 = vmatpush.msrb.mxu1 %v10777_v38  ;;  %v10834_v29 = vld [vmem:[#allocation124_spill] sm:$0xff]  ;;  %v10835_v38 = vld [vmem:[#allocation125_spill] sm:$0xff] }
 0x2fd   :  { %1846 = vmatpush.msra.mxu2 %v10778_v54  ;;  %1866 = vmatpush.msra.mxu3 %v10779_v5  ;;  %v10836_v54 = vld [vmem:[#allocation126_spill] sm:$0xff]  ;;  %v10837_v5 = vld [vmem:[#allocation127_spill] sm:$0xff] }
 0x2fe   :  { %1807 = vmatmul.f32.vlgmr.msra.gmra.mxu0 %v1562_v40  ;;  %1827 = vmatmul.f32.vlgmr.msrb.gmra.mxu1 %v1562_v40 }
 0x2ff   :  { %1847 = vmatmul.f32.vlgmr.msra.gmra.mxu2 %v1562_v40  ;;  %1867 = vmatmul.f32.vlgmr.msra.gmra.mxu3 %v1562_v40  ;;  %v10815_v40 = vld [vmem:[#allocation75_spill] sm:$0xff] }
 0x300   :  { %1942 = vmatpush.msrb.mxu0 %v10780_v53  ;;  %1962 = vmatpush.msra.mxu1 %v10781_v17  ;;  %v10838_v53 = vld [vmem:[#allocation128_spill] sm:$0xff]  ;;  %v10839_v17 = vld [vmem:[#allocation129_spill] sm:$0xff] }
 0x301   :  { %1982 = vmatpush.msrb.mxu2 %v10782_v41  ;;  %2002 = vmatpush.msrb.mxu3 %v10783_v22  ;;  %v10840_v41 = vld [vmem:[#allocation131_spill] sm:$0xff]  ;;  %v10841_v22 = vld [vmem:[#allocation133_spill] sm:$0xff] }
 0x302   :  { %1943 = vmatpush.msrb.mxu0 %v10784_v39  ;;  %1963 = vmatpush.msra.mxu1 %v10785_v56  ;;  %v10842_v39 = vld [vmem:[#allocation134_spill] sm:$0xff]  ;;  %v10843_v56 = vld [vmem:[#allocation135_spill] sm:$0xff] }
 0x303   :  { %1983 = vmatpush.msrb.mxu2 %v10786_v10  ;;  %2003 = vmatpush.msrb.mxu3 %v10787_v57  ;;  %v10844_v10 = vld [vmem:[#allocation136_spill] sm:$0xff]  ;;  %v10845_v57 = vld [vmem:[#allocation137_spill] sm:$0xff] }
 0x304   :  { %1944 = vmatpush.msrb.mxu0 %v10788_v35  ;;  %1964 = vmatpush.msra.mxu1 %v10789_v0  ;;  %v10846_v35 = vld [vmem:[#allocation138_spill] sm:$0xff]  ;;  %v10847_v0 = vld [vmem:[#allocation139_spill] sm:$0xff] }
 0x305   :  { %1984 = vmatpush.msrb.mxu2 %v10790_v1  ;;  %2004 = vmatpush.msrb.mxu3 %v10791_v2  ;;  %v10848_v1 = vld [vmem:[#allocation141_spill] sm:$0xff]  ;;  %v10849_v2 = vld [vmem:[#allocation142_spill] sm:$0xff] }
 0x306   :  { %1945 = vmatpush.msrb.mxu0 %v10792_v49  ;;  %1965 = vmatpush.msra.mxu1 %v10793_v45  ;;  %v10850_v49 = vld [vmem:[#allocation143_spill] sm:$0xff]  ;;  %v10851_v45 = vld [vmem:[#allocation144_spill] sm:$0xff] }
 0x307   :  { %1985 = vmatpush.msrb.mxu2 %v10794_v32  ;;  %2005 = vmatpush.msrb.mxu3 %v10795_v58  ;;  %v10852_v32 = vld [vmem:[#allocation145_spill] sm:$0xff]  ;;  %v10853_v58 = vld [vmem:[#allocation146_spill] sm:$0xff] }
 0x308   :  { %1946 = vmatpush.msrb.mxu0 %v10796_v61  ;;  %1966 = vmatpush.msra.mxu1 %v10797_v36  ;;  %v10854_v61 = vld [vmem:[#allocation147_spill] sm:$0xff]  ;;  %v10855_v36 = vld [vmem:[#allocation148_spill] sm:$0xff] }
 0x309   :  { %1986 = vmatpush.msrb.mxu2 %v10798_v4  ;;  %2006 = vmatpush.msrb.mxu3 %v10799_v8  ;;  %v10856_v4 = vld [vmem:[#allocation149_spill] sm:$0xff]  ;;  %v10857_v8 = vld [vmem:[#allocation150_spill] sm:$0xff] }
 0x30a   :  { %1947 = vmatpush.msrb.mxu0 %v10800_v11  ;;  %1967 = vmatpush.msra.mxu1 %v10801_v51  ;;  %v10858_v11 = vld [vmem:[#allocation151_spill] sm:$0xff]  ;;  %v10859_v51 = vld [vmem:[#allocation152_spill] sm:$0xff] }
 0x30b   :  { %1987 = vmatpush.msrb.mxu2 %v10802_v13  ;;  %2007 = vmatpush.msrb.mxu3 %v10803_v16  ;;  %v10860_v13 = vld [vmem:[#allocation154_spill] sm:$0xff]  ;;  %v10861_v16 = vld [vmem:[#allocation156_spill] sm:$0xff] }
 0x30c   :  { %1948 = vmatpush.msrb.mxu0 %v10804_v7  ;;  %1968 = vmatpush.msra.mxu1 %v10805_v19  ;;  %v10862_v7 = vld [vmem:[#allocation157_spill] sm:$0xff]  ;;  %v10863_v19 = vld [vmem:[#allocation158_spill] sm:$0xff] }
 0x30d   :  { %1988 = vmatpush.msrb.mxu2 %v10806_v20  ;;  %2008 = vmatpush.msrb.mxu3 %v10807_v21  ;;  %v10864_v20 = vld [vmem:[#allocation159_spill] sm:$0xff]  ;;  %v10865_v21 = vld [vmem:[#allocation160_spill] sm:$0xff] }
 0x30e   :  { %1949 = vmatpush.msrb.mxu0 %v10808_v23  ;;  %1969 = vmatpush.msra.mxu1 %v10809_v24  ;;  %v10866_v23 = vld [vmem:[#allocation161_spill] sm:$0xff]  ;;  %v10867_v24 = vld [vmem:[#allocation162_spill] sm:$0xff] }
 0x30f   :  { %1989 = vmatpush.msrb.mxu2 %v10810_v25  ;;  %2009 = vmatpush.msrb.mxu3 %v10811_v26  ;;  %v10868_v25 = vld [vmem:[#allocation164_spill] sm:$0xff]  ;;  %v10869_v26 = vld [vmem:[#allocation165_spill] sm:$0xff] }
 0x310   :  { %1950 = vmatpush.msrb.mxu0 %v10812_v27  ;;  %1970 = vmatpush.msra.mxu1 %v10813_v28  ;;  %v10870_v27 = vld [vmem:[#allocation166_spill] sm:$0xff]  ;;  %v10871_v28 = vld [vmem:[#allocation167_spill] sm:$0xff] }
 0x311   :  { %1990 = vmatpush.msrb.mxu2 %v10814_v30  ;;  %2010 = vmatpush.msrb.mxu3 %v10815_v40  ;;  %v10872_v30 = vld [vmem:[#allocation168_spill] sm:$0xff]  ;;  %v10873_v40 = vld [vmem:[#allocation169_spill] sm:$0xff] }
 0x312   :  { %1951 = vmatpush.msrb.mxu0 %v10816_v43  ;;  %1971 = vmatpush.msra.mxu1 %v10817_v18  ;;  %v10874_v43 = vld [vmem:[#allocation170_spill] sm:$0xff]  ;;  %v10875_v18 = vld [vmem:[#allocation171_spill] sm:$0xff] }
 0x313   :  { %1991 = vmatpush.msrb.mxu2 %v10818_v44  ;;  %2011 = vmatpush.msrb.mxu3 %v10819_v15  ;;  %v10876_v44 = vld [vmem:[#allocation172_spill] sm:$0xff]  ;;  %v10877_v15 = vld [vmem:[#allocation173_spill] sm:$0xff] }
 0x314   :  { %1952 = vmatpush.msrb.mxu0 %v10820_v34  ;;  %1972 = vmatpush.msra.mxu1 %v10821_v55  ;;  %v10878_v34 = vld [vmem:[#allocation174_spill] sm:$0xff]  ;;  %v10879_v55 = vld [vmem:[#allocation176_spill] sm:$0xff] }
 0x315   :  { %1992 = vmatpush.msrb.mxu2 %v10822_v14  ;;  %2012 = vmatpush.msrb.mxu3 %v10823_v31  ;;  %v10880_v14 = vld [vmem:[#allocation178_spill] sm:$0xff]  ;;  %v10881_v31 = vld [vmem:[#allocation179_spill] sm:$0xff] }
 0x316   :  { %1953 = vmatpush.msrb.mxu0 %v10824_v62  ;;  %1973 = vmatpush.msra.mxu1 %v10825_v37  ;;  %v10882_v62 = vld [vmem:[#allocation104_spill] sm:$0xff]  ;;  %v10883_v37 = vld [vmem:[#allocation106_spill] sm:$0xff] }
 0x317   :  { %1993 = vmatpush.msrb.mxu2 %v10826_v42  ;;  %2013 = vmatpush.msrb.mxu3 %v10827_v46  ;;  %v10884_v42 = vld [vmem:[#allocation105_spill] sm:$0xff]  ;;  %v10885_v46 = vld [vmem:[#allocation99_spill] sm:$0xff] }
 0x318   :  { %1954 = vmatpush.msrb.mxu0 %v10828_v47  ;;  %1974 = vmatpush.msra.mxu1 %v10829_v52  ;;  %v10886_v47 = vld [vmem:[#allocation182_spill] sm:$0xff]  ;;  %v10887_v52 = vld [vmem:[#allocation183_spill] sm:$0xff] }
 0x319   :  { %1994 = vmatpush.msrb.mxu2 %v10830_v6  ;;  %2014 = vmatpush.msrb.mxu3 %v10831_v33  ;;  %v10888_v6 = vld [vmem:[#allocation184_spill] sm:$0xff]  ;;  %v10889_v33 = vld [vmem:[#allocation185_spill] sm:$0xff] }
 0x31a   :  { %1955 = vmatpush.msrb.mxu0 %v10832_v63  ;;  %1975 = vmatpush.msra.mxu1 %v10833_v50  ;;  %v10890_v63 = vld [vmem:[#allocation186_spill] sm:$0xff]  ;;  %v10891_v50 = vld [vmem:[#allocation187_spill] sm:$0xff] }
 0x31b   :  { %1995 = vmatpush.msrb.mxu2 %v10834_v29  ;;  %2015 = vmatpush.msrb.mxu3 %v10835_v38  ;;  %v10892_v29 = vld [vmem:[#allocation188_spill] sm:$0xff]  ;;  %v10893_v38 = vld [vmem:[#allocation189_spill] sm:$0xff] }
 0x31c   :  { %1956 = vmatpush.msrb.mxu0 %v10836_v54  ;;  %1976 = vmatpush.msra.mxu1 %v10837_v5  ;;  %v10894_v54 = vld [vmem:[#allocation190_spill] sm:$0xff]  ;;  %v10895_v5 = vld [vmem:[#allocation191_spill] sm:$0xff] }
 0x31d   :  { %1996 = vmatpush.msrb.mxu2 %v10838_v53  ;;  %2016 = vmatpush.msrb.mxu3 %v10839_v17  ;;  %v10896_v53 = vld [vmem:[#allocation192_spill] sm:$0xff]  ;;  %v10897_v17 = vld [vmem:[#allocation193_spill] sm:$0xff] }
 0x31e   :  { %1957 = vmatpush.msrb.mxu0 %v10840_v41  ;;  %1977 = vmatpush.msra.mxu1 %v10841_v22  ;;  %v10898_v41 = vld [vmem:[#allocation194_spill] sm:$0xff]  ;;  %v10899_v22 = vld [vmem:[#allocation195_spill] sm:$0xff] }
 0x31f   :  { %1997 = vmatpush.msrb.mxu2 %v10842_v39  ;;  %2017 = vmatpush.msrb.mxu3 %v10843_v56  ;;  %v10900_v39 = vld [vmem:[#allocation196_spill] sm:$0xff]  ;;  %v10901_v56 = vld [vmem:[#allocation197_spill] sm:$0xff] }
 0x320   :  { %2022 = vmatpush.msra.mxu0 %v10844_v10  ;;  %2042 = vmatpush.msrb.mxu1 %v10845_v57  ;;  %v10902_v10 = vld [vmem:[#allocation198_spill] sm:$0xff]  ;;  %v10903_v57 = vld [vmem:[#allocation199_spill] sm:$0xff] }
 0x321   :  { %2062 = vmatpush.msra.mxu2 %v10846_v35  ;;  %2082 = vmatpush.msra.mxu3 %v10847_v0  ;;  %v10904_v35 = vld [vmem:[#allocation200_spill] sm:$0xff]  ;;  %v10905_v0 = vld [vmem:[#allocation201_spill] sm:$0xff] }
 0x322   :  { %2023 = vmatpush.msra.mxu0 %v10848_v1  ;;  %2043 = vmatpush.msrb.mxu1 %v10849_v2  ;;  %v10906_v1 = vld [vmem:[#allocation202_spill] sm:$0xff]  ;;  %v10907_v2 = vld [vmem:[#allocation203_spill] sm:$0xff] }
 0x323   :  { %2063 = vmatpush.msra.mxu2 %v10850_v49  ;;  %2083 = vmatpush.msra.mxu3 %v10851_v45 }
 0x324   :  { %2024 = vmatpush.msra.mxu0 %v10852_v32  ;;  %2044 = vmatpush.msrb.mxu1 %v10853_v58 }
 0x325   :  { %2064 = vmatpush.msra.mxu2 %v10854_v61  ;;  %2084 = vmatpush.msra.mxu3 %v10855_v36 }
 0x326   :  { %2025 = vmatpush.msra.mxu0 %v10856_v4  ;;  %2045 = vmatpush.msrb.mxu1 %v10857_v8  ;;  %v10908_v8 = vld [vmem:[#allocation16_spill] sm:$0xff] }
 0x327   :  { %2065 = vmatpush.msra.mxu2 %v10858_v11  ;;  %2085 = vmatpush.msra.mxu3 %v10859_v51  ;;  %v10909_v51 = vld [vmem:[#allocation20_spill] sm:$0xff] }
 0x328   :  { %2026 = vmatpush.msra.mxu0 %v10860_v13  ;;  %2046 = vmatpush.msrb.mxu1 %v10861_v16 }
 0x329   :  { %2066 = vmatpush.msra.mxu2 %v10862_v7  ;;  %2086 = vmatpush.msra.mxu3 %v10863_v19 }
 0x32a   :  { %2027 = vmatpush.msra.mxu0 %v10864_v20  ;;  %2047 = vmatpush.msrb.mxu1 %v10865_v21 }
 0x32b   :  { %2067 = vmatpush.msra.mxu2 %v10866_v23  ;;  %2087 = vmatpush.msra.mxu3 %v10867_v24  ;;  %v10910_v23 = vld [vmem:[#allocation26_spill] sm:$0xff] }
 0x32c   :  { %2028 = vmatpush.msra.mxu0 %v10868_v25  ;;  %2048 = vmatpush.msrb.mxu1 %v10869_v26 }
 0x32d   :  { %2068 = vmatpush.msra.mxu2 %v10870_v27  ;;  %2088 = vmatpush.msra.mxu3 %v10871_v28  ;;  %v10911_v27 = vld [vmem:[#allocation19_spill] sm:$0xff] }
 0x32e   :  { %2029 = vmatpush.msra.mxu0 %v10872_v30  ;;  %2049 = vmatpush.msrb.mxu1 %v10873_v40  ;;  %v10912_v30 = vld [vmem:[#allocation110_spill] sm:$0xff] }
 0x32f   :  { %2069 = vmatpush.msra.mxu2 %v10874_v43  ;;  %2089 = vmatpush.msra.mxu3 %v10875_v18 }
 0x330   :  { %2030 = vmatpush.msra.mxu0 %v10876_v44  ;;  %2050 = vmatpush.msrb.mxu1 %v10877_v15  ;;  %v10913_v15 = vld [vmem:[#allocation181_spill] sm:$0xff] }
 0x331   :  { %2070 = vmatpush.msra.mxu2 %v10878_v34  ;;  %2090 = vmatpush.msra.mxu3 %v10879_v55  ;;  %v10914_v55 = vld [vmem:[#allocation180_spill] sm:$0xff] }
 0x332   :  { %2031 = vmatpush.msra.mxu0 %v10880_v14  ;;  %2051 = vmatpush.msrb.mxu1 %v10881_v31 }
 0x333   :  { %2071 = vmatpush.msra.mxu2 %v10882_v62  ;;  %2091 = vmatpush.msra.mxu3 %v10883_v37 }
 0x334   :  { %2032 = vmatpush.msra.mxu0 %v10884_v42  ;;  %2052 = vmatpush.msrb.mxu1 %v10885_v46 }
 0x335   :  { %2072 = vmatpush.msra.mxu2 %v10886_v47  ;;  %2092 = vmatpush.msra.mxu3 %v10887_v52 }
 0x336   :  { %2033 = vmatpush.msra.mxu0 %v10888_v6  ;;  %2053 = vmatpush.msrb.mxu1 %v10889_v33  ;;  %v10915_v6 = vld [vmem:[#allocation112_spill] sm:$0xff] }
 0x337   :  { %2073 = vmatpush.msra.mxu2 %v10890_v63  ;;  %2093 = vmatpush.msra.mxu3 %v10891_v50  ;;  %v10916_v50 = vld [vmem:[#allocation21_spill] sm:$0xff] }
 0x338   :  { %2034 = vmatpush.msra.mxu0 %v10892_v29  ;;  %2054 = vmatpush.msrb.mxu1 %v10893_v38 }
 0x339   :  { %2074 = vmatpush.msra.mxu2 %v10894_v54  ;;  %2094 = vmatpush.msra.mxu3 %v10895_v5 }
 0x33a   :  { %2035 = vmatpush.msra.mxu0 %v10896_v53  ;;  %2055 = vmatpush.msrb.mxu1 %v10897_v17 }
 0x33b   :  { %2075 = vmatpush.msra.mxu2 %v10898_v41  ;;  %2095 = vmatpush.msra.mxu3 %v10899_v22 }
 0x33c   :  { %2036 = vmatpush.msra.mxu0 %v10900_v39  ;;  %2056 = vmatpush.msrb.mxu1 %v10901_v56 }
 0x33d   :  { %2076 = vmatpush.msra.mxu2 %v10902_v10  ;;  %2096 = vmatpush.msra.mxu3 %v10903_v57 }
 0x33e   :  { %2037 = vmatpush.msra.mxu0 %v10904_v35  ;;  %2057 = vmatpush.msrb.mxu1 %v10905_v0 }
 0x33f   :  { %2077 = vmatpush.msra.mxu2 %v10906_v1  ;;  %2097 = vmatpush.msra.mxu3 %v10907_v2 }
 0x357   :  { %v1580_v49 = vpop.f32.mrf.mxu0  ;;  %v1600_v45 = vpop.f32.mrf.mxu1 }
 0x35e   :  { %v1640_v32 = vpop.f32.mrf.mxu3  ;;  %v1620_v16 = vpop.f32.mrf.mxu2 }
 0x371   :  { %v1660_v58 = vpop.f32.mrf.mxu0  ;;  %v1680_v61 = vpop.f32.mrf.mxu1 }
 0x372   :  { %v1661_v36 = vadd.f32 %v1660_v58, %v1580_v49  ;;  %v1681_v4 = vadd.f32 %v1680_v61, %v1600_v45  ;;  %v10917_v45 = vld [vmem:[#allocation111_spill] sm:$0xff] }
 0x374   :  { %v1723_v11 = vadd.f32 %v1661_v36, %v10908_v8  ;;  %v1724_v13 = vadd.f32 %v1681_v4, %v10909_v51 }
 0x376   :  { %v3835_v7 = vmul.f32 -1.442695, %v1723_v11  ;;  %v3836_v19 = vmul.f32 -1.442695, %v1724_v13 }
 0x378   :  { %3962 = vpow2.f32 %v3835_v7  ;;  %v1720_v20 = vpop.f32.mrf.mxu3  ;;  %v1700_v44 = vpop.f32.mrf.mxu2 }
 0x379   :  { %3964 = vpow2.f32 %v3836_v19  ;;  %v1721_v21 = vadd.f32 %v1720_v20, %v1640_v32  ;;  %v1701_v47 = vadd.f32 %v1700_v44, %v1620_v16 }
 0x37b   :  { %v1726_v24 = vadd.f32 %v1721_v21, %v10910_v23  ;;  %v1808_v25 = vpop.f32.mrf.mxu0  ;;  %v1828_v26 = vpop.f32.mrf.mxu1  ;;  %v1725_v29 = vadd.f32 %v1701_v47, %v10916_v50 }
 0x37c   :  { %v1871_v28 = vadd.f32 %v1808_v25, %v10911_v27  ;;  %v1872_v40 = vadd.f32 %v1828_v26, %v10912_v30 }
 0x37d   :  { %v3837_v43 = vmul.f32 -1.442695, %v1726_v24 }
 0x37e   :  { %v3963_v18 = vpop.eup %3962  ;;  %v1875_v34 = vadd.f32 %v1871_v28, %v10913_v15  ;;  %v1876_v14 = vadd.f32 %v1872_v40, %v10914_v55 }
 0x37f   :  { %v3965_v31 = vpop.eup %3964  ;;  %v1730_v62 = vadd.f32 1.0, %v3963_v18  ;;  %3966 = vpow2.f32 %v3837_v43 }
 0x380   :  { %v1749_v37 = vadd.f32 1.0, %v3965_v31  ;;  %v3838_v42 = vmul.f32 -1.442695, %v1875_v34  ;;  %v3839_v46 = vmul.f32 -1.442695, %v1876_v14 }
 0x381   :  { %3968 = vrcp.f32 %v1730_v62  ;;  %v1740_v35 = vand.u32 2147483647, %v1730_v62  ;;  %v1742_v0 = vand.u32 2147483648, %v1730_v62  ;;  %vm1736_vm1 = vweird.f32 %v1730_v62 }
 0x382   :  { %3970 = vrcp.f32 %v1749_v37  ;;  %v1868_v52 = vpop.f32.mrf.mxu3  ;;  %v1848_v41 = vpop.f32.mrf.mxu2  ;;  %v1761_v58 = vand.u32 2147483648, %v1749_v37  ;;  %v1759_v4 = vand.u32 2147483647, %v1749_v37  ;;  %vm1755_vm0 = vweird.f32 %v1749_v37 }
 0x383   :  { %3972 = vpow2.f32 %v3838_v42  ;;  %v1874_v33 = vadd.f32 %v1868_v52, %v10915_v6  ;;  %v1873_v32 = vadd.f32 %v1848_v41, %v10917_v45  ;;  %v1743_v7 = vor.u32 1.1754944e-38, %v1742_v0 }
 0x384   :  { %3974 = vpow2.f32 %v3839_v46  ;;  %v1762_v24 = vor.u32 1.1754944e-38, %v1761_v58  ;;  %vm1741_vm4 = vcmp.eq.f32.partialorder %v1740_v35, 8.507059e+37  ;;  %vm1760_vm5 = vcmp.eq.f32.partialorder %v1759_v4, 8.507059e+37 }
 0x385   :  { %v3967_v63 = vpop.eup %3966  ;;  %v1878_v54 = vadd.f32 %v1874_v33, %v5992_v60  ;;  %v1877_v21 = vadd.f32 %v1873_v32, %v6044_v12 }
 0x386   :  { %v7328_v38 = vadd.f32 1.0, %v3967_v63 }
 0x387   :  { %v3969_v5 = vpop.eup %3968  ;;  %v3840_v56 = vmul.f32 -1.442695, %v1878_v54 }
 0x388   :  { %v3971_v53 = vpop.eup %3970  ;;  %v1732_v17 = vmul.f32 %v3969_v5, %v1730_v62  ;;  %3976 = vrcp.f32 %v7328_v38  ;;  %vm1737_vm14 = vweird.f32 %v3969_v5  ;;  %vm1775_vm6 = vweird.f32 %v7328_v38 }
 0x389   :  { %v3973_v22 = vpop.eup %3972  ;;  %v1751_v39 = vmul.f32 %v3971_v53, %v1749_v37  ;;  %3978 = vtanh.f32 %v1725_v29  ;;  %vm1756_vm15 = vweird.f32 %v3971_v53  ;;  %vm1738_vm2 = vmor %vm1736_vm1, %vm1737_vm14  ;;  %v1781_v46 = vand.u32 2147483648, %v7328_v38 }
 0x38a   :  { %v3975_v10 = vpop.eup %3974  ;;  %v1733_v57 = vsub.f32 1.0, %v1732_v17  ;;  %v7332_v1 = vadd.f32 1.0, %v3973_v22  ;;  %3980 = vpow2.f32 %v3840_v56  ;;  %vm1757_vm3 = vmor %vm1755_vm0, %vm1756_vm15  ;;  %v7561_v22 = vld [vmem:[%s9625_s3 + $0x130] sm:$0xff] }
 0x38b   :  { %v1752_v2 = vsub.f32 1.0, %v1751_v39  ;;  %v7334_v49 = vadd.f32 1.0, %v3975_v10  ;;  %v1782_v39 = vor.u32 1.1754944e-38, %v1781_v46 }
 0x38c   :  { %v1734_v61 = vmul.f32 %v3969_v5, %v1733_v57  ;;  %3982 = vrcp.f32 %v7332_v1  ;;  %v1892_v52 = vand.u32 2147483647, %v7332_v1  ;;  %vm1888_vm10 = vweird.f32 %v7332_v1 }
 0x38d   :  { %v1753_v36 = vmul.f32 %v3971_v53, %v1752_v2  ;;  %3984 = vrcp.f32 %v7334_v49  ;;  %v1913_v63 = vand.u32 2147483648, %v7334_v49  ;;  %vm1907_vm12 = vweird.f32 %v7334_v49 }
 0x38e   :  { %v7339_v11 = vpop.eup %3976  ;;  %v1735_v13 = vadd.f32 %v3969_v5, %v1734_v61  ;;  %3986 = vtanh.f32 %v1877_v21  ;;  %vm1893_vm15 = vcmp.eq.f32.partialorder %v1892_v52, 8.507059e+37  ;;  %v7404_v21 = vld [vmem:[%s9625_s3 + $0x1f0] sm:$0xff]  ;;  %v7491_v52 = vld [vmem:[%s9625_s3 + $0x198] sm:$0xff] }
 0x38f   :  { %v3979_v16 = vpop.eup %3978  ;;  %v1754_v19 = vadd.f32 %v3971_v53, %v1753_v36  ;;  %v1771_v20 = vmul.f32 %v7339_v11, %v7328_v38  ;;  %vm1776_vm7 = vweird.f32 %v7339_v11  ;;  %v1914_v0 = vor.u32 1.1754944e-38, %v1913_v63  ;;  %v7519_v63 = vld [vmem:[%s9625_s3 + $0x178] sm:$0xff] }
 0x390   :  { %v1739_v25 = vsel %vm1738_vm2, %v3969_v5, %v1735_v13  ;;  %v3981_v26 = vpop.eup %3980  ;;  %v1911_v5 = vand.u32 2147483647, %v7334_v49  ;;  %vm7366_vm11 = vmor %vm1775_vm6, %vm1776_vm7 }
 0x391   :  { %v1744_v27 = vsel %vm1741_vm4, %v1743_v7, %v1739_v25  ;;  %v1758_v28 = vsel %vm1757_vm3, %v3971_v53, %v1754_v19  ;;  %v1772_v30 = vsub.f32 1.0, %v1771_v20  ;;  %v7344_v44 = vadd.f32 1.0, %v3981_v26  ;;  %v7395_v19 = vld [vmem:[%s9625_s3 + $0x1e0] sm:$0xff]  ;;  %v7426_v26 = vld [vmem:[%s9625_s3 + $0x1c8] sm:$0xff] }
 0x392   :  { %v3983_v40 = vpop.eup %3982  ;;  %v1763_v43 = vsel %vm1760_vm5, %v1762_v24, %v1758_v28  ;;  %v1786_v18 = vmul.f32 %v3979_v16, %v1744_v27  ;;  %v1779_v53 = vand.u32 2147483647, %v7328_v38  ;;  %vm1912_vm0 = vcmp.eq.f32.partialorder %v1911_v5, 8.507059e+37  ;;  %v7410_v24 = vld [vmem:[%s9625_s3 + $0x1f8] sm:$0xff]  ;;  %v7420_v25 = vld [vmem:[%s9625_s3 + $0x1c0] sm:$0xff]  ;;  %v7435_v28 = vld [vmem:[%s9625_s3 + $0x1d0] sm:$0xff] }
 0x393   :  { %v3985_v34 = vpop.eup %3984  ;;  %v1785_v14 = vmul.f32 %v1763_v43, %v7080_v59  ;;  %v1773_v31 = vmul.f32 %v7339_v11, %v1772_v30  ;;  %v1884_v62 = vmul.f32 %v3983_v40, %v7332_v1  ;;  %3988 = vrcp.f32 %v7344_v44  ;;  %v7441_v30 = vld [vmem:[%s9625_s3 + $0x1d8] sm:$0xff]  ;;  %v7447_v43 = vld [vmem:[%s9625_s3 + $0x1a0] sm:$0xff]  ;;  %v7537_v5 = vld [vmem:[%s9625_s3 + $0x150] sm:$0xff] }
 0x394   :  { %v1903_v37 = vmul.f32 %v3985_v34, %v7334_v49  ;;  %v1894_v59 = vand.u32 2147483648, %v7332_v1  ;;  %vm1889_vm8 = vweird.f32 %v3983_v40  ;;  %vm1908_vm9 = vweird.f32 %v3985_v34  ;;  %v3987_v17 = vpop.eup %3986 }
 0x395   :  { %v7352_v42 = vadd.f32 %v1786_v18, %v1785_v14  ;;  %v1885_v47 = vsub.f32 1.0, %v1884_v62  ;;  %v1774_v33 = vadd.f32 %v7339_v11, %v1773_v31  ;;  %vm1890_vm13 = vmor %vm1888_vm10, %vm1889_vm8  ;;  %vm1780_vm1 = vcmp.eq.f32.partialorder %v1779_v53, 8.507059e+37  ;;  %v7453_v18 = vld [vmem:[%s9625_s3 + $0x1a8] sm:$0xff]  ;;  %v7471_v62 = vld [vmem:[%s9625_s3 + $0x180] sm:$0xff] }
 0x396   :  { %v1904_v6 = vsub.f32 1.0, %v1903_v37  ;;  %v1895_v10 = vor.u32 1.1754944e-38, %v1894_v59  ;;  %vm1909_vm14 = vmor %vm1907_vm12, %vm1908_vm9  ;;  %vm1927_vm3 = vweird.f32 %v7344_v44  ;;  %v1931_v20 = vand.u32 2147483647, %v7344_v44  ;;  %v7477_v37 = vld [vmem:[%s9625_s3 + $0x188] sm:$0xff]  ;;  %v7543_v53 = vld [vmem:[%s9625_s3 + $0x158] sm:$0xff] }
 0x397   :  { %3990 = vtanh.f32 %v7352_v42  ;;  %v1886_v29 = vmul.f32 %v3983_v40, %v1885_v47  ;;  %v1778_v35 = vsel %vm7366_vm11, %v7339_v11, %v1774_v33  ;;  %v7485_v47 = vld [vmem:[%s9625_s3 + $0x190] sm:$0xff]  ;;  %v7503_v59 = vld [vmem:[%s9625_s3 + $0x168] sm:$0xff] }
 0x398   :  { %v1905_v54 = vmul.f32 %v3985_v34, %v1904_v6  ;;  %v1783_v36 = vsel %vm1780_vm1, %v1782_v39, %v1778_v35  ;;  %vm1932_vm5 = vcmp.eq.f32.partialorder %v1931_v20, 8.507059e+37  ;;  %v7497_v6 = vld [vmem:[%s9625_s3 + $0x160] sm:$0xff]  ;;  %v7513_v33 = vld [vmem:[%s9625_s3 + $0x170] sm:$0xff]  ;;  %v7567_v39 = vld [vmem:[%s9625_s3 + $0x138] sm:$0xff] }
 0x399   :  { %v1887_v41 = vadd.f32 %v3983_v40, %v1886_v29  ;;  %v7370_v56 = vpop.eup %3988  ;;  %v7525_v29 = vld [vmem:[%s9625_s3 + $0x140] sm:$0xff]  ;;  %v7591_v35 = vld [vmem:[%s9625_s3 + $0x118] sm:$0xff]  ;;  %v7681_v20 = vld [vmem:[%s9625_s3 + $0x90] sm:$0xff] }
 0x39a   :  { %v1906_v57 = vadd.f32 %v3985_v34, %v1905_v54  ;;  %v1923_v38 = vmul.f32 %v7370_v56, %v7344_v44  ;;  %vm1928_vm2 = vweird.f32 %v7370_v56  ;;  %v7531_v54 = vld [vmem:[%s9625_s3 + $0x148] sm:$0xff]  ;;  %10935 = vst [vmem:[#allocation65_spill] sm:$0xff] %v7681_v20 }
 0x39b   :  { %v1891_v1 = vsel %vm1890_vm13, %v3983_v40, %v1887_v41  ;;  %vm7413_vm4 = vmor %vm1927_vm3, %vm1928_vm2  ;;  %v7555_v41 = vld [vmem:[%s9625_s3 + $0x128] sm:$0xff] }
 0x39c   :  { %v1896_v2 = vsel %vm1893_vm15, %v1895_v10, %v1891_v1  ;;  %v1910_v45 = vsel %vm1909_vm14, %v3985_v34, %v1906_v57  ;;  %v1924_v61 = vsub.f32 1.0, %v1923_v38  ;;  %v7465_v34 = vld [vmem:[%s9625_s3 + $0x1b8] sm:$0xff]  ;;  %v7579_v10 = vld [vmem:[%s9625_s3 + $0x108] sm:$0xff]  ;;  %v7585_v57 = vld [vmem:[%s9625_s3 + $0x110] sm:$0xff] }
 0x39d   :  { %v3991_v32 = vpop.eup %3990  ;;  %v1915_v49 = vsel %vm1912_vm0, %v1914_v0, %v1910_v45  ;;  %v1938_v58 = vmul.f32 %v3987_v17, %v1896_v2  ;;  %v7549_v17 = vld [vmem:[%s9625_s3 + $0x120] sm:$0xff]  ;;  %v7603_v1 = vld [vmem:[%s9625_s3 + $0xe8] sm:$0xff]  ;;  %v7609_v38 = vld [vmem:[%s9625_s3 + $0xf0] sm:$0xff] }
 0x39e   :  { %v1937_v4 = vmul.f32 %v1915_v49, %v7145_v9  ;;  %v7379_v13 = vmul.f32 %v3991_v32, %v1783_v36  ;;  %v1925_v11 = vmul.f32 %v7370_v56, %v1924_v61  ;;  %v1933_v9 = vand.u32 2147483648, %v7344_v44  ;;  %v7459_v44 = vld [vmem:[%s9625_s3 + $0x1b0] sm:$0xff]  ;;  %v7597_v0 = vld [vmem:[%s9625_s3 + $0xe0] sm:$0xff]  ;;  %10923 = vst [vmem:[#allocation108_spill] sm:$0xff] %v7609_v38  ;;  %v7615_v2 = vld [vmem:[%s9625_s3 + $0xf8] sm:$0xff] }
 0x39f   :  { %10924 = vst [vmem:[#allocation22_spill] sm:$0xff] %v7615_v2  ;;  %v7621_v45 = vld [vmem:[%s9625_s3 + $0xc0] sm:$0xff]  ;;  %v7627_v32 = vld [vmem:[%s9625_s3 + $0xc8] sm:$0xff]  ;;  %v7633_v49 = vld [vmem:[%s9625_s3 + $0xd0] sm:$0xff] }
 0x3a0   :  { %10920 = vst [vmem:[#allocation109_spill] sm:$0xff] %v7379_v13  ;;  %v7382_v16 = vadd.f32 %v1938_v58, %v1937_v4  ;;  %1958 = vmatmul.f32.vlgmr.msrb.gmra.mxu0 %v7379_v13  ;;  %1978 = vmatmul.f32.vlgmr.msra.gmra.mxu1 %v7379_v13  ;;  %v1926_v7 = vadd.f32 %v7370_v56, %v1925_v11  ;;  %v1934_v40 = vor.u32 1.1754944e-38, %v1933_v9  ;;  %v7639_v58 = vld [vmem:[%s9625_s3 + $0xd8] sm:$0xff]  ;;  %v7645_v61 = vld [vmem:[%s9625_s3 + $0xa0] sm:$0xff]  ;;  %v7651_v36 = vld [vmem:[%s9625_s3 + $0xa8] sm:$0xff] }
 0x3a1   :  { %1998 = vmatmul.f32.vlgmr.msrb.gmra.mxu2 %v7379_v13  ;;  %2018 = vmatmul.f32.vlgmr.msrb.gmra.mxu3 %v7379_v13  ;;  %10925 = vst [vmem:[#allocation27_spill] sm:$0xff] %v7621_v45  ;;  %v7657_v4 = vld [vmem:[%s9625_s3 + $0xb0] sm:$0xff]  ;;  %v7663_v11 = vld [vmem:[%s9625_s3 + $0xb8] sm:$0xff]  ;;  %v7675_v9 = vld [vmem:[%s9625_s3 + $0x88] sm:$0xff] }
 0x3a2   :  { %3992 = vtanh.f32 %v7382_v16  ;;  %2170 = vmatpush.msrb.mxu0 %v7395_v19  ;;  %2190 = vmatpush.msra.mxu1 %v7110_v3  ;;  %v1930_v27 = vsel %vm7413_vm4, %v7370_v56, %v1926_v7  ;;  %v7573_v56 = vld [vmem:[%s9625_s3 + $0x100] sm:$0xff]  ;;  %10926 = vst [vmem:[#allocation23_spill] sm:$0xff] %v7627_v32  ;;  %v7687_v3 = vld [vmem:[%s9625_s3 + $0x98] sm:$0xff] }
 0x3a3   :  { %2210 = vmatpush.msrb.mxu2 %v7404_v21  ;;  %2230 = vmatpush.msrb.mxu3 %v7410_v24  ;;  %v1935_v31 = vsel %vm1932_vm5, %v1934_v40, %v1930_v27  ;;  %10927 = vst [vmem:[#allocation18_spill] sm:$0xff] %v7633_v49  ;;  %v7669_v7 = vld [vmem:[%s9625_s3 + $0x80] sm:$0xff]  ;;  %v7699_v40 = vld [vmem:[%s9625_s3 + $0x68] sm:$0xff] }
 0x3a4   :  { %2171 = vmatpush.msrb.mxu0 %v7420_v25  ;;  %2191 = vmatpush.msra.mxu1 %v7426_v26  ;;  %10928 = vst [vmem:[#allocation24_spill] sm:$0xff] %v7639_v58  ;;  %v7693_v27 = vld [vmem:[%s9625_s3 + $0x60] sm:$0xff] }
 0x3a5   :  { %2211 = vmatpush.msrb.mxu2 %v7435_v28  ;;  %2231 = vmatpush.msrb.mxu3 %v7441_v30  ;;  %10929 = vst [vmem:[#allocation28_spill] sm:$0xff] %v7645_v61  ;;  %v7717_v13 = vld [vmem:[%s9625_s3 + $0x40] sm:$0xff] }
 0x3a6   :  { %2172 = vmatpush.msrb.mxu0 %v7447_v43  ;;  %2192 = vmatpush.msra.mxu1 %v7453_v18  ;;  %10930 = vst [vmem:[#allocation25_spill] sm:$0xff] %v7651_v36 }
 0x3a7   :  { %2212 = vmatpush.msrb.mxu2 %v7459_v44  ;;  %2232 = vmatpush.msrb.mxu3 %v7465_v34  ;;  %10931 = vst [vmem:[#allocation55_spill] sm:$0xff] %v7657_v4 }
 0x3a8   :  { %v3993_v14 = vpop.eup %3992  ;;  %2173 = vmatpush.msrb.mxu0 %v7471_v62  ;;  %2193 = vmatpush.msra.mxu1 %v7477_v37  ;;  %10932 = vst [vmem:[#allocation98_spill] sm:$0xff] %v7663_v11 }
 0x3a9   :  { %v7480_v46 = vmul.f32 %v3993_v14, %v1935_v31  ;;  %2213 = vmatpush.msrb.mxu2 %v7485_v47  ;;  %2233 = vmatpush.msrb.mxu3 %v7491_v52  ;;  %10933 = vst [vmem:[#allocation29_spill] sm:$0xff] %v7669_v7  ;;  %v7705_v14 = vld [vmem:[%s9625_s3 + $0x70] sm:$0xff]  ;;  %v7711_v31 = vld [vmem:[%s9625_s3 + $0x78] sm:$0xff] }
 0x3aa   :  { %2174 = vmatpush.msrb.mxu0 %v7497_v6  ;;  %2194 = vmatpush.msra.mxu1 %v7503_v59  ;;  %10934 = vst [vmem:[#allocation30_spill] sm:$0xff] %v7675_v9 }
 0x3ab   :  { %2038 = vmatmul.f32.vlgmr.msra.gmra.mxu0 %v7480_v46  ;;  %2058 = vmatmul.f32.vlgmr.msrb.gmra.mxu1 %v7480_v46  ;;  %10936 = vst [vmem:[#allocation31_spill] sm:$0xff] %v7687_v3 }
 0x3ac   :  { %2078 = vmatmul.f32.vlgmr.msra.gmra.mxu2 %v7480_v46  ;;  %2098 = vmatmul.f32.vlgmr.msra.gmra.mxu3 %v7480_v46  ;;  %10937 = vst [vmem:[#allocation32_spill] sm:$0xff] %v7693_v27 }
 0x3ad   :  { %2214 = vmatpush.msrb.mxu2 %v7513_v33  ;;  %2234 = vmatpush.msrb.mxu3 %v7519_v63  ;;  %10938 = vst [vmem:[#allocation33_spill] sm:$0xff] %v7699_v40 }
 0x3ae   :  { %2175 = vmatpush.msrb.mxu0 %v7525_v29  ;;  %2195 = vmatpush.msra.mxu1 %v7531_v54  ;;  %10939 = vst [vmem:[#allocation68_spill] sm:$0xff] %v7705_v14 }
 0x3af   :  { %2215 = vmatpush.msrb.mxu2 %v7537_v5  ;;  %2235 = vmatpush.msrb.mxu3 %v7543_v53  ;;  %10940 = vst [vmem:[#allocation34_spill] sm:$0xff] %v7711_v31 }
 0x3b0   :  { %2176 = vmatpush.msrb.mxu0 %v7549_v17  ;;  %2196 = vmatpush.msra.mxu1 %v7555_v41  ;;  %10941 = vst [vmem:[#allocation35_spill] sm:$0xff] %v7717_v13 }
 0x3b1   :  { %2216 = vmatpush.msrb.mxu2 %v7561_v22  ;;  %2236 = vmatpush.msrb.mxu3 %v7567_v39 }
 0x3b2   :  { %2177 = vmatpush.msrb.mxu0 %v7573_v56  ;;  %2197 = vmatpush.msra.mxu1 %v7579_v10 }
 0x3b3   :  { %2217 = vmatpush.msrb.mxu2 %v7585_v57  ;;  %2237 = vmatpush.msrb.mxu3 %v7591_v35 }
 0x3b4   :  { %2178 = vmatpush.msrb.mxu0 %v7597_v0  ;;  %2198 = vmatpush.msra.mxu1 %v7603_v1 }
 0x3b5   :  { %2218 = vmatpush.msrb.mxu2 %v7609_v38  ;;  %2238 = vmatpush.msrb.mxu3 %v7615_v2 }
 0x3b6   :  { %2179 = vmatpush.msrb.mxu0 %v7621_v45  ;;  %2199 = vmatpush.msra.mxu1 %v7627_v32 }
 0x3b7   :  { %2219 = vmatpush.msrb.mxu2 %v7633_v49  ;;  %2239 = vmatpush.msrb.mxu3 %v7639_v58 }
 0x3b8   :  { %2180 = vmatpush.msrb.mxu0 %v7645_v61  ;;  %2200 = vmatpush.msra.mxu1 %v7651_v36 }
 0x3b9   :  { %2220 = vmatpush.msrb.mxu2 %v7657_v4  ;;  %2240 = vmatpush.msrb.mxu3 %v7663_v11 }
 0x3ba   :  { %2181 = vmatpush.msrb.mxu0 %v7669_v7  ;;  %2201 = vmatpush.msra.mxu1 %v7675_v9 }
 0x3bb   :  { %2221 = vmatpush.msrb.mxu2 %v7681_v20  ;;  %2241 = vmatpush.msrb.mxu3 %v7687_v3 }
 0x3bc   :  { %2182 = vmatpush.msrb.mxu0 %v7693_v27  ;;  %2202 = vmatpush.msra.mxu1 %v7699_v40  ;;  %v7802_v40 = vld [vmem:[#allocation8 + $0x1c0] sm:$0xff] }
 0x3bd   :  { %2222 = vmatpush.msrb.mxu2 %v7705_v14  ;;  %2242 = vmatpush.msrb.mxu3 %v7711_v31  ;;  %v7729_v14 = vld [vmem:[%s9625_s3 + $0x50] sm:$0xff]  ;;  %v7735_v31 = vld [vmem:[%s9625_s3 + $0x58] sm:$0xff]  ;;  %10957 = vst [vmem:[#allocation47_spill] sm:$0xff] %v7802_v40 }
 0x3be   :  { %2183 = vmatpush.msrb.mxu0 %v7717_v13  ;;  %2203 = vmatpush.msra.mxu1 %v7723_v48  ;;  %10943 = vst [vmem:[#allocation72_spill] sm:$0xff] %v7729_v14  ;;  %v7741_v13 = vld [vmem:[%s9625_s3 + $0x20] sm:$0xff]  ;;  %v7747_v48 = vld [vmem:[%s9625_s3 + $0x28] sm:$0xff] }
 0x3bf   :  { %2223 = vmatpush.msrb.mxu2 %v7729_v14  ;;  %10944 = vst [vmem:[#allocation37_spill] sm:$0xff] %v7735_v31  ;;  %2243 = vmatpush.msrb.mxu3 %v7735_v31  ;;  %v7753_v14 = vld [vmem:[%s9625_s3 + $0x30] sm:$0xff]  ;;  %v7759_v31 = vld [vmem:[%s9625_s3 + $0x38] sm:$0xff] }
 0x3c0   :  { %10945 = vst [vmem:[#allocation38_spill] sm:$0xff] %v7741_v13  ;;  %2184 = vmatpush.msrb.mxu0 %v7741_v13  ;;  %2204 = vmatpush.msra.mxu1 %v7747_v48  ;;  %v7765_v13 = vld [vmem:[%s9625_s3] sm:$0xff] }
 0x3c1   :  { %10946 = vst [vmem:[#allocation39_spill] sm:$0xff] %v7747_v48  ;;  %2224 = vmatpush.msrb.mxu2 %v7753_v14  ;;  %2244 = vmatpush.msrb.mxu3 %v7759_v31  ;;  %v7771_v48 = vld [vmem:[%s9625_s3 + $0x8] sm:$0xff] }
 0x3c2   :  { %10947 = vst [vmem:[#allocation76_spill] sm:$0xff] %v7753_v14  ;;  %2185 = vmatpush.msrb.mxu0 %v7765_v13  ;;  %2205 = vmatpush.msra.mxu1 %v7771_v48  ;;  %v7777_v14 = vld [vmem:[%s9625_s3 + $0x10] sm:$0xff] }
 0x3c3   :  { %10948 = vst [vmem:[#allocation40_spill] sm:$0xff] %v7759_v31  ;;  %2225 = vmatpush.msrb.mxu2 %v7777_v14  ;;  %v7783_v31 = vld [vmem:[%s9625_s3 + $0x18] sm:$0xff]  ;;  %2186 = vmatmul.f32.vlgmr.msrb.gmra.mxu0 %v7480_v46 }
 0x3c4   :  { %10949 = vst [vmem:[#allocation41_spill] sm:$0xff] %v7765_v13  ;;  %2245 = vmatpush.msrb.mxu3 %v7783_v31  ;;  %2206 = vmatmul.f32.vlgmr.msra.gmra.mxu1 %v7480_v46  ;;  %v7796_v13 = vld [vmem:[#allocation8 + $0x1f0] sm:$0xff] }
 0x3c5   :  { %10950 = vst [vmem:[#allocation42_spill] sm:$0xff] %v7771_v48  ;;  %2226 = vmatmul.f32.vlgmr.msrb.gmra.mxu2 %v7480_v46  ;;  %2246 = vmatmul.f32.vlgmr.msrb.gmra.mxu3 %v7480_v46  ;;  %v7790_v48 = vld [vmem:[#allocation8 + $0x1e0] sm:$0xff]  ;;  %v7805_v46 = vld [vmem:[#allocation8 + $0x1c8] sm:$0xff] }
 0x3c6   :  { %10951 = vst [vmem:[#allocation80_spill] sm:$0xff] %v7777_v14  ;;  %2321 = vmatpush.msra.mxu0 %v7790_v48  ;;  %v7793_v14 = vld [vmem:[#allocation8 + $0x1e8] sm:$0xff]  ;;  %2361 = vmatpush.msra.mxu2 %v7796_v13 }
 0x3c7   :  { %10952 = vst [vmem:[#allocation43_spill] sm:$0xff] %v7783_v31  ;;  %2341 = vmatpush.msrb.mxu1 %v7793_v14  ;;  %v7799_v31 = vld [vmem:[#allocation8 + $0x1f8] sm:$0xff] }
 0x3c8   :  { %10953 = vst [vmem:[#allocation44_spill] sm:$0xff] %v7790_v48  ;;  %2381 = vmatpush.msra.mxu3 %v7799_v31  ;;  %2322 = vmatpush.msra.mxu0 %v7802_v40  ;;  %v7808_v48 = vld [vmem:[#allocation8 + $0x1d0] sm:$0xff] }
 0x3c9   :  { %10954 = vst [vmem:[#allocation45_spill] sm:$0xff] %v7793_v14  ;;  %2342 = vmatpush.msrb.mxu1 %v7805_v46  ;;  %2362 = vmatpush.msra.mxu2 %v7808_v48  ;;  %v7811_v14 = vld [vmem:[#allocation8 + $0x1d8] sm:$0xff]  ;;  %v7820_v40 = vld [vmem:[#allocation8 + $0x1b0] sm:$0xff] }
 0x3ca   :  { %10955 = vst [vmem:[#allocation84_spill] sm:$0xff] %v7796_v13  ;;  %2382 = vmatpush.msra.mxu3 %v7811_v14  ;;  %v7814_v13 = vld [vmem:[#allocation8 + $0x1a0] sm:$0xff] }
 0x3cb   :  { %10956 = vst [vmem:[#allocation46_spill] sm:$0xff] %v7799_v31  ;;  %2323 = vmatpush.msra.mxu0 %v7814_v13  ;;  %v7817_v31 = vld [vmem:[#allocation8 + $0x1a8] sm:$0xff]  ;;  %2363 = vmatpush.msra.mxu2 %v7820_v40 }
 0x3cc   :  { %10958 = vst [vmem:[#allocation48_spill] sm:$0xff] %v7805_v46  ;;  %2343 = vmatpush.msrb.mxu1 %v7817_v31  ;;  %v7823_v46 = vld [vmem:[#allocation8 + $0x1b8] sm:$0xff] }
 0x3cd   :  { %10959 = vst [vmem:[#allocation85_spill] sm:$0xff] %v7808_v48  ;;  %2383 = vmatpush.msra.mxu3 %v7823_v46  ;;  %v7826_v48 = vld [vmem:[#allocation8 + $0x180] sm:$0xff] }
 0x3ce   :  { %10960 = vst [vmem:[#allocation49_spill] sm:$0xff] %v7811_v14  ;;  %2324 = vmatpush.msra.mxu0 %v7826_v48  ;;  %v7829_v14 = vld [vmem:[#allocation8 + $0x188] sm:$0xff] }
 0x3cf   :  { %10961 = vst [vmem:[#allocation50_spill] sm:$0xff] %v7814_v13  ;;  %2344 = vmatpush.msrb.mxu1 %v7829_v14  ;;  %v7832_v13 = vld [vmem:[#allocation8 + $0x190] sm:$0xff] }
 0x3d0   :  { %10962 = vst [vmem:[#allocation51_spill] sm:$0xff] %v7817_v31  ;;  %2364 = vmatpush.msra.mxu2 %v7832_v13  ;;  %v7835_v31 = vld [vmem:[#allocation8 + $0x198] sm:$0xff] }
 0x3d1   :  { %10963 = vst [vmem:[#allocation86_spill] sm:$0xff] %v7820_v40  ;;  %2384 = vmatpush.msra.mxu3 %v7835_v31  ;;  %v7838_v40 = vld [vmem:[#allocation8 + $0x160] sm:$0xff] }
 0x3d2   :  { %10964 = vst [vmem:[#allocation52_spill] sm:$0xff] %v7823_v46  ;;  %2325 = vmatpush.msra.mxu0 %v7838_v40  ;;  %v7841_v46 = vld [vmem:[#allocation8 + $0x168] sm:$0xff] }
 0x3d3   :  { %10965 = vst [vmem:[#allocation53_spill] sm:$0xff] %v7826_v48  ;;  %2345 = vmatpush.msrb.mxu1 %v7841_v46  ;;  %v7844_v48 = vld [vmem:[#allocation8 + $0x170] sm:$0xff] }
 0x3d4   :  { %10966 = vst [vmem:[#allocation54_spill] sm:$0xff] %v7829_v14  ;;  %2365 = vmatpush.msra.mxu2 %v7844_v48  ;;  %v7847_v14 = vld [vmem:[#allocation8 + $0x178] sm:$0xff] }
 0x3d5   :  { %10967 = vst [vmem:[#allocation87_spill] sm:$0xff] %v7832_v13  ;;  %2385 = vmatpush.msra.mxu3 %v7847_v14  ;;  %v7850_v13 = vld [vmem:[#allocation8 + $0x140] sm:$0xff] }
 0x3d6   :  { %10968 = vst [vmem:[#allocation56_spill] sm:$0xff] %v7835_v31  ;;  %2326 = vmatpush.msra.mxu0 %v7850_v13  ;;  %v7853_v31 = vld [vmem:[#allocation8 + $0x148] sm:$0xff] }
 0x3d7   :  { %10969 = vst [vmem:[#allocation57_spill] sm:$0xff] %v7838_v40  ;;  %2346 = vmatpush.msrb.mxu1 %v7853_v31  ;;  %v7856_v40 = vld [vmem:[#allocation8 + $0x150] sm:$0xff] }
 0x3d8   :  { %10970 = vst [vmem:[#allocation58_spill] sm:$0xff] %v7841_v46  ;;  %2366 = vmatpush.msra.mxu2 %v7856_v40  ;;  %v7859_v46 = vld [vmem:[#allocation8 + $0x158] sm:$0xff] }
 0x3d9   :  { %10971 = vst [vmem:[#allocation89_spill] sm:$0xff] %v7844_v48  ;;  %2386 = vmatpush.msra.mxu3 %v7859_v46  ;;  %v7862_v48 = vld [vmem:[#allocation8 + $0x120] sm:$0xff] }
 0x3da   :  { %10972 = vst [vmem:[#allocation59_spill] sm:$0xff] %v7847_v14  ;;  %2327 = vmatpush.msra.mxu0 %v7862_v48  ;;  %v7865_v14 = vld [vmem:[#allocation8 + $0x128] sm:$0xff] }
 0x3db   :  { %10973 = vst [vmem:[#allocation60_spill] sm:$0xff] %v7850_v13  ;;  %2347 = vmatpush.msrb.mxu1 %v7865_v14  ;;  %v7868_v13 = vld [vmem:[#allocation8 + $0x130] sm:$0xff] }
 0x3dc   :  { %10974 = vst [vmem:[#allocation61_spill] sm:$0xff] %v7853_v31  ;;  %2367 = vmatpush.msra.mxu2 %v7868_v13  ;;  %v7871_v31 = vld [vmem:[#allocation8 + $0x138] sm:$0xff] }
 0x3dd   :  { %10975 = vst [vmem:[#allocation90_spill] sm:$0xff] %v7856_v40  ;;  %2387 = vmatpush.msra.mxu3 %v7871_v31  ;;  %v7874_v40 = vld [vmem:[#allocation8 + $0x100] sm:$0xff] }
 0x3de   :  { %10976 = vst [vmem:[#allocation62_spill] sm:$0xff] %v7859_v46  ;;  %2328 = vmatpush.msra.mxu0 %v7874_v40  ;;  %v7877_v46 = vld [vmem:[#allocation8 + $0x108] sm:$0xff] }
 0x3df   :  { %10977 = vst [vmem:[#allocation63_spill] sm:$0xff] %v7862_v48  ;;  %2348 = vmatpush.msrb.mxu1 %v7877_v46  ;;  %v7880_v48 = vld [vmem:[#allocation8 + $0x110] sm:$0xff] }
 0x3e0   :  { %10978 = vst [vmem:[#allocation64_spill] sm:$0xff] %v7865_v14  ;;  %2368 = vmatpush.msra.mxu2 %v7880_v48  ;;  %v7883_v14 = vld [vmem:[#allocation8 + $0x118] sm:$0xff] }
 0x3e1   :  { %10979 = vst [vmem:[#allocation91_spill] sm:$0xff] %v7868_v13  ;;  %2388 = vmatpush.msra.mxu3 %v7883_v14  ;;  %v7886_v13 = vld [vmem:[#allocation8 + $0xe0] sm:$0xff] }
 0x3e2   :  { %10980 = vst [vmem:[#allocation66_spill] sm:$0xff] %v7871_v31  ;;  %2329 = vmatpush.msra.mxu0 %v7886_v13  ;;  %v7889_v31 = vld [vmem:[#allocation8 + $0xe8] sm:$0xff] }
 0x3e3   :  { %10981 = vst [vmem:[#allocation67_spill] sm:$0xff] %v7874_v40  ;;  %2349 = vmatpush.msrb.mxu1 %v7889_v31  ;;  %v7892_v40 = vld [vmem:[#allocation8 + $0xf0] sm:$0xff] }
 0x3e4   :  { %10982 = vst [vmem:[#allocation69_spill] sm:$0xff] %v7877_v46  ;;  %2369 = vmatpush.msra.mxu2 %v7892_v40  ;;  %v7895_v46 = vld [vmem:[#allocation8 + $0xf8] sm:$0xff] }
 0x3e5   :  { %10983 = vst [vmem:[#allocation92_spill] sm:$0xff] %v7880_v48  ;;  %2389 = vmatpush.msra.mxu3 %v7895_v46  ;;  %v7898_v48 = vld [vmem:[#allocation8 + $0xc0] sm:$0xff] }
 0x3e6   :  { %10984 = vst [vmem:[#allocation70_spill] sm:$0xff] %v7883_v14  ;;  %2330 = vmatpush.msra.mxu0 %v7898_v48  ;;  %v7901_v14 = vld [vmem:[#allocation8 + $0xc8] sm:$0xff] }
 0x3e7   :  { %10985 = vst [vmem:[#allocation71_spill] sm:$0xff] %v7886_v13  ;;  %2350 = vmatpush.msrb.mxu1 %v7901_v14  ;;  %v7904_v13 = vld [vmem:[#allocation8 + $0xd0] sm:$0xff] }
 0x3e8   :  { %10986 = vst [vmem:[#allocation73_spill] sm:$0xff] %v7889_v31  ;;  %2370 = vmatpush.msra.mxu2 %v7904_v13  ;;  %v7907_v31 = vld [vmem:[#allocation8 + $0xd8] sm:$0xff] }
 0x3e9   :  { %10987 = vst [vmem:[#allocation93_spill] sm:$0xff] %v7892_v40  ;;  %2390 = vmatpush.msra.mxu3 %v7907_v31  ;;  %v7910_v40 = vld [vmem:[#allocation8 + $0xa0] sm:$0xff] }
 0x3ea   :  { %10988 = vst [vmem:[#allocation74_spill] sm:$0xff] %v7895_v46  ;;  %2331 = vmatpush.msra.mxu0 %v7910_v40  ;;  %v7913_v46 = vld [vmem:[#allocation8 + $0xa8] sm:$0xff] }
 0x3eb   :  { %10989 = vst [vmem:[#allocation75_spill] sm:$0xff] %v7898_v48  ;;  %2351 = vmatpush.msrb.mxu1 %v7913_v46  ;;  %v7916_v48 = vld [vmem:[#allocation8 + $0xb0] sm:$0xff] }
 0x3ec   :  { %10990 = vst [vmem:[#allocation77_spill] sm:$0xff] %v7901_v14  ;;  %2371 = vmatpush.msra.mxu2 %v7916_v48  ;;  %v7919_v14 = vld [vmem:[#allocation8 + $0xb8] sm:$0xff] }
 0x3ed   :  { %10991 = vst [vmem:[#allocation95_spill] sm:$0xff] %v7904_v13  ;;  %2391 = vmatpush.msra.mxu3 %v7919_v14  ;;  %v7922_v13 = vld [vmem:[#allocation8 + $0x80] sm:$0xff] }
 0x3ee   :  { %10992 = vst [vmem:[#allocation79_spill] sm:$0xff] %v7907_v31  ;;  %2332 = vmatpush.msra.mxu0 %v7922_v13  ;;  %v7925_v31 = vld [vmem:[#allocation8 + $0x88] sm:$0xff] }
 0x3ef   :  { %10993 = vst [vmem:[#allocation81_spill] sm:$0xff] %v7910_v40  ;;  %2352 = vmatpush.msrb.mxu1 %v7925_v31  ;;  %v7928_v40 = vld [vmem:[#allocation8 + $0x90] sm:$0xff] }
 0x3f0   :  { %10994 = vst [vmem:[#allocation82_spill] sm:$0xff] %v7913_v46  ;;  %2372 = vmatpush.msra.mxu2 %v7928_v40  ;;  %v7931_v46 = vld [vmem:[#allocation8 + $0x98] sm:$0xff] }
 0x3f1   :  { %10995 = vst [vmem:[#allocation96_spill] sm:$0xff] %v7916_v48  ;;  %2392 = vmatpush.msra.mxu3 %v7931_v46  ;;  %v7934_v48 = vld [vmem:[#allocation8 + $0x60] sm:$0xff] }
 0x3f2   :  { %10996 = vst [vmem:[#allocation83_spill] sm:$0xff] %v7919_v14  ;;  %2333 = vmatpush.msra.mxu0 %v7934_v48  ;;  %v7937_v14 = vld [vmem:[#allocation8 + $0x68] sm:$0xff] }
 0x3f3   :  { %10997 = vst [vmem:[#allocation100_spill] sm:$0xff] %v7922_v13  ;;  %2353 = vmatpush.msrb.mxu1 %v7937_v14  ;;  %v7940_v13 = vld [vmem:[#allocation8 + $0x70] sm:$0xff] }
 0x3f4   :  { %10998 = vst [vmem:[#allocation101_spill] sm:$0xff] %v7925_v31  ;;  %2373 = vmatpush.msra.mxu2 %v7940_v13  ;;  %v7943_v31 = vld [vmem:[#allocation8 + $0x78] sm:$0xff] }
 0x3f5   :  { %10999 = vst [vmem:[#allocation102_spill] sm:$0xff] %v7928_v40  ;;  %2393 = vmatpush.msra.mxu3 %v7943_v31  ;;  %v7946_v40 = vld [vmem:[#allocation8 + $0x40] sm:$0xff] }
 0x3f6   :  { %11000 = vst [vmem:[#allocation103_spill] sm:$0xff] %v7931_v46  ;;  %2334 = vmatpush.msra.mxu0 %v7946_v40  ;;  %v7949_v46 = vld [vmem:[#allocation8 + $0x48] sm:$0xff] }
 0x3f7   :  { %11001 = vst [vmem:[#allocation116_spill] sm:$0xff] %v7934_v48  ;;  %2354 = vmatpush.msrb.mxu1 %v7949_v46  ;;  %v7952_v48 = vld [vmem:[#allocation8 + $0x50] sm:$0xff] }
 0x3f8   :  { %11002 = vst [vmem:[#allocation117_spill] sm:$0xff] %v7937_v14  ;;  %2374 = vmatpush.msra.mxu2 %v7952_v48  ;;  %v7955_v14 = vld [vmem:[#allocation8 + $0x58] sm:$0xff] }
 0x3f9   :  { %11003 = vst [vmem:[#allocation119_spill] sm:$0xff] %v7940_v13  ;;  %2394 = vmatpush.msra.mxu3 %v7955_v14  ;;  %v7958_v13 = vld [vmem:[#allocation8 + $0x20] sm:$0xff] }
 0x3fa   :  { %11004 = vst [vmem:[#allocation120_spill] sm:$0xff] %v7943_v31  ;;  %2335 = vmatpush.msra.mxu0 %v7958_v13  ;;  %v7961_v31 = vld [vmem:[#allocation8 + $0x28] sm:$0xff] }
 0x3fb   :  { %11005 = vst [vmem:[#allocation121_spill] sm:$0xff] %v7946_v40  ;;  %2355 = vmatpush.msrb.mxu1 %v7961_v31  ;;  %v7964_v40 = vld [vmem:[#allocation8 + $0x30] sm:$0xff] }
 0x3fc   :  { %11006 = vst [vmem:[#allocation122_spill] sm:$0xff] %v7949_v46  ;;  %2375 = vmatpush.msra.mxu2 %v7964_v40  ;;  %v7967_v46 = vld [vmem:[#allocation8 + $0x38] sm:$0xff] }
 0x3fd   :  { %11007 = vst [vmem:[#allocation123_spill] sm:$0xff] %v7952_v48  ;;  %2395 = vmatpush.msra.mxu3 %v7967_v46  ;;  %v7970_v48 = vld [vmem:[#allocation8] sm:$0xff] }
 0x3fe   :  { %11008 = vst [vmem:[#allocation124_spill] sm:$0xff] %v7955_v14  ;;  %2336 = vmatpush.msra.mxu0 %v7970_v48  ;;  %v7973_v14 = vld [vmem:[#allocation8 + $0x8] sm:$0xff] }
 0x3ff   :  { %11009 = vst [vmem:[#allocation125_spill] sm:$0xff] %v7958_v13  ;;  %2356 = vmatpush.msrb.mxu1 %v7973_v14  ;;  %v7976_v13 = vld [vmem:[#allocation8 + $0x10] sm:$0xff] }
 0x400   :  { %11010 = vst [vmem:[#allocation126_spill] sm:$0xff] %v7961_v31  ;;  %2376 = vmatpush.msra.mxu2 %v7976_v13  ;;  %v7979_v31 = vld [vmem:[#allocation8 + $0x18] sm:$0xff] }
 0x401   :  { %11011 = vst [vmem:[#allocation127_spill] sm:$0xff] %v7964_v40  ;;  %2396 = vmatpush.msra.mxu3 %v7979_v31  ;;  %v7982_v40 = vld [vmem:[#allocation6 + $0x1e0] sm:$0xff] }
 0x402   :  { %11012 = vst [vmem:[#allocation128_spill] sm:$0xff] %v7967_v46  ;;  %2401 = vmatpush.msrb.mxu0 %v7982_v40  ;;  %v7985_v46 = vld [vmem:[#allocation6 + $0x1e8] sm:$0xff] }
 0x403   :  { %11013 = vst [vmem:[#allocation129_spill] sm:$0xff] %v7970_v48  ;;  %2421 = vmatpush.msra.mxu1 %v7985_v46  ;;  %v7988_v48 = vld [vmem:[#allocation6 + $0x1f0] sm:$0xff] }
 0x404   :  { %11014 = vst [vmem:[#allocation131_spill] sm:$0xff] %v7973_v14  ;;  %2441 = vmatpush.msrb.mxu2 %v7988_v48  ;;  %v7991_v14 = vld [vmem:[#allocation6 + $0x1f8] sm:$0xff] }
 0x405   :  { %11015 = vst [vmem:[#allocation133_spill] sm:$0xff] %v7976_v13  ;;  %2461 = vmatpush.msrb.mxu3 %v7991_v14  ;;  %v7994_v13 = vld [vmem:[#allocation6 + $0x1c0] sm:$0xff] }
 0x406   :  { %11016 = vst [vmem:[#allocation134_spill] sm:$0xff] %v7979_v31  ;;  %2402 = vmatpush.msrb.mxu0 %v7994_v13  ;;  %v7997_v31 = vld [vmem:[#allocation6 + $0x1c8] sm:$0xff] }
 0x407   :  { %11017 = vst [vmem:[#allocation135_spill] sm:$0xff] %v7982_v40  ;;  %2422 = vmatpush.msra.mxu1 %v7997_v31  ;;  %v8000_v40 = vld [vmem:[#allocation6 + $0x1d0] sm:$0xff] }
 0x408   :  { %11018 = vst [vmem:[#allocation136_spill] sm:$0xff] %v7985_v46  ;;  %2442 = vmatpush.msrb.mxu2 %v8000_v40  ;;  %v8003_v46 = vld [vmem:[#allocation6 + $0x1d8] sm:$0xff] }
 0x409   :  { %11019 = vst [vmem:[#allocation137_spill] sm:$0xff] %v7988_v48  ;;  %2462 = vmatpush.msrb.mxu3 %v8003_v46  ;;  %v8006_v48 = vld [vmem:[#allocation6 + $0x1a0] sm:$0xff] }
 0x40a   :  { %11020 = vst [vmem:[#allocation138_spill] sm:$0xff] %v7991_v14  ;;  %2403 = vmatpush.msrb.mxu0 %v8006_v48  ;;  %v8009_v14 = vld [vmem:[#allocation6 + $0x1a8] sm:$0xff] }
 0x40b   :  { %11021 = vst [vmem:[#allocation139_spill] sm:$0xff] %v7994_v13  ;;  %2423 = vmatpush.msra.mxu1 %v8009_v14  ;;  %v8012_v13 = vld [vmem:[#allocation6 + $0x1b0] sm:$0xff] }
 0x40c   :  { %11022 = vst [vmem:[#allocation141_spill] sm:$0xff] %v7997_v31  ;;  %2443 = vmatpush.msrb.mxu2 %v8012_v13  ;;  %v8015_v31 = vld [vmem:[#allocation6 + $0x1b8] sm:$0xff] }
 0x40d   :  { %11023 = vst [vmem:[#allocation142_spill] sm:$0xff] %v8000_v40  ;;  %2463 = vmatpush.msrb.mxu3 %v8015_v31  ;;  %v8018_v40 = vld [vmem:[#allocation6 + $0x180] sm:$0xff] }
 0x40e   :  { %11024 = vst [vmem:[#allocation143_spill] sm:$0xff] %v8003_v46  ;;  %2404 = vmatpush.msrb.mxu0 %v8018_v40  ;;  %v8021_v46 = vld [vmem:[#allocation6 + $0x188] sm:$0xff] }
 0x40f   :  { %11025 = vst [vmem:[#allocation144_spill] sm:$0xff] %v8006_v48  ;;  %2424 = vmatpush.msra.mxu1 %v8021_v46  ;;  %v8024_v48 = vld [vmem:[#allocation6 + $0x190] sm:$0xff] }
 0x410   :  { %11026 = vst [vmem:[#allocation145_spill] sm:$0xff] %v8009_v14  ;;  %2444 = vmatpush.msrb.mxu2 %v8024_v48  ;;  %v8027_v14 = vld [vmem:[#allocation6 + $0x198] sm:$0xff] }
 0x411   :  { %11027 = vst [vmem:[#allocation146_spill] sm:$0xff] %v8012_v13  ;;  %2464 = vmatpush.msrb.mxu3 %v8027_v14  ;;  %v8030_v13 = vld [vmem:[#allocation6 + $0x160] sm:$0xff] }
 0x412   :  { %11028 = vst [vmem:[#allocation147_spill] sm:$0xff] %v8015_v31  ;;  %2405 = vmatpush.msrb.mxu0 %v8030_v13  ;;  %v8033_v31 = vld [vmem:[#allocation6 + $0x168] sm:$0xff] }
 0x413   :  { %11029 = vst [vmem:[#allocation148_spill] sm:$0xff] %v8018_v40  ;;  %2425 = vmatpush.msra.mxu1 %v8033_v31  ;;  %v8036_v40 = vld [vmem:[#allocation6 + $0x170] sm:$0xff] }
 0x414   :  { %11030 = vst [vmem:[#allocation149_spill] sm:$0xff] %v8021_v46  ;;  %2445 = vmatpush.msrb.mxu2 %v8036_v40  ;;  %v8039_v46 = vld [vmem:[#allocation6 + $0x178] sm:$0xff] }
 0x415   :  { %11031 = vst [vmem:[#allocation150_spill] sm:$0xff] %v8024_v48  ;;  %2465 = vmatpush.msrb.mxu3 %v8039_v46  ;;  %v8042_v48 = vld [vmem:[#allocation6 + $0x140] sm:$0xff] }
 0x416   :  { %11032 = vst [vmem:[#allocation151_spill] sm:$0xff] %v8027_v14  ;;  %2406 = vmatpush.msrb.mxu0 %v8042_v48  ;;  %v8045_v14 = vld [vmem:[#allocation6 + $0x148] sm:$0xff] }
 0x417   :  { %11033 = vst [vmem:[#allocation152_spill] sm:$0xff] %v8030_v13  ;;  %2426 = vmatpush.msra.mxu1 %v8045_v14  ;;  %v8048_v13 = vld [vmem:[#allocation6 + $0x150] sm:$0xff] }
 0x418   :  { %11034 = vst [vmem:[#allocation154_spill] sm:$0xff] %v8033_v31  ;;  %2446 = vmatpush.msrb.mxu2 %v8048_v13  ;;  %v8051_v31 = vld [vmem:[#allocation6 + $0x158] sm:$0xff] }
 0x419   :  { %11035 = vst [vmem:[#allocation156_spill] sm:$0xff] %v8036_v40  ;;  %2466 = vmatpush.msrb.mxu3 %v8051_v31  ;;  %v8054_v40 = vld [vmem:[#allocation6 + $0x120] sm:$0xff] }
 0x41a   :  { %11036 = vst [vmem:[#allocation157_spill] sm:$0xff] %v8039_v46  ;;  %2407 = vmatpush.msrb.mxu0 %v8054_v40  ;;  %v8057_v46 = vld [vmem:[#allocation6 + $0x128] sm:$0xff] }
 0x41b   :  { %11037 = vst [vmem:[#allocation158_spill] sm:$0xff] %v8042_v48  ;;  %2427 = vmatpush.msra.mxu1 %v8057_v46  ;;  %v8060_v48 = vld [vmem:[#allocation6 + $0x130] sm:$0xff] }
 0x41c   :  { %11038 = vst [vmem:[#allocation159_spill] sm:$0xff] %v8045_v14  ;;  %2447 = vmatpush.msrb.mxu2 %v8060_v48  ;;  %v8063_v14 = vld [vmem:[#allocation6 + $0x138] sm:$0xff] }
 0x41d   :  { %11039 = vst [vmem:[#allocation160_spill] sm:$0xff] %v8048_v13  ;;  %2467 = vmatpush.msrb.mxu3 %v8063_v14  ;;  %v8066_v13 = vld [vmem:[#allocation6 + $0x100] sm:$0xff]  ;;  %v1979_v27 = vpop.f32.mrf.mxu1 }
 0x41e   :  { %11040 = vst [vmem:[#allocation161_spill] sm:$0xff] %v8051_v31  ;;  %2408 = vmatpush.msrb.mxu0 %v8066_v13  ;;  %v8069_v31 = vld [vmem:[#allocation6 + $0x108] sm:$0xff] }
 0x41f   :  { %11041 = vst [vmem:[#allocation162_spill] sm:$0xff] %v8054_v40  ;;  %2428 = vmatpush.msra.mxu1 %v8069_v31  ;;  %v8072_v40 = vld [vmem:[#allocation6 + $0x110] sm:$0xff] }
 0x420   :  { %11042 = vst [vmem:[#allocation164_spill] sm:$0xff] %v8057_v46  ;;  %2448 = vmatpush.msrb.mxu2 %v8072_v40  ;;  %v8075_v46 = vld [vmem:[#allocation6 + $0x118] sm:$0xff] }
 0x421   :  { %11043 = vst [vmem:[#allocation165_spill] sm:$0xff] %v8060_v48  ;;  %2468 = vmatpush.msrb.mxu3 %v8075_v46  ;;  %v8078_v48 = vld [vmem:[#allocation6 + $0xe0] sm:$0xff] }
 0x422   :  { %11044 = vst [vmem:[#allocation166_spill] sm:$0xff] %v8063_v14  ;;  %2409 = vmatpush.msrb.mxu0 %v8078_v48  ;;  %v8081_v14 = vld [vmem:[#allocation6 + $0xe8] sm:$0xff] }
 0x423   :  { %11045 = vst [vmem:[#allocation167_spill] sm:$0xff] %v8066_v13  ;;  %2429 = vmatpush.msra.mxu1 %v8081_v14  ;;  %v8084_v13 = vld [vmem:[#allocation6 + $0xf0] sm:$0xff] }
 0x424   :  { %11046 = vst [vmem:[#allocation168_spill] sm:$0xff] %v8069_v31  ;;  %2449 = vmatpush.msrb.mxu2 %v8084_v13  ;;  %v8087_v31 = vld [vmem:[#allocation6 + $0xf8] sm:$0xff]  ;;  %v2019_v3 = vpop.f32.mrf.mxu3 }
 0x425   :  { %11047 = vst [vmem:[#allocation169_spill] sm:$0xff] %v8072_v40  ;;  %2469 = vmatpush.msrb.mxu3 %v8087_v31  ;;  %v8090_v40 = vld [vmem:[#allocation6 + $0xc0] sm:$0xff] }
 0x426   :  { %11048 = vst [vmem:[#allocation170_spill] sm:$0xff] %v8075_v46  ;;  %2410 = vmatpush.msrb.mxu0 %v8090_v40  ;;  %v8093_v46 = vld [vmem:[#allocation6 + $0xc8] sm:$0xff] }
 0x427   :  { %11049 = vst [vmem:[#allocation171_spill] sm:$0xff] %v8078_v48  ;;  %2430 = vmatpush.msra.mxu1 %v8093_v46  ;;  %v8096_v48 = vld [vmem:[#allocation6 + $0xd0] sm:$0xff] }
 0x428   :  { %11050 = vst [vmem:[#allocation172_spill] sm:$0xff] %v8081_v14  ;;  %2450 = vmatpush.msrb.mxu2 %v8096_v48  ;;  %v8099_v14 = vld [vmem:[#allocation6 + $0xd8] sm:$0xff]  ;;  %v2059_v20 = vpop.f32.mrf.mxu1 }
 0x429   :  { %11051 = vst [vmem:[#allocation173_spill] sm:$0xff] %v8084_v13  ;;  %2470 = vmatpush.msrb.mxu3 %v8099_v14  ;;  %v8102_v13 = vld [vmem:[#allocation6 + $0xa0] sm:$0xff]  ;;  %v2060_v7 = vadd.f32 %v2059_v20, %v1979_v27 }
 0x42a   :  { %11052 = vst [vmem:[#allocation174_spill] sm:$0xff] %v8087_v31  ;;  %2411 = vmatpush.msrb.mxu0 %v8102_v13  ;;  %v8105_v31 = vld [vmem:[#allocation6 + $0xa8] sm:$0xff] }
 0x42b   :  { %11053 = vst [vmem:[#allocation176_spill] sm:$0xff] %v8090_v40  ;;  %2431 = vmatpush.msra.mxu1 %v8105_v31  ;;  %v8108_v40 = vld [vmem:[#allocation6 + $0xb0] sm:$0xff]  ;;  %v2103_v11 = vadd.f32 %v2060_v7, %v10909_v51 }
 0x42c   :  { %11054 = vst [vmem:[#allocation178_spill] sm:$0xff] %v8093_v46  ;;  %2451 = vmatpush.msrb.mxu2 %v8108_v40  ;;  %v8111_v46 = vld [vmem:[#allocation6 + $0xb8] sm:$0xff] }
 0x42d   :  { %11055 = vst [vmem:[#allocation179_spill] sm:$0xff] %v8096_v48  ;;  %2471 = vmatpush.msrb.mxu3 %v8111_v46  ;;  %v8114_v48 = vld [vmem:[#allocation6 + $0x80] sm:$0xff]  ;;  %v3842_v36 = vmul.f32 -1.442695, %v2103_v11 }
 0x42e   :  { %11056 = vst [vmem:[#allocation104_spill] sm:$0xff] %v8099_v14  ;;  %2412 = vmatpush.msrb.mxu0 %v8114_v48  ;;  %v8117_v14 = vld [vmem:[#allocation6 + $0x88] sm:$0xff] }
 0x42f   :  { %11057 = vst [vmem:[#allocation106_spill] sm:$0xff] %v8102_v13  ;;  %2432 = vmatpush.msra.mxu1 %v8117_v14  ;;  %v8120_v13 = vld [vmem:[#allocation6 + $0x90] sm:$0xff] }
 0x430   :  { %11058 = vst [vmem:[#allocation105_spill] sm:$0xff] %v8105_v31  ;;  %2452 = vmatpush.msrb.mxu2 %v8120_v13  ;;  %v8123_v31 = vld [vmem:[#allocation6 + $0x98] sm:$0xff] }
 0x431   :  { %11059 = vst [vmem:[#allocation99_spill] sm:$0xff] %v8108_v40  ;;  %2472 = vmatpush.msrb.mxu3 %v8123_v31  ;;  %v8126_v40 = vld [vmem:[#allocation6 + $0x60] sm:$0xff] }
 0x432   :  { %11060 = vst [vmem:[#allocation182_spill] sm:$0xff] %v8111_v46  ;;  %2413 = vmatpush.msrb.mxu0 %v8126_v40  ;;  %v8129_v46 = vld [vmem:[#allocation6 + $0x68] sm:$0xff] }
 0x433   :  { %11061 = vst [vmem:[#allocation183_spill] sm:$0xff] %v8114_v48  ;;  %2433 = vmatpush.msra.mxu1 %v8129_v46  ;;  %v8132_v48 = vld [vmem:[#allocation6 + $0x70] sm:$0xff] }
 0x434   :  { %11062 = vst [vmem:[#allocation184_spill] sm:$0xff] %v8117_v14  ;;  %2453 = vmatpush.msrb.mxu2 %v8132_v48  ;;  %v8135_v14 = vld [vmem:[#allocation6 + $0x78] sm:$0xff] }
 0x435   :  { %11063 = vst [vmem:[#allocation185_spill] sm:$0xff] %v8120_v13  ;;  %2473 = vmatpush.msrb.mxu3 %v8135_v14  ;;  %v8138_v13 = vld [vmem:[#allocation6 + $0x40] sm:$0xff] }
 0x436   :  { %11064 = vst [vmem:[#allocation186_spill] sm:$0xff] %v8123_v31  ;;  %2414 = vmatpush.msrb.mxu0 %v8138_v13  ;;  %v8141_v31 = vld [vmem:[#allocation6 + $0x48] sm:$0xff] }
 0x437   :  { %11065 = vst [vmem:[#allocation187_spill] sm:$0xff] %v8126_v40  ;;  %2434 = vmatpush.msra.mxu1 %v8141_v31  ;;  %v8144_v40 = vld [vmem:[#allocation6 + $0x50] sm:$0xff] }
 0x438   :  { %11066 = vst [vmem:[#allocation188_spill] sm:$0xff] %v8129_v46  ;;  %2454 = vmatpush.msrb.mxu2 %v8144_v40  ;;  %v8147_v46 = vld [vmem:[#allocation6 + $0x58] sm:$0xff] }
 0x439   :  { %11067 = vst [vmem:[#allocation189_spill] sm:$0xff] %v8132_v48  ;;  %2474 = vmatpush.msrb.mxu3 %v8147_v46  ;;  %v8150_v48 = vld [vmem:[#allocation6 + $0x20] sm:$0xff] }
 0x43a   :  { %11068 = vst [vmem:[#allocation190_spill] sm:$0xff] %v8135_v14  ;;  %2415 = vmatpush.msrb.mxu0 %v8150_v48  ;;  %v8153_v14 = vld [vmem:[#allocation6 + $0x28] sm:$0xff] }
 0x43b   :  { %11069 = vst [vmem:[#allocation191_spill] sm:$0xff] %v8138_v13  ;;  %2435 = vmatpush.msra.mxu1 %v8153_v14  ;;  %v8156_v13 = vld [vmem:[#allocation6 + $0x30] sm:$0xff] }
 0x43c   :  { %11070 = vst [vmem:[#allocation192_spill] sm:$0xff] %v8141_v31  ;;  %2455 = vmatpush.msrb.mxu2 %v8156_v13  ;;  %v8159_v31 = vld [vmem:[#allocation6 + $0x38] sm:$0xff] }
 0x43d   :  { %11071 = vst [vmem:[#allocation193_spill] sm:$0xff] %v8144_v40  ;;  %2475 = vmatpush.msrb.mxu3 %v8159_v31  ;;  %v8162_v40 = vld [vmem:[#allocation6] sm:$0xff] }
 0x43e   :  { %11072 = vst [vmem:[#allocation194_spill] sm:$0xff] %v8147_v46  ;;  %2416 = vmatpush.msrb.mxu0 %v8162_v40  ;;  %v8165_v46 = vld [vmem:[#allocation6 + $0x8] sm:$0xff] }
 0x43f   :  { %11073 = vst [vmem:[#allocation195_spill] sm:$0xff] %v8150_v48  ;;  %2436 = vmatpush.msra.mxu1 %v8165_v46  ;;  %v8168_v48 = vld [vmem:[#allocation6 + $0x10] sm:$0xff] }
 0x440   :  { %11074 = vst [vmem:[#allocation196_spill] sm:$0xff] %v8153_v14  ;;  %2456 = vmatpush.msrb.mxu2 %v8168_v48  ;;  %v8171_v14 = vld [vmem:[#allocation6 + $0x18] sm:$0xff] }
 0x441   :  { %11075 = vst [vmem:[#allocation197_spill] sm:$0xff] %v8156_v13  ;;  %2476 = vmatpush.msrb.mxu3 %v8171_v14  ;;  %v1959_v13 = vpop.f32.mrf.mxu0 }
 0x442   :  { %11076 = vst [vmem:[#allocation198_spill] sm:$0xff] %v8159_v31 }
 0x443   :  { %11077 = vst [vmem:[#allocation199_spill] sm:$0xff] %v8162_v40 }
 0x444   :  { %11078 = vst [vmem:[#allocation200_spill] sm:$0xff] %v8165_v46  ;;  %v1999_v46 = vpop.f32.mrf.mxu2 }
 0x445   :  { %11079 = vst [vmem:[#allocation201_spill] sm:$0xff] %v8168_v48  ;;  %v2099_v48 = vpop.f32.mrf.mxu3 }
 0x446   :  { %11080 = vst [vmem:[#allocation202_spill] sm:$0xff] %v8171_v14  ;;  %v2100_v61 = vadd.f32 %v2099_v48, %v2019_v3 }
 0x448   :  { %v2105_v14 = vadd.f32 %v2100_v61, %v10910_v23 }
 0x449   :  { %v2039_v31 = vpop.f32.mrf.mxu0 }
 0x44a   :  { %v2040_v9 = vadd.f32 %v2039_v31, %v1959_v13  ;;  %v3843_v58 = vmul.f32 -1.442695, %v2105_v14  ;;  %v11081_v14 = vld [vmem:[#allocation78_spill] sm:$0xff]  ;;  %v11082_v31 = vld [vmem:[#allocation113_spill] sm:$0xff] }
 0x44c   :  { %v2102_v40 = vadd.f32 %v2040_v9, %v10908_v8  ;;  %v2079_v2 = vpop.f32.mrf.mxu2 }
 0x44d   :  { %v2080_v9 = vadd.f32 %v2079_v2, %v1999_v46 }
 0x44e   :  { %v3841_v4 = vmul.f32 -1.442695, %v2102_v40 }
 0x44f   :  { %v2104_v20 = vadd.f32 %v2080_v9, %v10916_v50 }
 0x450   :  { %3994 = vpow2.f32 %v3841_v4 }
 0x451   :  { %3996 = vpow2.f32 %v3842_v36 }
 0x452   :  { %3998 = vpow2.f32 %v3843_v58  ;;  %v2207_v58 = vpop.f32.mrf.mxu1 }
 0x453   :  { %v2251_v46 = vadd.f32 %v2207_v58, %v11082_v31 }
 0x456   :  { %v3995_v49 = vpop.eup %3994 }
 0x457   :  { %v3997_v32 = vpop.eup %3996  ;;  %v2109_v45 = vadd.f32 1.0, %v3995_v49  ;;  %v2187_v49 = vpop.f32.mrf.mxu0 }
 0x458   :  { %v2128_v13 = vadd.f32 1.0, %v3997_v32  ;;  %v3999_v7 = vpop.eup %3998  ;;  %v2250_v2 = vadd.f32 %v2187_v49, %v11081_v14 }
 0x459   :  { %4000 = vrcp.f32 %v2109_v45  ;;  %v8178_v11 = vadd.f32 1.0, %v3999_v7  ;;  %v2121_v27 = vand.u32 2147483648, %v2109_v45  ;;  %v2119_v40 = vand.u32 2147483647, %v2109_v45 }
 0x45a   :  { %4002 = vrcp.f32 %v2128_v13  ;;  %v2140_v9 = vand.u32 2147483648, %v2128_v13  ;;  %v2138_v50 = vand.u32 2147483647, %v2128_v13  ;;  %v2254_v51 = vadd.f32 %v2250_v2, %v10913_v15 }
 0x45b   :  { %4004 = vrcp.f32 %v8178_v11  ;;  %vm2134_vm8 = vweird.f32 %v2128_v13  ;;  %vm2115_vm9 = vweird.f32 %v2109_v45  ;;  %vm2120_vm12 = vcmp.eq.f32.partialorder %v2119_v40, 8.507059e+37 }
 0x45c   :  { %4006 = vtanh.f32 %v2104_v20  ;;  %v3844_v58 = vmul.f32 -1.442695, %v2254_v51  ;;  %v2141_v31 = vor.u32 1.1754944e-38, %v2140_v9  ;;  %vm2139_vm13 = vcmp.eq.f32.partialorder %v2138_v50, 8.507059e+37 }
 0x45d   :  { %vm2154_vm15 = vweird.f32 %v8178_v11 }
 0x45e   :  { %4008 = vpow2.f32 %v3844_v58  ;;  %v11084_v58 = vld [vmem:[#allocation114_spill] sm:$0xff] }
 0x45f   :  { %v4001_v4 = vpop.eup %4000 }
 0x460   :  { %v4003_v36 = vpop.eup %4002  ;;  %v2111_v48 = vmul.f32 %v4001_v4, %v2109_v45  ;;  %vm2116_vm6 = vweird.f32 %v4001_v4 }
 0x461   :  { %v2130_v61 = vmul.f32 %v4003_v36, %v2128_v13  ;;  %vm2135_vm7 = vweird.f32 %v4003_v36  ;;  %v4005_v8 = vpop.eup %4004  ;;  %vm2117_vm10 = vmor %vm2115_vm9, %vm2116_vm6  ;;  %v2247_v13 = vpop.f32.mrf.mxu3 }
 0x462   :  { %v2112_v3 = vsub.f32 1.0, %v2111_v48  ;;  %v2255_v48 = vadd.f32 %v2251_v46, %v10914_v55  ;;  %v2150_v49 = vmul.f32 %v4005_v8, %v8178_v11  ;;  %vm2136_vm11 = vmor %vm2134_vm8, %vm2135_vm7  ;;  %v11083_v55 = vld [vmem:[#allocation115_spill] sm:$0xff]  ;;  %vm2155_vm14 = vweird.f32 %v4005_v8 }
 0x463   :  { %v2131_v32 = vsub.f32 1.0, %v2130_v61  ;;  %v2122_v61 = vor.u32 1.1754944e-38, %v2121_v27  ;;  %v2253_v51 = vadd.f32 %v2247_v13, %v11083_v55  ;;  %vm2156_vm0 = vmor %vm2154_vm15, %vm2155_vm14 }
 0x464   :  { %v2113_v7 = vmul.f32 %v4001_v4, %v2112_v3  ;;  %v3845_v14 = vmul.f32 -1.442695, %v2255_v48  ;;  %v4007_v3 = vpop.eup %4006  ;;  %v2151_v46 = vsub.f32 1.0, %v2150_v49 }
 0x465   :  { %v2132_v23 = vmul.f32 %v4003_v36, %v2131_v32  ;;  %v2257_v9 = vadd.f32 %v2253_v51, %v5992_v60  ;;  %v4009_v50 = vpop.eup %4008 }
 0x466   :  { %v2114_v20 = vadd.f32 %v4001_v4, %v2113_v7  ;;  %4010 = vpow2.f32 %v3845_v14  ;;  %v2152_v27 = vmul.f32 %v4005_v8, %v2151_v46  ;;  %v8194_v40 = vadd.f32 1.0, %v4009_v50 }
 0x467   :  { %v2133_v38 = vadd.f32 %v4003_v36, %v2132_v23 }
 0x468   :  { %v2118_v32 = vsel %vm2117_vm10, %v4001_v4, %v2114_v20  ;;  %v2153_v4 = vadd.f32 %v4005_v8, %v2152_v27  ;;  %v2227_v20 = vpop.f32.mrf.mxu2  ;;  %v2271_v50 = vand.u32 2147483647, %v8194_v40  ;;  %vm2267_vm4 = vweird.f32 %v8194_v40 }
 0x469   :  { %v2123_v2 = vsel %vm2120_vm12, %v2122_v61, %v2118_v32  ;;  %v2137_v15 = vsel %vm2136_vm11, %v4003_v36, %v2133_v38  ;;  %v2160_v38 = vand.u32 2147483648, %v8178_v11  ;;  %v3846_v36 = vmul.f32 -1.442695, %v2257_v9 }
 0x46a   :  { %v2142_v7 = vsel %vm2139_vm13, %v2141_v31, %v2137_v15  ;;  %v2165_v45 = vmul.f32 %v4007_v3, %v2123_v2  ;;  %v2157_v61 = vsel %vm2156_vm0, %v4005_v8, %v2153_v4  ;;  %v2252_v14 = vadd.f32 %v2227_v20, %v11084_v58  ;;  %v11099_v20 = vld [vmem:[#allocation31_spill] sm:$0xff]  ;;  %v11102_v58 = vld [vmem:[#allocation68_spill] sm:$0xff] }
 0x46b   :  { %v2164_v23 = vmul.f32 %v2142_v7, %v7352_v42  ;;  %v2158_v42 = vand.u32 2147483647, %v8178_v11  ;;  %v2161_v49 = vor.u32 1.1754944e-38, %v2160_v38  ;;  %v2273_v9 = vand.u32 2147483648, %v8194_v40 }
 0x46c   :  { %v4011_v15 = vpop.eup %4010  ;;  %v2256_v46 = vadd.f32 %v2252_v14, %v6044_v12  ;;  %vm2272_vm8 = vcmp.eq.f32.partialorder %v2271_v50, 8.507059e+37  ;;  %v11103_v14 = vld [vmem:[#allocation34_spill] sm:$0xff]  ;;  %v11118_v50 = vld [vmem:[#allocation84_spill] sm:$0xff] }
 0x46d   :  { %v8188_v48 = vadd.f32 %v2165_v45, %v2164_v23  ;;  %v8197_v55 = vadd.f32 1.0, %v4011_v15  ;;  %vm2159_vm1 = vcmp.eq.f32.partialorder %v2158_v42, 8.507059e+37  ;;  %v8218_v23 = vld [vmem:[%s9625_s3 + $0x1e8] sm:$0xff]  ;;  %v11097_v42 = vld [vmem:[#allocation30_spill] sm:$0xff] }
 0x46e   :  { %v2162_v31 = vsel %vm2159_vm1, %v2161_v49, %v2157_v61  ;;  %v11100_v61 = vld [vmem:[#allocation32_spill] sm:$0xff]  ;;  %v11101_v49 = vld [vmem:[#allocation33_spill] sm:$0xff] }
 0x46f   :  { %4012 = vtanh.f32 %v8188_v48  ;;  %vm2286_vm5 = vweird.f32 %v8197_v55 }
 0x470   :  { %4014 = vpow2.f32 %v3846_v36 }
 0x471   :  { %4016 = vrcp.f32 %v8194_v40 }
 0x472   :  { %4018 = vrcp.f32 %v8197_v55 }
 0x475   :  { %v4013_v3 = vpop.eup %4012 }
 0x476   :  { %v8202_v32 = vmul.f32 %v4013_v3, %v2162_v31  ;;  %v4015_v2 = vpop.eup %4014  ;;  %v11104_v3 = vld [vmem:[#allocation35_spill] sm:$0xff]  ;;  %v11105_v31 = vld [vmem:[#allocation36_spill] sm:$0xff] }
 0x477   :  { %v4017_v11 = vpop.eup %4016  ;;  %v8205_v13 = vadd.f32 1.0, %v4015_v2  ;;  %v11106_v2 = vld [vmem:[#allocation72_spill] sm:$0xff] }
 0x478   :  { %11085 = vst [vmem:[#allocation203_spill] sm:$0xff] %v8202_v32  ;;  %2337 = vmatmul.f32.vlgmr.msra.gmra.mxu0 %v8202_v32  ;;  %2357 = vmatmul.f32.vlgmr.msrb.gmra.mxu1 %v8202_v32  ;;  %v4019_v8 = vpop.eup %4018  ;;  %v2263_v7 = vmul.f32 %v4017_v11, %v8194_v40  ;;  %vm2268_vm2 = vweird.f32 %v4017_v11 }
 0x479   :  { %2377 = vmatmul.f32.vlgmr.msra.gmra.mxu2 %v8202_v32  ;;  %2397 = vmatmul.f32.vlgmr.msra.gmra.mxu3 %v8202_v32  ;;  %v2282_v45 = vmul.f32 %v4019_v8, %v8197_v55  ;;  %4020 = vrcp.f32 %v8205_v13  ;;  %vm2287_vm3 = vweird.f32 %v4019_v8  ;;  %vm2269_vm6 = vmor %vm2267_vm4, %vm2268_vm2  ;;  %vm2306_vm11 = vweird.f32 %v8205_v13  ;;  %v8831_v32 = vld [vmem:[%s9625_s3 + $0x48] sm:$0xff] }
 0x47a   :  { %2549 = vmatpush.msra.mxu0 %v7395_v19  ;;  %2569 = vmatpush.msrb.mxu1 %v8218_v23  ;;  %v2264_v27 = vsub.f32 1.0, %v2263_v7  ;;  %4022 = vtanh.f32 %v2256_v46  ;;  %v2292_v19 = vand.u32 2147483648, %v8197_v55  ;;  %vm2288_vm7 = vmor %vm2286_vm5, %vm2287_vm3  ;;  %v11108_v46 = vld [vmem:[#allocation38_spill] sm:$0xff]  ;;  %v11111_v7 = vld [vmem:[#allocation40_spill] sm:$0xff] }
 0x47b   :  { %2589 = vmatpush.msra.mxu2 %v7404_v21  ;;  %2609 = vmatpush.msra.mxu3 %v7410_v24  ;;  %v2283_v51 = vsub.f32 1.0, %v2282_v45  ;;  %v2290_v24 = vand.u32 2147483647, %v8197_v55  ;;  %v11098_v55 = vld [vmem:[#allocation65_spill] sm:$0xff] }
 0x47c   :  { %2550 = vmatpush.msra.mxu0 %v7420_v25  ;;  %2570 = vmatpush.msrb.mxu1 %v7426_v26  ;;  %v2265_v4 = vmul.f32 %v4017_v11, %v2264_v27  ;;  %v11112_v45 = vld [vmem:[#allocation41_spill] sm:$0xff]  ;;  %v11113_v27 = vld [vmem:[#allocation42_spill] sm:$0xff]  ;;  %11278 = vst [vmem:[#allocation65_spill] sm:$0xff] %v8831_v32 }
 0x47d   :  { %2590 = vmatpush.msra.mxu2 %v7435_v28  ;;  %2610 = vmatpush.msra.mxu3 %v7441_v30  ;;  %v2284_v21 = vmul.f32 %v4019_v8, %v2283_v51  ;;  %v2274_v28 = vor.u32 1.1754944e-38, %v2273_v9  ;;  %vm2291_vm9 = vcmp.eq.f32.partialorder %v2290_v24, 8.507059e+37  ;;  %v11114_v51 = vld [vmem:[#allocation80_spill] sm:$0xff]  ;;  %v11115_v9 = vld [vmem:[#allocation43_spill] sm:$0xff] }
 0x47e   :  { %2551 = vmatpush.msra.mxu0 %v7447_v43  ;;  %2571 = vmatpush.msrb.mxu1 %v7453_v18  ;;  %v2266_v25 = vadd.f32 %v4017_v11, %v2265_v4  ;;  %v2293_v43 = vor.u32 1.1754944e-38, %v2292_v19  ;;  %v11116_v19 = vld [vmem:[#allocation44_spill] sm:$0xff]  ;;  %v11117_v4 = vld [vmem:[#allocation45_spill] sm:$0xff]  ;;  %v11120_v24 = vld [vmem:[#allocation47_spill] sm:$0xff] }
 0x47f   :  { %2591 = vmatpush.msra.mxu2 %v7459_v44  ;;  %2611 = vmatpush.msra.mxu3 %v7465_v34  ;;  %v4021_v26 = vpop.eup %4020  ;;  %v2285_v30 = vadd.f32 %v4019_v8, %v2284_v21  ;;  %v11119_v21 = vld [vmem:[#allocation46_spill] sm:$0xff] }
 0x480   :  { %2552 = vmatpush.msra.mxu0 %v7471_v62  ;;  %2572 = vmatpush.msrb.mxu1 %v7477_v37  ;;  %v2270_v18 = vsel %vm2269_vm6, %v4017_v11, %v2266_v25  ;;  %v2302_v44 = vmul.f32 %v4021_v26, %v8205_v13  ;;  %v4023_v34 = vpop.eup %4022  ;;  %vm2307_vm10 = vweird.f32 %v4021_v26  ;;  %v11107_v11 = vld [vmem:[#allocation37_spill] sm:$0xff]  ;;  %v11121_v25 = vld [vmem:[#allocation48_spill] sm:$0xff] }
 0x481   :  { %2592 = vmatpush.msra.mxu2 %v7485_v47  ;;  %2612 = vmatpush.msra.mxu3 %v7491_v52  ;;  %v2275_v38 = vsel %vm2272_vm8, %v2274_v28, %v2270_v18  ;;  %v2289_v36 = vsel %vm2288_vm7, %v4019_v8, %v2285_v30  ;;  %vm2308_vm12 = vmor %vm2306_vm11, %vm2307_vm10  ;;  %v11110_v8 = vld [vmem:[#allocation76_spill] sm:$0xff]  ;;  %v11123_v28 = vld [vmem:[#allocation49_spill] sm:$0xff] }
 0x482   :  { %2553 = vmatpush.msra.mxu0 %v7497_v6  ;;  %2573 = vmatpush.msrb.mxu1 %v7503_v59  ;;  %v2294_v62 = vsel %vm2291_vm9, %v2293_v43, %v2289_v36  ;;  %v2317_v37 = vmul.f32 %v4023_v34, %v2275_v38  ;;  %v2303_v15 = vsub.f32 1.0, %v2302_v44  ;;  %v2310_v59 = vand.u32 2147483647, %v8205_v13  ;;  %v11124_v30 = vld [vmem:[#allocation50_spill] sm:$0xff]  ;;  %v11125_v43 = vld [vmem:[#allocation51_spill] sm:$0xff]  ;;  %v11127_v44 = vld [vmem:[#allocation52_spill] sm:$0xff] }
 0x483   :  { %2593 = vmatpush.msra.mxu2 %v7513_v33  ;;  %2613 = vmatpush.msra.mxu3 %v7519_v63  ;;  %v2316_v40 = vmul.f32 %v2294_v62, %v7382_v16  ;;  %v2312_v16 = vand.u32 2147483648, %v8205_v13  ;;  %v11086_v63 = vld [vmem:[#allocation108_spill] sm:$0xff]  ;;  %v11109_v13 = vld [vmem:[#allocation39_spill] sm:$0xff]  ;;  %v11126_v18 = vld [vmem:[#allocation86_spill] sm:$0xff] }
 0x484   :  { %2554 = vmatpush.msra.mxu0 %v7525_v29  ;;  %2574 = vmatpush.msrb.mxu1 %v7531_v54  ;;  %v2304_v47 = vmul.f32 %v4021_v26, %v2303_v15  ;;  %v11087_v29 = vld [vmem:[#allocation22_spill] sm:$0xff]  ;;  %vm2311_vm13 = vcmp.eq.f32.partialorder %v2310_v59, 8.507059e+37  ;;  %v11128_v34 = vld [vmem:[#allocation53_spill] sm:$0xff]  ;;  %v11130_v36 = vld [vmem:[#allocation87_spill] sm:$0xff] }
 0x485   :  { %2594 = vmatpush.msra.mxu2 %v7537_v5  ;;  %2614 = vmatpush.msra.mxu3 %v7543_v53  ;;  %v8253_v52 = vadd.f32 %v2317_v37, %v2316_v40  ;;  %v2313_v54 = vor.u32 1.1754944e-38, %v2312_v16  ;;  %v11088_v5 = vld [vmem:[#allocation27_spill] sm:$0xff]  ;;  %v11129_v38 = vld [vmem:[#allocation54_spill] sm:$0xff]  ;;  %v11131_v62 = vld [vmem:[#allocation56_spill] sm:$0xff] }
 0x486   :  { %2555 = vmatpush.msra.mxu0 %v7549_v17  ;;  %2575 = vmatpush.msrb.mxu1 %v7555_v41  ;;  %v2305_v6 = vadd.f32 %v4021_v26, %v2304_v47  ;;  %v11089_v53 = vld [vmem:[#allocation23_spill] sm:$0xff]  ;;  %v11090_v17 = vld [vmem:[#allocation18_spill] sm:$0xff]  ;;  %v11091_v41 = vld [vmem:[#allocation24_spill] sm:$0xff] }
 0x487   :  { %2595 = vmatpush.msra.mxu2 %v7561_v22  ;;  %2615 = vmatpush.msra.mxu3 %v7567_v39  ;;  %4024 = vtanh.f32 %v8253_v52  ;;  %v11132_v37 = vld [vmem:[#allocation57_spill] sm:$0xff]  ;;  %v11133_v15 = vld [vmem:[#allocation58_spill] sm:$0xff]  ;;  %v11135_v47 = vld [vmem:[#allocation59_spill] sm:$0xff] }
 0x488   :  { %2556 = vmatpush.msra.mxu0 %v7573_v56  ;;  %2576 = vmatpush.msrb.mxu1 %v7579_v10  ;;  %v2309_v33 = vsel %vm2308_vm12, %v4021_v26, %v2305_v6  ;;  %v11092_v56 = vld [vmem:[#allocation28_spill] sm:$0xff]  ;;  %v11093_v10 = vld [vmem:[#allocation25_spill] sm:$0xff]  ;;  %v11138_v59 = vld [vmem:[#allocation90_spill] sm:$0xff] }
 0x489   :  { %2596 = vmatpush.msra.mxu2 %v7585_v57  ;;  %2616 = vmatpush.msra.mxu3 %v7591_v35  ;;  %v2314_v39 = vsel %vm2311_vm13, %v2313_v54, %v2309_v33  ;;  %v11094_v35 = vld [vmem:[#allocation55_spill] sm:$0xff]  ;;  %v11122_v26 = vld [vmem:[#allocation85_spill] sm:$0xff]  ;;  %v11136_v6 = vld [vmem:[#allocation60_spill] sm:$0xff] }
 0x48a   :  { %2557 = vmatpush.msra.mxu0 %v7597_v0  ;;  %2577 = vmatpush.msrb.mxu1 %v7603_v1  ;;  %v11095_v0 = vld [vmem:[#allocation98_spill] sm:$0xff]  ;;  %v11096_v1 = vld [vmem:[#allocation29_spill] sm:$0xff]  ;;  %v11142_v54 = vld [vmem:[#allocation91_spill] sm:$0xff] }
 0x48b   :  { %2597 = vmatpush.msra.mxu2 %v11086_v63  ;;  %2617 = vmatpush.msra.mxu3 %v11087_v29  ;;  %v11134_v40 = vld [vmem:[#allocation89_spill] sm:$0xff]  ;;  %v11139_v33 = vld [vmem:[#allocation62_spill] sm:$0xff]  ;;  %v11140_v63 = vld [vmem:[#allocation63_spill] sm:$0xff] }
 0x48c   :  { %2558 = vmatpush.msra.mxu0 %v11088_v5  ;;  %2578 = vmatpush.msrb.mxu1 %v11089_v53  ;;  %v11137_v16 = vld [vmem:[#allocation61_spill] sm:$0xff]  ;;  %v11141_v29 = vld [vmem:[#allocation64_spill] sm:$0xff]  ;;  %v11143_v5 = vld [vmem:[#allocation66_spill] sm:$0xff] }
 0x48d   :  { %2598 = vmatpush.msra.mxu2 %v11090_v17  ;;  %2618 = vmatpush.msra.mxu3 %v11091_v41  ;;  %v4025_v22 = vpop.eup %4024  ;;  %v11144_v53 = vld [vmem:[#allocation67_spill] sm:$0xff]  ;;  %v11145_v17 = vld [vmem:[#allocation69_spill] sm:$0xff]  ;;  %v11146_v41 = vld [vmem:[#allocation92_spill] sm:$0xff] }
 0x48e   :  { %2559 = vmatpush.msra.mxu0 %v11092_v56  ;;  %2579 = vmatpush.msrb.mxu1 %v11093_v10  ;;  %v2320_v57 = vmul.f32 %v4025_v22, %v2314_v39  ;;  %v11147_v22 = vld [vmem:[#allocation70_spill] sm:$0xff]  ;;  %v11148_v39 = vld [vmem:[#allocation71_spill] sm:$0xff]  ;;  %v11149_v56 = vld [vmem:[#allocation73_spill] sm:$0xff] }
 0x48f   :  { %2599 = vmatpush.msra.mxu2 %v11094_v35  ;;  %2619 = vmatpush.msra.mxu3 %v11095_v0  ;;  %v11150_v10 = vld [vmem:[#allocation93_spill] sm:$0xff]  ;;  %v11152_v35 = vld [vmem:[#allocation75_spill] sm:$0xff] }
 0x490   :  { %2560 = vmatpush.msra.mxu0 %v11096_v1  ;;  %2580 = vmatpush.msrb.mxu1 %v11097_v42  ;;  %v11153_v0 = vld [vmem:[#allocation77_spill] sm:$0xff]  ;;  %v11154_v1 = vld [vmem:[#allocation95_spill] sm:$0xff] }
 0x491   :  { %2600 = vmatpush.msra.mxu2 %v11098_v55  ;;  %2620 = vmatpush.msra.mxu3 %v11099_v20  ;;  %v11155_v42 = vld [vmem:[#allocation79_spill] sm:$0xff]  ;;  %v11156_v55 = vld [vmem:[#allocation81_spill] sm:$0xff]  ;;  %v11157_v20 = vld [vmem:[#allocation82_spill] sm:$0xff] }
 0x492   :  { %2417 = vmatmul.f32.vlgmr.msrb.gmra.mxu0 %v2320_v57  ;;  %2437 = vmatmul.f32.vlgmr.msra.gmra.mxu1 %v2320_v57 }
 0x493   :  { %2457 = vmatmul.f32.vlgmr.msrb.gmra.mxu2 %v2320_v57  ;;  %2477 = vmatmul.f32.vlgmr.msrb.gmra.mxu3 %v2320_v57 }
 0x494   :  { %2561 = vmatpush.msra.mxu0 %v11100_v61  ;;  %2581 = vmatpush.msrb.mxu1 %v11101_v49  ;;  %v11158_v61 = vld [vmem:[#allocation96_spill] sm:$0xff]  ;;  %v11159_v49 = vld [vmem:[#allocation83_spill] sm:$0xff] }
 0x495   :  { %2601 = vmatpush.msra.mxu2 %v11102_v58  ;;  %2621 = vmatpush.msra.mxu3 %v11103_v14  ;;  %v11160_v58 = vld [vmem:[#allocation100_spill] sm:$0xff]  ;;  %v11161_v14 = vld [vmem:[#allocation101_spill] sm:$0xff] }
 0x496   :  { %2562 = vmatpush.msra.mxu0 %v11104_v3  ;;  %2582 = vmatpush.msrb.mxu1 %v11105_v31  ;;  %v11162_v3 = vld [vmem:[#allocation102_spill] sm:$0xff]  ;;  %v11163_v31 = vld [vmem:[#allocation103_spill] sm:$0xff] }
 0x497   :  { %2602 = vmatpush.msra.mxu2 %v11106_v2  ;;  %2622 = vmatpush.msra.mxu3 %v11107_v11  ;;  %v11164_v2 = vld [vmem:[#allocation116_spill] sm:$0xff]  ;;  %v11165_v11 = vld [vmem:[#allocation117_spill] sm:$0xff] }
 0x498   :  { %2563 = vmatpush.msra.mxu0 %v11108_v46  ;;  %2583 = vmatpush.msrb.mxu1 %v11109_v13  ;;  %v11166_v46 = vld [vmem:[#allocation119_spill] sm:$0xff]  ;;  %v11167_v13 = vld [vmem:[#allocation120_spill] sm:$0xff] }
 0x499   :  { %2603 = vmatpush.msra.mxu2 %v11110_v8  ;;  %2623 = vmatpush.msra.mxu3 %v11111_v7  ;;  %v11168_v8 = vld [vmem:[#allocation121_spill] sm:$0xff]  ;;  %v11169_v7 = vld [vmem:[#allocation122_spill] sm:$0xff] }
 0x49a   :  { %2564 = vmatpush.msra.mxu0 %v11112_v45  ;;  %2584 = vmatpush.msrb.mxu1 %v11113_v27  ;;  %v11170_v45 = vld [vmem:[#allocation123_spill] sm:$0xff]  ;;  %v11171_v27 = vld [vmem:[#allocation124_spill] sm:$0xff] }
 0x49b   :  { %2604 = vmatpush.msra.mxu2 %v11114_v51  ;;  %2624 = vmatpush.msra.mxu3 %v11115_v9  ;;  %v11172_v51 = vld [vmem:[#allocation125_spill] sm:$0xff]  ;;  %v11173_v9 = vld [vmem:[#allocation126_spill] sm:$0xff] }
 0x49c   :  { %2565 = vmatmul.f32.vlgmr.msra.gmra.mxu0 %v2320_v57  ;;  %2585 = vmatmul.f32.vlgmr.msrb.gmra.mxu1 %v2320_v57 }
 0x49d   :  { %2605 = vmatmul.f32.vlgmr.msra.gmra.mxu2 %v2320_v57  ;;  %2625 = vmatmul.f32.vlgmr.msra.gmra.mxu3 %v2320_v57  ;;  %v11151_v57 = vld [vmem:[#allocation74_spill] sm:$0xff] }
 0x49e   :  { %2700 = vmatpush.msrb.mxu0 %v11116_v19  ;;  %2720 = vmatpush.msra.mxu1 %v11117_v4  ;;  %v11174_v19 = vld [vmem:[#allocation127_spill] sm:$0xff]  ;;  %v11175_v4 = vld [vmem:[#allocation128_spill] sm:$0xff] }
 0x49f   :  { %2740 = vmatpush.msrb.mxu2 %v11118_v50  ;;  %2760 = vmatpush.msrb.mxu3 %v11119_v21  ;;  %v11176_v50 = vld [vmem:[#allocation129_spill] sm:$0xff]  ;;  %v11177_v21 = vld [vmem:[#allocation131_spill] sm:$0xff] }
 0x4a0   :  { %2701 = vmatpush.msrb.mxu0 %v11120_v24  ;;  %2721 = vmatpush.msra.mxu1 %v11121_v25  ;;  %v11178_v24 = vld [vmem:[#allocation133_spill] sm:$0xff]  ;;  %v11179_v25 = vld [vmem:[#allocation134_spill] sm:$0xff] }
 0x4a1   :  { %2741 = vmatpush.msrb.mxu2 %v11122_v26  ;;  %2761 = vmatpush.msrb.mxu3 %v11123_v28  ;;  %v11180_v26 = vld [vmem:[#allocation135_spill] sm:$0xff]  ;;  %v11181_v28 = vld [vmem:[#allocation136_spill] sm:$0xff] }
 0x4a2   :  { %2702 = vmatpush.msrb.mxu0 %v11124_v30  ;;  %2722 = vmatpush.msra.mxu1 %v11125_v43  ;;  %v11182_v30 = vld [vmem:[#allocation137_spill] sm:$0xff]  ;;  %v11183_v43 = vld [vmem:[#allocation138_spill] sm:$0xff] }
 0x4a3   :  { %2742 = vmatpush.msrb.mxu2 %v11126_v18  ;;  %2762 = vmatpush.msrb.mxu3 %v11127_v44  ;;  %v11184_v18 = vld [vmem:[#allocation139_spill] sm:$0xff]  ;;  %v11185_v44 = vld [vmem:[#allocation141_spill] sm:$0xff] }
 0x4a4   :  { %2703 = vmatpush.msrb.mxu0 %v11128_v34  ;;  %2723 = vmatpush.msra.mxu1 %v11129_v38  ;;  %v11186_v34 = vld [vmem:[#allocation142_spill] sm:$0xff]  ;;  %v11187_v38 = vld [vmem:[#allocation143_spill] sm:$0xff] }
 0x4a5   :  { %2743 = vmatpush.msrb.mxu2 %v11130_v36  ;;  %2763 = vmatpush.msrb.mxu3 %v11131_v62  ;;  %v11188_v36 = vld [vmem:[#allocation144_spill] sm:$0xff]  ;;  %v11189_v62 = vld [vmem:[#allocation145_spill] sm:$0xff] }
 0x4a6   :  { %2704 = vmatpush.msrb.mxu0 %v11132_v37  ;;  %2724 = vmatpush.msra.mxu1 %v11133_v15  ;;  %v11190_v37 = vld [vmem:[#allocation146_spill] sm:$0xff]  ;;  %v11191_v15 = vld [vmem:[#allocation147_spill] sm:$0xff] }
 0x4a7   :  { %2744 = vmatpush.msrb.mxu2 %v11134_v40  ;;  %2764 = vmatpush.msrb.mxu3 %v11135_v47  ;;  %v11192_v40 = vld [vmem:[#allocation148_spill] sm:$0xff]  ;;  %v11193_v47 = vld [vmem:[#allocation149_spill] sm:$0xff] }
 0x4a8   :  { %2705 = vmatpush.msrb.mxu0 %v11136_v6  ;;  %2725 = vmatpush.msra.mxu1 %v11137_v16  ;;  %v11194_v6 = vld [vmem:[#allocation150_spill] sm:$0xff]  ;;  %v11195_v16 = vld [vmem:[#allocation151_spill] sm:$0xff] }
 0x4a9   :  { %2745 = vmatpush.msrb.mxu2 %v11138_v59  ;;  %2765 = vmatpush.msrb.mxu3 %v11139_v33  ;;  %v11196_v59 = vld [vmem:[#allocation152_spill] sm:$0xff]  ;;  %v11197_v33 = vld [vmem:[#allocation154_spill] sm:$0xff] }
 0x4aa   :  { %2706 = vmatpush.msrb.mxu0 %v11140_v63  ;;  %2726 = vmatpush.msra.mxu1 %v11141_v29  ;;  %v11198_v63 = vld [vmem:[#allocation156_spill] sm:$0xff]  ;;  %v11199_v29 = vld [vmem:[#allocation157_spill] sm:$0xff] }
 0x4ab   :  { %2746 = vmatpush.msrb.mxu2 %v11142_v54  ;;  %2766 = vmatpush.msrb.mxu3 %v11143_v5  ;;  %v11200_v54 = vld [vmem:[#allocation158_spill] sm:$0xff]  ;;  %v11201_v5 = vld [vmem:[#allocation159_spill] sm:$0xff] }
 0x4ac   :  { %2707 = vmatpush.msrb.mxu0 %v11144_v53  ;;  %2727 = vmatpush.msra.mxu1 %v11145_v17  ;;  %v11202_v53 = vld [vmem:[#allocation160_spill] sm:$0xff]  ;;  %v11203_v17 = vld [vmem:[#allocation161_spill] sm:$0xff] }
 0x4ad   :  { %2747 = vmatpush.msrb.mxu2 %v11146_v41  ;;  %2767 = vmatpush.msrb.mxu3 %v11147_v22  ;;  %v11204_v41 = vld [vmem:[#allocation162_spill] sm:$0xff]  ;;  %v11205_v22 = vld [vmem:[#allocation164_spill] sm:$0xff] }
 0x4ae   :  { %2708 = vmatpush.msrb.mxu0 %v11148_v39  ;;  %2728 = vmatpush.msra.mxu1 %v11149_v56  ;;  %v11206_v39 = vld [vmem:[#allocation165_spill] sm:$0xff]  ;;  %v11207_v56 = vld [vmem:[#allocation166_spill] sm:$0xff] }
 0x4af   :  { %2748 = vmatpush.msrb.mxu2 %v11150_v10  ;;  %2768 = vmatpush.msrb.mxu3 %v11151_v57  ;;  %v11208_v10 = vld [vmem:[#allocation167_spill] sm:$0xff]  ;;  %v11209_v57 = vld [vmem:[#allocation168_spill] sm:$0xff] }
 0x4b0   :  { %2709 = vmatpush.msrb.mxu0 %v11152_v35  ;;  %2729 = vmatpush.msra.mxu1 %v11153_v0  ;;  %v11210_v35 = vld [vmem:[#allocation169_spill] sm:$0xff]  ;;  %v11211_v0 = vld [vmem:[#allocation170_spill] sm:$0xff] }
 0x4b1   :  { %2749 = vmatpush.msrb.mxu2 %v11154_v1  ;;  %2769 = vmatpush.msrb.mxu3 %v11155_v42  ;;  %v11212_v1 = vld [vmem:[#allocation171_spill] sm:$0xff]  ;;  %v11213_v42 = vld [vmem:[#allocation172_spill] sm:$0xff] }
 0x4b2   :  { %2710 = vmatpush.msrb.mxu0 %v11156_v55  ;;  %2730 = vmatpush.msra.mxu1 %v11157_v20  ;;  %v11214_v55 = vld [vmem:[#allocation173_spill] sm:$0xff]  ;;  %v11215_v20 = vld [vmem:[#allocation174_spill] sm:$0xff] }
 0x4b3   :  { %2750 = vmatpush.msrb.mxu2 %v11158_v61  ;;  %2770 = vmatpush.msrb.mxu3 %v11159_v49  ;;  %v11216_v61 = vld [vmem:[#allocation176_spill] sm:$0xff]  ;;  %v11217_v49 = vld [vmem:[#allocation178_spill] sm:$0xff] }
 0x4b4   :  { %2711 = vmatpush.msrb.mxu0 %v11160_v58  ;;  %2731 = vmatpush.msra.mxu1 %v11161_v14  ;;  %v11218_v58 = vld [vmem:[#allocation179_spill] sm:$0xff]  ;;  %v11219_v14 = vld [vmem:[#allocation104_spill] sm:$0xff] }
 0x4b5   :  { %2751 = vmatpush.msrb.mxu2 %v11162_v3  ;;  %2771 = vmatpush.msrb.mxu3 %v11163_v31  ;;  %v11220_v3 = vld [vmem:[#allocation106_spill] sm:$0xff]  ;;  %v11221_v31 = vld [vmem:[#allocation105_spill] sm:$0xff] }
 0x4b6   :  { %2712 = vmatpush.msrb.mxu0 %v11164_v2  ;;  %2732 = vmatpush.msra.mxu1 %v11165_v11  ;;  %v11222_v2 = vld [vmem:[#allocation99_spill] sm:$0xff]  ;;  %v11223_v11 = vld [vmem:[#allocation182_spill] sm:$0xff] }
 0x4b7   :  { %2752 = vmatpush.msrb.mxu2 %v11166_v46  ;;  %2772 = vmatpush.msrb.mxu3 %v11167_v13  ;;  %v11224_v46 = vld [vmem:[#allocation183_spill] sm:$0xff]  ;;  %v11225_v13 = vld [vmem:[#allocation184_spill] sm:$0xff] }
 0x4b8   :  { %2713 = vmatpush.msrb.mxu0 %v11168_v8  ;;  %2733 = vmatpush.msra.mxu1 %v11169_v7  ;;  %v11226_v8 = vld [vmem:[#allocation185_spill] sm:$0xff]  ;;  %v11227_v7 = vld [vmem:[#allocation186_spill] sm:$0xff] }
 0x4b9   :  { %2753 = vmatpush.msrb.mxu2 %v11170_v45  ;;  %2773 = vmatpush.msrb.mxu3 %v11171_v27  ;;  %v11228_v45 = vld [vmem:[#allocation187_spill] sm:$0xff]  ;;  %v11229_v27 = vld [vmem:[#allocation188_spill] sm:$0xff] }
 0x4ba   :  { %2714 = vmatpush.msrb.mxu0 %v11172_v51  ;;  %2734 = vmatpush.msra.mxu1 %v11173_v9  ;;  %v11230_v51 = vld [vmem:[#allocation189_spill] sm:$0xff]  ;;  %v11231_v9 = vld [vmem:[#allocation190_spill] sm:$0xff] }
 0x4bb   :  { %2754 = vmatpush.msrb.mxu2 %v11174_v19  ;;  %2774 = vmatpush.msrb.mxu3 %v11175_v4  ;;  %v11232_v19 = vld [vmem:[#allocation191_spill] sm:$0xff]  ;;  %v11233_v4 = vld [vmem:[#allocation192_spill] sm:$0xff] }
 0x4bc   :  { %2715 = vmatpush.msrb.mxu0 %v11176_v50  ;;  %2735 = vmatpush.msra.mxu1 %v11177_v21  ;;  %v11234_v50 = vld [vmem:[#allocation193_spill] sm:$0xff]  ;;  %v11235_v21 = vld [vmem:[#allocation194_spill] sm:$0xff] }
 0x4bd   :  { %2755 = vmatpush.msrb.mxu2 %v11178_v24  ;;  %2775 = vmatpush.msrb.mxu3 %v11179_v25  ;;  %v11236_v24 = vld [vmem:[#allocation195_spill] sm:$0xff]  ;;  %v11237_v25 = vld [vmem:[#allocation196_spill] sm:$0xff] }
 0x4be   :  { %2780 = vmatpush.msra.mxu0 %v11180_v26  ;;  %2800 = vmatpush.msrb.mxu1 %v11181_v28  ;;  %v11238_v26 = vld [vmem:[#allocation197_spill] sm:$0xff]  ;;  %v11239_v28 = vld [vmem:[#allocation198_spill] sm:$0xff] }
 0x4bf   :  { %2820 = vmatpush.msra.mxu2 %v11182_v30  ;;  %2840 = vmatpush.msra.mxu3 %v11183_v43  ;;  %v11240_v30 = vld [vmem:[#allocation199_spill] sm:$0xff]  ;;  %v11241_v43 = vld [vmem:[#allocation200_spill] sm:$0xff] }
 0x4c0   :  { %2781 = vmatpush.msra.mxu0 %v11184_v18  ;;  %2801 = vmatpush.msrb.mxu1 %v11185_v44  ;;  %v11242_v18 = vld [vmem:[#allocation201_spill] sm:$0xff]  ;;  %v11243_v44 = vld [vmem:[#allocation202_spill] sm:$0xff] }
 0x4c1   :  { %2821 = vmatpush.msra.mxu2 %v11186_v34  ;;  %2841 = vmatpush.msra.mxu3 %v11187_v38 }
 0x4c2   :  { %2782 = vmatpush.msra.mxu0 %v11188_v36  ;;  %2802 = vmatpush.msrb.mxu1 %v11189_v62 }
 0x4c3   :  { %2822 = vmatpush.msra.mxu2 %v11190_v37  ;;  %2842 = vmatpush.msra.mxu3 %v11191_v15 }
 0x4c4   :  { %2783 = vmatpush.msra.mxu0 %v11192_v40  ;;  %2803 = vmatpush.msrb.mxu1 %v11193_v47  ;;  %v11244_v47 = vld [vmem:[#allocation16_spill] sm:$0xff] }
 0x4c5   :  { %2823 = vmatpush.msra.mxu2 %v11194_v6  ;;  %2843 = vmatpush.msra.mxu3 %v11195_v16  ;;  %v11245_v16 = vld [vmem:[#allocation20_spill] sm:$0xff] }
 0x4c6   :  { %2784 = vmatpush.msra.mxu0 %v11196_v59  ;;  %2804 = vmatpush.msrb.mxu1 %v11197_v33 }
 0x4c7   :  { %2824 = vmatpush.msra.mxu2 %v11198_v63  ;;  %2844 = vmatpush.msra.mxu3 %v11199_v29 }
 0x4c8   :  { %2785 = vmatpush.msra.mxu0 %v11200_v54  ;;  %2805 = vmatpush.msrb.mxu1 %v11201_v5 }
 0x4c9   :  { %2825 = vmatpush.msra.mxu2 %v11202_v53  ;;  %2845 = vmatpush.msra.mxu3 %v11203_v17  ;;  %v11246_v53 = vld [vmem:[#allocation26_spill] sm:$0xff] }
 0x4ca   :  { %2786 = vmatpush.msra.mxu0 %v11204_v41  ;;  %2806 = vmatpush.msrb.mxu1 %v11205_v22 }
 0x4cb   :  { %2826 = vmatpush.msra.mxu2 %v11206_v39  ;;  %2846 = vmatpush.msra.mxu3 %v11207_v56  ;;  %v11247_v39 = vld [vmem:[#allocation88_spill] sm:$0xff] }
 0x4cc   :  { %2787 = vmatpush.msra.mxu0 %v11208_v10  ;;  %2807 = vmatpush.msrb.mxu1 %v11209_v57  ;;  %v11248_v10 = vld [vmem:[#allocation118_spill] sm:$0xff] }
 0x4cd   :  { %2827 = vmatpush.msra.mxu2 %v11210_v35  ;;  %2847 = vmatpush.msra.mxu3 %v11211_v0 }
 0x4ce   :  { %2788 = vmatpush.msra.mxu0 %v11212_v1  ;;  %2808 = vmatpush.msrb.mxu1 %v11213_v42  ;;  %v11249_v42 = vld [vmem:[#allocation181_spill] sm:$0xff] }
 0x4cf   :  { %2828 = vmatpush.msra.mxu2 %v11214_v55  ;;  %2848 = vmatpush.msra.mxu3 %v11215_v20  ;;  %v11250_v20 = vld [vmem:[#allocation180_spill] sm:$0xff] }
 0x4d0   :  { %2789 = vmatpush.msra.mxu0 %v11216_v61  ;;  %2809 = vmatpush.msrb.mxu1 %v11217_v49 }
 0x4d1   :  { %2829 = vmatpush.msra.mxu2 %v11218_v58  ;;  %2849 = vmatpush.msra.mxu3 %v11219_v14 }
 0x4d2   :  { %2790 = vmatpush.msra.mxu0 %v11220_v3  ;;  %2810 = vmatpush.msrb.mxu1 %v11221_v31 }
 0x4d3   :  { %2830 = vmatpush.msra.mxu2 %v11222_v2  ;;  %2850 = vmatpush.msra.mxu3 %v11223_v11 }
 0x4d4   :  { %2791 = vmatpush.msra.mxu0 %v11224_v46  ;;  %2811 = vmatpush.msrb.mxu1 %v11225_v13  ;;  %v11251_v46 = vld [vmem:[#allocation132_spill] sm:$0xff] }
 0x4d5   :  { %2831 = vmatpush.msra.mxu2 %v11226_v8  ;;  %2851 = vmatpush.msra.mxu3 %v11227_v7  ;;  %v11252_v7 = vld [vmem:[#allocation21_spill] sm:$0xff] }
 0x4d6   :  { %2792 = vmatpush.msra.mxu0 %v11228_v45  ;;  %2812 = vmatpush.msrb.mxu1 %v11229_v27 }
 0x4d7   :  { %2832 = vmatpush.msra.mxu2 %v11230_v51  ;;  %2852 = vmatpush.msra.mxu3 %v11231_v9 }
 0x4d8   :  { %2793 = vmatpush.msra.mxu0 %v11232_v19  ;;  %2813 = vmatpush.msrb.mxu1 %v11233_v4 }
 0x4d9   :  { %2833 = vmatpush.msra.mxu2 %v11234_v50  ;;  %2853 = vmatpush.msra.mxu3 %v11235_v21 }
 0x4da   :  { %2794 = vmatpush.msra.mxu0 %v11236_v24  ;;  %2814 = vmatpush.msrb.mxu1 %v11237_v25 }
 0x4db   :  { %2834 = vmatpush.msra.mxu2 %v11238_v26  ;;  %2854 = vmatpush.msra.mxu3 %v11239_v28 }
 0x4dc   :  { %2795 = vmatpush.msra.mxu0 %v11240_v30  ;;  %2815 = vmatpush.msrb.mxu1 %v11241_v43 }
 0x4dd   :  { %2835 = vmatpush.msra.mxu2 %v11242_v18  ;;  %2855 = vmatpush.msra.mxu3 %v11243_v44 }
 0x4f5   :  { %v2338_v34 = vpop.f32.mrf.mxu0  ;;  %v2358_v38 = vpop.f32.mrf.mxu1 }
 0x4fc   :  { %v2398_v36 = vpop.f32.mrf.mxu3  ;;  %v2378_v33 = vpop.f32.mrf.mxu2 }
 0x50f   :  { %v2418_v62 = vpop.f32.mrf.mxu0  ;;  %v2438_v37 = vpop.f32.mrf.mxu1 }
 0x510   :  { %v2419_v15 = vadd.f32 %v2418_v62, %v2338_v34  ;;  %v2439_v40 = vadd.f32 %v2438_v37, %v2358_v38  ;;  %v11253_v38 = vld [vmem:[#allocation130_spill] sm:$0xff] }
 0x512   :  { %v2481_v6 = vadd.f32 %v2419_v15, %v11244_v47  ;;  %v2482_v59 = vadd.f32 %v2439_v40, %v11245_v16 }
 0x514   :  { %v3847_v63 = vmul.f32 -1.442695, %v2481_v6  ;;  %v3848_v29 = vmul.f32 -1.442695, %v2482_v59 }
 0x516   :  { %4026 = vpow2.f32 %v3847_v63  ;;  %v2478_v54 = vpop.f32.mrf.mxu3  ;;  %v2458_v1 = vpop.f32.mrf.mxu2 }
 0x517   :  { %4028 = vpow2.f32 %v3848_v29  ;;  %v2479_v5 = vadd.f32 %v2478_v54, %v2398_v36  ;;  %v2459_v2 = vadd.f32 %v2458_v1, %v2378_v33 }
 0x519   :  { %v2484_v17 = vadd.f32 %v2479_v5, %v11246_v53  ;;  %v2566_v41 = vpop.f32.mrf.mxu0  ;;  %v2586_v22 = vpop.f32.mrf.mxu1  ;;  %v2483_v45 = vadd.f32 %v2459_v2, %v11252_v7 }
 0x51a   :  { %v2629_v56 = vadd.f32 %v2566_v41, %v11247_v39  ;;  %v2630_v57 = vadd.f32 %v2586_v22, %v11248_v10 }
 0x51b   :  { %v3849_v35 = vmul.f32 -1.442695, %v2484_v17 }
 0x51c   :  { %v4027_v0 = vpop.eup %4026  ;;  %v2633_v55 = vadd.f32 %v2629_v56, %v11249_v42  ;;  %v2634_v61 = vadd.f32 %v2630_v57, %v11250_v20 }
 0x51d   :  { %v4029_v49 = vpop.eup %4028  ;;  %v2488_v58 = vadd.f32 1.0, %v4027_v0  ;;  %4030 = vpow2.f32 %v3849_v35 }
 0x51e   :  { %v2507_v14 = vadd.f32 1.0, %v4029_v49  ;;  %v3850_v3 = vmul.f32 -1.442695, %v2633_v55  ;;  %v3851_v31 = vmul.f32 -1.442695, %v2634_v61 }
 0x51f   :  { %4032 = vrcp.f32 %v2488_v58  ;;  %v2498_v30 = vand.u32 2147483647, %v2488_v58  ;;  %v2500_v43 = vand.u32 2147483648, %v2488_v58  ;;  %vm2494_vm1 = vweird.f32 %v2488_v58 }
 0x520   :  { %4034 = vrcp.f32 %v2507_v14  ;;  %v2626_v11 = vpop.f32.mrf.mxu3  ;;  %v2606_v50 = vpop.f32.mrf.mxu2  ;;  %v2519_v62 = vand.u32 2147483648, %v2507_v14  ;;  %v2517_v40 = vand.u32 2147483647, %v2507_v14  ;;  %vm2513_vm0 = vweird.f32 %v2507_v14 }
 0x521   :  { %4036 = vpow2.f32 %v3850_v3  ;;  %v2632_v13 = vadd.f32 %v2626_v11, %v11251_v46  ;;  %v2631_v36 = vadd.f32 %v2606_v50, %v11253_v38  ;;  %v2501_v63 = vor.u32 1.1754944e-38, %v2500_v43 }
 0x522   :  { %4038 = vpow2.f32 %v3851_v31  ;;  %v2520_v17 = vor.u32 1.1754944e-38, %v2519_v62  ;;  %vm2499_vm4 = vcmp.eq.f32.partialorder %v2498_v30, 8.507059e+37  ;;  %vm2518_vm5 = vcmp.eq.f32.partialorder %v2517_v40, 8.507059e+37 }
 0x523   :  { %v4031_v8 = vpop.eup %4030  ;;  %v2636_v51 = vadd.f32 %v2632_v13, %v5992_v60  ;;  %v2635_v5 = vadd.f32 %v2631_v36, %v6044_v12 }
 0x524   :  { %v8436_v27 = vadd.f32 1.0, %v4031_v8 }
 0x525   :  { %v4033_v9 = vpop.eup %4032  ;;  %v3852_v25 = vmul.f32 -1.442695, %v2636_v51 }
 0x526   :  { %v4035_v19 = vpop.eup %4034  ;;  %v2490_v4 = vmul.f32 %v4033_v9, %v2488_v58  ;;  %4040 = vrcp.f32 %v8436_v27  ;;  %vm2495_vm14 = vweird.f32 %v4033_v9  ;;  %vm2533_vm6 = vweird.f32 %v8436_v27 }
 0x527   :  { %v4037_v21 = vpop.eup %4036  ;;  %v2509_v24 = vmul.f32 %v4035_v19, %v2507_v14  ;;  %4042 = vtanh.f32 %v2483_v45  ;;  %vm2514_vm15 = vweird.f32 %v4035_v19  ;;  %vm2496_vm2 = vmor %vm2494_vm1, %vm2495_vm14  ;;  %v2539_v31 = vand.u32 2147483648, %v8436_v27 }
 0x528   :  { %v4039_v26 = vpop.eup %4038  ;;  %v2491_v28 = vsub.f32 1.0, %v2490_v4  ;;  %v8440_v18 = vadd.f32 1.0, %v4037_v21  ;;  %4044 = vpow2.f32 %v3852_v25  ;;  %vm2515_vm3 = vmor %vm2513_vm0, %vm2514_vm15  ;;  %v8669_v21 = vld [vmem:[%s9625_s3 + $0x130] sm:$0xff] }
 0x529   :  { %v2510_v44 = vsub.f32 1.0, %v2509_v24  ;;  %v8442_v34 = vadd.f32 1.0, %v4039_v26  ;;  %v2540_v24 = vor.u32 1.1754944e-38, %v2539_v31 }
 0x52a   :  { %v2492_v37 = vmul.f32 %v4033_v9, %v2491_v28  ;;  %4046 = vrcp.f32 %v8440_v18  ;;  %v2650_v11 = vand.u32 2147483647, %v8440_v18  ;;  %vm2646_vm10 = vweird.f32 %v8440_v18 }
 0x52b   :  { %v2511_v15 = vmul.f32 %v4035_v19, %v2510_v44  ;;  %4048 = vrcp.f32 %v8442_v34  ;;  %v2671_v8 = vand.u32 2147483648, %v8442_v34  ;;  %vm2665_vm12 = vweird.f32 %v8442_v34 }
 0x52c   :  { %v8447_v6 = vpop.eup %4040  ;;  %v2493_v59 = vadd.f32 %v4033_v9, %v2492_v37  ;;  %4050 = vtanh.f32 %v2635_v5  ;;  %vm2651_vm15 = vcmp.eq.f32.partialorder %v2650_v11, 8.507059e+37  ;;  %v8512_v5 = vld [vmem:[%s9625_s3 + $0x1f0] sm:$0xff]  ;;  %v8599_v11 = vld [vmem:[%s9625_s3 + $0x198] sm:$0xff] }
 0x52d   :  { %v4043_v33 = vpop.eup %4042  ;;  %v2512_v29 = vadd.f32 %v4035_v19, %v2511_v15  ;;  %v2529_v54 = vmul.f32 %v8447_v6, %v8436_v27  ;;  %vm2534_vm7 = vweird.f32 %v8447_v6  ;;  %v2672_v43 = vor.u32 1.1754944e-38, %v2671_v8  ;;  %v8627_v8 = vld [vmem:[%s9625_s3 + $0x178] sm:$0xff] }
 0x52e   :  { %v2497_v41 = vsel %vm2496_vm2, %v4033_v9, %v2493_v59  ;;  %v4045_v22 = vpop.eup %4044  ;;  %v2669_v9 = vand.u32 2147483647, %v8442_v34  ;;  %vm8474_vm11 = vmor %vm2533_vm6, %vm2534_vm7 }
 0x52f   :  { %v2502_v39 = vsel %vm2499_vm4, %v2501_v63, %v2497_v41  ;;  %v2516_v56 = vsel %vm2515_vm3, %v4035_v19, %v2512_v29  ;;  %v2530_v10 = vsub.f32 1.0, %v2529_v54  ;;  %v8452_v1 = vadd.f32 1.0, %v4045_v22  ;;  %v8503_v29 = vld [vmem:[%s9625_s3 + $0x1e0] sm:$0xff]  ;;  %v8534_v22 = vld [vmem:[%s9625_s3 + $0x1c8] sm:$0xff] }
 0x530   :  { %v4047_v57 = vpop.eup %4046  ;;  %v2521_v35 = vsel %vm2518_vm5, %v2520_v17, %v2516_v56  ;;  %v2544_v0 = vmul.f32 %v4043_v33, %v2502_v39  ;;  %v2537_v19 = vand.u32 2147483647, %v8436_v27  ;;  %vm2670_vm0 = vcmp.eq.f32.partialorder %v2669_v9, 8.507059e+37  ;;  %v8518_v17 = vld [vmem:[%s9625_s3 + $0x1f8] sm:$0xff]  ;;  %v8528_v41 = vld [vmem:[%s9625_s3 + $0x1c0] sm:$0xff]  ;;  %v8543_v56 = vld [vmem:[%s9625_s3 + $0x1d0] sm:$0xff] }
 0x531   :  { %v4049_v55 = vpop.eup %4048  ;;  %v2543_v61 = vmul.f32 %v2521_v35, %v8188_v48  ;;  %v2531_v49 = vmul.f32 %v8447_v6, %v2530_v10  ;;  %v2642_v58 = vmul.f32 %v4047_v57, %v8440_v18  ;;  %4052 = vrcp.f32 %v8452_v1  ;;  %v8549_v10 = vld [vmem:[%s9625_s3 + $0x1d8] sm:$0xff]  ;;  %v8555_v35 = vld [vmem:[%s9625_s3 + $0x1a0] sm:$0xff]  ;;  %v8645_v9 = vld [vmem:[%s9625_s3 + $0x150] sm:$0xff] }
 0x532   :  { %v2661_v14 = vmul.f32 %v4049_v55, %v8442_v34  ;;  %v2652_v48 = vand.u32 2147483648, %v8440_v18  ;;  %vm2647_vm8 = vweird.f32 %v4047_v57  ;;  %vm2666_vm9 = vweird.f32 %v4049_v55  ;;  %v4051_v4 = vpop.eup %4050 }
 0x533   :  { %v8460_v3 = vadd.f32 %v2544_v0, %v2543_v61  ;;  %v2643_v2 = vsub.f32 1.0, %v2642_v58  ;;  %v2532_v13 = vadd.f32 %v8447_v6, %v2531_v49  ;;  %vm2648_vm13 = vmor %vm2646_vm10, %vm2647_vm8  ;;  %vm2538_vm1 = vcmp.eq.f32.partialorder %v2537_v19, 8.507059e+37  ;;  %v8561_v0 = vld [vmem:[%s9625_s3 + $0x1a8] sm:$0xff]  ;;  %v8579_v58 = vld [vmem:[%s9625_s3 + $0x180] sm:$0xff] }
 0x534   :  { %v2662_v46 = vsub.f32 1.0, %v2661_v14  ;;  %v2653_v26 = vor.u32 1.1754944e-38, %v2652_v48  ;;  %vm2667_vm14 = vmor %vm2665_vm12, %vm2666_vm9  ;;  %vm2685_vm3 = vweird.f32 %v8452_v1  ;;  %v2689_v54 = vand.u32 2147483647, %v8452_v1  ;;  %v8585_v14 = vld [vmem:[%s9625_s3 + $0x188] sm:$0xff]  ;;  %v8651_v19 = vld [vmem:[%s9625_s3 + $0x158] sm:$0xff] }
 0x535   :  { %4054 = vtanh.f32 %v8460_v3  ;;  %v2644_v45 = vmul.f32 %v4047_v57, %v2643_v2  ;;  %v2536_v30 = vsel %vm8474_vm11, %v8447_v6, %v2532_v13  ;;  %v8593_v2 = vld [vmem:[%s9625_s3 + $0x190] sm:$0xff]  ;;  %v8611_v48 = vld [vmem:[%s9625_s3 + $0x168] sm:$0xff] }
 0x536   :  { %v2663_v51 = vmul.f32 %v4049_v55, %v2662_v46  ;;  %v2541_v15 = vsel %vm2538_vm1, %v2540_v24, %v2536_v30  ;;  %vm2690_vm5 = vcmp.eq.f32.partialorder %v2689_v54, 8.507059e+37  ;;  %v8605_v46 = vld [vmem:[%s9625_s3 + $0x160] sm:$0xff]  ;;  %v8621_v13 = vld [vmem:[%s9625_s3 + $0x170] sm:$0xff]  ;;  %v8675_v24 = vld [vmem:[%s9625_s3 + $0x138] sm:$0xff] }
 0x537   :  { %v2645_v50 = vadd.f32 %v4047_v57, %v2644_v45  ;;  %v8478_v25 = vpop.eup %4052  ;;  %v8633_v45 = vld [vmem:[%s9625_s3 + $0x140] sm:$0xff]  ;;  %v8699_v30 = vld [vmem:[%s9625_s3 + $0x118] sm:$0xff]  ;;  %v8789_v54 = vld [vmem:[%s9625_s3 + $0x90] sm:$0xff] }
 0x538   :  { %v2664_v28 = vadd.f32 %v4049_v55, %v2663_v51  ;;  %v2681_v27 = vmul.f32 %v8478_v25, %v8452_v1  ;;  %vm2686_vm2 = vweird.f32 %v8478_v25  ;;  %v8639_v51 = vld [vmem:[%s9625_s3 + $0x148] sm:$0xff]  ;;  %11271 = vst [vmem:[#allocation24_spill] sm:$0xff] %v8789_v54 }
 0x539   :  { %v2649_v18 = vsel %vm2648_vm13, %v4047_v57, %v2645_v50  ;;  %vm8521_vm4 = vmor %vm2685_vm3, %vm2686_vm2  ;;  %v8663_v50 = vld [vmem:[%s9625_s3 + $0x128] sm:$0xff] }
 0x53a   :  { %v2654_v44 = vsel %vm2651_vm15, %v2653_v26, %v2649_v18  ;;  %v2668_v38 = vsel %vm2667_vm14, %v4049_v55, %v2664_v28  ;;  %v2682_v37 = vsub.f32 1.0, %v2681_v27  ;;  %v8573_v55 = vld [vmem:[%s9625_s3 + $0x1b8] sm:$0xff]  ;;  %v8687_v26 = vld [vmem:[%s9625_s3 + $0x108] sm:$0xff]  ;;  %v8693_v28 = vld [vmem:[%s9625_s3 + $0x110] sm:$0xff] }
 0x53b   :  { %v4055_v36 = vpop.eup %4054  ;;  %v2673_v34 = vsel %vm2670_vm0, %v2672_v43, %v2668_v38  ;;  %v2696_v62 = vmul.f32 %v4051_v4, %v2654_v44  ;;  %v8657_v4 = vld [vmem:[%s9625_s3 + $0x120] sm:$0xff]  ;;  %v8711_v18 = vld [vmem:[%s9625_s3 + $0xe8] sm:$0xff]  ;;  %v8717_v27 = vld [vmem:[%s9625_s3 + $0xf0] sm:$0xff] }
 0x53c   :  { %v2695_v40 = vmul.f32 %v2673_v34, %v8253_v52  ;;  %v8487_v59 = vmul.f32 %v4055_v36, %v2541_v15  ;;  %v2683_v6 = vmul.f32 %v8478_v25, %v2682_v37  ;;  %v2691_v52 = vand.u32 2147483648, %v8452_v1  ;;  %v8567_v1 = vld [vmem:[%s9625_s3 + $0x1b0] sm:$0xff]  ;;  %v8705_v43 = vld [vmem:[%s9625_s3 + $0xe0] sm:$0xff]  ;;  %11259 = vst [vmem:[#allocation110_spill] sm:$0xff] %v8717_v27  ;;  %v8723_v44 = vld [vmem:[%s9625_s3 + $0xf8] sm:$0xff] }
 0x53d   :  { %11260 = vst [vmem:[#allocation112_spill] sm:$0xff] %v8723_v44  ;;  %v8729_v38 = vld [vmem:[%s9625_s3 + $0xc0] sm:$0xff]  ;;  %v8735_v36 = vld [vmem:[%s9625_s3 + $0xc8] sm:$0xff]  ;;  %v8741_v34 = vld [vmem:[%s9625_s3 + $0xd0] sm:$0xff] }
 0x53e   :  { %11256 = vst [vmem:[#allocation19_spill] sm:$0xff] %v8487_v59  ;;  %v8490_v33 = vadd.f32 %v2696_v62, %v2695_v40  ;;  %2716 = vmatmul.f32.vlgmr.msrb.gmra.mxu0 %v8487_v59  ;;  %2736 = vmatmul.f32.vlgmr.msra.gmra.mxu1 %v8487_v59  ;;  %v2684_v63 = vadd.f32 %v8478_v25, %v2683_v6  ;;  %v2692_v57 = vor.u32 1.1754944e-38, %v2691_v52  ;;  %v8747_v62 = vld [vmem:[%s9625_s3 + $0xd8] sm:$0xff]  ;;  %v8753_v37 = vld [vmem:[%s9625_s3 + $0xa0] sm:$0xff]  ;;  %v8759_v15 = vld [vmem:[%s9625_s3 + $0xa8] sm:$0xff] }
 0x53f   :  { %2756 = vmatmul.f32.vlgmr.msrb.gmra.mxu2 %v8487_v59  ;;  %2776 = vmatmul.f32.vlgmr.msrb.gmra.mxu3 %v8487_v59  ;;  %11261 = vst [vmem:[#allocation111_spill] sm:$0xff] %v8729_v38  ;;  %v8765_v40 = vld [vmem:[%s9625_s3 + $0xb0] sm:$0xff]  ;;  %v8771_v6 = vld [vmem:[%s9625_s3 + $0xb8] sm:$0xff]  ;;  %v8783_v52 = vld [vmem:[%s9625_s3 + $0x88] sm:$0xff] }
 0x540   :  { %4056 = vtanh.f32 %v8490_v33  ;;  %2928 = vmatpush.msrb.mxu0 %v8503_v29  ;;  %2948 = vmatpush.msra.mxu1 %v8218_v23  ;;  %v2688_v39 = vsel %vm8521_vm4, %v8478_v25, %v2684_v63  ;;  %v8681_v25 = vld [vmem:[%s9625_s3 + $0x100] sm:$0xff]  ;;  %11262 = vst [vmem:[#allocation78_spill] sm:$0xff] %v8735_v36  ;;  %v8795_v23 = vld [vmem:[%s9625_s3 + $0x98] sm:$0xff] }
 0x541   :  { %2968 = vmatpush.msrb.mxu2 %v8512_v5  ;;  %2988 = vmatpush.msrb.mxu3 %v8518_v17  ;;  %v2693_v49 = vsel %vm2690_vm5, %v2692_v57, %v2688_v39  ;;  %11263 = vst [vmem:[#allocation113_spill] sm:$0xff] %v8741_v34  ;;  %v8777_v63 = vld [vmem:[%s9625_s3 + $0x80] sm:$0xff]  ;;  %v8807_v57 = vld [vmem:[%s9625_s3 + $0x68] sm:$0xff] }
 0x542   :  { %2929 = vmatpush.msrb.mxu0 %v8528_v41  ;;  %2949 = vmatpush.msra.mxu1 %v8534_v22  ;;  %11264 = vst [vmem:[#allocation115_spill] sm:$0xff] %v8747_v62  ;;  %v8801_v39 = vld [vmem:[%s9625_s3 + $0x60] sm:$0xff] }
 0x543   :  { %2969 = vmatpush.msrb.mxu2 %v8543_v56  ;;  %2989 = vmatpush.msrb.mxu3 %v8549_v10  ;;  %11265 = vst [vmem:[#allocation114_spill] sm:$0xff] %v8753_v37  ;;  %v8825_v59 = vld [vmem:[%s9625_s3 + $0x40] sm:$0xff] }
 0x544   :  { %2930 = vmatpush.msrb.mxu0 %v8555_v35  ;;  %2950 = vmatpush.msra.mxu1 %v8561_v0  ;;  %11266 = vst [vmem:[#allocation108_spill] sm:$0xff] %v8759_v15 }
 0x545   :  { %2970 = vmatpush.msrb.mxu2 %v8567_v1  ;;  %2990 = vmatpush.msrb.mxu3 %v8573_v55  ;;  %11267 = vst [vmem:[#allocation22_spill] sm:$0xff] %v8765_v40 }
 0x546   :  { %v4057_v61 = vpop.eup %4056  ;;  %2931 = vmatpush.msrb.mxu0 %v8579_v58  ;;  %2951 = vmatpush.msra.mxu1 %v8585_v14  ;;  %11268 = vst [vmem:[#allocation27_spill] sm:$0xff] %v8771_v6 }
 0x547   :  { %v8588_v31 = vmul.f32 %v4057_v61, %v2693_v49  ;;  %2971 = vmatpush.msrb.mxu2 %v8593_v2  ;;  %2991 = vmatpush.msrb.mxu3 %v8599_v11  ;;  %11269 = vst [vmem:[#allocation23_spill] sm:$0xff] %v8777_v63  ;;  %v8813_v61 = vld [vmem:[%s9625_s3 + $0x70] sm:$0xff]  ;;  %v8819_v49 = vld [vmem:[%s9625_s3 + $0x78] sm:$0xff] }
 0x548   :  { %2932 = vmatpush.msrb.mxu0 %v8605_v46  ;;  %2952 = vmatpush.msra.mxu1 %v8611_v48  ;;  %11270 = vst [vmem:[#allocation18_spill] sm:$0xff] %v8783_v52 }
 0x549   :  { %2796 = vmatmul.f32.vlgmr.msra.gmra.mxu0 %v8588_v31  ;;  %2816 = vmatmul.f32.vlgmr.msrb.gmra.mxu1 %v8588_v31  ;;  %11272 = vst [vmem:[#allocation28_spill] sm:$0xff] %v8795_v23 }
 0x54a   :  { %2836 = vmatmul.f32.vlgmr.msra.gmra.mxu2 %v8588_v31  ;;  %2856 = vmatmul.f32.vlgmr.msra.gmra.mxu3 %v8588_v31  ;;  %11273 = vst [vmem:[#allocation25_spill] sm:$0xff] %v8801_v39 }
 0x54b   :  { %2972 = vmatpush.msrb.mxu2 %v8621_v13  ;;  %2992 = vmatpush.msrb.mxu3 %v8627_v8  ;;  %11274 = vst [vmem:[#allocation55_spill] sm:$0xff] %v8807_v57 }
 0x54c   :  { %2933 = vmatpush.msrb.mxu0 %v8633_v45  ;;  %2953 = vmatpush.msra.mxu1 %v8639_v51  ;;  %11275 = vst [vmem:[#allocation98_spill] sm:$0xff] %v8813_v61 }
 0x54d   :  { %2973 = vmatpush.msrb.mxu2 %v8645_v9  ;;  %2993 = vmatpush.msrb.mxu3 %v8651_v19  ;;  %11276 = vst [vmem:[#allocation29_spill] sm:$0xff] %v8819_v49 }
 0x54e   :  { %2934 = vmatpush.msrb.mxu0 %v8657_v4  ;;  %2954 = vmatpush.msra.mxu1 %v8663_v50  ;;  %11277 = vst [vmem:[#allocation30_spill] sm:$0xff] %v8825_v59 }
 0x54f   :  { %2974 = vmatpush.msrb.mxu2 %v8669_v21  ;;  %2994 = vmatpush.msrb.mxu3 %v8675_v24 }
 0x550   :  { %2935 = vmatpush.msrb.mxu0 %v8681_v25  ;;  %2955 = vmatpush.msra.mxu1 %v8687_v26 }
 0x551   :  { %2975 = vmatpush.msrb.mxu2 %v8693_v28  ;;  %2995 = vmatpush.msrb.mxu3 %v8699_v30 }
 0x552   :  { %2936 = vmatpush.msrb.mxu0 %v8705_v43  ;;  %2956 = vmatpush.msra.mxu1 %v8711_v18 }
 0x553   :  { %2976 = vmatpush.msrb.mxu2 %v8717_v27  ;;  %2996 = vmatpush.msrb.mxu3 %v8723_v44 }
 0x554   :  { %2937 = vmatpush.msrb.mxu0 %v8729_v38  ;;  %2957 = vmatpush.msra.mxu1 %v8735_v36 }
 0x555   :  { %2977 = vmatpush.msrb.mxu2 %v8741_v34  ;;  %2997 = vmatpush.msrb.mxu3 %v8747_v62 }
 0x556   :  { %2938 = vmatpush.msrb.mxu0 %v8753_v37  ;;  %2958 = vmatpush.msra.mxu1 %v8759_v15 }
 0x557   :  { %2978 = vmatpush.msrb.mxu2 %v8765_v40  ;;  %2998 = vmatpush.msrb.mxu3 %v8771_v6 }
 0x558   :  { %2939 = vmatpush.msrb.mxu0 %v8777_v63  ;;  %2959 = vmatpush.msra.mxu1 %v8783_v52 }
 0x559   :  { %2979 = vmatpush.msrb.mxu2 %v8789_v54  ;;  %2999 = vmatpush.msrb.mxu3 %v8795_v23 }
 0x55a   :  { %2940 = vmatpush.msrb.mxu0 %v8801_v39  ;;  %2960 = vmatpush.msra.mxu1 %v8807_v57  ;;  %v8910_v57 = vld [vmem:[#allocation8 + $0x1c0] sm:$0xff] }
 0x55b   :  { %2980 = vmatpush.msrb.mxu2 %v8813_v61  ;;  %3000 = vmatpush.msrb.mxu3 %v8819_v49  ;;  %v8837_v61 = vld [vmem:[%s9625_s3 + $0x50] sm:$0xff]  ;;  %v8843_v49 = vld [vmem:[%s9625_s3 + $0x58] sm:$0xff]  ;;  %11293 = vst [vmem:[#allocation42_spill] sm:$0xff] %v8910_v57 }
 0x55c   :  { %2941 = vmatpush.msrb.mxu0 %v8825_v59  ;;  %2961 = vmatpush.msra.mxu1 %v8831_v32  ;;  %11279 = vst [vmem:[#allocation31_spill] sm:$0xff] %v8837_v61  ;;  %v8849_v59 = vld [vmem:[%s9625_s3 + $0x20] sm:$0xff]  ;;  %v8855_v32 = vld [vmem:[%s9625_s3 + $0x28] sm:$0xff] }
 0x55d   :  { %2981 = vmatpush.msrb.mxu2 %v8837_v61  ;;  %11280 = vst [vmem:[#allocation32_spill] sm:$0xff] %v8843_v49  ;;  %3001 = vmatpush.msrb.mxu3 %v8843_v49  ;;  %v8861_v61 = vld [vmem:[%s9625_s3 + $0x30] sm:$0xff]  ;;  %v8867_v49 = vld [vmem:[%s9625_s3 + $0x38] sm:$0xff] }
 0x55e   :  { %11281 = vst [vmem:[#allocation33_spill] sm:$0xff] %v8849_v59  ;;  %2942 = vmatpush.msrb.mxu0 %v8849_v59  ;;  %2962 = vmatpush.msra.mxu1 %v8855_v32  ;;  %v8873_v59 = vld [vmem:[%s9625_s3] sm:$0xff] }
 0x55f   :  { %11282 = vst [vmem:[#allocation68_spill] sm:$0xff] %v8855_v32  ;;  %2982 = vmatpush.msrb.mxu2 %v8861_v61  ;;  %3002 = vmatpush.msrb.mxu3 %v8867_v49  ;;  %v8879_v32 = vld [vmem:[%s9625_s3 + $0x8] sm:$0xff] }
 0x560   :  { %11283 = vst [vmem:[#allocation34_spill] sm:$0xff] %v8861_v61  ;;  %2943 = vmatpush.msrb.mxu0 %v8873_v59  ;;  %2963 = vmatpush.msra.mxu1 %v8879_v32  ;;  %v8885_v61 = vld [vmem:[%s9625_s3 + $0x10] sm:$0xff] }
 0x561   :  { %11284 = vst [vmem:[#allocation35_spill] sm:$0xff] %v8867_v49  ;;  %2983 = vmatpush.msrb.mxu2 %v8885_v61  ;;  %v8891_v49 = vld [vmem:[%s9625_s3 + $0x18] sm:$0xff]  ;;  %2944 = vmatmul.f32.vlgmr.msrb.gmra.mxu0 %v8588_v31 }
 0x562   :  { %11285 = vst [vmem:[#allocation36_spill] sm:$0xff] %v8873_v59  ;;  %3003 = vmatpush.msrb.mxu3 %v8891_v49  ;;  %2964 = vmatmul.f32.vlgmr.msra.gmra.mxu1 %v8588_v31  ;;  %v8904_v59 = vld [vmem:[#allocation8 + $0x1f0] sm:$0xff] }
 0x563   :  { %11286 = vst [vmem:[#allocation72_spill] sm:$0xff] %v8879_v32  ;;  %2984 = vmatmul.f32.vlgmr.msrb.gmra.mxu2 %v8588_v31  ;;  %3004 = vmatmul.f32.vlgmr.msrb.gmra.mxu3 %v8588_v31  ;;  %v8898_v32 = vld [vmem:[#allocation8 + $0x1e0] sm:$0xff]  ;;  %v8913_v31 = vld [vmem:[#allocation8 + $0x1c8] sm:$0xff] }
 0x564   :  { %11287 = vst [vmem:[#allocation37_spill] sm:$0xff] %v8885_v61  ;;  %3079 = vmatpush.msra.mxu0 %v8898_v32  ;;  %v8901_v61 = vld [vmem:[#allocation8 + $0x1e8] sm:$0xff]  ;;  %3119 = vmatpush.msra.mxu2 %v8904_v59 }
 0x565   :  { %11288 = vst [vmem:[#allocation38_spill] sm:$0xff] %v8891_v49  ;;  %3099 = vmatpush.msrb.mxu1 %v8901_v61  ;;  %v8907_v49 = vld [vmem:[#allocation8 + $0x1f8] sm:$0xff] }
 0x566   :  { %11289 = vst [vmem:[#allocation39_spill] sm:$0xff] %v8898_v32  ;;  %3139 = vmatpush.msra.mxu3 %v8907_v49  ;;  %3080 = vmatpush.msra.mxu0 %v8910_v57  ;;  %v8916_v32 = vld [vmem:[#allocation8 + $0x1d0] sm:$0xff] }
 0x567   :  { %11290 = vst [vmem:[#allocation76_spill] sm:$0xff] %v8901_v61  ;;  %3100 = vmatpush.msrb.mxu1 %v8913_v31  ;;  %3120 = vmatpush.msra.mxu2 %v8916_v32  ;;  %v8919_v61 = vld [vmem:[#allocation8 + $0x1d8] sm:$0xff]  ;;  %v8928_v57 = vld [vmem:[#allocation8 + $0x1b0] sm:$0xff] }
 0x568   :  { %11291 = vst [vmem:[#allocation40_spill] sm:$0xff] %v8904_v59  ;;  %3140 = vmatpush.msra.mxu3 %v8919_v61  ;;  %v8922_v59 = vld [vmem:[#allocation8 + $0x1a0] sm:$0xff] }
 0x569   :  { %11292 = vst [vmem:[#allocation41_spill] sm:$0xff] %v8907_v49  ;;  %3081 = vmatpush.msra.mxu0 %v8922_v59  ;;  %v8925_v49 = vld [vmem:[#allocation8 + $0x1a8] sm:$0xff]  ;;  %3121 = vmatpush.msra.mxu2 %v8928_v57 }
 0x56a   :  { %11294 = vst [vmem:[#allocation80_spill] sm:$0xff] %v8913_v31  ;;  %3101 = vmatpush.msrb.mxu1 %v8925_v49  ;;  %v8931_v31 = vld [vmem:[#allocation8 + $0x1b8] sm:$0xff] }
 0x56b   :  { %11295 = vst [vmem:[#allocation43_spill] sm:$0xff] %v8916_v32  ;;  %3141 = vmatpush.msra.mxu3 %v8931_v31  ;;  %v8934_v32 = vld [vmem:[#allocation8 + $0x180] sm:$0xff] }
 0x56c   :  { %11296 = vst [vmem:[#allocation44_spill] sm:$0xff] %v8919_v61  ;;  %3082 = vmatpush.msra.mxu0 %v8934_v32  ;;  %v8937_v61 = vld [vmem:[#allocation8 + $0x188] sm:$0xff] }
 0x56d   :  { %11297 = vst [vmem:[#allocation45_spill] sm:$0xff] %v8922_v59  ;;  %3102 = vmatpush.msrb.mxu1 %v8937_v61  ;;  %v8940_v59 = vld [vmem:[#allocation8 + $0x190] sm:$0xff] }
 0x56e   :  { %11298 = vst [vmem:[#allocation84_spill] sm:$0xff] %v8925_v49  ;;  %3122 = vmatpush.msra.mxu2 %v8940_v59  ;;  %v8943_v49 = vld [vmem:[#allocation8 + $0x198] sm:$0xff] }
 0x56f   :  { %11299 = vst [vmem:[#allocation46_spill] sm:$0xff] %v8928_v57  ;;  %3142 = vmatpush.msra.mxu3 %v8943_v49  ;;  %v8946_v57 = vld [vmem:[#allocation8 + $0x160] sm:$0xff] }
 0x570   :  { %11300 = vst [vmem:[#allocation47_spill] sm:$0xff] %v8931_v31  ;;  %3083 = vmatpush.msra.mxu0 %v8946_v57  ;;  %v8949_v31 = vld [vmem:[#allocation8 + $0x168] sm:$0xff] }
 0x571   :  { %11301 = vst [vmem:[#allocation48_spill] sm:$0xff] %v8934_v32  ;;  %3103 = vmatpush.msrb.mxu1 %v8949_v31  ;;  %v8952_v32 = vld [vmem:[#allocation8 + $0x170] sm:$0xff] }
 0x572   :  { %11302 = vst [vmem:[#allocation85_spill] sm:$0xff] %v8937_v61  ;;  %3123 = vmatpush.msra.mxu2 %v8952_v32  ;;  %v8955_v61 = vld [vmem:[#allocation8 + $0x178] sm:$0xff] }
 0x573   :  { %11303 = vst [vmem:[#allocation49_spill] sm:$0xff] %v8940_v59  ;;  %3143 = vmatpush.msra.mxu3 %v8955_v61  ;;  %v8958_v59 = vld [vmem:[#allocation8 + $0x140] sm:$0xff] }
 0x574   :  { %11304 = vst [vmem:[#allocation50_spill] sm:$0xff] %v8943_v49  ;;  %3084 = vmatpush.msra.mxu0 %v8958_v59  ;;  %v8961_v49 = vld [vmem:[#allocation8 + $0x148] sm:$0xff] }
 0x575   :  { %11305 = vst [vmem:[#allocation51_spill] sm:$0xff] %v8946_v57  ;;  %3104 = vmatpush.msrb.mxu1 %v8961_v49  ;;  %v8964_v57 = vld [vmem:[#allocation8 + $0x150] sm:$0xff] }
 0x576   :  { %11306 = vst [vmem:[#allocation86_spill] sm:$0xff] %v8949_v31  ;;  %3124 = vmatpush.msra.mxu2 %v8964_v57  ;;  %v8967_v31 = vld [vmem:[#allocation8 + $0x158] sm:$0xff] }
 0x577   :  { %11307 = vst [vmem:[#allocation52_spill] sm:$0xff] %v8952_v32  ;;  %3144 = vmatpush.msra.mxu3 %v8967_v31  ;;  %v8970_v32 = vld [vmem:[#allocation8 + $0x120] sm:$0xff] }
 0x578   :  { %11308 = vst [vmem:[#allocation53_spill] sm:$0xff] %v8955_v61  ;;  %3085 = vmatpush.msra.mxu0 %v8970_v32  ;;  %v8973_v61 = vld [vmem:[#allocation8 + $0x128] sm:$0xff] }
 0x579   :  { %11309 = vst [vmem:[#allocation54_spill] sm:$0xff] %v8958_v59  ;;  %3105 = vmatpush.msrb.mxu1 %v8973_v61  ;;  %v8976_v59 = vld [vmem:[#allocation8 + $0x130] sm:$0xff] }
 0x57a   :  { %11310 = vst [vmem:[#allocation87_spill] sm:$0xff] %v8961_v49  ;;  %3125 = vmatpush.msra.mxu2 %v8976_v59  ;;  %v8979_v49 = vld [vmem:[#allocation8 + $0x138] sm:$0xff] }
 0x57b   :  { %11311 = vst [vmem:[#allocation56_spill] sm:$0xff] %v8964_v57  ;;  %3145 = vmatpush.msra.mxu3 %v8979_v49  ;;  %v8982_v57 = vld [vmem:[#allocation8 + $0x100] sm:$0xff] }
 0x57c   :  { %11312 = vst [vmem:[#allocation57_spill] sm:$0xff] %v8967_v31  ;;  %3086 = vmatpush.msra.mxu0 %v8982_v57  ;;  %v8985_v31 = vld [vmem:[#allocation8 + $0x108] sm:$0xff] }
 0x57d   :  { %11313 = vst [vmem:[#allocation58_spill] sm:$0xff] %v8970_v32  ;;  %3106 = vmatpush.msrb.mxu1 %v8985_v31  ;;  %v8988_v32 = vld [vmem:[#allocation8 + $0x110] sm:$0xff] }
 0x57e   :  { %11314 = vst [vmem:[#allocation89_spill] sm:$0xff] %v8973_v61  ;;  %3126 = vmatpush.msra.mxu2 %v8988_v32  ;;  %v8991_v61 = vld [vmem:[#allocation8 + $0x118] sm:$0xff] }
 0x57f   :  { %11315 = vst [vmem:[#allocation59_spill] sm:$0xff] %v8976_v59  ;;  %3146 = vmatpush.msra.mxu3 %v8991_v61  ;;  %v8994_v59 = vld [vmem:[#allocation8 + $0xe0] sm:$0xff] }
 0x580   :  { %11316 = vst [vmem:[#allocation60_spill] sm:$0xff] %v8979_v49  ;;  %3087 = vmatpush.msra.mxu0 %v8994_v59  ;;  %v8997_v49 = vld [vmem:[#allocation8 + $0xe8] sm:$0xff] }
 0x581   :  { %11317 = vst [vmem:[#allocation61_spill] sm:$0xff] %v8982_v57  ;;  %3107 = vmatpush.msrb.mxu1 %v8997_v49  ;;  %v9000_v57 = vld [vmem:[#allocation8 + $0xf0] sm:$0xff] }
 0x582   :  { %11318 = vst [vmem:[#allocation90_spill] sm:$0xff] %v8985_v31  ;;  %3127 = vmatpush.msra.mxu2 %v9000_v57  ;;  %v9003_v31 = vld [vmem:[#allocation8 + $0xf8] sm:$0xff] }
 0x583   :  { %11319 = vst [vmem:[#allocation62_spill] sm:$0xff] %v8988_v32  ;;  %3147 = vmatpush.msra.mxu3 %v9003_v31  ;;  %v9006_v32 = vld [vmem:[#allocation8 + $0xc0] sm:$0xff] }
 0x584   :  { %11320 = vst [vmem:[#allocation63_spill] sm:$0xff] %v8991_v61  ;;  %3088 = vmatpush.msra.mxu0 %v9006_v32  ;;  %v9009_v61 = vld [vmem:[#allocation8 + $0xc8] sm:$0xff] }
 0x585   :  { %11321 = vst [vmem:[#allocation64_spill] sm:$0xff] %v8994_v59  ;;  %3108 = vmatpush.msrb.mxu1 %v9009_v61  ;;  %v9012_v59 = vld [vmem:[#allocation8 + $0xd0] sm:$0xff] }
 0x586   :  { %11322 = vst [vmem:[#allocation91_spill] sm:$0xff] %v8997_v49  ;;  %3128 = vmatpush.msra.mxu2 %v9012_v59  ;;  %v9015_v49 = vld [vmem:[#allocation8 + $0xd8] sm:$0xff] }
 0x587   :  { %11323 = vst [vmem:[#allocation66_spill] sm:$0xff] %v9000_v57  ;;  %3148 = vmatpush.msra.mxu3 %v9015_v49  ;;  %v9018_v57 = vld [vmem:[#allocation8 + $0xa0] sm:$0xff] }
 0x588   :  { %11324 = vst [vmem:[#allocation67_spill] sm:$0xff] %v9003_v31  ;;  %3089 = vmatpush.msra.mxu0 %v9018_v57  ;;  %v9021_v31 = vld [vmem:[#allocation8 + $0xa8] sm:$0xff] }
 0x589   :  { %11325 = vst [vmem:[#allocation69_spill] sm:$0xff] %v9006_v32  ;;  %3109 = vmatpush.msrb.mxu1 %v9021_v31  ;;  %v9024_v32 = vld [vmem:[#allocation8 + $0xb0] sm:$0xff] }
 0x58a   :  { %11326 = vst [vmem:[#allocation92_spill] sm:$0xff] %v9009_v61  ;;  %3129 = vmatpush.msra.mxu2 %v9024_v32  ;;  %v9027_v61 = vld [vmem:[#allocation8 + $0xb8] sm:$0xff] }
 0x58b   :  { %11327 = vst [vmem:[#allocation70_spill] sm:$0xff] %v9012_v59  ;;  %3149 = vmatpush.msra.mxu3 %v9027_v61  ;;  %v9030_v59 = vld [vmem:[#allocation8 + $0x80] sm:$0xff] }
 0x58c   :  { %11328 = vst [vmem:[#allocation71_spill] sm:$0xff] %v9015_v49  ;;  %3090 = vmatpush.msra.mxu0 %v9030_v59  ;;  %v9033_v49 = vld [vmem:[#allocation8 + $0x88] sm:$0xff] }
 0x58d   :  { %11329 = vst [vmem:[#allocation73_spill] sm:$0xff] %v9018_v57  ;;  %3110 = vmatpush.msrb.mxu1 %v9033_v49  ;;  %v9036_v57 = vld [vmem:[#allocation8 + $0x90] sm:$0xff] }
 0x58e   :  { %11330 = vst [vmem:[#allocation93_spill] sm:$0xff] %v9021_v31  ;;  %3130 = vmatpush.msra.mxu2 %v9036_v57  ;;  %v9039_v31 = vld [vmem:[#allocation8 + $0x98] sm:$0xff] }
 0x58f   :  { %11331 = vst [vmem:[#allocation74_spill] sm:$0xff] %v9024_v32  ;;  %3150 = vmatpush.msra.mxu3 %v9039_v31  ;;  %v9042_v32 = vld [vmem:[#allocation8 + $0x60] sm:$0xff] }
 0x590   :  { %11332 = vst [vmem:[#allocation75_spill] sm:$0xff] %v9027_v61  ;;  %3091 = vmatpush.msra.mxu0 %v9042_v32  ;;  %v9045_v61 = vld [vmem:[#allocation8 + $0x68] sm:$0xff] }
 0x591   :  { %11333 = vst [vmem:[#allocation77_spill] sm:$0xff] %v9030_v59  ;;  %3111 = vmatpush.msrb.mxu1 %v9045_v61  ;;  %v9048_v59 = vld [vmem:[#allocation8 + $0x70] sm:$0xff] }
 0x592   :  { %11334 = vst [vmem:[#allocation95_spill] sm:$0xff] %v9033_v49  ;;  %3131 = vmatpush.msra.mxu2 %v9048_v59  ;;  %v9051_v49 = vld [vmem:[#allocation8 + $0x78] sm:$0xff] }
 0x593   :  { %11335 = vst [vmem:[#allocation79_spill] sm:$0xff] %v9036_v57  ;;  %3151 = vmatpush.msra.mxu3 %v9051_v49  ;;  %v9054_v57 = vld [vmem:[#allocation8 + $0x40] sm:$0xff] }
 0x594   :  { %11336 = vst [vmem:[#allocation81_spill] sm:$0xff] %v9039_v31  ;;  %3092 = vmatpush.msra.mxu0 %v9054_v57  ;;  %v9057_v31 = vld [vmem:[#allocation8 + $0x48] sm:$0xff] }
 0x595   :  { %11337 = vst [vmem:[#allocation82_spill] sm:$0xff] %v9042_v32  ;;  %3112 = vmatpush.msrb.mxu1 %v9057_v31  ;;  %v9060_v32 = vld [vmem:[#allocation8 + $0x50] sm:$0xff] }
 0x596   :  { %11338 = vst [vmem:[#allocation96_spill] sm:$0xff] %v9045_v61  ;;  %3132 = vmatpush.msra.mxu2 %v9060_v32  ;;  %v9063_v61 = vld [vmem:[#allocation8 + $0x58] sm:$0xff] }
 0x597   :  { %11339 = vst [vmem:[#allocation83_spill] sm:$0xff] %v9048_v59  ;;  %3152 = vmatpush.msra.mxu3 %v9063_v61  ;;  %v9066_v59 = vld [vmem:[#allocation8 + $0x20] sm:$0xff] }
 0x598   :  { %11340 = vst [vmem:[#allocation100_spill] sm:$0xff] %v9051_v49  ;;  %3093 = vmatpush.msra.mxu0 %v9066_v59  ;;  %v9069_v49 = vld [vmem:[#allocation8 + $0x28] sm:$0xff] }
 0x599   :  { %11341 = vst [vmem:[#allocation101_spill] sm:$0xff] %v9054_v57  ;;  %3113 = vmatpush.msrb.mxu1 %v9069_v49  ;;  %v9072_v57 = vld [vmem:[#allocation8 + $0x30] sm:$0xff] }
 0x59a   :  { %11342 = vst [vmem:[#allocation102_spill] sm:$0xff] %v9057_v31  ;;  %3133 = vmatpush.msra.mxu2 %v9072_v57  ;;  %v9075_v31 = vld [vmem:[#allocation8 + $0x38] sm:$0xff] }
 0x59b   :  { %11343 = vst [vmem:[#allocation103_spill] sm:$0xff] %v9060_v32  ;;  %3153 = vmatpush.msra.mxu3 %v9075_v31  ;;  %v9078_v32 = vld [vmem:[#allocation8] sm:$0xff] }
 0x59c   :  { %11344 = vst [vmem:[#allocation116_spill] sm:$0xff] %v9063_v61  ;;  %3094 = vmatpush.msra.mxu0 %v9078_v32  ;;  %v9081_v61 = vld [vmem:[#allocation8 + $0x8] sm:$0xff] }
 0x59d   :  { %11345 = vst [vmem:[#allocation117_spill] sm:$0xff] %v9066_v59  ;;  %3114 = vmatpush.msrb.mxu1 %v9081_v61  ;;  %v9084_v59 = vld [vmem:[#allocation8 + $0x10] sm:$0xff] }
 0x59e   :  { %11346 = vst [vmem:[#allocation119_spill] sm:$0xff] %v9069_v49  ;;  %3134 = vmatpush.msra.mxu2 %v9084_v59  ;;  %v9087_v49 = vld [vmem:[#allocation8 + $0x18] sm:$0xff] }
 0x59f   :  { %11347 = vst [vmem:[#allocation120_spill] sm:$0xff] %v9072_v57  ;;  %3154 = vmatpush.msra.mxu3 %v9087_v49  ;;  %v9090_v57 = vld [vmem:[#allocation6 + $0x1e0] sm:$0xff] }
 0x5a0   :  { %11348 = vst [vmem:[#allocation121_spill] sm:$0xff] %v9075_v31  ;;  %3159 = vmatpush.msrb.mxu0 %v9090_v57  ;;  %v9093_v31 = vld [vmem:[#allocation6 + $0x1e8] sm:$0xff] }
 0x5a1   :  { %11349 = vst [vmem:[#allocation122_spill] sm:$0xff] %v9078_v32  ;;  %3179 = vmatpush.msra.mxu1 %v9093_v31  ;;  %v9096_v32 = vld [vmem:[#allocation6 + $0x1f0] sm:$0xff] }
 0x5a2   :  { %11350 = vst [vmem:[#allocation123_spill] sm:$0xff] %v9081_v61  ;;  %3199 = vmatpush.msrb.mxu2 %v9096_v32  ;;  %v9099_v61 = vld [vmem:[#allocation6 + $0x1f8] sm:$0xff] }
 0x5a3   :  { %11351 = vst [vmem:[#allocation124_spill] sm:$0xff] %v9084_v59  ;;  %3219 = vmatpush.msrb.mxu3 %v9099_v61  ;;  %v9102_v59 = vld [vmem:[#allocation6 + $0x1c0] sm:$0xff] }
 0x5a4   :  { %11352 = vst [vmem:[#allocation125_spill] sm:$0xff] %v9087_v49  ;;  %3160 = vmatpush.msrb.mxu0 %v9102_v59  ;;  %v9105_v49 = vld [vmem:[#allocation6 + $0x1c8] sm:$0xff] }
 0x5a5   :  { %11353 = vst [vmem:[#allocation126_spill] sm:$0xff] %v9090_v57  ;;  %3180 = vmatpush.msra.mxu1 %v9105_v49  ;;  %v9108_v57 = vld [vmem:[#allocation6 + $0x1d0] sm:$0xff] }
 0x5a6   :  { %11354 = vst [vmem:[#allocation127_spill] sm:$0xff] %v9093_v31  ;;  %3200 = vmatpush.msrb.mxu2 %v9108_v57  ;;  %v9111_v31 = vld [vmem:[#allocation6 + $0x1d8] sm:$0xff] }
 0x5a7   :  { %11355 = vst [vmem:[#allocation128_spill] sm:$0xff] %v9096_v32  ;;  %3220 = vmatpush.msrb.mxu3 %v9111_v31  ;;  %v9114_v32 = vld [vmem:[#allocation6 + $0x1a0] sm:$0xff] }
 0x5a8   :  { %11356 = vst [vmem:[#allocation129_spill] sm:$0xff] %v9099_v61  ;;  %3161 = vmatpush.msrb.mxu0 %v9114_v32  ;;  %v9117_v61 = vld [vmem:[#allocation6 + $0x1a8] sm:$0xff] }
 0x5a9   :  { %11357 = vst [vmem:[#allocation131_spill] sm:$0xff] %v9102_v59  ;;  %3181 = vmatpush.msra.mxu1 %v9117_v61  ;;  %v9120_v59 = vld [vmem:[#allocation6 + $0x1b0] sm:$0xff] }
 0x5aa   :  { %11358 = vst [vmem:[#allocation133_spill] sm:$0xff] %v9105_v49  ;;  %3201 = vmatpush.msrb.mxu2 %v9120_v59  ;;  %v9123_v49 = vld [vmem:[#allocation6 + $0x1b8] sm:$0xff] }
 0x5ab   :  { %11359 = vst [vmem:[#allocation134_spill] sm:$0xff] %v9108_v57  ;;  %3221 = vmatpush.msrb.mxu3 %v9123_v49  ;;  %v9126_v57 = vld [vmem:[#allocation6 + $0x180] sm:$0xff] }
 0x5ac   :  { %11360 = vst [vmem:[#allocation135_spill] sm:$0xff] %v9111_v31  ;;  %3162 = vmatpush.msrb.mxu0 %v9126_v57  ;;  %v9129_v31 = vld [vmem:[#allocation6 + $0x188] sm:$0xff] }
 0x5ad   :  { %11361 = vst [vmem:[#allocation136_spill] sm:$0xff] %v9114_v32  ;;  %3182 = vmatpush.msra.mxu1 %v9129_v31  ;;  %v9132_v32 = vld [vmem:[#allocation6 + $0x190] sm:$0xff] }
 0x5ae   :  { %11362 = vst [vmem:[#allocation137_spill] sm:$0xff] %v9117_v61  ;;  %3202 = vmatpush.msrb.mxu2 %v9132_v32  ;;  %v9135_v61 = vld [vmem:[#allocation6 + $0x198] sm:$0xff] }
 0x5af   :  { %11363 = vst [vmem:[#allocation138_spill] sm:$0xff] %v9120_v59  ;;  %3222 = vmatpush.msrb.mxu3 %v9135_v61  ;;  %v9138_v59 = vld [vmem:[#allocation6 + $0x160] sm:$0xff] }
 0x5b0   :  { %11364 = vst [vmem:[#allocation139_spill] sm:$0xff] %v9123_v49  ;;  %3163 = vmatpush.msrb.mxu0 %v9138_v59  ;;  %v9141_v49 = vld [vmem:[#allocation6 + $0x168] sm:$0xff] }
 0x5b1   :  { %11365 = vst [vmem:[#allocation141_spill] sm:$0xff] %v9126_v57  ;;  %3183 = vmatpush.msra.mxu1 %v9141_v49  ;;  %v9144_v57 = vld [vmem:[#allocation6 + $0x170] sm:$0xff] }
 0x5b2   :  { %11366 = vst [vmem:[#allocation142_spill] sm:$0xff] %v9129_v31  ;;  %3203 = vmatpush.msrb.mxu2 %v9144_v57  ;;  %v9147_v31 = vld [vmem:[#allocation6 + $0x178] sm:$0xff] }
 0x5b3   :  { %11367 = vst [vmem:[#allocation143_spill] sm:$0xff] %v9132_v32  ;;  %3223 = vmatpush.msrb.mxu3 %v9147_v31  ;;  %v9150_v32 = vld [vmem:[#allocation6 + $0x140] sm:$0xff] }
 0x5b4   :  { %11368 = vst [vmem:[#allocation144_spill] sm:$0xff] %v9135_v61  ;;  %3164 = vmatpush.msrb.mxu0 %v9150_v32  ;;  %v9153_v61 = vld [vmem:[#allocation6 + $0x148] sm:$0xff] }
 0x5b5   :  { %11369 = vst [vmem:[#allocation145_spill] sm:$0xff] %v9138_v59  ;;  %3184 = vmatpush.msra.mxu1 %v9153_v61  ;;  %v9156_v59 = vld [vmem:[#allocation6 + $0x150] sm:$0xff] }
 0x5b6   :  { %11370 = vst [vmem:[#allocation146_spill] sm:$0xff] %v9141_v49  ;;  %3204 = vmatpush.msrb.mxu2 %v9156_v59  ;;  %v9159_v49 = vld [vmem:[#allocation6 + $0x158] sm:$0xff] }
 0x5b7   :  { %11371 = vst [vmem:[#allocation147_spill] sm:$0xff] %v9144_v57  ;;  %3224 = vmatpush.msrb.mxu3 %v9159_v49  ;;  %v9162_v57 = vld [vmem:[#allocation6 + $0x120] sm:$0xff] }
 0x5b8   :  { %11372 = vst [vmem:[#allocation148_spill] sm:$0xff] %v9147_v31  ;;  %3165 = vmatpush.msrb.mxu0 %v9162_v57  ;;  %v9165_v31 = vld [vmem:[#allocation6 + $0x128] sm:$0xff] }
 0x5b9   :  { %11373 = vst [vmem:[#allocation149_spill] sm:$0xff] %v9150_v32  ;;  %3185 = vmatpush.msra.mxu1 %v9165_v31  ;;  %v9168_v32 = vld [vmem:[#allocation6 + $0x130] sm:$0xff] }
 0x5ba   :  { %11374 = vst [vmem:[#allocation150_spill] sm:$0xff] %v9153_v61  ;;  %3205 = vmatpush.msrb.mxu2 %v9168_v32  ;;  %v9171_v61 = vld [vmem:[#allocation6 + $0x138] sm:$0xff] }
 0x5bb   :  { %11375 = vst [vmem:[#allocation151_spill] sm:$0xff] %v9156_v59  ;;  %3225 = vmatpush.msrb.mxu3 %v9171_v61  ;;  %v9174_v59 = vld [vmem:[#allocation6 + $0x100] sm:$0xff]  ;;  %v2737_v39 = vpop.f32.mrf.mxu1 }
 0x5bc   :  { %11376 = vst [vmem:[#allocation152_spill] sm:$0xff] %v9159_v49  ;;  %3166 = vmatpush.msrb.mxu0 %v9174_v59  ;;  %v9177_v49 = vld [vmem:[#allocation6 + $0x108] sm:$0xff] }
 0x5bd   :  { %11377 = vst [vmem:[#allocation154_spill] sm:$0xff] %v9162_v57  ;;  %3186 = vmatpush.msra.mxu1 %v9177_v49  ;;  %v9180_v57 = vld [vmem:[#allocation6 + $0x110] sm:$0xff] }
 0x5be   :  { %11378 = vst [vmem:[#allocation156_spill] sm:$0xff] %v9165_v31  ;;  %3206 = vmatpush.msrb.mxu2 %v9180_v57  ;;  %v9183_v31 = vld [vmem:[#allocation6 + $0x118] sm:$0xff] }
 0x5bf   :  { %11379 = vst [vmem:[#allocation157_spill] sm:$0xff] %v9168_v32  ;;  %3226 = vmatpush.msrb.mxu3 %v9183_v31  ;;  %v9186_v32 = vld [vmem:[#allocation6 + $0xe0] sm:$0xff] }
 0x5c0   :  { %11380 = vst [vmem:[#allocation158_spill] sm:$0xff] %v9171_v61  ;;  %3167 = vmatpush.msrb.mxu0 %v9186_v32  ;;  %v9189_v61 = vld [vmem:[#allocation6 + $0xe8] sm:$0xff] }
 0x5c1   :  { %11381 = vst [vmem:[#allocation159_spill] sm:$0xff] %v9174_v59  ;;  %3187 = vmatpush.msra.mxu1 %v9189_v61  ;;  %v9192_v59 = vld [vmem:[#allocation6 + $0xf0] sm:$0xff] }
 0x5c2   :  { %11382 = vst [vmem:[#allocation160_spill] sm:$0xff] %v9177_v49  ;;  %3207 = vmatpush.msrb.mxu2 %v9192_v59  ;;  %v9195_v49 = vld [vmem:[#allocation6 + $0xf8] sm:$0xff]  ;;  %v2777_v23 = vpop.f32.mrf.mxu3 }
 0x5c3   :  { %11383 = vst [vmem:[#allocation161_spill] sm:$0xff] %v9180_v57  ;;  %3227 = vmatpush.msrb.mxu3 %v9195_v49  ;;  %v9198_v57 = vld [vmem:[#allocation6 + $0xc0] sm:$0xff] }
 0x5c4   :  { %11384 = vst [vmem:[#allocation162_spill] sm:$0xff] %v9183_v31  ;;  %3168 = vmatpush.msrb.mxu0 %v9198_v57  ;;  %v9201_v31 = vld [vmem:[#allocation6 + $0xc8] sm:$0xff] }
 0x5c5   :  { %11385 = vst [vmem:[#allocation164_spill] sm:$0xff] %v9186_v32  ;;  %3188 = vmatpush.msra.mxu1 %v9201_v31  ;;  %v9204_v32 = vld [vmem:[#allocation6 + $0xd0] sm:$0xff] }
 0x5c6   :  { %11386 = vst [vmem:[#allocation165_spill] sm:$0xff] %v9189_v61  ;;  %3208 = vmatpush.msrb.mxu2 %v9204_v32  ;;  %v9207_v61 = vld [vmem:[#allocation6 + $0xd8] sm:$0xff]  ;;  %v2817_v54 = vpop.f32.mrf.mxu1 }
 0x5c7   :  { %11387 = vst [vmem:[#allocation166_spill] sm:$0xff] %v9192_v59  ;;  %3228 = vmatpush.msrb.mxu3 %v9207_v61  ;;  %v9210_v59 = vld [vmem:[#allocation6 + $0xa0] sm:$0xff]  ;;  %v2818_v63 = vadd.f32 %v2817_v54, %v2737_v39 }
 0x5c8   :  { %11388 = vst [vmem:[#allocation167_spill] sm:$0xff] %v9195_v49  ;;  %3169 = vmatpush.msrb.mxu0 %v9210_v59  ;;  %v9213_v49 = vld [vmem:[#allocation6 + $0xa8] sm:$0xff] }
 0x5c9   :  { %11389 = vst [vmem:[#allocation168_spill] sm:$0xff] %v9198_v57  ;;  %3189 = vmatpush.msra.mxu1 %v9213_v49  ;;  %v9216_v57 = vld [vmem:[#allocation6 + $0xb0] sm:$0xff]  ;;  %v2861_v6 = vadd.f32 %v2818_v63, %v11245_v16 }
 0x5ca   :  { %11390 = vst [vmem:[#allocation169_spill] sm:$0xff] %v9201_v31  ;;  %3209 = vmatpush.msrb.mxu2 %v9216_v57  ;;  %v9219_v31 = vld [vmem:[#allocation6 + $0xb8] sm:$0xff] }
 0x5cb   :  { %11391 = vst [vmem:[#allocation170_spill] sm:$0xff] %v9204_v32  ;;  %3229 = vmatpush.msrb.mxu3 %v9219_v31  ;;  %v9222_v32 = vld [vmem:[#allocation6 + $0x80] sm:$0xff]  ;;  %v3854_v15 = vmul.f32 -1.442695, %v2861_v6 }
 0x5cc   :  { %11392 = vst [vmem:[#allocation171_spill] sm:$0xff] %v9207_v61  ;;  %3170 = vmatpush.msrb.mxu0 %v9222_v32  ;;  %v9225_v61 = vld [vmem:[#allocation6 + $0x88] sm:$0xff] }
 0x5cd   :  { %11393 = vst [vmem:[#allocation172_spill] sm:$0xff] %v9210_v59  ;;  %3190 = vmatpush.msra.mxu1 %v9225_v61  ;;  %v9228_v59 = vld [vmem:[#allocation6 + $0x90] sm:$0xff] }
 0x5ce   :  { %11394 = vst [vmem:[#allocation173_spill] sm:$0xff] %v9213_v49  ;;  %3210 = vmatpush.msrb.mxu2 %v9228_v59  ;;  %v9231_v49 = vld [vmem:[#allocation6 + $0x98] sm:$0xff] }
 0x5cf   :  { %11395 = vst [vmem:[#allocation174_spill] sm:$0xff] %v9216_v57  ;;  %3230 = vmatpush.msrb.mxu3 %v9231_v49  ;;  %v9234_v57 = vld [vmem:[#allocation6 + $0x60] sm:$0xff] }
 0x5d0   :  { %11396 = vst [vmem:[#allocation176_spill] sm:$0xff] %v9219_v31  ;;  %3171 = vmatpush.msrb.mxu0 %v9234_v57  ;;  %v9237_v31 = vld [vmem:[#allocation6 + $0x68] sm:$0xff] }
 0x5d1   :  { %11397 = vst [vmem:[#allocation178_spill] sm:$0xff] %v9222_v32  ;;  %3191 = vmatpush.msra.mxu1 %v9237_v31  ;;  %v9240_v32 = vld [vmem:[#allocation6 + $0x70] sm:$0xff] }
 0x5d2   :  { %11398 = vst [vmem:[#allocation179_spill] sm:$0xff] %v9225_v61  ;;  %3211 = vmatpush.msrb.mxu2 %v9240_v32  ;;  %v9243_v61 = vld [vmem:[#allocation6 + $0x78] sm:$0xff] }
 0x5d3   :  { %11399 = vst [vmem:[#allocation104_spill] sm:$0xff] %v9228_v59  ;;  %3231 = vmatpush.msrb.mxu3 %v9243_v61  ;;  %v9246_v59 = vld [vmem:[#allocation6 + $0x40] sm:$0xff] }
 0x5d4   :  { %11400 = vst [vmem:[#allocation106_spill] sm:$0xff] %v9231_v49  ;;  %3172 = vmatpush.msrb.mxu0 %v9246_v59  ;;  %v9249_v49 = vld [vmem:[#allocation6 + $0x48] sm:$0xff] }
 0x5d5   :  { %11401 = vst [vmem:[#allocation105_spill] sm:$0xff] %v9234_v57  ;;  %3192 = vmatpush.msra.mxu1 %v9249_v49  ;;  %v9252_v57 = vld [vmem:[#allocation6 + $0x50] sm:$0xff] }
 0x5d6   :  { %11402 = vst [vmem:[#allocation99_spill] sm:$0xff] %v9237_v31  ;;  %3212 = vmatpush.msrb.mxu2 %v9252_v57  ;;  %v9255_v31 = vld [vmem:[#allocation6 + $0x58] sm:$0xff] }
 0x5d7   :  { %11403 = vst [vmem:[#allocation182_spill] sm:$0xff] %v9240_v32  ;;  %3232 = vmatpush.msrb.mxu3 %v9255_v31  ;;  %v9258_v32 = vld [vmem:[#allocation6 + $0x20] sm:$0xff] }
 0x5d8   :  { %11404 = vst [vmem:[#allocation183_spill] sm:$0xff] %v9243_v61  ;;  %3173 = vmatpush.msrb.mxu0 %v9258_v32  ;;  %v9261_v61 = vld [vmem:[#allocation6 + $0x28] sm:$0xff] }
 0x5d9   :  { %11405 = vst [vmem:[#allocation184_spill] sm:$0xff] %v9246_v59  ;;  %3193 = vmatpush.msra.mxu1 %v9261_v61  ;;  %v9264_v59 = vld [vmem:[#allocation6 + $0x30] sm:$0xff] }
 0x5da   :  { %11406 = vst [vmem:[#allocation185_spill] sm:$0xff] %v9249_v49  ;;  %3213 = vmatpush.msrb.mxu2 %v9264_v59  ;;  %v9267_v49 = vld [vmem:[#allocation6 + $0x38] sm:$0xff] }
 0x5db   :  { %11407 = vst [vmem:[#allocation186_spill] sm:$0xff] %v9252_v57  ;;  %3233 = vmatpush.msrb.mxu3 %v9267_v49  ;;  %v9270_v57 = vld [vmem:[#allocation6] sm:$0xff] }
 0x5dc   :  { %11408 = vst [vmem:[#allocation187_spill] sm:$0xff] %v9255_v31  ;;  %3174 = vmatpush.msrb.mxu0 %v9270_v57  ;;  %v9273_v31 = vld [vmem:[#allocation6 + $0x8] sm:$0xff] }
 0x5dd   :  { %11409 = vst [vmem:[#allocation188_spill] sm:$0xff] %v9258_v32  ;;  %3194 = vmatpush.msra.mxu1 %v9273_v31  ;;  %v9276_v32 = vld [vmem:[#allocation6 + $0x10] sm:$0xff] }
 0x5de   :  { %11410 = vst [vmem:[#allocation189_spill] sm:$0xff] %v9261_v61  ;;  %3214 = vmatpush.msrb.mxu2 %v9276_v32  ;;  %v9279_v61 = vld [vmem:[#allocation6 + $0x18] sm:$0xff] }
 0x5df   :  { %11411 = vst [vmem:[#allocation190_spill] sm:$0xff] %v9264_v59  ;;  %3234 = vmatpush.msrb.mxu3 %v9279_v61  ;;  %v2717_v59 = vpop.f32.mrf.mxu0 }
 0x5e0   :  { %11412 = vst [vmem:[#allocation191_spill] sm:$0xff] %v9267_v49 }
 0x5e1   :  { %11413 = vst [vmem:[#allocation192_spill] sm:$0xff] %v9270_v57 }
 0x5e2   :  { %11414 = vst [vmem:[#allocation193_spill] sm:$0xff] %v9273_v31  ;;  %v2757_v31 = vpop.f32.mrf.mxu2 }
 0x5e3   :  { %11415 = vst [vmem:[#allocation194_spill] sm:$0xff] %v9276_v32  ;;  %v2857_v32 = vpop.f32.mrf.mxu3 }
 0x5e4   :  { %11416 = vst [vmem:[#allocation195_spill] sm:$0xff] %v9279_v61  ;;  %v2858_v37 = vadd.f32 %v2857_v32, %v2777_v23 }
 0x5e6   :  { %v2863_v61 = vadd.f32 %v2858_v37, %v11246_v53 }
 0x5e7   :  { %v2797_v49 = vpop.f32.mrf.mxu0 }
 0x5e8   :  { %v2798_v52 = vadd.f32 %v2797_v49, %v2717_v59  ;;  %v3855_v62 = vmul.f32 -1.442695, %v2863_v61  ;;  %v11417_v61 = vld [vmem:[#allocation94_spill] sm:$0xff]  ;;  %v11418_v49 = vld [vmem:[#allocation140_spill] sm:$0xff] }
 0x5ea   :  { %v2860_v57 = vadd.f32 %v2798_v52, %v11244_v47  ;;  %v2837_v44 = vpop.f32.mrf.mxu2 }
 0x5eb   :  { %v2838_v52 = vadd.f32 %v2837_v44, %v2757_v31 }
 0x5ec   :  { %v3853_v40 = vmul.f32 -1.442695, %v2860_v57 }
 0x5ed   :  { %v2862_v54 = vadd.f32 %v2838_v52, %v11252_v7 }
 0x5ee   :  { %4058 = vpow2.f32 %v3853_v40 }
 0x5ef   :  { %4060 = vpow2.f32 %v3854_v15 }
 0x5f0   :  { %4062 = vpow2.f32 %v3855_v62  ;;  %v2965_v62 = vpop.f32.mrf.mxu1 }
 0x5f1   :  { %v3009_v31 = vadd.f32 %v2965_v62, %v11418_v49 }
 0x5f4   :  { %v4059_v34 = vpop.eup %4058 }
 0x5f5   :  { %v4061_v36 = vpop.eup %4060  ;;  %v2867_v38 = vadd.f32 1.0, %v4059_v34  ;;  %v2945_v34 = vpop.f32.mrf.mxu0 }
 0x5f6   :  { %v2886_v59 = vadd.f32 1.0, %v4061_v36  ;;  %v4063_v63 = vpop.eup %4062  ;;  %v3008_v44 = vadd.f32 %v2945_v34, %v11417_v61 }
 0x5f7   :  { %4064 = vrcp.f32 %v2867_v38  ;;  %v9286_v6 = vadd.f32 1.0, %v4063_v63  ;;  %v2879_v39 = vand.u32 2147483648, %v2867_v38  ;;  %v2877_v57 = vand.u32 2147483647, %v2867_v38 }
 0x5f8   :  { %4066 = vrcp.f32 %v2886_v59  ;;  %v2898_v52 = vand.u32 2147483648, %v2886_v59  ;;  %v2896_v7 = vand.u32 2147483647, %v2886_v59  ;;  %v3012_v16 = vadd.f32 %v3008_v44, %v11249_v42 }
 0x5f9   :  { %4068 = vrcp.f32 %v9286_v6  ;;  %vm2892_vm8 = vweird.f32 %v2886_v59  ;;  %vm2873_vm9 = vweird.f32 %v2867_v38  ;;  %vm2878_vm12 = vcmp.eq.f32.partialorder %v2877_v57, 8.507059e+37 }
 0x5fa   :  { %4070 = vtanh.f32 %v2862_v54  ;;  %v3856_v62 = vmul.f32 -1.442695, %v3012_v16  ;;  %v2899_v49 = vor.u32 1.1754944e-38, %v2898_v52  ;;  %vm2897_vm13 = vcmp.eq.f32.partialorder %v2896_v7, 8.507059e+37 }
 0x5fb   :  { %vm2912_vm15 = vweird.f32 %v9286_v6 }
 0x5fc   :  { %4072 = vpow2.f32 %v3856_v62  ;;  %v11420_v62 = vld [vmem:[#allocation153_spill] sm:$0xff] }
 0x5fd   :  { %v4065_v40 = vpop.eup %4064 }
 0x5fe   :  { %v4067_v15 = vpop.eup %4066  ;;  %v2869_v32 = vmul.f32 %v4065_v40, %v2867_v38  ;;  %vm2874_vm6 = vweird.f32 %v4065_v40 }
 0x5ff   :  { %v2888_v37 = vmul.f32 %v4067_v15, %v2886_v59  ;;  %vm2893_vm7 = vweird.f32 %v4067_v15  ;;  %v4069_v47 = vpop.eup %4068  ;;  %vm2875_vm10 = vmor %vm2873_vm9, %vm2874_vm6  ;;  %v3005_v59 = vpop.f32.mrf.mxu3 }
 0x600   :  { %v2870_v23 = vsub.f32 1.0, %v2869_v32  ;;  %v3013_v32 = vadd.f32 %v3009_v31, %v11250_v20  ;;  %v2908_v34 = vmul.f32 %v4069_v47, %v9286_v6  ;;  %vm2894_vm11 = vmor %vm2892_vm8, %vm2893_vm7  ;;  %v11419_v20 = vld [vmem:[#allocation155_spill] sm:$0xff]  ;;  %vm2913_vm14 = vweird.f32 %v4069_v47 }
 0x601   :  { %v2889_v36 = vsub.f32 1.0, %v2888_v37  ;;  %v2880_v37 = vor.u32 1.1754944e-38, %v2879_v39  ;;  %v3011_v16 = vadd.f32 %v3005_v59, %v11419_v20  ;;  %vm2914_vm0 = vmor %vm2912_vm15, %vm2913_vm14 }
 0x602   :  { %v2871_v63 = vmul.f32 %v4065_v40, %v2870_v23  ;;  %v3857_v61 = vmul.f32 -1.442695, %v3013_v32  ;;  %v4071_v23 = vpop.eup %4070  ;;  %v2909_v31 = vsub.f32 1.0, %v2908_v34 }
 0x603   :  { %v2890_v53 = vmul.f32 %v4067_v15, %v2889_v36  ;;  %v3015_v52 = vadd.f32 %v3011_v16, %v5992_v60  ;;  %v4073_v7 = vpop.eup %4072 }
 0x604   :  { %v2872_v54 = vadd.f32 %v4065_v40, %v2871_v63  ;;  %4074 = vpow2.f32 %v3857_v61  ;;  %v2910_v39 = vmul.f32 %v4069_v47, %v2909_v31  ;;  %v9302_v57 = vadd.f32 1.0, %v4073_v7 }
 0x605   :  { %v2891_v27 = vadd.f32 %v4067_v15, %v2890_v53 }
 0x606   :  { %v2876_v36 = vsel %vm2875_vm10, %v4065_v40, %v2872_v54  ;;  %v2911_v40 = vadd.f32 %v4069_v47, %v2910_v39  ;;  %v2985_v54 = vpop.f32.mrf.mxu2  ;;  %v3029_v7 = vand.u32 2147483647, %v9302_v57  ;;  %vm3025_vm4 = vweird.f32 %v9302_v57 }
 0x607   :  { %v2881_v44 = vsel %vm2878_vm12, %v2880_v37, %v2876_v36  ;;  %v2895_v42 = vsel %vm2894_vm11, %v4067_v15, %v2891_v27  ;;  %v2918_v27 = vand.u32 2147483648, %v9286_v6  ;;  %v3858_v15 = vmul.f32 -1.442695, %v3015_v52 }
 0x608   :  { %v2900_v63 = vsel %vm2897_vm13, %v2899_v49, %v2895_v42  ;;  %v2923_v38 = vmul.f32 %v4071_v23, %v2881_v44  ;;  %v2915_v37 = vsel %vm2914_vm0, %v4069_v47, %v2911_v40  ;;  %v3010_v61 = vadd.f32 %v2985_v54, %v11420_v62  ;;  %v11434_v54 = vld [vmem:[#allocation28_spill] sm:$0xff]  ;;  %v11437_v62 = vld [vmem:[#allocation98_spill] sm:$0xff] }
 0x609   :  { %v2922_v53 = vmul.f32 %v2900_v63, %v8460_v3  ;;  %v2916_v3 = vand.u32 2147483647, %v9286_v6  ;;  %v2919_v34 = vor.u32 1.1754944e-38, %v2918_v27  ;;  %v3031_v52 = vand.u32 2147483648, %v9302_v57 }
 0x60a   :  { %v4075_v42 = vpop.eup %4074  ;;  %v3014_v31 = vadd.f32 %v3010_v61, %v6044_v12  ;;  %vm3030_vm8 = vcmp.eq.f32.partialorder %v3029_v7, 8.507059e+37  ;;  %v11438_v61 = vld [vmem:[#allocation29_spill] sm:$0xff] }
 0x60b   :  { %v9296_v32 = vadd.f32 %v2923_v38, %v2922_v53  ;;  %v9305_v20 = vadd.f32 1.0, %v4075_v42  ;;  %vm2917_vm1 = vcmp.eq.f32.partialorder %v2916_v3, 8.507059e+37  ;;  %v4715_v53 = vld [vmem:[%s9625_s3 + $0x1e8] sm:$0xff]  ;;  %v11432_v3 = vld [vmem:[#allocation18_spill] sm:$0xff] }
 0x60c   :  { %v2920_v49 = vsel %vm2917_vm1, %v2919_v34, %v2915_v37  ;;  %v11435_v37 = vld [vmem:[#allocation25_spill] sm:$0xff]  ;;  %v11436_v34 = vld [vmem:[#allocation55_spill] sm:$0xff] }
 0x60d   :  { %4076 = vtanh.f32 %v9296_v32  ;;  %vm3044_vm5 = vweird.f32 %v9305_v20  ;;  %v11454_v7 = vld [vmem:[#allocation41_spill] sm:$0xff] }
 0x60e   :  { %4078 = vpow2.f32 %v3858_v15 }
 0x60f   :  { %4080 = vrcp.f32 %v9302_v57 }
 0x610   :  { %4082 = vrcp.f32 %v9305_v20 }
 0x613   :  { %v4077_v23 = vpop.eup %4076 }
 0x614   :  { %v9310_v36 = vmul.f32 %v4077_v23, %v2920_v49  ;;  %v4079_v44 = vpop.eup %4078  ;;  %v11439_v23 = vld [vmem:[#allocation30_spill] sm:$0xff]  ;;  %v11440_v49 = vld [vmem:[#allocation65_spill] sm:$0xff] }
 0x615   :  { %v4081_v6 = vpop.eup %4080  ;;  %v9313_v59 = vadd.f32 1.0, %v4079_v44  ;;  %v11441_v44 = vld [vmem:[#allocation31_spill] sm:$0xff] }
 0x616   :  { %3095 = vmatmul.f32.vlgmr.msra.gmra.mxu0 %v9310_v36  ;;  %3115 = vmatmul.f32.vlgmr.msrb.gmra.mxu1 %v9310_v36  ;;  %v4083_v47 = vpop.eup %4082  ;;  %v3021_v63 = vmul.f32 %v4081_v6, %v9302_v57  ;;  %vm3026_vm2 = vweird.f32 %v4081_v6 }
 0x617   :  { %3135 = vmatmul.f32.vlgmr.msra.gmra.mxu2 %v9310_v36  ;;  %3155 = vmatmul.f32.vlgmr.msra.gmra.mxu3 %v9310_v36  ;;  %v3040_v38 = vmul.f32 %v4083_v47, %v9305_v20  ;;  %4084 = vrcp.f32 %v9313_v59  ;;  %vm3045_vm3 = vweird.f32 %v4083_v47  ;;  %vm3027_vm6 = vmor %vm3025_vm4, %vm3026_vm2  ;;  %vm3064_vm11 = vweird.f32 %v9313_v59 }
 0x618   :  { %3307 = vmatpush.msra.mxu0 %v8503_v29  ;;  %3327 = vmatpush.msrb.mxu1 %v4715_v53  ;;  %v3022_v39 = vsub.f32 1.0, %v3021_v63  ;;  %4086 = vtanh.f32 %v3014_v31  ;;  %v3050_v29 = vand.u32 2147483648, %v9305_v20  ;;  %vm3046_vm7 = vmor %vm3044_vm5, %vm3045_vm3  ;;  %v11443_v31 = vld [vmem:[#allocation33_spill] sm:$0xff]  ;;  %v11446_v63 = vld [vmem:[#allocation35_spill] sm:$0xff] }
 0x619   :  { %3347 = vmatpush.msra.mxu2 %v8512_v5  ;;  %3367 = vmatpush.msra.mxu3 %v8518_v17  ;;  %v3041_v16 = vsub.f32 1.0, %v3040_v38  ;;  %v3048_v17 = vand.u32 2147483647, %v9305_v20  ;;  %v11433_v20 = vld [vmem:[#allocation24_spill] sm:$0xff] }
 0x61a   :  { %3308 = vmatpush.msra.mxu0 %v8528_v41  ;;  %3328 = vmatpush.msrb.mxu1 %v8534_v22  ;;  %v3023_v40 = vmul.f32 %v4081_v6, %v3022_v39  ;;  %v11447_v38 = vld [vmem:[#allocation36_spill] sm:$0xff]  ;;  %v11449_v39 = vld [vmem:[#allocation37_spill] sm:$0xff] }
 0x61b   :  { %3348 = vmatpush.msra.mxu2 %v8543_v56  ;;  %3368 = vmatpush.msra.mxu3 %v8549_v10  ;;  %v3042_v5 = vmul.f32 %v4083_v47, %v3041_v16  ;;  %v3032_v56 = vor.u32 1.1754944e-38, %v3031_v52  ;;  %vm3049_vm9 = vcmp.eq.f32.partialorder %v3048_v17, 8.507059e+37  ;;  %v11448_v53 = vld [vmem:[#allocation72_spill] sm:$0xff]  ;;  %v11450_v16 = vld [vmem:[#allocation38_spill] sm:$0xff]  ;;  %v11451_v52 = vld [vmem:[#allocation39_spill] sm:$0xff] }
 0x61c   :  { %3309 = vmatpush.msra.mxu0 %v8555_v35  ;;  %3329 = vmatpush.msrb.mxu1 %v8561_v0  ;;  %v3024_v41 = vadd.f32 %v4081_v6, %v3023_v40  ;;  %v3051_v35 = vor.u32 1.1754944e-38, %v3050_v29  ;;  %v11452_v29 = vld [vmem:[#allocation76_spill] sm:$0xff] }
 0x61d   :  { %3349 = vmatpush.msra.mxu2 %v8567_v1  ;;  %3369 = vmatpush.msra.mxu3 %v8573_v55  ;;  %v4085_v22 = vpop.eup %4084  ;;  %v3043_v10 = vadd.f32 %v4083_v47, %v3042_v5  ;;  %v11453_v40 = vld [vmem:[#allocation40_spill] sm:$0xff]  ;;  %v11455_v5 = vld [vmem:[#allocation42_spill] sm:$0xff] }
 0x61e   :  { %3310 = vmatpush.msra.mxu0 %v8579_v58  ;;  %3330 = vmatpush.msrb.mxu1 %v8585_v14  ;;  %v3028_v0 = vsel %vm3027_vm6, %v4081_v6, %v3024_v41  ;;  %v3060_v1 = vmul.f32 %v4085_v22, %v9313_v59  ;;  %v4087_v55 = vpop.eup %4086  ;;  %vm3065_vm10 = vweird.f32 %v4085_v22  ;;  %v11442_v6 = vld [vmem:[#allocation32_spill] sm:$0xff]  ;;  %v11457_v41 = vld [vmem:[#allocation43_spill] sm:$0xff] }
 0x61f   :  { %3350 = vmatpush.msra.mxu2 %v8593_v2  ;;  %3370 = vmatpush.msra.mxu3 %v8599_v11  ;;  %v3033_v27 = vsel %vm3030_vm8, %v3032_v56, %v3028_v0  ;;  %v3047_v15 = vsel %vm3046_vm7, %v4083_v47, %v3043_v10  ;;  %vm3066_vm12 = vmor %vm3064_vm11, %vm3065_vm10  ;;  %v11445_v47 = vld [vmem:[#allocation34_spill] sm:$0xff]  ;;  %v11456_v17 = vld [vmem:[#allocation80_spill] sm:$0xff] }
 0x620   :  { %3311 = vmatpush.msra.mxu0 %v8605_v46  ;;  %3331 = vmatpush.msrb.mxu1 %v8611_v48  ;;  %v3052_v58 = vsel %vm3049_vm9, %v3051_v35, %v3047_v15  ;;  %v3075_v14 = vmul.f32 %v4087_v55, %v3033_v27  ;;  %v3061_v42 = vsub.f32 1.0, %v3060_v1  ;;  %v3068_v48 = vand.u32 2147483647, %v9313_v59  ;;  %v11459_v56 = vld [vmem:[#allocation45_spill] sm:$0xff]  ;;  %v11460_v10 = vld [vmem:[#allocation84_spill] sm:$0xff]  ;;  %v11461_v35 = vld [vmem:[#allocation46_spill] sm:$0xff] }
 0x621   :  { %3351 = vmatpush.msra.mxu2 %v8621_v13  ;;  %3371 = vmatpush.msra.mxu3 %v8627_v8  ;;  %v3074_v57 = vmul.f32 %v3052_v58, %v8490_v33  ;;  %v3070_v33 = vand.u32 2147483648, %v9313_v59  ;;  %v11421_v8 = vld [vmem:[#allocation110_spill] sm:$0xff]  ;;  %v11444_v59 = vld [vmem:[#allocation68_spill] sm:$0xff]  ;;  %v11462_v0 = vld [vmem:[#allocation47_spill] sm:$0xff] }
 0x622   :  { %3312 = vmatpush.msra.mxu0 %v8633_v45  ;;  %3332 = vmatpush.msrb.mxu1 %v8639_v51  ;;  %v3062_v2 = vmul.f32 %v4085_v22, %v3061_v42  ;;  %v11422_v45 = vld [vmem:[#allocation112_spill] sm:$0xff]  ;;  %vm3069_vm13 = vcmp.eq.f32.partialorder %v3068_v48, 8.507059e+37  ;;  %v11464_v55 = vld [vmem:[#allocation85_spill] sm:$0xff]  ;;  %v11466_v15 = vld [vmem:[#allocation50_spill] sm:$0xff] }
 0x623   :  { %3352 = vmatpush.msra.mxu2 %v8645_v9  ;;  %3372 = vmatpush.msra.mxu3 %v8651_v19  ;;  %v9358_v11 = vadd.f32 %v3075_v14, %v3074_v57  ;;  %v3071_v51 = vor.u32 1.1754944e-38, %v3070_v33  ;;  %v11423_v9 = vld [vmem:[#allocation111_spill] sm:$0xff]  ;;  %v11424_v19 = vld [vmem:[#allocation78_spill] sm:$0xff]  ;;  %v11463_v1 = vld [vmem:[#allocation48_spill] sm:$0xff] }
 0x624   :  { %3313 = vmatpush.msra.mxu0 %v8657_v4  ;;  %3333 = vmatpush.msrb.mxu1 %v8663_v50  ;;  %v3063_v46 = vadd.f32 %v4085_v22, %v3062_v2  ;;  %v11425_v4 = vld [vmem:[#allocation113_spill] sm:$0xff]  ;;  %v11426_v50 = vld [vmem:[#allocation115_spill] sm:$0xff]  ;;  %v11468_v14 = vld [vmem:[#allocation86_spill] sm:$0xff] }
 0x625   :  { %3353 = vmatpush.msra.mxu2 %v8669_v21  ;;  %3373 = vmatpush.msra.mxu3 %v8675_v24  ;;  %4088 = vtanh.f32 %v9358_v11  ;;  %v11465_v27 = vld [vmem:[#allocation49_spill] sm:$0xff]  ;;  %v11467_v58 = vld [vmem:[#allocation51_spill] sm:$0xff]  ;;  %v11469_v42 = vld [vmem:[#allocation52_spill] sm:$0xff] }
 0x626   :  { %3314 = vmatpush.msra.mxu0 %v8681_v25  ;;  %3334 = vmatpush.msrb.mxu1 %v8687_v26  ;;  %v3067_v13 = vsel %vm3066_vm12, %v4085_v22, %v3063_v46  ;;  %v11427_v25 = vld [vmem:[#allocation114_spill] sm:$0xff]  ;;  %v11428_v26 = vld [vmem:[#allocation108_spill] sm:$0xff]  ;;  %v11470_v57 = vld [vmem:[#allocation53_spill] sm:$0xff] }
 0x627   :  { %3354 = vmatpush.msra.mxu2 %v8693_v28  ;;  %3374 = vmatpush.msra.mxu3 %v8699_v30  ;;  %v3072_v24 = vsel %vm3069_vm13, %v3071_v51, %v3067_v13  ;;  %v11429_v30 = vld [vmem:[#allocation22_spill] sm:$0xff]  ;;  %v11458_v22 = vld [vmem:[#allocation44_spill] sm:$0xff]  ;;  %v11472_v46 = vld [vmem:[#allocation87_spill] sm:$0xff] }
 0x628   :  { %3315 = vmatpush.msra.mxu0 %v8705_v43  ;;  %3335 = vmatpush.msrb.mxu1 %v8711_v18  ;;  %v11430_v43 = vld [vmem:[#allocation27_spill] sm:$0xff]  ;;  %v11471_v2 = vld [vmem:[#allocation54_spill] sm:$0xff]  ;;  %v11473_v33 = vld [vmem:[#allocation56_spill] sm:$0xff] }
 0x629   :  { %3355 = vmatpush.msra.mxu2 %v11421_v8  ;;  %3375 = vmatpush.msra.mxu3 %v11422_v45  ;;  %v11431_v18 = vld [vmem:[#allocation23_spill] sm:$0xff]  ;;  %v11474_v48 = vld [vmem:[#allocation57_spill] sm:$0xff]  ;;  %v11475_v13 = vld [vmem:[#allocation58_spill] sm:$0xff] }
 0x62a   :  { %3316 = vmatpush.msra.mxu0 %v11423_v9  ;;  %3336 = vmatpush.msrb.mxu1 %v11424_v19  ;;  %v11476_v8 = vld [vmem:[#allocation89_spill] sm:$0xff]  ;;  %v11477_v45 = vld [vmem:[#allocation59_spill] sm:$0xff]  ;;  %v11478_v51 = vld [vmem:[#allocation60_spill] sm:$0xff] }
 0x62b   :  { %3356 = vmatpush.msra.mxu2 %v11425_v4  ;;  %3376 = vmatpush.msra.mxu3 %v11426_v50  ;;  %v4089_v21 = vpop.eup %4088  ;;  %v11479_v9 = vld [vmem:[#allocation61_spill] sm:$0xff]  ;;  %v11480_v19 = vld [vmem:[#allocation90_spill] sm:$0xff]  ;;  %v11482_v50 = vld [vmem:[#allocation63_spill] sm:$0xff] }
 0x62c   :  { %3317 = vmatpush.msra.mxu0 %v11427_v25  ;;  %3337 = vmatpush.msrb.mxu1 %v11428_v26  ;;  %v3078_v28 = vmul.f32 %v4089_v21, %v3072_v24  ;;  %v11481_v4 = vld [vmem:[#allocation62_spill] sm:$0xff]  ;;  %v11483_v21 = vld [vmem:[#allocation64_spill] sm:$0xff]  ;;  %v11484_v24 = vld [vmem:[#allocation91_spill] sm:$0xff] }
 0x62d   :  { %3357 = vmatpush.msra.mxu2 %v11429_v30  ;;  %3377 = vmatpush.msra.mxu3 %v11430_v43  ;;  %v11485_v25 = vld [vmem:[#allocation66_spill] sm:$0xff]  ;;  %v11486_v26 = vld [vmem:[#allocation67_spill] sm:$0xff]  ;;  %v11488_v30 = vld [vmem:[#allocation92_spill] sm:$0xff] }
 0x62e   :  { %3318 = vmatpush.msra.mxu0 %v11431_v18  ;;  %3338 = vmatpush.msrb.mxu1 %v11432_v3  ;;  %v11489_v43 = vld [vmem:[#allocation70_spill] sm:$0xff]  ;;  %v11490_v18 = vld [vmem:[#allocation71_spill] sm:$0xff]  ;;  %v11491_v3 = vld [vmem:[#allocation73_spill] sm:$0xff] }
 0x62f   :  { %3358 = vmatpush.msra.mxu2 %v11433_v20  ;;  %3378 = vmatpush.msra.mxu3 %v11434_v54  ;;  %v11492_v20 = vld [vmem:[#allocation93_spill] sm:$0xff]  ;;  %v11493_v54 = vld [vmem:[#allocation74_spill] sm:$0xff] }
 0x630   :  { %3175 = vmatmul.f32.vlgmr.msrb.gmra.mxu0 %v3078_v28  ;;  %3195 = vmatmul.f32.vlgmr.msra.gmra.mxu1 %v3078_v28 }
 0x631   :  { %3215 = vmatmul.f32.vlgmr.msrb.gmra.mxu2 %v3078_v28  ;;  %3235 = vmatmul.f32.vlgmr.msrb.gmra.mxu3 %v3078_v28 }
 0x632   :  { %3319 = vmatpush.msra.mxu0 %v11435_v37  ;;  %3339 = vmatpush.msrb.mxu1 %v11436_v34  ;;  %v11494_v37 = vld [vmem:[#allocation75_spill] sm:$0xff]  ;;  %v11495_v34 = vld [vmem:[#allocation77_spill] sm:$0xff] }
 0x633   :  { %3359 = vmatpush.msra.mxu2 %v11437_v62  ;;  %3379 = vmatpush.msra.mxu3 %v11438_v61  ;;  %v11496_v62 = vld [vmem:[#allocation95_spill] sm:$0xff] }
 0x634   :  { %3320 = vmatpush.msra.mxu0 %v11439_v23  ;;  %3340 = vmatpush.msrb.mxu1 %v11440_v49  ;;  %v11497_v61 = vld [vmem:[#allocation79_spill] sm:$0xff]  ;;  %v11498_v23 = vld [vmem:[#allocation81_spill] sm:$0xff]  ;;  %v11499_v49 = vld [vmem:[#allocation82_spill] sm:$0xff] }
 0x635   :  { %3360 = vmatpush.msra.mxu2 %v11441_v44  ;;  %3380 = vmatpush.msra.mxu3 %v11442_v6  ;;  %v11500_v44 = vld [vmem:[#allocation96_spill] sm:$0xff]  ;;  %v11501_v6 = vld [vmem:[#allocation83_spill] sm:$0xff] }
 0x636   :  { %3321 = vmatpush.msra.mxu0 %v11443_v31  ;;  %3341 = vmatpush.msrb.mxu1 %v11444_v59  ;;  %v11502_v31 = vld [vmem:[#allocation100_spill] sm:$0xff]  ;;  %v11503_v59 = vld [vmem:[#allocation101_spill] sm:$0xff] }
 0x637   :  { %3361 = vmatpush.msra.mxu2 %v11445_v47  ;;  %3381 = vmatpush.msra.mxu3 %v11446_v63  ;;  %v11504_v47 = vld [vmem:[#allocation102_spill] sm:$0xff]  ;;  %v11505_v63 = vld [vmem:[#allocation103_spill] sm:$0xff] }
 0x638   :  { %3322 = vmatpush.msra.mxu0 %v11447_v38  ;;  %3342 = vmatpush.msrb.mxu1 %v11448_v53  ;;  %v11506_v38 = vld [vmem:[#allocation116_spill] sm:$0xff]  ;;  %v11507_v53 = vld [vmem:[#allocation117_spill] sm:$0xff] }
 0x639   :  { %3362 = vmatpush.msra.mxu2 %v11449_v39  ;;  %3382 = vmatpush.msra.mxu3 %v11450_v16  ;;  %v11508_v39 = vld [vmem:[#allocation119_spill] sm:$0xff]  ;;  %v11509_v16 = vld [vmem:[#allocation120_spill] sm:$0xff] }
 0x63a   :  { %3323 = vmatmul.f32.vlgmr.msra.gmra.mxu0 %v3078_v28  ;;  %3343 = vmatmul.f32.vlgmr.msrb.gmra.mxu1 %v3078_v28 }
 0x63b   :  { %3363 = vmatmul.f32.vlgmr.msra.gmra.mxu2 %v3078_v28  ;;  %3383 = vmatmul.f32.vlgmr.msra.gmra.mxu3 %v3078_v28  ;;  %v11487_v28 = vld [vmem:[#allocation69_spill] sm:$0xff] }
 0x63c   :  { %3458 = vmatpush.msrb.mxu0 %v11451_v52  ;;  %3478 = vmatpush.msra.mxu1 %v11452_v29  ;;  %v11510_v52 = vld [vmem:[#allocation121_spill] sm:$0xff]  ;;  %v11511_v29 = vld [vmem:[#allocation122_spill] sm:$0xff] }
 0x63d   :  { %3498 = vmatpush.msrb.mxu2 %v11453_v40  ;;  %3518 = vmatpush.msrb.mxu3 %v11454_v7  ;;  %v11512_v40 = vld [vmem:[#allocation123_spill] sm:$0xff]  ;;  %v11513_v7 = vld [vmem:[#allocation126_spill] sm:$0xff] }
 0x63e   :  { %3459 = vmatpush.msrb.mxu0 %v11455_v5  ;;  %3479 = vmatpush.msra.mxu1 %v11456_v17  ;;  %v11514_v5 = vld [vmem:[#allocation124_spill] sm:$0xff]  ;;  %v11515_v17 = vld [vmem:[#allocation125_spill] sm:$0xff] }
 0x63f   :  { %3499 = vmatpush.msrb.mxu2 %v11457_v41  ;;  %3519 = vmatpush.msrb.mxu3 %v11458_v22  ;;  %v11516_v41 = vld [vmem:[#allocation127_spill] sm:$0xff] }
 0x640   :  { %3460 = vmatpush.msrb.mxu0 %v11459_v56  ;;  %3480 = vmatpush.msra.mxu1 %v11460_v10  ;;  %v11517_v22 = vld [vmem:[#allocation131_spill] sm:$0xff]  ;;  %v11518_v56 = vld [vmem:[#allocation128_spill] sm:$0xff]  ;;  %v11519_v10 = vld [vmem:[#allocation129_spill] sm:$0xff] }
 0x641   :  { %3500 = vmatpush.msrb.mxu2 %v11461_v35  ;;  %3520 = vmatpush.msrb.mxu3 %v11462_v0  ;;  %v11520_v35 = vld [vmem:[#allocation133_spill] sm:$0xff]  ;;  %v11521_v0 = vld [vmem:[#allocation136_spill] sm:$0xff] }
 0x642   :  { %3461 = vmatpush.msrb.mxu0 %v11463_v1  ;;  %3481 = vmatpush.msra.mxu1 %v11464_v55  ;;  %v11522_v1 = vld [vmem:[#allocation134_spill] sm:$0xff]  ;;  %v11523_v55 = vld [vmem:[#allocation135_spill] sm:$0xff] }
 0x643   :  { %3501 = vmatpush.msrb.mxu2 %v11465_v27  ;;  %3521 = vmatpush.msrb.mxu3 %v11466_v15  ;;  %v11524_v27 = vld [vmem:[#allocation137_spill] sm:$0xff] }
 0x644   :  { %3462 = vmatpush.msrb.mxu0 %v11467_v58  ;;  %3482 = vmatpush.msra.mxu1 %v11468_v14  ;;  %v11525_v15 = vld [vmem:[#allocation141_spill] sm:$0xff]  ;;  %v11526_v58 = vld [vmem:[#allocation138_spill] sm:$0xff]  ;;  %v11527_v14 = vld [vmem:[#allocation139_spill] sm:$0xff] }
 0x645   :  { %3502 = vmatpush.msrb.mxu2 %v11469_v42  ;;  %3522 = vmatpush.msrb.mxu3 %v11470_v57  ;;  %v11528_v42 = vld [vmem:[#allocation142_spill] sm:$0xff]  ;;  %v11529_v57 = vld [vmem:[#allocation145_spill] sm:$0xff] }
 0x646   :  { %3463 = vmatpush.msrb.mxu0 %v11471_v2  ;;  %3483 = vmatpush.msra.mxu1 %v11472_v46  ;;  %v11530_v2 = vld [vmem:[#allocation143_spill] sm:$0xff]  ;;  %v11531_v46 = vld [vmem:[#allocation144_spill] sm:$0xff] }
 0x647   :  { %3503 = vmatpush.msrb.mxu2 %v11473_v33  ;;  %3523 = vmatpush.msrb.mxu3 %v11474_v48  ;;  %v11532_v33 = vld [vmem:[#allocation146_spill] sm:$0xff]  ;;  %v11533_v48 = vld [vmem:[#allocation149_spill] sm:$0xff] }
 0x648   :  { %3464 = vmatpush.msrb.mxu0 %v11475_v13  ;;  %3484 = vmatpush.msra.mxu1 %v11476_v8  ;;  %v11534_v13 = vld [vmem:[#allocation147_spill] sm:$0xff]  ;;  %v11535_v8 = vld [vmem:[#allocation148_spill] sm:$0xff] }
 0x649   :  { %3504 = vmatpush.msrb.mxu2 %v11477_v45  ;;  %3524 = vmatpush.msrb.mxu3 %v11478_v51  ;;  %v11536_v45 = vld [vmem:[#allocation150_spill] sm:$0xff] }
 0x64a   :  { %3465 = vmatpush.msrb.mxu0 %v11479_v9  ;;  %3485 = vmatpush.msra.mxu1 %v11480_v19  ;;  %v11537_v51 = vld [vmem:[#allocation154_spill] sm:$0xff]  ;;  %v11538_v9 = vld [vmem:[#allocation151_spill] sm:$0xff]  ;;  %v11539_v19 = vld [vmem:[#allocation152_spill] sm:$0xff] }
 0x64b   :  { %3505 = vmatpush.msrb.mxu2 %v11481_v4  ;;  %3525 = vmatpush.msrb.mxu3 %v11482_v50  ;;  %v11540_v4 = vld [vmem:[#allocation156_spill] sm:$0xff]  ;;  %v11541_v50 = vld [vmem:[#allocation159_spill] sm:$0xff] }
 0x64c   :  { %3466 = vmatpush.msrb.mxu0 %v11483_v21  ;;  %3486 = vmatpush.msra.mxu1 %v11484_v24  ;;  %v11542_v21 = vld [vmem:[#allocation157_spill] sm:$0xff]  ;;  %v11543_v24 = vld [vmem:[#allocation158_spill] sm:$0xff] }
 0x64d   :  { %3506 = vmatpush.msrb.mxu2 %v11485_v25  ;;  %3526 = vmatpush.msrb.mxu3 %v11486_v26  ;;  %v11544_v25 = vld [vmem:[#allocation160_spill] sm:$0xff] }
 0x64e   :  { %3467 = vmatpush.msrb.mxu0 %v11487_v28  ;;  %3487 = vmatpush.msra.mxu1 %v11488_v30  ;;  %v11545_v26 = vld [vmem:[#allocation164_spill] sm:$0xff]  ;;  %v11546_v28 = vld [vmem:[#allocation161_spill] sm:$0xff]  ;;  %v11547_v30 = vld [vmem:[#allocation162_spill] sm:$0xff] }
 0x64f   :  { %3507 = vmatpush.msrb.mxu2 %v11489_v43  ;;  %3527 = vmatpush.msrb.mxu3 %v11490_v18  ;;  %v11548_v43 = vld [vmem:[#allocation165_spill] sm:$0xff]  ;;  %v11549_v18 = vld [vmem:[#allocation168_spill] sm:$0xff] }
 0x650   :  { %3468 = vmatpush.msrb.mxu0 %v11491_v3  ;;  %3488 = vmatpush.msra.mxu1 %v11492_v20  ;;  %v11550_v3 = vld [vmem:[#allocation166_spill] sm:$0xff]  ;;  %v11551_v20 = vld [vmem:[#allocation167_spill] sm:$0xff] }
 0x651   :  { %3508 = vmatpush.msrb.mxu2 %v11493_v54  ;;  %3528 = vmatpush.msrb.mxu3 %v11494_v37  ;;  %v11552_v54 = vld [vmem:[#allocation169_spill] sm:$0xff]  ;;  %v11553_v37 = vld [vmem:[#allocation172_spill] sm:$0xff] }
 0x652   :  { %3469 = vmatpush.msrb.mxu0 %v11495_v34  ;;  %3489 = vmatpush.msra.mxu1 %v11496_v62  ;;  %v11554_v34 = vld [vmem:[#allocation170_spill] sm:$0xff]  ;;  %v11555_v62 = vld [vmem:[#allocation171_spill] sm:$0xff] }
 0x653   :  { %3509 = vmatpush.msrb.mxu2 %v11497_v61  ;;  %3529 = vmatpush.msrb.mxu3 %v11498_v23  ;;  %v11556_v61 = vld [vmem:[#allocation173_spill] sm:$0xff]  ;;  %v11557_v23 = vld [vmem:[#allocation178_spill] sm:$0xff] }
 0x654   :  { %3470 = vmatpush.msrb.mxu0 %v11499_v49  ;;  %3490 = vmatpush.msra.mxu1 %v11500_v44  ;;  %v11558_v49 = vld [vmem:[#allocation174_spill] sm:$0xff]  ;;  %v11559_v44 = vld [vmem:[#allocation176_spill] sm:$0xff] }
 0x655   :  { %3510 = vmatpush.msrb.mxu2 %v11501_v6  ;;  %3530 = vmatpush.msrb.mxu3 %v11502_v31  ;;  %v11560_v6 = vld [vmem:[#allocation179_spill] sm:$0xff]  ;;  %v11561_v31 = vld [vmem:[#allocation105_spill] sm:$0xff] }
 0x656   :  { %3471 = vmatpush.msrb.mxu0 %v11503_v59  ;;  %3491 = vmatpush.msra.mxu1 %v11504_v47  ;;  %v11562_v59 = vld [vmem:[#allocation104_spill] sm:$0xff]  ;;  %v11563_v47 = vld [vmem:[#allocation106_spill] sm:$0xff] }
 0x657   :  { %3511 = vmatpush.msrb.mxu2 %v11505_v63  ;;  %3531 = vmatpush.msrb.mxu3 %v11506_v38  ;;  %v11564_v63 = vld [vmem:[#allocation99_spill] sm:$0xff]  ;;  %v11565_v38 = vld [vmem:[#allocation184_spill] sm:$0xff] }
 0x658   :  { %3472 = vmatpush.msrb.mxu0 %v11507_v53  ;;  %3492 = vmatpush.msra.mxu1 %v11508_v39  ;;  %v11566_v53 = vld [vmem:[#allocation182_spill] sm:$0xff]  ;;  %v11567_v39 = vld [vmem:[#allocation183_spill] sm:$0xff] }
 0x659   :  { %3512 = vmatpush.msrb.mxu2 %v11509_v16  ;;  %3532 = vmatpush.msrb.mxu3 %v11510_v52  ;;  %v11568_v16 = vld [vmem:[#allocation185_spill] sm:$0xff]  ;;  %v11569_v52 = vld [vmem:[#allocation188_spill] sm:$0xff] }
 0x65a   :  { %3473 = vmatpush.msrb.mxu0 %v11511_v29  ;;  %3493 = vmatpush.msra.mxu1 %v11512_v40  ;;  %v11570_v29 = vld [vmem:[#allocation186_spill] sm:$0xff]  ;;  %v11571_v40 = vld [vmem:[#allocation187_spill] sm:$0xff] }
 0x65b   :  { %3513 = vmatpush.msrb.mxu2 %v11514_v5  ;;  %3533 = vmatpush.msrb.mxu3 %v11515_v17  ;;  %v11573_v5 = vld [vmem:[#allocation192_spill] sm:$0xff]  ;;  %v11574_v17 = vld [vmem:[#allocation190_spill] sm:$0xff] }
 0x65c   :  { %3538 = vmatpush.msra.mxu0 %v11513_v7  ;;  %3558 = vmatpush.msrb.mxu1 %v11516_v41  ;;  %v11572_v7 = vld [vmem:[#allocation189_spill] sm:$0xff]  ;;  %v11575_v41 = vld [vmem:[#allocation191_spill] sm:$0xff] }
 0x65d   :  { %3578 = vmatpush.msra.mxu2 %v11518_v56  ;;  %3598 = vmatpush.msra.mxu3 %v11519_v10  ;;  %v11577_v56 = vld [vmem:[#allocation194_spill] sm:$0xff]  ;;  %v11578_v10 = vld [vmem:[#allocation195_spill] sm:$0xff] }
 0x65e   :  { %3539 = vmatpush.msra.mxu0 %v11517_v22  ;;  %3559 = vmatpush.msrb.mxu1 %v11520_v35  ;;  %v11576_v22 = vld [vmem:[#allocation193_spill] sm:$0xff] }
 0x65f   :  { %3579 = vmatpush.msra.mxu2 %v11522_v1  ;;  %3599 = vmatpush.msra.mxu3 %v11523_v55 }
 0x660   :  { %3540 = vmatpush.msra.mxu0 %v11521_v0  ;;  %3560 = vmatpush.msrb.mxu1 %v11524_v27 }
 0x661   :  { %3580 = vmatpush.msra.mxu2 %v11526_v58  ;;  %3600 = vmatpush.msra.mxu3 %v11527_v14  ;;  %v11579_v14 = vld [vmem:[#allocation16_spill] sm:$0xff] }
 0x662   :  { %3541 = vmatpush.msra.mxu0 %v11525_v15  ;;  %3561 = vmatpush.msrb.mxu1 %v11528_v42 }
 0x663   :  { %3581 = vmatpush.msra.mxu2 %v11530_v2  ;;  %3601 = vmatpush.msra.mxu3 %v11531_v46 }
 0x664   :  { %3542 = vmatpush.msra.mxu0 %v11529_v57  ;;  %3562 = vmatpush.msrb.mxu1 %v11532_v33  ;;  %v11580_v57 = vld [vmem:[#allocation20_spill] sm:$0xff] }
 0x665   :  { %3582 = vmatpush.msra.mxu2 %v11534_v13  ;;  %3602 = vmatpush.msra.mxu3 %v11535_v8 }
 0x666   :  { %3543 = vmatpush.msra.mxu0 %v11533_v48  ;;  %3563 = vmatpush.msrb.mxu1 %v11536_v45  ;;  %v11581_v45 = vld [vmem:[#allocation26_spill] sm:$0xff] }
 0x667   :  { %3583 = vmatpush.msra.mxu2 %v11538_v9  ;;  %3603 = vmatpush.msra.mxu3 %v11539_v19 }
 0x668   :  { %3544 = vmatpush.msra.mxu0 %v11537_v51  ;;  %3564 = vmatpush.msrb.mxu1 %v11540_v4  ;;  %v11582_v4 = vld [vmem:[#allocation97_spill] sm:$0xff] }
 0x669   :  { %3584 = vmatpush.msra.mxu2 %v11542_v21  ;;  %3604 = vmatpush.msra.mxu3 %v11543_v24  ;;  %v11583_v21 = vld [vmem:[#allocation163_spill] sm:$0xff] }
 0x66a   :  { %3545 = vmatpush.msra.mxu0 %v11541_v50  ;;  %3565 = vmatpush.msrb.mxu1 %v11544_v25 }
 0x66b   :  { %3585 = vmatpush.msra.mxu2 %v11546_v28  ;;  %3605 = vmatpush.msra.mxu3 %v11547_v30  ;;  %v11584_v30 = vld [vmem:[#allocation181_spill] sm:$0xff] }
 0x66c   :  { %3546 = vmatpush.msra.mxu0 %v11545_v26  ;;  %3566 = vmatpush.msrb.mxu1 %v11548_v43 }
 0x66d   :  { %3586 = vmatpush.msra.mxu2 %v11550_v3  ;;  %3606 = vmatpush.msra.mxu3 %v11551_v20 }
 0x66e   :  { %3547 = vmatpush.msra.mxu0 %v11549_v18  ;;  %3567 = vmatpush.msrb.mxu1 %v11552_v54  ;;  %v11585_v18 = vld [vmem:[#allocation180_spill] sm:$0xff] }
 0x66f   :  { %3587 = vmatpush.msra.mxu2 %v11554_v34  ;;  %3607 = vmatpush.msra.mxu3 %v11555_v62 }
 0x670   :  { %3548 = vmatpush.msra.mxu0 %v11553_v37  ;;  %3568 = vmatpush.msrb.mxu1 %v11556_v61 }
 0x671   :  { %3588 = vmatpush.msra.mxu2 %v11558_v49  ;;  %3608 = vmatpush.msra.mxu3 %v11559_v44  ;;  %v11586_v49 = vld [vmem:[#allocation177_spill] sm:$0xff] }
 0x672   :  { %3549 = vmatpush.msra.mxu0 %v11557_v23  ;;  %3569 = vmatpush.msrb.mxu1 %v11560_v6 }
 0x673   :  { %3589 = vmatpush.msra.mxu2 %v11562_v59  ;;  %3609 = vmatpush.msra.mxu3 %v11563_v47 }
 0x674   :  { %3550 = vmatpush.msra.mxu0 %v11561_v31  ;;  %3570 = vmatpush.msrb.mxu1 %v11564_v63  ;;  %v11587_v31 = vld [vmem:[#allocation21_spill] sm:$0xff] }
 0x675   :  { %3590 = vmatpush.msra.mxu2 %v11566_v53  ;;  %3610 = vmatpush.msra.mxu3 %v11567_v39 }
 0x676   :  { %3551 = vmatpush.msra.mxu0 %v11565_v38  ;;  %3571 = vmatpush.msrb.mxu1 %v11568_v16 }
 0x677   :  { %3591 = vmatpush.msra.mxu2 %v11570_v29  ;;  %3611 = vmatpush.msra.mxu3 %v11571_v40 }
 0x678   :  { %3552 = vmatpush.msra.mxu0 %v11569_v52  ;;  %3572 = vmatpush.msrb.mxu1 %v11572_v7 }
 0x679   :  { %3592 = vmatpush.msra.mxu2 %v11574_v17  ;;  %3612 = vmatpush.msra.mxu3 %v11575_v41 }
 0x67a   :  { %3553 = vmatpush.msra.mxu0 %v11573_v5  ;;  %3573 = vmatpush.msrb.mxu1 %v11576_v22 }
 0x67b   :  { %3593 = vmatpush.msra.mxu2 %v11577_v56  ;;  %3613 = vmatpush.msra.mxu3 %v11578_v10 }
 0x693   :  { %v3096_v35 = vpop.f32.mrf.mxu0  ;;  %v3116_v0 = vpop.f32.mrf.mxu1 }
 0x69a   :  { %v3156_v1 = vpop.f32.mrf.mxu3  ;;  %v3136_v46 = vpop.f32.mrf.mxu2 }
 0x6ad   :  { %v3176_v55 = vpop.f32.mrf.mxu0  ;;  %v3196_v27 = vpop.f32.mrf.mxu1 }
 0x6ae   :  { %v3177_v15 = vadd.f32 %v3176_v55, %v3096_v35  ;;  %v3197_v58 = vadd.f32 %v3196_v27, %v3116_v0 }
 0x6b0   :  { %v3239_v42 = vadd.f32 %v3177_v15, %v11579_v14  ;;  %v3240_v2 = vadd.f32 %v3197_v58, %v11580_v57 }
 0x6b2   :  { %v3859_v33 = vmul.f32 -1.442695, %v3239_v42  ;;  %v3860_v48 = vmul.f32 -1.442695, %v3240_v2 }
 0x6b4   :  { %4090 = vpow2.f32 %v3859_v33  ;;  %v3236_v13 = vpop.f32.mrf.mxu3  ;;  %v3216_v28 = vpop.f32.mrf.mxu2 }
 0x6b5   :  { %4092 = vpow2.f32 %v3860_v48  ;;  %v3237_v8 = vadd.f32 %v3236_v13, %v3156_v1  ;;  %v3217_v61 = vadd.f32 %v3216_v28, %v3136_v46 }
 0x6b7   :  { %v3242_v51 = vadd.f32 %v3237_v8, %v11581_v45  ;;  %v3324_v9 = vpop.f32.mrf.mxu0  ;;  %v3344_v19 = vpop.f32.mrf.mxu1  ;;  %v3241_v59 = vadd.f32 %v3217_v61, %v11587_v31 }
 0x6b8   :  { %v3387_v50 = vadd.f32 %v3324_v9, %v11582_v4  ;;  %v3388_v24 = vadd.f32 %v3344_v19, %v11583_v21 }
 0x6b9   :  { %v3861_v25 = vmul.f32 -1.442695, %v3242_v51 }
 0x6ba   :  { %v4091_v26 = vpop.eup %4090  ;;  %v3391_v43 = vadd.f32 %v3387_v50, %v11584_v30  ;;  %v3392_v3 = vadd.f32 %v3388_v24, %v11585_v18 }
 0x6bb   :  { %v4093_v20 = vpop.eup %4092  ;;  %v3246_v54 = vadd.f32 1.0, %v4091_v26  ;;  %4094 = vpow2.f32 %v3861_v25 }
 0x6bc   :  { %v3265_v37 = vadd.f32 1.0, %v4093_v20  ;;  %v3862_v34 = vmul.f32 -1.442695, %v3391_v43  ;;  %v3863_v62 = vmul.f32 -1.442695, %v3392_v3 }
 0x6bd   :  { %4096 = vrcp.f32 %v3246_v54  ;;  %v3256_v17 = vand.u32 2147483647, %v3246_v54  ;;  %v3258_v41 = vand.u32 2147483648, %v3246_v54  ;;  %vm3252_vm1 = vweird.f32 %v3246_v54 }
 0x6be   :  { %4098 = vrcp.f32 %v3265_v37  ;;  %v3384_v23 = vpop.f32.mrf.mxu3  ;;  %v3364_v16 = vpop.f32.mrf.mxu2  ;;  %v3277_v0 = vand.u32 2147483648, %v3265_v37  ;;  %v3275_v27 = vand.u32 2147483647, %v3265_v37  ;;  %vm3271_vm0 = vweird.f32 %v3265_v37 }
 0x6bf   :  { %4100 = vpow2.f32 %v3862_v34  ;;  %v3390_v44 = vadd.f32 %v3384_v23, %v11586_v49  ;;  %v3259_v2 = vor.u32 1.1754944e-38, %v3258_v41  ;;  %vm3257_vm4 = vcmp.eq.f32.partialorder %v3256_v17, 8.507059e+37 }
 0x6c0   :  { %4102 = vpow2.f32 %v3863_v62  ;;  %v3278_v13 = vor.u32 1.1754944e-38, %v3277_v0  ;;  %vm3276_vm5 = vcmp.eq.f32.partialorder %v3275_v27, 8.507059e+37  ;;  %v3708_v27 = vld [vmem:[#allocation9 + $0x70] sm:$0xff] }
 0x6c1   :  { %v4095_v6 = vpop.eup %4094  ;;  %v3394_v63 = vadd.f32 %v3390_v44, %v5992_v60  ;;  %v11588_v60 = vld [vmem:[#allocation175_spill] sm:$0xff] }
 0x6c2   :  { %v9541_v47 = vadd.f32 1.0, %v4095_v6  ;;  %v3389_v35 = vadd.f32 %v3364_v16, %v11588_v60 }
 0x6c3   :  { %v4097_v38 = vpop.eup %4096  ;;  %v3864_v40 = vmul.f32 -1.442695, %v3394_v63 }
 0x6c4   :  { %v4099_v53 = vpop.eup %4098  ;;  %v3248_v39 = vmul.f32 %v4097_v38, %v3246_v54  ;;  %4104 = vrcp.f32 %v9541_v47  ;;  %vm3253_vm14 = vweird.f32 %v4097_v38  ;;  %v3393_v48 = vadd.f32 %v3389_v35, %v6044_v12 }
 0x6c5   :  { %v4101_v52 = vpop.eup %4100  ;;  %v3267_v29 = vmul.f32 %v4099_v53, %v3265_v37  ;;  %4106 = vtanh.f32 %v3241_v59  ;;  %vm3272_vm15 = vweird.f32 %v4099_v53  ;;  %vm3254_vm2 = vmor %vm3252_vm1, %vm3253_vm14  ;;  %vm3291_vm6 = vweird.f32 %v9541_v47 }
 0x6c6   :  { %v4103_v7 = vpop.eup %4102  ;;  %v3249_v5 = vsub.f32 1.0, %v3248_v39  ;;  %v9545_v22 = vadd.f32 1.0, %v4101_v52  ;;  %4108 = vpow2.f32 %v3864_v40  ;;  %vm3273_vm3 = vmor %vm3271_vm0, %vm3272_vm15  ;;  %v3297_v3 = vand.u32 2147483648, %v9541_v47 }
 0x6c7   :  { %v3268_v56 = vsub.f32 1.0, %v3267_v29  ;;  %v9547_v10 = vadd.f32 1.0, %v4103_v7  ;;  %v3295_v44 = vand.u32 2147483647, %v9541_v47 }
 0x6c8   :  { %v3250_v1 = vmul.f32 %v4097_v38, %v3249_v5  ;;  %4110 = vrcp.f32 %v9545_v22  ;;  %v3408_v54 = vand.u32 2147483647, %v9545_v22  ;;  %vm3404_vm10 = vweird.f32 %v9545_v22 }
 0x6c9   :  { %v3269_v55 = vmul.f32 %v4099_v53, %v3268_v56  ;;  %4112 = vrcp.f32 %v9547_v10  ;;  %v3429_v62 = vand.u32 2147483648, %v9547_v10  ;;  %v3427_v49 = vand.u32 2147483647, %v9547_v10 }
 0x6ca   :  { %v9552_v15 = vpop.eup %4104  ;;  %v3251_v58 = vadd.f32 %v4097_v38, %v3250_v1  ;;  %4114 = vtanh.f32 %v3393_v48  ;;  %vm3423_vm12 = vweird.f32 %v9547_v10  ;;  %vm3409_vm15 = vcmp.eq.f32.partialorder %v3408_v54, 8.507059e+37  ;;  %v3709_v1 = vld [vmem:[#allocation9 + $0x78] sm:$0xff] }
 0x6cb   :  { %v4107_v42 = vpop.eup %4106  ;;  %v3270_v46 = vadd.f32 %v4099_v53, %v3269_v55  ;;  %v3287_v33 = vmul.f32 %v9552_v15, %v9541_v47  ;;  %vm3292_vm7 = vweird.f32 %v9552_v15  ;;  %v3430_v29 = vor.u32 1.1754944e-38, %v3429_v62  ;;  %v3705_v48 = vld [vmem:[#allocation9 + $0x58] sm:$0xff] }
 0x6cc   :  { %v3255_v8 = vsel %vm3254_vm2, %v4097_v38, %v3251_v58  ;;  %v4109_v51 = vpop.eup %4108  ;;  %vm9579_vm11 = vmor %vm3291_vm6, %vm3292_vm7  ;;  %v3298_v38 = vor.u32 1.1754944e-38, %v3297_v3  ;;  %vm3428_vm0 = vcmp.eq.f32.partialorder %v3427_v49, 8.507059e+37  ;;  %vm3296_vm1 = vcmp.eq.f32.partialorder %v3295_v44, 8.507059e+37  ;;  %v11592_v3 = vld [vmem:[#allocation107_spill] sm:$0xff] }
 0x6cd   :  { %v3260_v9 = vsel %vm3257_vm4, %v3259_v2, %v3255_v8  ;;  %v3274_v19 = vsel %vm3273_vm3, %v4099_v53, %v3270_v46  ;;  %v3288_v4 = vsub.f32 1.0, %v3287_v33  ;;  %v9557_v25 = vadd.f32 1.0, %v4109_v51  ;;  %v3706_v2 = vld [vmem:[#allocation9 + $0x60] sm:$0xff]  ;;  %v11594_v54 = vld [vmem:[#allocation203_spill] sm:$0xff] }
 0x6ce   :  { %v4111_v50 = vpop.eup %4110  ;;  %v3279_v21 = vsel %vm3276_vm5, %v3278_v13, %v3274_v19  ;;  %v3302_v24 = vmul.f32 %v4107_v42, %v3260_v9  ;;  %v3707_v42 = vld [vmem:[#allocation9 + $0x68] sm:$0xff]  ;;  %v3704_v9 = vld [vmem:[#allocation9 + $0x50] sm:$0xff] }
 0x6cf   :  { %v4113_v26 = vpop.eup %4112  ;;  %v3301_v28 = vmul.f32 %v3279_v21, %v9296_v32  ;;  %v3289_v30 = vmul.f32 %v9552_v15, %v3288_v4  ;;  %v3400_v12 = vmul.f32 %v4111_v50, %v9545_v22  ;;  %4116 = vrcp.f32 %v9557_v25  ;;  %v3703_v19 = vld [vmem:[#allocation9 + $0x48] sm:$0xff]  ;;  %v3702_v4 = vld [vmem:[#allocation9 + $0x40] sm:$0xff]  ;;  %v3700_v21 = vld [vmem:[#allocation9 + $0x30] sm:$0xff] }
 0x6d0   :  { %v3419_v43 = vmul.f32 %v4113_v26, %v9547_v10  ;;  %v3410_v32 = vand.u32 2147483648, %v9545_v22  ;;  %vm3405_vm8 = vweird.f32 %v4111_v50  ;;  %vm3424_vm9 = vweird.f32 %v4113_v26  ;;  %v4115_v6 = vpop.eup %4114 }
 0x6d1   :  { %v9565_v18 = vadd.f32 %v3302_v24, %v3301_v28  ;;  %v3401_v20 = vsub.f32 1.0, %v3400_v12  ;;  %v3290_v34 = vadd.f32 %v9552_v15, %v3289_v30  ;;  %vm3406_vm13 = vmor %vm3404_vm10, %vm3405_vm8  ;;  %v3449_v58 = vand.u32 2147483648, %v9557_v25  ;;  %v3699_v24 = vld [vmem:[#allocation9 + $0x28] sm:$0xff]  ;;  %v3696_v28 = vld [vmem:[#allocation9 + $0x10] sm:$0xff] }
 0x6d2   :  { %v3420_v37 = vsub.f32 1.0, %v3419_v43  ;;  %v3411_v39 = vor.u32 1.1754944e-38, %v3410_v32  ;;  %vm3425_vm14 = vmor %vm3423_vm12, %vm3424_vm9  ;;  %vm3443_vm3 = vweird.f32 %v9557_v25  ;;  %v3695_v30 = vld [vmem:[#allocation9 + $0x8] sm:$0xff]  ;;  %v3694_v12 = vld [vmem:[#allocation9] sm:$0xff] }
 0x6d3   :  { %4118 = vtanh.f32 %v9565_v18  ;;  %v3402_v61 = vmul.f32 %v4111_v50, %v3401_v20  ;;  %v3294_v52 = vsel %vm9579_vm11, %v9552_v15, %v3290_v34  ;;  %v3450_v33 = vor.u32 1.1754944e-38, %v3449_v58  ;;  %v11591_v43 = vld [vmem:[#allocation17_spill] sm:$0xff] }
 0x6d4   :  { %v3421_v23 = vmul.f32 %v4113_v26, %v3420_v37  ;;  %v3299_v10 = vsel %vm3296_vm1, %v3298_v38, %v3294_v52  ;;  %v11593_v20 = vld [vmem:[#allocation109_spill] sm:$0xff]  ;;  %v11595_v37 = vld [vmem:[#allocation19_spill] sm:$0xff] }
 0x6d5   :  { %v3403_v59 = vadd.f32 %v4111_v50, %v3402_v61  ;;  %v4117_v53 = vpop.eup %4116 }
 0x6d6   :  { %v3422_v16 = vadd.f32 %v4113_v26, %v3421_v23  ;;  %v3439_v47 = vmul.f32 %v4117_v53, %v9557_v25  ;;  %vm3444_vm2 = vweird.f32 %v4117_v53 }
 0x6d7   :  { %v3407_v40 = vsel %vm3406_vm13, %v4111_v50, %v3403_v59  ;;  %vm3445_vm4 = vmor %vm3443_vm3, %vm3444_vm2  ;;  %v3701_v50 = vld [vmem:[#allocation9 + $0x38] sm:$0xff] }
 0x6d8   :  { %v3412_v7 = vsel %vm3409_vm15, %v3411_v39, %v3407_v40  ;;  %v3426_v5 = vsel %vm3425_vm14, %v4113_v26, %v3422_v16  ;;  %v3440_v56 = vsub.f32 1.0, %v3439_v47  ;;  %v3697_v26 = vld [vmem:[#allocation9 + $0x18] sm:$0xff] }
 0x6d9   :  { %v4119_v17 = vpop.eup %4118  ;;  %v3431_v41 = vsel %vm3428_vm0, %v3430_v29, %v3426_v5  ;;  %v3454_v22 = vmul.f32 %v4115_v6, %v3412_v7 }
 0x6da   :  { %v3453_v60 = vmul.f32 %v3431_v41, %v9358_v11  ;;  %v3305_v35 = vmul.f32 %v4119_v17, %v3299_v10  ;;  %v3441_v0 = vmul.f32 %v4117_v53, %v3440_v56  ;;  %v3447_v11 = vand.u32 2147483647, %v9557_v25  ;;  %v3698_v25 = vld [vmem:[#allocation9 + $0x20] sm:$0xff] }
 0x6db   :  { %v9604_v17 = vld [vmem:[%s9632_s10] ss:$0 sm:$0xff]  ;;  %s4852_s10 = smov [#allocation11]  }
 0x6dc   :  { %v3455_v55 = vadd.f32 %v3454_v22, %v3453_v60  ;;  %3474 = vmatmul.f32.vlgmr.msrb.gmra.mxu0 %v3305_v35  ;;  %3494 = vmatmul.f32.vlgmr.msra.gmra.mxu1 %v3305_v35  ;;  %v3442_v15 = vadd.f32 %v4117_v53, %v3441_v0  ;;  %vm3448_vm5 = vcmp.eq.f32.partialorder %v3447_v11, 8.507059e+37  ;;  %s3767_s27 = sshll.u32 %s4852_s10, 4  ;;  %s3768_s27 = int_to_ptr.vmem [resolvable:$true] %s3767_s27 }
 0x6dd   :  { %3514 = vmatmul.f32.vlgmr.msrb.gmra.mxu2 %v3305_v35  ;;  %3534 = vmatmul.f32.vlgmr.msrb.gmra.mxu3 %v3305_v35 }
 0x6de   :  { %4120 = vtanh.f32 %v3455_v55  ;;  %3714 = vmatpush.msrb.mxu0 %v3709_v1  ;;  %v3446_v46 = vsel %vm3445_vm4, %v4117_v53, %v3442_v15 }
 0x6df   :  { %v3451_v8 = vsel %vm3448_vm5, %v3450_v33, %v3446_v46 }
 0x6e0   :  { %3715 = vmatpush.msrb.mxu0 %v3708_v27 }
 0x6e2   :  { %3716 = vmatpush.msrb.mxu0 %v3707_v42 }
 0x6e4   :  { %v4121_v13 = vpop.eup %4120  ;;  %3717 = vmatpush.msrb.mxu0 %v3706_v2 }
 0x6e5   :  { %v3457_v51 = vmul.f32 %v4121_v13, %v3451_v8 }
 0x6e6   :  { %3718 = vmatpush.msrb.mxu0 %v3705_v48 }
 0x6e7   :  { %3554 = vmatmul.f32.vlgmr.msra.gmra.mxu0 %v3457_v51  ;;  %3574 = vmatmul.f32.vlgmr.msrb.gmra.mxu1 %v3457_v51 }
 0x6e8   :  { %3594 = vmatmul.f32.vlgmr.msra.gmra.mxu2 %v3457_v51  ;;  %3614 = vmatmul.f32.vlgmr.msra.gmra.mxu3 %v3457_v51 }
 0x6e9   :  { %3719 = vmatpush.msrb.mxu0 %v3704_v9 }
 0x6eb   :  { %3720 = vmatpush.msrb.mxu0 %v3703_v19 }
 0x6ed   :  { %3721 = vmatpush.msrb.mxu0 %v3702_v4 }
 0x6ef   :  { %3722 = vmatpush.msrb.mxu0 %v3701_v50 }
 0x6f1   :  { %3723 = vmatpush.msrb.mxu0 %v3700_v21 }
 0x6f3   :  { %3724 = vmatpush.msrb.mxu0 %v3699_v24 }
 0x6f5   :  { %3725 = vmatpush.msrb.mxu0 %v3698_v25 }
 0x6f7   :  { %3726 = vmatpush.msrb.mxu0 %v3697_v26 }
 0x6f9   :  { %3727 = vmatpush.msrb.mxu0 %v3696_v28 }
 0x6fb   :  { %3728 = vmatpush.msrb.mxu0 %v3695_v30 }
 0x6fd   :  { %3729 = vmatpush.msrb.mxu0 %v3694_v12 }
 0x6fe   :  { %3730 = vmatmul.f32.vlgmr.msrb.gmra.mxu0 %v11591_v43 }
 0x706   :  { %3733 = vmatmul.f32.gmra.mxu0 %v11592_v3 }
 0x70e   :  { %3736 = vmatmul.f32.gmra.mxu0 %v11593_v20 }
 0x716   :  { %3739 = vmatmul.f32.gmra.mxu0 %v11594_v54 }
 0x71e   :  { %3742 = vmatmul.f32.gmra.mxu0 %v11595_v37 }
 0x726   :  { %3745 = vmatmul.f32.gmra.mxu0 %v9310_v36 }
 0x72e   :  { %3748 = vmatmul.f32.gmra.mxu0 %v3305_v35 }
 0x759   :  { %v3475_v32 = vpop.f32.mrf.mxu0  ;;  %v3495_v34 = vpop.f32.mrf.mxu1 }
 0x760   :  { %v3535_v62 = vpop.f32.mrf.mxu3  ;;  %v3515_v63 = vpop.f32.mrf.mxu2 }
 0x764   :  { %v3555_v61 = vpop.f32.mrf.mxu0  ;;  %v3575_v23 = vpop.f32.mrf.mxu1 }
 0x765   :  { %v3556_v49 = vadd.f32 %v3555_v61, %v3475_v32  ;;  %v3576_v44 = vadd.f32 %v3575_v23, %v3495_v34 }
 0x767   :  { %v3618_v6 = vadd.f32 %v3556_v49, %v11579_v14  ;;  %v3619_v59 = vadd.f32 %v3576_v44, %v11580_v57 }
 0x769   :  { %v3865_v38 = vmul.f32 -1.442695, %v3618_v6  ;;  %v3866_v53 = vmul.f32 -1.442695, %v3619_v59 }
 0x76b   :  { %4122 = vpow2.f32 %v3865_v38  ;;  %v3615_v39 = vpop.f32.mrf.mxu3  ;;  %v3595_v5 = vpop.f32.mrf.mxu2 }
 0x76c   :  { %4124 = vpow2.f32 %v3866_v53  ;;  %v3616_v16 = vadd.f32 %v3615_v39, %v3535_v62  ;;  %v3596_v14 = vadd.f32 %v3595_v5, %v3515_v63 }
 0x76e   :  { %v3621_v36 = vadd.f32 %v3616_v16, %v11581_v45  ;;  %v3620_v45 = vadd.f32 %v3596_v14, %v11587_v31 }
 0x770   :  { %v3867_v52 = vmul.f32 -1.442695, %v3621_v36 }
 0x771   :  { %v4123_v29 = vpop.eup %4122 }
 0x772   :  { %v4125_v40 = vpop.eup %4124  ;;  %v3625_v47 = vadd.f32 1.0, %v4123_v29  ;;  %4126 = vpow2.f32 %v3867_v52 }
 0x773   :  { %v3644_v7 = vadd.f32 1.0, %v4125_v40 }
 0x774   :  { %4128 = vrcp.f32 %v3625_v47  ;;  %v3635_v27 = vand.u32 2147483647, %v3625_v47  ;;  %v3637_v15 = vand.u32 2147483648, %v3625_v47  ;;  %vm3631_vm8 = vweird.f32 %v3625_v47 }
 0x775   :  { %4130 = vrcp.f32 %v3644_v7  ;;  %v3656_v58 = vand.u32 2147483648, %v3644_v7  ;;  %v3654_v11 = vand.u32 2147483647, %v3644_v7  ;;  %vm3650_vm9 = vweird.f32 %v3644_v7 }
 0x776   :  { %v3638_v33 = vor.u32 1.1754944e-38, %v3637_v15  ;;  %vm3636_vm12 = vcmp.eq.f32.partialorder %v3635_v27, 8.507059e+37 }
 0x777   :  { %v3657_v8 = vor.u32 1.1754944e-38, %v3656_v58  ;;  %vm3655_vm13 = vcmp.eq.f32.partialorder %v3654_v11, 8.507059e+37 }
 0x778   :  { %v4127_v57 = vpop.eup %4126 }
 0x779   :  { %v3664_v41 = vadd.f32 1.0, %v4127_v57 }
 0x77a   :  { %v4129_v22 = vpop.eup %4128 }
 0x77b   :  { %v4131_v56 = vpop.eup %4130  ;;  %v3627_v10 = vmul.f32 %v4129_v22, %v3625_v47  ;;  %4132 = vrcp.f32 %v3664_v41  ;;  %v3731_v60 = vpop.f32.mrf.mxu0  ;;  %vm3632_vm6 = vweird.f32 %v4129_v22  ;;  %v3676_v3 = vand.u32 2147483648, %v3664_v41 }
 0x77c   :  { %v3646_v35 = vmul.f32 %v4131_v56, %v3644_v7  ;;  %v3732_v0 = vadd.f32 %v9604_v17, %v3731_v60  ;;  %4134 = vtanh.f32 %v3620_v45  ;;  %vm3651_vm7 = vweird.f32 %v4131_v56  ;;  %vm3633_vm10 = vmor %vm3631_vm8, %vm3632_vm6 }
 0x77d   :  { %v3628_v1 = vsub.f32 1.0, %v3627_v10  ;;  %vm3652_vm11 = vmor %vm3650_vm9, %vm3651_vm7  ;;  %vm3670_vm15 = vweird.f32 %v3664_v41  ;;  %v3674_v54 = vand.u32 2147483647, %v3664_v41  ;;  %v3677_v34 = vor.u32 1.1754944e-38, %v3676_v3 }
 0x77e   :  { %v3647_v55 = vsub.f32 1.0, %v3646_v35  ;;  %3755 = vst [vmem:[#allocation11] sm:$0xff] %v3732_v0 }
 0x77f   :  { %v3629_v42 = vmul.f32 %v4129_v22, %v3628_v1  ;;  %vm3675_vm1 = vcmp.eq.f32.partialorder %v3674_v54, 8.507059e+37 }
 0x780   :  { %v3648_v2 = vmul.f32 %v4131_v56, %v3647_v55 }
 0x781   :  { %v4133_v31 = vpop.eup %4132  ;;  %v3630_v46 = vadd.f32 %v4129_v22, %v3629_v42 }
 0x782   :  { %v3649_v48 = vadd.f32 %v4131_v56, %v3648_v2  ;;  %v3666_v13 = vmul.f32 %v4133_v31, %v3664_v41  ;;  %v4135_v19 = vpop.eup %4134  ;;  %vm3671_vm14 = vweird.f32 %v4133_v31 }
 0x783   :  { %v3634_v51 = vsel %vm3633_vm10, %v4129_v22, %v3630_v46  ;;  %v3734_v9 = vpop.f32.mrf.mxu0  ;;  %vm3672_vm0 = vmor %vm3670_vm15, %vm3671_vm14 }
 0x784   :  { %v3639_v4 = vsel %vm3636_vm12, %v3638_v33, %v3634_v51  ;;  %v3735_v50 = vadd.f32 %v9604_v17, %v3734_v9  ;;  %v3653_v21 = vsel %vm3652_vm11, %v4131_v56, %v3649_v48  ;;  %v3667_v24 = vsub.f32 1.0, %v3666_v13 }
 0x785   :  { %v3681_v25 = vmul.f32 %v4135_v19, %v3639_v4  ;;  %v3658_v26 = vsel %vm3655_vm13, %v3657_v8, %v3653_v21 }
 0x786   :  { %3756 = vst [vmem:[#allocation11 + $0x8] sm:$0xff] %v3735_v50  ;;  %v3668_v28 = vmul.f32 %v4133_v31, %v3667_v24  ;;  %v3680_v30 = vmul.f32 %v3658_v26, %v9565_v18 }
 0x788   :  { %v3682_v12 = vadd.f32 %v3681_v25, %v3680_v30  ;;  %v3669_v43 = vadd.f32 %v4133_v31, %v3668_v28 }
 0x78a   :  { %4136 = vtanh.f32 %v3682_v12  ;;  %v3673_v32 = vsel %vm3672_vm0, %v4133_v31, %v3669_v43 }
 0x78b   :  { %v3737_v20 = vpop.f32.mrf.mxu0  ;;  %v3678_v61 = vsel %vm3675_vm1, %v3677_v34, %v3673_v32 }
 0x78c   :  { %v3738_v37 = vadd.f32 %v9604_v17, %v3737_v20 }
 0x78e   :  { %3757 = vst [vmem:[#allocation11 + $0x10] sm:$0xff] %v3738_v37 }
 0x790   :  { %v4137_v62 = vpop.eup %4136 }
 0x791   :  { %v3684_v23 = vmul.f32 %v4137_v62, %v3678_v61 }
 0x793   :  { %3751 = vmatmul.f32.gmra.mxu0 %v3684_v23  ;;  %v3740_v18 = vpop.f32.mrf.mxu0 }
 0x794   :  { %v3741_v49 = vadd.f32 %v9604_v17, %v3740_v18 }
 0x796   :  { %3758 = vst [vmem:[#allocation11 + $0x18] sm:$0xff] %v3741_v49 }
 0x79b   :  { %v3743_v44 = vpop.f32.mrf.mxu0 }
 0x79c   :  { %v3744_v6 = vadd.f32 %v9604_v17, %v3743_v44 }
 0x79e   :  { %3759 = vst [vmem:[#allocation11 + $0x20] sm:$0xff] %v3744_v6 }
 0x7a3   :  { %v3746_v59 = vpop.f32.mrf.mxu0 }
 0x7a4   :  { %v3747_v63 = vadd.f32 %v9604_v17, %v3746_v59 }
 0x7a6   :  { %3760 = vst [vmem:[#allocation11 + $0x28] sm:$0xff] %v3747_v63 }
 0x7ab   :  { %v3749_v38 = vpop.f32.mrf.mxu0 }
 0x7ac   :  { %v3750_v53 = vadd.f32 %v9604_v17, %v3749_v38 }
 0x7ae   :  { %3761 = vst [vmem:[#allocation11 + $0x30] sm:$0xff] %v3750_v53 }
 0x810   :  { %v3752_v39 = vpop.f32.mrf.mxu0 }
 0x811   :  { %v3753_v16 = vadd.f32 %v9604_v17, %v3752_v39 }
 0x813   :  { %3762 = vst [vmem:[#allocation11 + $0x38] sm:$0xff] %v3753_v16 }
 0x814   :  { %3775 = dma.vmem_to_hbm [thread:$0]  %s3768_s27, 1024, %s3770_s6, [#allocation5], %s4850_s18, %s4850_s18, %s4851_s19  }
 0x815   :  { %4842 = dma.done.wait [#allocation5], 1024  }
 0x816   :  { %4843 = vsyncadd [#allocation5], 4294966272 }
 0x817   :  { %3780 = vsyncpa [#allocation4], 1 }
 0x818   :  { %3781 = vsyncpa [#allocation7], 1 }
 0x819   :  { %3782 = vsyncpa [#allocation10], 1 }
 0x81a   :  { %3783 = vsyncpa [#allocation5], 1 }

</bundles_post_ra>
